<compile_context>
chip_gen: v7x
topology: tpu7x:2x2x1
jax: 0.10.0
libtpu: 0.0.40
codegen_flags: <defaults>
</compile_context>

<pallas_src>
import functools

import jax
import jax.numpy as jnp
from jax.experimental import pallas as pl
from jax.experimental.pallas import tpu as pltpu

TM = 512                          # M tile for the im2col matmul kernels


def _vmem_limit_bytes():
    """Generation-aware scoped-VMEM limit (~3/4 of physical, capped at 100 MiB)."""
    try:
        cap = pltpu.get_tpu_info().vmem_capacity_bytes
    except Exception:
        cap = 64 * 1024 * 1024
    return int(min(cap * 3 // 4, 100 * 1024 * 1024))


VMEM_LIMIT = _vmem_limit_bytes()


def _round_up(x, m):
    return ((x + m - 1) // m) * m


def _pick_embed_rows(h2, w1, target=32):
    """Rows of feat2 per embed block: big (amortise grid overhead) but 128-lane clean."""
    if h2 <= target:
        return h2                                    # block == full extent, always legal
    best = None
    for r in range(1, target + 1):
        if h2 % r == 0 and (2 * r * w1) % 128 == 0:
            best = r
    return best if best is not None else h2


# ---------------------------------------------------------------------------
# Pallas kernels
# ---------------------------------------------------------------------------
def _mm_kernel(x_ref, w_ref, b_ref, o_ref, *, act):
    """(TM, K) @ (K, C) + bias (+ SiLU). BN scale is pre-folded into W."""
    acc = jnp.dot(x_ref[...], w_ref[...], preferred_element_type=jnp.float32)
    acc = acc + b_ref[...]
    if act:
        acc = acc * jax.nn.sigmoid(acc)              # SiLU
    o_ref[...] = acc.astype(o_ref.dtype)


def _mm2_kernel(x_ref, we_ref, be_ref, wp_ref, bp_ref, o_ref):
    """FusedMBConv stride-2 block: expand matmul + SiLU + 1x1 project fused.
    The expanded activation stays in VMEM/registers."""
    a = jnp.dot(x_ref[...], we_ref[...], preferred_element_type=jnp.float32)
    a = a + be_ref[...]
    a = a * jax.nn.sigmoid(a.astype(jnp.bfloat16)).astype(jnp.float32)   # bf16 EUP
    p = jnp.dot(a.astype(jnp.bfloat16), wp_ref[...],
                preferred_element_type=jnp.float32)
    p = p + bp_ref[...]
    o_ref[...] = p.astype(o_ref.dtype)


def _make_stage1_kernel(ho, wo, c, nblk):
    """nblk x FusedMBConv(expand=1): conv3x3+BN+SiLU + residual, chained in VMEM.

    Feature map kept in "format F": per image a 2D (ZT + Ho*Wp + ZB, C) array,
    data position (h, w) at row ZT + h*Wp + w (Wp = Wo+2); the 2 extra columns per
    row and the top/bottom row blocks are zero and act as conv zero padding, so a
    3x3 conv is 9 accumulated matmuls on contiguous row slices.
    """
    wp = wo + 2
    L = ho * wp
    zt = wp + 1

    def kernel(x_ref, w_ref, b_ref, o_ref, cur_ref):
        cur_ref[...] = x_ref[...].astype(jnp.float32)
        rows = jax.lax.broadcasted_iota(jnp.int32, (L, 1), 0)
        valid = (rows % wp) < wo                       # mask out pad columns

        @pl.loop(0, nblk)                              # scf.for: bounded live ranges
        def _(blk):
            acc = jnp.zeros((L, c), jnp.float32)
            for t in range(9):
                di, dj = divmod(t, 3)
                lhs = cur_ref[pl.ds(di * wp + dj, L), :].astype(jnp.bfloat16)
                acc = acc + jnp.dot(lhs, w_ref[blk * 9 + t],
                                    preferred_element_type=jnp.float32)
            acc = acc + b_ref[blk]
            acc = acc * jax.nn.sigmoid(acc)            # SiLU
            acc = acc + cur_ref[pl.ds(zt, L), :]       # residual (eval mode)
            cur_ref[pl.ds(zt, L), :] = jnp.where(valid, acc, 0.0)

        o_ref[...] = cur_ref[...].astype(o_ref.dtype)

    return kernel


def _make_stage2_kernel(ho, wo, c, nblk):
    """nblk x FusedMBConv(expand=4, s1): expand3x3+SiLU, project1x1+BN, residual.
    All blocks chained per image; the 4x-expanded activation never leaves VMEM."""
    wp = wo + 2
    L = ho * wp
    zt = wp + 1

    def kernel(x_ref, we_ref, be_ref, wpj_ref, bpj_ref, o_ref, cur_ref):
        cur_ref[...] = x_ref[...].astype(jnp.float32)
        rows = jax.lax.broadcasted_iota(jnp.int32, (L, 1), 0)
        valid = (rows % wp) < wo
        e = we_ref.shape[-1]

        @pl.loop(0, nblk)
        def _(blk):
            acc = jnp.zeros((L, e), jnp.float32)
            for t in range(9):
                di, dj = divmod(t, 3)
                lhs = cur_ref[pl.ds(di * wp + dj, L), :].astype(jnp.bfloat16)
                acc = acc + jnp.dot(lhs, we_ref[blk * 9 + t],
                                    preferred_element_type=jnp.float32)
            acc = acc + be_ref[blk]
            # SiLU: sigmoid in bf16 (EUP relief); product kept in f32
            acc = acc * jax.nn.sigmoid(acc.astype(jnp.bfloat16)).astype(jnp.float32)
            proj = jnp.dot(acc.astype(jnp.bfloat16), wpj_ref[blk],
                           preferred_element_type=jnp.float32)      # 1x1 project
            proj = proj + bpj_ref[blk]
            proj = proj + cur_ref[pl.ds(zt, L), :]                  # residual
            cur_ref[pl.ds(zt, L), :] = jnp.where(valid, proj, 0.0)

        o_ref[...] = cur_ref[...].astype(o_ref.dtype)

    return kernel


def _make_embed_kernel(r2, w1, c1, c2):
    """Per block: height-repeat feat2, concat channels, per-block min/max partials,
    transpose to channel-major and store a lane-dense (96, rows*W) NCHW slab."""
    ce = c1 + c2
    L = 2 * r2 * w1

    def kernel(f1_ref, f2_ref, emb_ref, min_ref, max_ref):
        f1 = f1_ref[...].astype(jnp.float32)                        # (2*r2, w1, c1)
        f2 = f2_ref[...].astype(jnp.float32)                        # (r2,  w1, c2)
        # nearest 2x height repeat (leading-dim broadcast + free reshape)
        f2r = jnp.broadcast_to(f2[:, None], (r2, 2, w1, c2)).reshape(2 * r2, w1, c2)
        emb = jnp.concatenate([f1, f2r], axis=-1).reshape(L, ce)    # (L, 96) f32
        # per-block partial min/max (reduced in the wrapper -> grid stays parallel)
        min_ref[...] = jnp.min(emb, axis=0, keepdims=True).min(axis=1, keepdims=True)
        max_ref[...] = jnp.max(emb, axis=0, keepdims=True).max(axis=1, keepdims=True)
        # channel-major, lane-dense store (NCHW comes out for free after reshape)
        emb_ref[...] = jnp.transpose(emb.astype(emb_ref.dtype))     # (96, L)

    return kernel


# ---------------------------------------------------------------------------
# pallas_call wrappers
# ---------------------------------------------------------------------------
def _conv_mm_call(patches, w, b, *, act):
    m, k = patches.shape
    cout = w.shape[1]
    tm = TM if m >= TM else _round_up(m, 8)
    m_pad = _round_up(m, tm)
    if m_pad != m:
        patches = jnp.pad(patches, ((0, m_pad - m), (0, 0)))
    out = pl.pallas_call(
        functools.partial(_mm_kernel, act=act),
        out_shape=jax.ShapeDtypeStruct((m_pad, cout), jnp.bfloat16),
        grid=(m_pad // tm,),
        in_specs=[pl.BlockSpec((tm, k), lambda i: (i, 0)),
                  pl.BlockSpec((k, cout), lambda i: (0, 0)),
                  pl.BlockSpec((1, cout), lambda i: (0, 0))],
        out_specs=pl.BlockSpec((tm, cout), lambda i: (i, 0)),
        compiler_params=pltpu.CompilerParams(
            dimension_semantics=("parallel",), vmem_limit_bytes=VMEM_LIMIT),
    )(patches, w, b)
    if m_pad != m:
        out = out[:m]
    return out


def _mbconv0_call(patches, we, be, wp, bp):
    m, k = patches.shape
    e = we.shape[1]
    cout = wp.shape[1]
    tm = TM if m >= TM else _round_up(m, 8)
    m_pad = _round_up(m, tm)
    if m_pad != m:
        patches = jnp.pad(patches, ((0, m_pad - m), (0, 0)))
    out = pl.pallas_call(
        _mm2_kernel,
        out_shape=jax.ShapeDtypeStruct((m_pad, cout), jnp.bfloat16),
        grid=(m_pad // tm,),
        in_specs=[pl.BlockSpec((tm, k), lambda i: (i, 0)),
                  pl.BlockSpec((k, e), lambda i: (0, 0)),
                  pl.BlockSpec((1, e), lambda i: (0, 0)),
                  pl.BlockSpec((e, cout), lambda i: (0, 0)),
                  pl.BlockSpec((1, cout), lambda i: (0, 0))],
        out_specs=pl.BlockSpec((tm, cout), lambda i: (i, 0)),
        compiler_params=pltpu.CompilerParams(
            dimension_semantics=("parallel",), vmem_limit_bytes=VMEM_LIMIT),
    )(patches, we, be, wp, bp)
    if m_pad != m:
        out = out[:m]
    return out


def _run_stage1(P, xf, ho, wo):
    n, rf, c = xf.shape
    nblk = P["s1_b"].shape[0]
    kern = _make_stage1_kernel(ho, wo, c, nblk)
    return pl.pallas_call(
        kern,
        out_shape=jax.ShapeDtypeStruct((n, rf, c), jnp.bfloat16),
        grid=(n,),
        in_specs=[pl.BlockSpec((None, rf, c), lambda i: (i, 0, 0)),
                  pl.BlockSpec(P["s1_w"].shape, lambda i: (0, 0, 0)),
                  pl.BlockSpec(P["s1_b"].shape, lambda i: (0, 0, 0))],
        out_specs=pl.BlockSpec((None, rf, c), lambda i: (i, 0, 0)),
        scratch_shapes=[pltpu.VMEM((rf, c), jnp.float32)],
        compiler_params=pltpu.CompilerParams(
            dimension_semantics=("parallel",), vmem_limit_bytes=VMEM_LIMIT),
    )(xf, P["s1_w"], P["s1_b"])


def _run_stage2(P, xf, ho, wo):
    n, rf, c = xf.shape
    nblk = P["s2_be"].shape[0]
    kern = _make_stage2_kernel(ho, wo, c, nblk)
    return pl.pallas_call(
        kern,
        out_shape=jax.ShapeDtypeStruct((n, rf, c), jnp.bfloat16),
        grid=(n,),
        in_specs=[pl.BlockSpec((None, rf, c), lambda i: (i, 0, 0)),
                  pl.BlockSpec(P["s2_we"].shape, lambda i: (0, 0, 0)),
                  pl.BlockSpec(P["s2_be"].shape, lambda i: (0, 0, 0)),
                  pl.BlockSpec(P["s2_wp"].shape, lambda i: (0, 0, 0)),
                  pl.BlockSpec(P["s2_bp"].shape, lambda i: (0, 0, 0))],
        out_specs=pl.BlockSpec((None, rf, c), lambda i: (i, 0, 0)),
        scratch_shapes=[pltpu.VMEM((rf, c), jnp.float32)],
        compiler_params=pltpu.CompilerParams(
            dimension_semantics=("parallel",), vmem_limit_bytes=VMEM_LIMIT),
    )(xf, P["s2_we"], P["s2_be"], P["s2_wp"], P["s2_bp"])


def _run_embed(feat1, feat2w, prev_min, prev_max):
    """Fused: nearest 2x H-repeat of feat2 + channel concat + NCHW transpose +
    per-block min/max partials. Output is bf16, channel-major, lane-dense."""
    n, h1, w1, c1 = feat1.shape
    _, h2, _, c2 = feat2w.shape
    ce = c1 + c2
    r2 = _pick_embed_rows(h2, w1)
    nrb = h2 // r2
    kern = _make_embed_kernel(r2, w1, c1, c2)

    emb, mins, maxs = pl.pallas_call(
        kern,
        out_shape=(jax.ShapeDtypeStruct((n, ce, h1 * w1), jnp.bfloat16),
                   jax.ShapeDtypeStruct((n, nrb, 1, 1), jnp.float32),
                   jax.ShapeDtypeStruct((n, nrb, 1, 1), jnp.float32)),
        grid=(n, nrb),
        in_specs=[pl.BlockSpec((None, 2 * r2, w1, c1), lambda i, r: (i, r, 0, 0)),
                  pl.BlockSpec((None, r2, w1, c2), lambda i, r: (i, r, 0, 0))],
        out_specs=(pl.BlockSpec((None, ce, 2 * r2 * w1), lambda i, r: (i, 0, r)),
                   pl.BlockSpec((None, None, 1, 1), lambda i, r: (i, r, 0, 0)),
                   pl.BlockSpec((None, None, 1, 1), lambda i, r: (i, r, 0, 0))),
        compiler_params=pltpu.CompilerParams(
            dimension_semantics=("parallel", "parallel"),
            vmem_limit_bytes=VMEM_LIMIT),
    )(feat1, feat2w)

    new_min = jnp.minimum(prev_min, jnp.min(mins))
    new_max = jnp.maximum(prev_max, jnp.max(maxs))
    emb_nchw = emb.reshape(n, ce, h1, w1)          # free reshape (contiguous)
    return emb_nchw, new_min, new_max


# ---------------------------------------------------------------------------
# Layout helpers (cheap XLA glue in the wrapper)
# ---------------------------------------------------------------------------
def _im2col(x, kh, kw, stride, pad):
    """Wrapper-side im2col -- only used for the two stride-2 convs (stem, stage2[0])."""
    n, h, w, c = x.shape
    xp = jnp.pad(x, ((0, 0), (pad, pad), (pad, pad), (0, 0)))
    ho = (h + 2 * pad - kh) // stride + 1
    wo = (w + 2 * pad - kw) // stride + 1
    cols = []
    for i in range(kh):
        for j in range(kw):
            cols.append(
                xp[:, i:i + (ho - 1) * stride + 1:stride,
                      j:j + (wo - 1) * stride + 1:stride, :])
    patches = jnp.concatenate(cols, axis=-1)
    return patches.reshape(n * ho * wo, kh * kw * c), (n, ho, wo)


def _to_format_f(x):
    """NHWC -> per-image row-flattened padded layout used by the fused stage kernels."""
    n, h, w, c = x.shape
    wp = w + 2
    zt, zb = wp + 1, wp + 7
    xp = jnp.pad(x, ((0, 0), (0, 0), (0, 2), (0, 0)))    # 2 zero cols per row
    xf = xp.reshape(n, h * wp, c)
    return jnp.pad(xf, ((0, 0), (zt, zb), (0, 0)))       # top/bottom zero row blocks


def _from_format_f(xf, h, w):
    n, _, c = xf.shape
    wp = w + 2
    zt = wp + 1
    data = xf[:, zt:zt + h * wp, :].reshape(n, h, wp, c)
    return data[:, :, :w, :]


# ---------------------------------------------------------------------------
# Deterministic synthetic parameters (BN folded: scale into W, bias kept)
# ---------------------------------------------------------------------------
def _init_conv(key, kh, kw, cin, cout):
    k1, k2, k3 = jax.random.split(key, 3)
    fan_in = kh * kw * cin
    return {
        "w": jax.random.normal(k1, (kh, kw, cin, cout), jnp.float32)
             * (2.0 / fan_in) ** 0.5,
        "scale": 1.0 + 0.05 * jax.random.normal(k2, (cout,), jnp.float32),
        "bias": 0.05 * jax.random.normal(k3, (cout,), jnp.float32),
    }


def init_params(key):
    keys = iter(jax.random.split(key, 32))
    params = {"stem": _init_conv(next(keys), 3, 3, 3, 32),
              "stage1": [_init_conv(next(keys), 3, 3, 32, 32) for _ in range(4)]}
    stage2 = []
    for i in range(7):
        cin = 32 if i == 0 else 64
        stage2.append({"expand": _init_conv(next(keys), 3, 3, cin, cin * 4),
                       "project": _init_conv(next(keys), 1, 1, cin * 4, 64)})
    params["stage2"] = stage2
    return params


def _fold(p):
    """Fold BN scale into conv weights; return bf16 weight + f32 bias."""
    w = (p["w"] * p["scale"]).astype(jnp.bfloat16)
    return w, p["bias"].astype(jnp.float32)


def prepare_params(raw):
    P = {}
    w, b = _fold(raw["stem"])
    P["stem_w"] = w.reshape(-1, w.shape[-1])                              # (27, 32)
    P["stem_b"] = b.reshape(1, -1)
    # stage1: weights flattened to (nblk*9, 32, 32) for dynamic per-block indexing
    P["s1_w"] = jnp.concatenate(
        [_fold(blk)[0].reshape(9, 32, 32) for blk in raw["stage1"]], axis=0)
    P["s1_b"] = jnp.stack([_fold(blk)[1].reshape(1, 32) for blk in raw["stage1"]])
    b0 = raw["stage2"][0]
    we, be = _fold(b0["expand"])
    wp, bp = _fold(b0["project"])
    P["s20_we"] = we.reshape(-1, we.shape[-1])                            # (288, 128)
    P["s20_be"] = be.reshape(1, -1)
    P["s20_wp"] = wp.reshape(-1, wp.shape[-1])                            # (128, 64)
    P["s20_bp"] = bp.reshape(1, -1)
    rest = raw["stage2"][1:]
    P["s2_we"] = jnp.concatenate(
        [_fold(blk["expand"])[0].reshape(9, 64, 256) for blk in rest], axis=0)
    P["s2_be"] = jnp.stack([_fold(blk["expand"])[1].reshape(1, 256) for blk in rest])
    P["s2_wp"] = jnp.stack([_fold(blk["project"])[0].reshape(256, 64) for blk in rest])
    P["s2_bp"] = jnp.stack([_fold(blk["project"])[1].reshape(1, 64) for blk in rest])
    return P


# ---------------------------------------------------------------------------
# Forward pass
# ---------------------------------------------------------------------------
def padim_forward(params, x_nchw, prev_min, prev_max):
    n, _, h, w = x_nchw.shape
    assert h % 4 == 0 and w % 4 == 0, "input H/W must be divisible by 4"
    h1, w1, h2, w2 = h // 2, w // 2, h // 4, w // 4

    x = jnp.transpose(x_nchw, (0, 2, 3, 1)).astype(jnp.bfloat16)   # NHWC bf16

    # features[0]: stem conv3x3 s2 + folded-BN + SiLU (im2col matmul kernel)
    p0, _ = _im2col(x, 3, 3, 2, 1)
    f = _conv_mm_call(p0, params["stem_w"], params["stem_b"], act=True)
    f = f.reshape(n, h1, w1, 32)

    # features[1]: 4x FusedMBConv(e=1) fused into ONE per-image kernel
    feat1 = _from_format_f(_run_stage1(params, _to_format_f(f), h1, w1), h1, w1)

    # features[2] block 0 (stride 2): fused expand(3x3,SiLU)+project(1x1) kernel.
    # TODO(synk): the stride-2 taps could be read in-kernel from format-F with
    # strided pl.ds loads to avoid this im2col materialisation.
    p1, _ = _im2col(feat1, 3, 3, 2, 1)
    g = _mbconv0_call(p1, params["s20_we"], params["s20_be"],
                      params["s20_wp"], params["s20_bp"])
    g = g.reshape(n, h2, w2, 64)

    # features[2] blocks 1..6: fused into ONE per-image kernel
    feat2 = _from_format_f(_run_stage2(params, _to_format_f(g), h2, w2), h2, w2)

    # generate_embedding(): nearest 2x upsample of features_2, concat, running min/max.
    # (index_select with arange(96) is an identity gather -> dropped.)
    # Width-repeat kept in the wrapper (lane interleave; fuses with the format-F
    # unpack into one XLA pass); height-repeat, concat, NCHW transpose and the
    # min/max partials are fused in the embed kernel.
    feat2w = jnp.broadcast_to(feat2[:, :, :, None, :],
                              (n, h2, w2, 2, 64)).reshape(n, h2, w1, 64)
    emb, new_min, new_max = _run_embed(feat1, feat2w, prev_min, prev_max)
    return emb, new_min, new_max                                   # NCHW (bf16)


class PadimModel:
    """JAX/Pallas re-implementation of the PyTorch PadimModel forward pass."""

    def __init__(self, input_size, backbone, layers, key):
        self.backbone = backbone
        self.layers = layers
        self.input_size = input_size
        self.params = prepare_params(init_params(key))
        # _deduce_dim(): features_1 -> 32 ch @ (H/2,W/2); features_2 -> 64 ch @ (H/4,W/4)
        self.n_features_original = 32 + 64
        self.n_patches = (input_size[0] // 2) * (input_size[1] // 2)
        self.idx = jnp.arange(self.n_features_original, dtype=jnp.int32)
        self.min = jnp.array(jnp.inf, jnp.float32)
        self.max = jnp.array(-jnp.inf, jnp.float32)
        self._fwd = jax.jit(padim_forward)
        # TODO(synk): AnomalyMapGenerator / MultiVariateGaussian are built in __init__
        # of the reference module but never used in forward(); omitted.

    def __call__(self, x):
        emb, new_min, new_max = self._fwd(self.params, x, self.min, self.max)
        self.min = new_min
        self.max = new_max
        return emb


if __name__ == "__main__":
    key = jax.random.PRNGKey(0)
    kx, kp = jax.random.split(key)
    input_size = (32, 32)
    model = PadimModel(input_size=input_size,
                       backbone="efficientnet_v2_l",
                       layers=["features_1", "features_2"],
                       key=kp)
    x = jax.random.normal(kx, (2, 3, *input_size), jnp.float32)

    emb = model(x)
    emb = jax.block_until_ready(emb)

    expected = (2, model.n_features_original, input_size[0] // 2, input_size[1] // 2)
    assert emb.shape == expected, (emb.shape, expected)
    assert bool(jnp.isfinite(model.min)) and bool(jnp.isfinite(model.max))
    assert float(model.min) <= float(model.max)
    print("KERNEL_OK")
</pallas_src>

<mosaic_0001>
module attributes {stable_mosaic.version = 11 : i64} {
  func.func @_mm_kernel(%arg0: i32, %arg1: memref<512x27xbf16, #tpu.memory_space<vmem>>, %arg2: memref<27x32xbf16, #tpu.memory_space<vmem>>, %arg3: memref<1x32xf32, #tpu.memory_space<vmem>>, %arg4: memref<512x32xbf16, #tpu.memory_space<vmem>>) attributes {dimension_semantics = [#tpu.dimension_semantics<parallel>], iteration_bounds = array<i64: 1>, scalar_prefetch = 0 : i64, scratch_operands = 0 : i64, tpu.core_type = #tpu.core_type<tc>, window_params = [{transform_indices = @transform_0, window_bounds = array<i64: 512, 27>}, {pipeline_mode = #tpu.pipeline_mode<synchronous>, transform_indices = @transform_1, window_bounds = array<i64: 27, 32>}, {pipeline_mode = #tpu.pipeline_mode<synchronous>, transform_indices = @transform_2, window_bounds = array<i64: 1, 32>}, {transform_indices = @transform_3, window_bounds = array<i64: 512, 32>}]} {
    %c0 = arith.constant 0 : index
    %c0_0 = arith.constant 0 : index
    %0 = vector.load %arg1[%c0, %c0_0] : memref<512x27xbf16, #tpu.memory_space<vmem>>, vector<512x27xbf16>
    %c0_1 = arith.constant 0 : index
    %c0_2 = arith.constant 0 : index
    %1 = vector.load %arg2[%c0_1, %c0_2] : memref<27x32xbf16, #tpu.memory_space<vmem>>, vector<27x32xbf16>
    %cst = arith.constant dense<0.000000e+00> : vector<512x32xf32>
    %2 = tpu.matmul %0, %1, %cst {dimension_numbers = #tpu.dot_dimension_numbers<[1], [0], [0], [1], [0, 0, 1, 1], [], []>} : vector<512x27xbf16>, vector<27x32xbf16>, vector<512x32xf32> -> vector<512x32xf32>
    %c0_3 = arith.constant 0 : index
    %c0_4 = arith.constant 0 : index
    %3 = vector.load %arg3[%c0_3, %c0_4] : memref<1x32xf32, #tpu.memory_space<vmem>>, vector<1x32xf32>
    %4 = vector.broadcast %3 : vector<1x32xf32> to vector<512x32xf32>
    %5 = arith.addf %2, %4 : vector<512x32xf32>
    %6 = arith.negf %5 : vector<512x32xf32>
    %7 = math.exp %6 : vector<512x32xf32>
    %cst_5 = arith.constant 1.000000e+00 : f32
    %8 = vector.broadcast %cst_5 : f32 to vector<512x32xf32>
    %9 = arith.addf %8, %7 : vector<512x32xf32>
    %10 = arith.divf %8, %9 : vector<512x32xf32>
    %11 = arith.mulf %5, %10 : vector<512x32xf32>
    %12 = arith.truncf %11 : vector<512x32xf32> to vector<512x32xbf16>
    %c0_6 = arith.constant 0 : index
    %c0_7 = arith.constant 0 : index
    %13 = vector.load %arg4[%c0_6, %c0_7] : memref<512x32xbf16, #tpu.memory_space<vmem>>, vector<512x32xbf16>
    tpu.vector_store %arg4[%c0_6, %c0_7], %12 {strides = array<i32>} : memref<512x32xbf16, #tpu.memory_space<vmem>>, vector<512x32xbf16>,
    return
  }
  func.func @transform_0(%arg0: i32) -> (i32, i32) {
    %c0_i32 = arith.constant 0 : i32
    %c0_i32_0 = arith.constant 0 : i32
    return %arg0, %c0_i32 : i32, i32
  }
  func.func @transform_1(%arg0: i32) -> (i32, i32) {
    %c0_i32 = arith.constant 0 : i32
    %c0_i32_0 = arith.constant 0 : i32
    %c0_i32_1 = arith.constant 0 : i32
    return %c0_i32, %c0_i32_0 : i32, i32
  }
  func.func @transform_2(%arg0: i32) -> (i32, i32) {
    %c0_i32 = arith.constant 0 : i32
    %c0_i32_0 = arith.constant 0 : i32
    %c0_i32_1 = arith.constant 0 : i32
    return %c0_i32, %c0_i32_0 : i32, i32
  }
  func.func @transform_3(%arg0: i32) -> (i32, i32) {
    %c0_i32 = arith.constant 0 : i32
    %c0_i32_0 = arith.constant 0 : i32
    return %arg0, %c0_i32 : i32, i32
  }
}

module attributes {stable_mosaic.version = 11 : i64} {
  func.func @kernel(%arg0: i32, %arg1: memref<1x332x32xbf16, #tpu.memory_space<vmem>>, %arg2: memref<36x32x32xbf16, #tpu.memory_space<vmem>>, %arg3: memref<4x1x32xf32, #tpu.memory_space<vmem>>, %arg4: memref<1x332x32xbf16, #tpu.memory_space<vmem>>, %arg5: memref<332x32xf32, #tpu.memory_space<vmem>>) attributes {dimension_semantics = [#tpu.dimension_semantics<parallel>], iteration_bounds = array<i64: 2>, scalar_prefetch = 0 : i64, scratch_operands = 1 : i64, tpu.core_type = #tpu.core_type<tc>, window_params = [{transform_indices = @transform_0, window_bounds = array<i64: 1, 332, 32>}, {pipeline_mode = #tpu.pipeline_mode<synchronous>, transform_indices = @transform_1, window_bounds = array<i64: 36, 32, 32>}, {pipeline_mode = #tpu.pipeline_mode<synchronous>, transform_indices = @transform_2, window_bounds = array<i64: 4, 1, 32>}, {transform_indices = @transform_3, window_bounds = array<i64: 1, 332, 32>}]} {
    %c0 = arith.constant 0 : index
    %c0_0 = arith.constant 0 : index
    %c0_1 = arith.constant 0 : index
    %0 = vector.load %arg1[%c0, %c0_0, %c0_1] : memref<1x332x32xbf16, #tpu.memory_space<vmem>>, vector<1x332x32xbf16>
    %1 = vector.shape_cast %0 : vector<1x332x32xbf16> to vector<332x32xbf16>
    %2 = arith.extf %1 : vector<332x32xbf16> to vector<332x32xf32>
    %c0_2 = arith.constant 0 : index
    %c0_3 = arith.constant 0 : index
    %3 = vector.load %arg5[%c0_2, %c0_3] : memref<332x32xf32, #tpu.memory_space<vmem>>, vector<332x32xf32>
    tpu.vector_store %arg5[%c0_2, %c0_3], %2 {strides = array<i32>} : memref<332x32xf32, #tpu.memory_space<vmem>>, vector<332x32xf32>,
    %4 = tpu.iota {dimensions = array<i32: 0>} : vector<288x1xi32>
    %c18_i32 = arith.constant 18 : i32
    %c0_i32 = arith.constant 0 : i32
    %5 = arith.cmpi eq, %c18_i32, %c0_i32 : i32
    %c1_i32 = arith.constant 1 : i32
    %6 = arith.select %5, %c1_i32, %c18_i32 : i32
    %7 = vector.broadcast %6 : i32 to vector<288x1xi32>
    %8 = arith.remsi %4, %7 : vector<288x1xi32>
    %c0_i32_4 = arith.constant 0 : i32
    %9 = vector.broadcast %c0_i32_4 : i32 to vector<288x1xi32>
    %10 = arith.cmpi ne, %8, %9 : vector<288x1xi32>
    %c0_i32_5 = arith.constant 0 : i32
    %11 = vector.broadcast %c0_i32_5 : i32 to vector<288x1xi32>
    %12 = arith.cmpi slt, %8, %11 : vector<288x1xi32>
    %c0_i32_6 = arith.constant 0 : i32
    %13 = arith.cmpi slt, %6, %c0_i32_6 : i32
    %14 = vector.broadcast %13 : i1 to vector<288x1xi1>
    %15 = vector.broadcast %14 : vector<288x1xi1> to vector<288x1xi1>
    %16 = arith.xori %12, %15 : vector<288x1xi1>
    %17 = arith.andi %16, %10 : vector<288x1xi1>
    %18 = vector.broadcast %6 : i32 to vector<288x1xi32>
    %19 = arith.addi %8, %18 : vector<288x1xi32>
    %20 = arith.select %17, %19, %8 : vector<288x1xi1>, vector<288x1xi32>
    %c16_i32 = arith.constant 16 : i32
    %21 = vector.broadcast %c16_i32 : i32 to vector<288x1xi32>
    %22 = arith.cmpi slt, %20, %21 : vector<288x1xi32>
    %c0_i32_7 = arith.constant 0 : i32
    %c4_i32 = arith.constant 4 : i32
    %23 = arith.addi %c0_i32_7, %c4_i32 : i32
    %c1_i32_8 = arith.constant 1 : i32
    scf.for %arg6 = %c0_i32_7 to %23 step %c1_i32_8  : i32 {
      %c1_i32_15 = arith.constant 1 : i32
      %29 = arith.muli %arg6, %c1_i32_15 : i32
      %c0_i32_16 = arith.constant 0 : i32
      %30 = arith.addi %c0_i32_16, %29 : i32
      %cst = arith.constant 0.000000e+00 : f32
      %31 = vector.broadcast %cst : f32 to vector<288x32xf32>
      %c0_17 = arith.constant 0 : index
      %c0_18 = arith.constant 0 : index
      %32 = vector.load %arg5[%c0_17, %c0_18] : memref<332x32xf32, #tpu.memory_space<vmem>>, vector<288x32xf32>
      %33 = arith.truncf %32 : vector<288x32xf32> to vector<288x32xbf16>
      %c9_i32 = arith.constant 9 : i32
      %34 = arith.muli %30, %c9_i32 : i32
      %c0_i32_19 = arith.constant 0 : i32
      %35 = arith.addi %34, %c0_i32_19 : i32
      %36 = arith.index_cast %35 : i32 to index
      %c0_20 = arith.constant 0 : index
      %c0_21 = arith.constant 0 : index
      %37 = vector.load %arg2[%36, %c0_20, %c0_21] : memref<36x32x32xbf16, #tpu.memory_space<vmem>>, vector<1x32x32xbf16>
      %38 = vector.shape_cast %37 : vector<1x32x32xbf16> to vector<32x32xbf16>
      %cst_22 = arith.constant dense<0.000000e+00> : vector<288x32xf32>
      %39 = tpu.matmul %33, %38, %cst_22 {dimension_numbers = #tpu.dot_dimension_numbers<[1], [0], [0], [1], [0, 0, 1, 1], [], []>} : vector<288x32xbf16>, vector<32x32xbf16>, vector<288x32xf32> -> vector<288x32xf32>
      %40 = arith.addf %31, %39 : vector<288x32xf32>
      %c1 = arith.constant 1 : index
      %c0_23 = arith.constant 0 : index
      %41 = vector.load %arg5[%c1, %c0_23] : memref<332x32xf32, #tpu.memory_space<vmem>>, vector<288x32xf32>
      %42 = arith.truncf %41 : vector<288x32xf32> to vector<288x32xbf16>
      %c9_i32_24 = arith.constant 9 : i32
      %43 = arith.muli %30, %c9_i32_24 : i32
      %c1_i32_25 = arith.constant 1 : i32
      %44 = arith.addi %43, %c1_i32_25 : i32
      %45 = arith.index_cast %44 : i32 to index
      %c0_26 = arith.constant 0 : index
      %c0_27 = arith.constant 0 : index
      %46 = vector.load %arg2[%45, %c0_26, %c0_27] : memref<36x32x32xbf16, #tpu.memory_space<vmem>>, vector<1x32x32xbf16>
      %47 = vector.shape_cast %46 : vector<1x32x32xbf16> to vector<32x32xbf16>
      %cst_28 = arith.constant dense<0.000000e+00> : vector<288x32xf32>
      %48 = tpu.matmul %42, %47, %cst_28 {dimension_numbers = #tpu.dot_dimension_numbers<[1], [0], [0], [1], [0, 0, 1, 1], [], []>} : vector<288x32xbf16>, vector<32x32xbf16>, vector<288x32xf32> -> vector<288x32xf32>
      %49 = arith.addf %40, %48 : vector<288x32xf32>
      %c2 = arith.constant 2 : index
      %c0_29 = arith.constant 0 : index
      %50 = vector.load %arg5[%c2, %c0_29] : memref<332x32xf32, #tpu.memory_space<vmem>>, vector<288x32xf32>
      %51 = arith.truncf %50 : vector<288x32xf32> to vector<288x32xbf16>
      %c9_i32_30 = arith.constant 9 : i32
      %52 = arith.muli %30, %c9_i32_30 : i32
      %c2_i32 = arith.constant 2 : i32
      %53 = arith.addi %52, %c2_i32 : i32
      %54 = arith.index_cast %53 : i32 to index
      %c0_31 = arith.constant 0 : index
      %c0_32 = arith.constant 0 : index
      %55 = vector.load %arg2[%54, %c0_31, %c0_32] : memref<36x32x32xbf16, #tpu.memory_space<vmem>>, vector<1x32x32xbf16>
      %56 = vector.shape_cast %55 : vector<1x32x32xbf16> to vector<32x32xbf16>
      %cst_33 = arith.constant dense<0.000000e+00> : vector<288x32xf32>
      %57 = tpu.matmul %51, %56, %cst_33 {dimension_numbers = #tpu.dot_dimension_numbers<[1], [0], [0], [1], [0, 0, 1, 1], [], []>} : vector<288x32xbf16>, vector<32x32xbf16>, vector<288x32xf32> -> vector<288x32xf32>
      %58 = arith.addf %49, %57 : vector<288x32xf32>
      %c18 = arith.constant 18 : index
      %c0_34 = arith.constant 0 : index
      %59 = vector.load %arg5[%c18, %c0_34] : memref<332x32xf32, #tpu.memory_space<vmem>>, vector<288x32xf32>
      %60 = arith.truncf %59 : vector<288x32xf32> to vector<288x32xbf16>
      %c9_i32_35 = arith.constant 9 : i32
      %61 = arith.muli %30, %c9_i32_35 : i32
      %c3_i32 = arith.constant 3 : i32
      %62 = arith.addi %61, %c3_i32 : i32
      %63 = arith.index_cast %62 : i32 to index
      %c0_36 = arith.constant 0 : index
      %c0_37 = arith.constant 0 : index
      %64 = vector.load %arg2[%63, %c0_36, %c0_37] : memref<36x32x32xbf16, #tpu.memory_space<vmem>>, vector<1x32x32xbf16>
      %65 = vector.shape_cast %64 : vector<1x32x32xbf16> to vector<32x32xbf16>
      %cst_38 = arith.constant dense<0.000000e+00> : vector<288x32xf32>
      %66 = tpu.matmul %60, %65, %cst_38 {dimension_numbers = #tpu.dot_dimension_numbers<[1], [0], [0], [1], [0, 0, 1, 1], [], []>} : vector<288x32xbf16>, vector<32x32xbf16>, vector<288x32xf32> -> vector<288x32xf32>
      %67 = arith.addf %58, %66 : vector<288x32xf32>
      %c19 = arith.constant 19 : index
      %c0_39 = arith.constant 0 : index
      %68 = vector.load %arg5[%c19, %c0_39] : memref<332x32xf32, #tpu.memory_space<vmem>>, vector<288x32xf32>
      %69 = arith.truncf %68 : vector<288x32xf32> to vector<288x32xbf16>
      %c9_i32_40 = arith.constant 9 : i32
      %70 = arith.muli %30, %c9_i32_40 : i32
      %c4_i32_41 = arith.constant 4 : i32
      %71 = arith.addi %70, %c4_i32_41 : i32
      %72 = arith.index_cast %71 : i32 to index
      %c0_42 = arith.constant 0 : index
      %c0_43 = arith.constant 0 : index
      %73 = vector.load %arg2[%72, %c0_42, %c0_43] : memref<36x32x32xbf16, #tpu.memory_space<vmem>>, vector<1x32x32xbf16>
      %74 = vector.shape_cast %73 : vector<1x32x32xbf16> to vector<32x32xbf16>
      %cst_44 = arith.constant dense<0.000000e+00> : vector<288x32xf32>
      %75 = tpu.matmul %69, %74, %cst_44 {dimension_numbers = #tpu.dot_dimension_numbers<[1], [0], [0], [1], [0, 0, 1, 1], [], []>} : vector<288x32xbf16>, vector<32x32xbf16>, vector<288x32xf32> -> vector<288x32xf32>
      %76 = arith.addf %67, %75 : vector<288x32xf32>
      %c20 = arith.constant 20 : index
      %c0_45 = arith.constant 0 : index
      %77 = vector.load %arg5[%c20, %c0_45] : memref<332x32xf32, #tpu.memory_space<vmem>>, vector<288x32xf32>
      %78 = arith.truncf %77 : vector<288x32xf32> to vector<288x32xbf16>
      %c9_i32_46 = arith.constant 9 : i32
      %79 = arith.muli %30, %c9_i32_46 : i32
      %c5_i32 = arith.constant 5 : i32
      %80 = arith.addi %79, %c5_i32 : i32
      %81 = arith.index_cast %80 : i32 to index
      %c0_47 = arith.constant 0 : index
      %c0_48 = arith.constant 0 : index
      %82 = vector.load %arg2[%81, %c0_47, %c0_48] : memref<36x32x32xbf16, #tpu.memory_space<vmem>>, vector<1x32x32xbf16>
      %83 = vector.shape_cast %82 : vector<1x32x32xbf16> to vector<32x32xbf16>
      %cst_49 = arith.constant dense<0.000000e+00> : vector<288x32xf32>
      %84 = tpu.matmul %78, %83, %cst_49 {dimension_numbers = #tpu.dot_dimension_numbers<[1], [0], [0], [1], [0, 0, 1, 1], [], []>} : vector<288x32xbf16>, vector<32x32xbf16>, vector<288x32xf32> -> vector<288x32xf32>
      %85 = arith.addf %76, %84 : vector<288x32xf32>
      %c36 = arith.constant 36 : index
      %c0_50 = arith.constant 0 : index
      %86 = vector.load %arg5[%c36, %c0_50] : memref<332x32xf32, #tpu.memory_space<vmem>>, vector<288x32xf32>
      %87 = arith.truncf %86 : vector<288x32xf32> to vector<288x32xbf16>
      %c9_i32_51 = arith.constant 9 : i32
      %88 = arith.muli %30, %c9_i32_51 : i32
      %c6_i32 = arith.constant 6 : i32
      %89 = arith.addi %88, %c6_i32 : i32
      %90 = arith.index_cast %89 : i32 to index
      %c0_52 = arith.constant 0 : index
      %c0_53 = arith.constant 0 : index
      %91 = vector.load %arg2[%90, %c0_52, %c0_53] : memref<36x32x32xbf16, #tpu.memory_space<vmem>>, vector<1x32x32xbf16>
      %92 = vector.shape_cast %91 : vector<1x32x32xbf16> to vector<32x32xbf16>
      %cst_54 = arith.constant dense<0.000000e+00> : vector<288x32xf32>
      %93 = tpu.matmul %87, %92, %cst_54 {dimension_numbers = #tpu.dot_dimension_numbers<[1], [0], [0], [1], [0, 0, 1, 1], [], []>} : vector<288x32xbf16>, vector<32x32xbf16>, vector<288x32xf32> -> vector<288x32xf32>
      %94 = arith.addf %85, %93 : vector<288x32xf32>
      %c37 = arith.constant 37 : index
      %c0_55 = arith.constant 0 : index
      %95 = vector.load %arg5[%c37, %c0_55] : memref<332x32xf32, #tpu.memory_space<vmem>>, vector<288x32xf32>
      %96 = arith.truncf %95 : vector<288x32xf32> to vector<288x32xbf16>
      %c9_i32_56 = arith.constant 9 : i32
      %97 = arith.muli %30, %c9_i32_56 : i32
      %c7_i32 = arith.constant 7 : i32
      %98 = arith.addi %97, %c7_i32 : i32
      %99 = arith.index_cast %98 : i32 to index
      %c0_57 = arith.constant 0 : index
      %c0_58 = arith.constant 0 : index
      %100 = vector.load %arg2[%99, %c0_57, %c0_58] : memref<36x32x32xbf16, #tpu.memory_space<vmem>>, vector<1x32x32xbf16>
      %101 = vector.shape_cast %100 : vector<1x32x32xbf16> to vector<32x32xbf16>
      %cst_59 = arith.constant dense<0.000000e+00> : vector<288x32xf32>
      %102 = tpu.matmul %96, %101, %cst_59 {dimension_numbers = #tpu.dot_dimension_numbers<[1], [0], [0], [1], [0, 0, 1, 1], [], []>} : vector<288x32xbf16>, vector<32x32xbf16>, vector<288x32xf32> -> vector<288x32xf32>
      %103 = arith.addf %94, %102 : vector<288x32xf32>
      %c38 = arith.constant 38 : index
      %c0_60 = arith.constant 0 : index
      %104 = vector.load %arg5[%c38, %c0_60] : memref<332x32xf32, #tpu.memory_space<vmem>>, vector<288x32xf32>
      %105 = arith.truncf %104 : vector<288x32xf32> to vector<288x32xbf16>
      %c9_i32_61 = arith.constant 9 : i32
      %106 = arith.muli %30, %c9_i32_61 : i32
      %c8_i32 = arith.constant 8 : i32
      %107 = arith.addi %106, %c8_i32 : i32
      %108 = arith.index_cast %107 : i32 to index
      %c0_62 = arith.constant 0 : index
      %c0_63 = arith.constant 0 : index
      %109 = vector.load %arg2[%108, %c0_62, %c0_63] : memref<36x32x32xbf16, #tpu.memory_space<vmem>>, vector<1x32x32xbf16>
      %110 = vector.shape_cast %109 : vector<1x32x32xbf16> to vector<32x32xbf16>
      %cst_64 = arith.constant dense<0.000000e+00> : vector<288x32xf32>
      %111 = tpu.matmul %105, %110, %cst_64 {dimension_numbers = #tpu.dot_dimension_numbers<[1], [0], [0], [1], [0, 0, 1, 1], [], []>} : vector<288x32xbf16>, vector<32x32xbf16>, vector<288x32xf32> -> vector<288x32xf32>
      %112 = arith.addf %103, %111 : vector<288x32xf32>
      %113 = arith.index_cast %30 : i32 to index
      %c0_65 = arith.constant 0 : index
      %c0_66 = arith.constant 0 : index
      %114 = vector.load %arg3[%113, %c0_65, %c0_66] : memref<4x1x32xf32, #tpu.memory_space<vmem>>, vector<1x1x32xf32>
      %115 = vector.shape_cast %114 : vector<1x1x32xf32> to vector<1x32xf32>
      %116 = vector.broadcast %115 : vector<1x32xf32> to vector<288x32xf32>
      %117 = arith.addf %112, %116 : vector<288x32xf32>
      %118 = arith.negf %117 : vector<288x32xf32>
      %119 = math.exp %118 : vector<288x32xf32>
      %cst_67 = arith.constant 1.000000e+00 : f32
      %120 = vector.broadcast %cst_67 : f32 to vector<288x32xf32>
      %121 = arith.addf %120, %119 : vector<288x32xf32>
      %122 = arith.divf %120, %121 : vector<288x32xf32>
      %123 = arith.mulf %117, %122 : vector<288x32xf32>
      %c19_68 = arith.constant 19 : index
      %c0_69 = arith.constant 0 : index
      %124 = vector.load %arg5[%c19_68, %c0_69] : memref<332x32xf32, #tpu.memory_space<vmem>>, vector<288x32xf32>
      %125 = arith.addf %123, %124 : vector<288x32xf32>
      %cst_70 = arith.constant 0.000000e+00 : f32
      %126 = vector.shape_cast %22 : vector<288x1xi1> to vector<288x1xi1>
      %127 = vector.broadcast %126 : vector<288x1xi1> to vector<288x32xi1>
      %128 = vector.broadcast %cst_70 : f32 to vector<288x32xf32>
      %129 = arith.select %127, %125, %128 : vector<288x32xi1>, vector<288x32xf32>
      %c19_71 = arith.constant 19 : index
      %c0_72 = arith.constant 0 : index
      %130 = vector.load %arg5[%c19_71, %c0_72] : memref<332x32xf32, #tpu.memory_space<vmem>>, vector<288x32xf32>
      tpu.vector_store %arg5[%c19_71, %c0_72], %129 {strides = array<i32>} : memref<332x32xf32, #tpu.memory_space<vmem>>, vector<288x32xf32>,
    }
    %c4_i32_9 = arith.constant 4 : i32
    %c0_10 = arith.constant 0 : index
    %c0_11 = arith.constant 0 : index
    %24 = vector.load %arg5[%c0_10, %c0_11] : memref<332x32xf32, #tpu.memory_space<vmem>>, vector<332x32xf32>
    %25 = arith.truncf %24 : vector<332x32xf32> to vector<332x32xbf16>
    %c0_12 = arith.constant 0 : index
    %c0_13 = arith.constant 0 : index
    %c0_14 = arith.constant 0 : index
    %26 = vector.load %arg4[%c0_12, %c0_13, %c0_14] : memref<1x332x32xbf16, #tpu.memory_space<vmem>>, vector<1x332x32xbf16>
    %27 = vector.shape_cast %26 : vector<1x332x32xbf16> to vector<332x32xbf16>
    %28 = vector.shape_cast %25 : vector<332x32xbf16> to vector<1x332x32xbf16>
    tpu.vector_store %arg4[%c0_12, %c0_13, %c0_14], %28 {strides = array<i32>} : memref<1x332x32xbf16, #tpu.memory_space<vmem>>, vector<1x332x32xbf16>,
    return
  }
  func.func @transform_0(%arg0: i32) -> (i32, i32, i32) {
    %c0_i32 = arith.constant 0 : i32
    %c0_i32_0 = arith.constant 0 : i32
    %c0_i32_1 = arith.constant 0 : i32
    return %arg0, %c0_i32, %c0_i32_0 : i32, i32, i32
  }
  func.func @transform_1(%arg0: i32) -> (i32, i32, i32) {
    %c0_i32 = arith.constant 0 : i32
    %c0_i32_0 = arith.constant 0 : i32
    %c0_i32_1 = arith.constant 0 : i32
    %c0_i32_2 = arith.constant 0 : i32
    return %c0_i32, %c0_i32_0, %c0_i32_1 : i32, i32, i32
  }
  func.func @transform_2(%arg0: i32) -> (i32, i32, i32) {
    %c0_i32 = arith.constant 0 : i32
    %c0_i32_0 = arith.constant 0 : i32
    %c0_i32_1 = arith.constant 0 : i32
    %c0_i32_2 = arith.constant 0 : i32
    return %c0_i32, %c0_i32_0, %c0_i32_1 : i32, i32, i32
  }
  func.func @transform_3(%arg0: i32) -> (i32, i32, i32) {
    %c0_i32 = arith.constant 0 : i32
    %c0_i32_0 = arith.constant 0 : i32
    %c0_i32_1 = arith.constant 0 : i32
    return %arg0, %c0_i32, %c0_i32_0 : i32, i32, i32
  }
}

module attributes {stable_mosaic.version = 11 : i64} {
  func.func @_mm2_kernel(%arg0: i32, %arg1: memref<128x288xbf16, #tpu.memory_space<vmem>>, %arg2: memref<288x128xbf16, #tpu.memory_space<vmem>>, %arg3: memref<1x128xf32, #tpu.memory_space<vmem>>, %arg4: memref<128x64xbf16, #tpu.memory_space<vmem>>, %arg5: memref<1x64xf32, #tpu.memory_space<vmem>>, %arg6: memref<128x64xbf16, #tpu.memory_space<vmem>>) attributes {dimension_semantics = [#tpu.dimension_semantics<parallel>], iteration_bounds = array<i64: 1>, scalar_prefetch = 0 : i64, scratch_operands = 0 : i64, tpu.core_type = #tpu.core_type<tc>, window_params = [{transform_indices = @transform_0, window_bounds = array<i64: 128, 288>}, {pipeline_mode = #tpu.pipeline_mode<synchronous>, transform_indices = @transform_1, window_bounds = array<i64: 288, 128>}, {pipeline_mode = #tpu.pipeline_mode<synchronous>, transform_indices = @transform_2, window_bounds = array<i64: 1, 128>}, {pipeline_mode = #tpu.pipeline_mode<synchronous>, transform_indices = @transform_3, window_bounds = array<i64: 128, 64>}, {pipeline_mode = #tpu.pipeline_mode<synchronous>, transform_indices = @transform_4, window_bounds = array<i64: 1, 64>}, {transform_indices = @transform_5, window_bounds = array<i64: 128, 64>}]} {
    %c0 = arith.constant 0 : index
    %c0_0 = arith.constant 0 : index
    %0 = vector.load %arg1[%c0, %c0_0] : memref<128x288xbf16, #tpu.memory_space<vmem>>, vector<128x288xbf16>
    %c0_1 = arith.constant 0 : index
    %c0_2 = arith.constant 0 : index
    %1 = vector.load %arg2[%c0_1, %c0_2] : memref<288x128xbf16, #tpu.memory_space<vmem>>, vector<288x128xbf16>
    %cst = arith.constant dense<0.000000e+00> : vector<128x128xf32>
    %2 = tpu.matmul %0, %1, %cst {dimension_numbers = #tpu.dot_dimension_numbers<[1], [0], [0], [1], [0, 0, 1, 1], [], []>} : vector<128x288xbf16>, vector<288x128xbf16>, vector<128x128xf32> -> vector<128x128xf32>
    %c0_3 = arith.constant 0 : index
    %c0_4 = arith.constant 0 : index
    %3 = vector.load %arg3[%c0_3, %c0_4] : memref<1x128xf32, #tpu.memory_space<vmem>>, vector<1x128xf32>
    %4 = vector.broadcast %3 : vector<1x128xf32> to vector<128x128xf32>
    %5 = arith.addf %2, %4 : vector<128x128xf32>
    %6 = arith.truncf %5 : vector<128x128xf32> to vector<128x128xbf16>
    %7 = arith.negf %6 : vector<128x128xbf16>
    %8 = math.exp %7 : vector<128x128xbf16>
    %cst_5 = arith.constant 1.000000e+00 : bf16
    %9 = vector.broadcast %cst_5 : bf16 to vector<128x128xbf16>
    %10 = arith.addf %9, %8 : vector<128x128xbf16>
    %11 = arith.divf %9, %10 : vector<128x128xbf16>
    %12 = arith.extf %11 : vector<128x128xbf16> to vector<128x128xf32>
    %13 = arith.mulf %5, %12 : vector<128x128xf32>
    %14 = arith.truncf %13 : vector<128x128xf32> to vector<128x128xbf16>
    %c0_6 = arith.constant 0 : index
    %c0_7 = arith.constant 0 : index
    %15 = vector.load %arg4[%c0_6, %c0_7] : memref<128x64xbf16, #tpu.memory_space<vmem>>, vector<128x64xbf16>
    %cst_8 = arith.constant dense<0.000000e+00> : vector<128x64xf32>
    %16 = tpu.matmul %14, %15, %cst_8 {dimension_numbers = #tpu.dot_dimension_numbers<[1], [0], [0], [1], [0, 0, 1, 1], [], []>} : vector<128x128xbf16>, vector<128x64xbf16>, vector<128x64xf32> -> vector<128x64xf32>
    %c0_9 = arith.constant 0 : index
    %c0_10 = arith.constant 0 : index
    %17 = vector.load %arg5[%c0_9, %c0_10] : memref<1x64xf32, #tpu.memory_space<vmem>>, vector<1x64xf32>
    %18 = vector.broadcast %17 : vector<1x64xf32> to vector<128x64xf32>
    %19 = arith.addf %16, %18 : vector<128x64xf32>
    %20 = arith.truncf %19 : vector<128x64xf32> to vector<128x64xbf16>
    %c0_11 = arith.constant 0 : index
    %c0_12 = arith.constant 0 : index
    %21 = vector.load %arg6[%c0_11, %c0_12] : memref<128x64xbf16, #tpu.memory_space<vmem>>, vector<128x64xbf16>
    tpu.vector_store %arg6[%c0_11, %c0_12], %20 {strides = array<i32>} : memref<128x64xbf16, #tpu.memory_space<vmem>>, vector<128x64xbf16>,
    return
  }
  func.func @transform_0(%arg0: i32) -> (i32, i32) {
    %c0_i32 = arith.constant 0 : i32
    %c0_i32_0 = arith.constant 0 : i32
    return %arg0, %c0_i32 : i32, i32
  }
  func.func @transform_1(%arg0: i32) -> (i32, i32) {
    %c0_i32 = arith.constant 0 : i32
    %c0_i32_0 = arith.constant 0 : i32
    %c0_i32_1 = arith.constant 0 : i32
    return %c0_i32, %c0_i32_0 : i32, i32
  }
  func.func @transform_2(%arg0: i32) -> (i32, i32) {
    %c0_i32 = arith.constant 0 : i32
    %c0_i32_0 = arith.constant 0 : i32
    %c0_i32_1 = arith.constant 0 : i32
    return %c0_i32, %c0_i32_0 : i32, i32
  }
  func.func @transform_3(%arg0: i32) -> (i32, i32) {
    %c0_i32 = arith.constant 0 : i32
    %c0_i32_0 = arith.constant 0 : i32
    %c0_i32_1 = arith.constant 0 : i32
    return %c0_i32, %c0_i32_0 : i32, i32
  }
  func.func @transform_4(%arg0: i32) -> (i32, i32) {
    %c0_i32 = arith.constant 0 : i32
    %c0_i32_0 = arith.constant 0 : i32
    %c0_i32_1 = arith.constant 0 : i32
    return %c0_i32, %c0_i32_0 : i32, i32
  }
  func.func @transform_5(%arg0: i32) -> (i32, i32) {
    %c0_i32 = arith.constant 0 : i32
    %c0_i32_0 = arith.constant 0 : i32
    return %arg0, %c0_i32 : i32, i32
  }
}

module attributes {stable_mosaic.version = 11 : i64} {
  func.func @kernel(%arg0: i32, %arg1: memref<1x108x64xbf16, #tpu.memory_space<vmem>>, %arg2: memref<54x64x256xbf16, #tpu.memory_space<vmem>>, %arg3: memref<6x1x256xf32, #tpu.memory_space<vmem>>, %arg4: memref<6x256x64xbf16, #tpu.memory_space<vmem>>, %arg5: memref<6x1x64xf32, #tpu.memory_space<vmem>>, %arg6: memref<1x108x64xbf16, #tpu.memory_space<vmem>>, %arg7: memref<108x64xf32, #tpu.memory_space<vmem>>) attributes {dimension_semantics = [#tpu.dimension_semantics<parallel>], iteration_bounds = array<i64: 2>, scalar_prefetch = 0 : i64, scratch_operands = 1 : i64, tpu.core_type = #tpu.core_type<tc>, window_params = [{transform_indices = @transform_0, window_bounds = array<i64: 1, 108, 64>}, {pipeline_mode = #tpu.pipeline_mode<synchronous>, transform_indices = @transform_1, window_bounds = array<i64: 54, 64, 256>}, {pipeline_mode = #tpu.pipeline_mode<synchronous>, transform_indices = @transform_2, window_bounds = array<i64: 6, 1, 256>}, {pipeline_mode = #tpu.pipeline_mode<synchronous>, transform_indices = @transform_3, window_bounds = array<i64: 6, 256, 64>}, {pipeline_mode = #tpu.pipeline_mode<synchronous>, transform_indices = @transform_4, window_bounds = array<i64: 6, 1, 64>}, {transform_indices = @transform_5, window_bounds = array<i64: 1, 108, 64>}]} {
    %c0 = arith.constant 0 : index
    %c0_0 = arith.constant 0 : index
    %c0_1 = arith.constant 0 : index
    %0 = vector.load %arg1[%c0, %c0_0, %c0_1] : memref<1x108x64xbf16, #tpu.memory_space<vmem>>, vector<1x108x64xbf16>
    %1 = vector.shape_cast %0 : vector<1x108x64xbf16> to vector<108x64xbf16>
    %2 = arith.extf %1 : vector<108x64xbf16> to vector<108x64xf32>
    %c0_2 = arith.constant 0 : index
    %c0_3 = arith.constant 0 : index
    %3 = vector.load %arg7[%c0_2, %c0_3] : memref<108x64xf32, #tpu.memory_space<vmem>>, vector<108x64xf32>
    tpu.vector_store %arg7[%c0_2, %c0_3], %2 {strides = array<i32>} : memref<108x64xf32, #tpu.memory_space<vmem>>, vector<108x64xf32>,
    %4 = tpu.iota {dimensions = array<i32: 0>} : vector<80x1xi32>
    %c10_i32 = arith.constant 10 : i32
    %c0_i32 = arith.constant 0 : i32
    %5 = arith.cmpi eq, %c10_i32, %c0_i32 : i32
    %c1_i32 = arith.constant 1 : i32
    %6 = arith.select %5, %c1_i32, %c10_i32 : i32
    %7 = vector.broadcast %6 : i32 to vector<80x1xi32>
    %8 = arith.remsi %4, %7 : vector<80x1xi32>
    %c0_i32_4 = arith.constant 0 : i32
    %9 = vector.broadcast %c0_i32_4 : i32 to vector<80x1xi32>
    %10 = arith.cmpi ne, %8, %9 : vector<80x1xi32>
    %c0_i32_5 = arith.constant 0 : i32
    %11 = vector.broadcast %c0_i32_5 : i32 to vector<80x1xi32>
    %12 = arith.cmpi slt, %8, %11 : vector<80x1xi32>
    %c0_i32_6 = arith.constant 0 : i32
    %13 = arith.cmpi slt, %6, %c0_i32_6 : i32
    %14 = vector.broadcast %13 : i1 to vector<80x1xi1>
    %15 = vector.broadcast %14 : vector<80x1xi1> to vector<80x1xi1>
    %16 = arith.xori %12, %15 : vector<80x1xi1>
    %17 = arith.andi %16, %10 : vector<80x1xi1>
    %18 = vector.broadcast %6 : i32 to vector<80x1xi32>
    %19 = arith.addi %8, %18 : vector<80x1xi32>
    %20 = arith.select %17, %19, %8 : vector<80x1xi1>, vector<80x1xi32>
    %c8_i32 = arith.constant 8 : i32
    %21 = vector.broadcast %c8_i32 : i32 to vector<80x1xi32>
    %22 = arith.cmpi slt, %20, %21 : vector<80x1xi32>
    %c0_i32_7 = arith.constant 0 : i32
    %c6_i32 = arith.constant 6 : i32
    %23 = arith.addi %c0_i32_7, %c6_i32 : i32
    %c1_i32_8 = arith.constant 1 : i32
    scf.for %arg8 = %c0_i32_7 to %23 step %c1_i32_8  : i32 {
      %c1_i32_15 = arith.constant 1 : i32
      %29 = arith.muli %arg8, %c1_i32_15 : i32
      %c0_i32_16 = arith.constant 0 : i32
      %30 = arith.addi %c0_i32_16, %29 : i32
      %cst = arith.constant 0.000000e+00 : f32
      %31 = vector.broadcast %cst : f32 to vector<80x256xf32>
      %c0_17 = arith.constant 0 : index
      %c0_18 = arith.constant 0 : index
      %32 = vector.load %arg7[%c0_17, %c0_18] : memref<108x64xf32, #tpu.memory_space<vmem>>, vector<80x64xf32>
      %33 = arith.truncf %32 : vector<80x64xf32> to vector<80x64xbf16>
      %c9_i32 = arith.constant 9 : i32
      %34 = arith.muli %30, %c9_i32 : i32
      %c0_i32_19 = arith.constant 0 : i32
      %35 = arith.addi %34, %c0_i32_19 : i32
      %36 = arith.index_cast %35 : i32 to index
      %c0_20 = arith.constant 0 : index
      %c0_21 = arith.constant 0 : index
      %37 = vector.load %arg2[%36, %c0_20, %c0_21] : memref<54x64x256xbf16, #tpu.memory_space<vmem>>, vector<1x64x256xbf16>
      %38 = vector.shape_cast %37 : vector<1x64x256xbf16> to vector<64x256xbf16>
      %cst_22 = arith.constant dense<0.000000e+00> : vector<80x256xf32>
      %39 = tpu.matmul %33, %38, %cst_22 {dimension_numbers = #tpu.dot_dimension_numbers<[1], [0], [0], [1], [0, 0, 1, 1], [], []>} : vector<80x64xbf16>, vector<64x256xbf16>, vector<80x256xf32> -> vector<80x256xf32>
      %40 = arith.addf %31, %39 : vector<80x256xf32>
      %c1 = arith.constant 1 : index
      %c0_23 = arith.constant 0 : index
      %41 = vector.load %arg7[%c1, %c0_23] : memref<108x64xf32, #tpu.memory_space<vmem>>, vector<80x64xf32>
      %42 = arith.truncf %41 : vector<80x64xf32> to vector<80x64xbf16>
      %c9_i32_24 = arith.constant 9 : i32
      %43 = arith.muli %30, %c9_i32_24 : i32
      %c1_i32_25 = arith.constant 1 : i32
      %44 = arith.addi %43, %c1_i32_25 : i32
      %45 = arith.index_cast %44 : i32 to index
      %c0_26 = arith.constant 0 : index
      %c0_27 = arith.constant 0 : index
      %46 = vector.load %arg2[%45, %c0_26, %c0_27] : memref<54x64x256xbf16, #tpu.memory_space<vmem>>, vector<1x64x256xbf16>
      %47 = vector.shape_cast %46 : vector<1x64x256xbf16> to vector<64x256xbf16>
      %cst_28 = arith.constant dense<0.000000e+00> : vector<80x256xf32>
      %48 = tpu.matmul %42, %47, %cst_28 {dimension_numbers = #tpu.dot_dimension_numbers<[1], [0], [0], [1], [0, 0, 1, 1], [], []>} : vector<80x64xbf16>, vector<64x256xbf16>, vector<80x256xf32> -> vector<80x256xf32>
      %49 = arith.addf %40, %48 : vector<80x256xf32>
      %c2 = arith.constant 2 : index
      %c0_29 = arith.constant 0 : index
      %50 = vector.load %arg7[%c2, %c0_29] : memref<108x64xf32, #tpu.memory_space<vmem>>, vector<80x64xf32>
      %51 = arith.truncf %50 : vector<80x64xf32> to vector<80x64xbf16>
      %c9_i32_30 = arith.constant 9 : i32
      %52 = arith.muli %30, %c9_i32_30 : i32
      %c2_i32 = arith.constant 2 : i32
      %53 = arith.addi %52, %c2_i32 : i32
      %54 = arith.index_cast %53 : i32 to index
      %c0_31 = arith.constant 0 : index
      %c0_32 = arith.constant 0 : index
      %55 = vector.load %arg2[%54, %c0_31, %c0_32] : memref<54x64x256xbf16, #tpu.memory_space<vmem>>, vector<1x64x256xbf16>
      %56 = vector.shape_cast %55 : vector<1x64x256xbf16> to vector<64x256xbf16>
      %cst_33 = arith.constant dense<0.000000e+00> : vector<80x256xf32>
      %57 = tpu.matmul %51, %56, %cst_33 {dimension_numbers = #tpu.dot_dimension_numbers<[1], [0], [0], [1], [0, 0, 1, 1], [], []>} : vector<80x64xbf16>, vector<64x256xbf16>, vector<80x256xf32> -> vector<80x256xf32>
      %58 = arith.addf %49, %57 : vector<80x256xf32>
      %c10 = arith.constant 10 : index
      %c0_34 = arith.constant 0 : index
      %59 = vector.load %arg7[%c10, %c0_34] : memref<108x64xf32, #tpu.memory_space<vmem>>, vector<80x64xf32>
      %60 = arith.truncf %59 : vector<80x64xf32> to vector<80x64xbf16>
      %c9_i32_35 = arith.constant 9 : i32
      %61 = arith.muli %30, %c9_i32_35 : i32
      %c3_i32 = arith.constant 3 : i32
      %62 = arith.addi %61, %c3_i32 : i32
      %63 = arith.index_cast %62 : i32 to index
      %c0_36 = arith.constant 0 : index
      %c0_37 = arith.constant 0 : index
      %64 = vector.load %arg2[%63, %c0_36, %c0_37] : memref<54x64x256xbf16, #tpu.memory_space<vmem>>, vector<1x64x256xbf16>
      %65 = vector.shape_cast %64 : vector<1x64x256xbf16> to vector<64x256xbf16>
      %cst_38 = arith.constant dense<0.000000e+00> : vector<80x256xf32>
      %66 = tpu.matmul %60, %65, %cst_38 {dimension_numbers = #tpu.dot_dimension_numbers<[1], [0], [0], [1], [0, 0, 1, 1], [], []>} : vector<80x64xbf16>, vector<64x256xbf16>, vector<80x256xf32> -> vector<80x256xf32>
      %67 = arith.addf %58, %66 : vector<80x256xf32>
      %c11 = arith.constant 11 : index
      %c0_39 = arith.constant 0 : index
      %68 = vector.load %arg7[%c11, %c0_39] : memref<108x64xf32, #tpu.memory_space<vmem>>, vector<80x64xf32>
      %69 = arith.truncf %68 : vector<80x64xf32> to vector<80x64xbf16>
      %c9_i32_40 = arith.constant 9 : i32
      %70 = arith.muli %30, %c9_i32_40 : i32
      %c4_i32 = arith.constant 4 : i32
      %71 = arith.addi %70, %c4_i32 : i32
      %72 = arith.index_cast %71 : i32 to index
      %c0_41 = arith.constant 0 : index
      %c0_42 = arith.constant 0 : index
      %73 = vector.load %arg2[%72, %c0_41, %c0_42] : memref<54x64x256xbf16, #tpu.memory_space<vmem>>, vector<1x64x256xbf16>
      %74 = vector.shape_cast %73 : vector<1x64x256xbf16> to vector<64x256xbf16>
      %cst_43 = arith.constant dense<0.000000e+00> : vector<80x256xf32>
      %75 = tpu.matmul %69, %74, %cst_43 {dimension_numbers = #tpu.dot_dimension_numbers<[1], [0], [0], [1], [0, 0, 1, 1], [], []>} : vector<80x64xbf16>, vector<64x256xbf16>, vector<80x256xf32> -> vector<80x256xf32>
      %76 = arith.addf %67, %75 : vector<80x256xf32>
      %c12 = arith.constant 12 : index
      %c0_44 = arith.constant 0 : index
      %77 = vector.load %arg7[%c12, %c0_44] : memref<108x64xf32, #tpu.memory_space<vmem>>, vector<80x64xf32>
      %78 = arith.truncf %77 : vector<80x64xf32> to vector<80x64xbf16>
      %c9_i32_45 = arith.constant 9 : i32
      %79 = arith.muli %30, %c9_i32_45 : i32
      %c5_i32 = arith.constant 5 : i32
      %80 = arith.addi %79, %c5_i32 : i32
      %81 = arith.index_cast %80 : i32 to index
      %c0_46 = arith.constant 0 : index
      %c0_47 = arith.constant 0 : index
      %82 = vector.load %arg2[%81, %c0_46, %c0_47] : memref<54x64x256xbf16, #tpu.memory_space<vmem>>, vector<1x64x256xbf16>
      %83 = vector.shape_cast %82 : vector<1x64x256xbf16> to vector<64x256xbf16>
      %cst_48 = arith.constant dense<0.000000e+00> : vector<80x256xf32>
      %84 = tpu.matmul %78, %83, %cst_48 {dimension_numbers = #tpu.dot_dimension_numbers<[1], [0], [0], [1], [0, 0, 1, 1], [], []>} : vector<80x64xbf16>, vector<64x256xbf16>, vector<80x256xf32> -> vector<80x256xf32>
      %85 = arith.addf %76, %84 : vector<80x256xf32>
      %c20 = arith.constant 20 : index
      %c0_49 = arith.constant 0 : index
      %86 = vector.load %arg7[%c20, %c0_49] : memref<108x64xf32, #tpu.memory_space<vmem>>, vector<80x64xf32>
      %87 = arith.truncf %86 : vector<80x64xf32> to vector<80x64xbf16>
      %c9_i32_50 = arith.constant 9 : i32
      %88 = arith.muli %30, %c9_i32_50 : i32
      %c6_i32_51 = arith.constant 6 : i32
      %89 = arith.addi %88, %c6_i32_51 : i32
      %90 = arith.index_cast %89 : i32 to index
      %c0_52 = arith.constant 0 : index
      %c0_53 = arith.constant 0 : index
      %91 = vector.load %arg2[%90, %c0_52, %c0_53] : memref<54x64x256xbf16, #tpu.memory_space<vmem>>, vector<1x64x256xbf16>
      %92 = vector.shape_cast %91 : vector<1x64x256xbf16> to vector<64x256xbf16>
      %cst_54 = arith.constant dense<0.000000e+00> : vector<80x256xf32>
      %93 = tpu.matmul %87, %92, %cst_54 {dimension_numbers = #tpu.dot_dimension_numbers<[1], [0], [0], [1], [0, 0, 1, 1], [], []>} : vector<80x64xbf16>, vector<64x256xbf16>, vector<80x256xf32> -> vector<80x256xf32>
      %94 = arith.addf %85, %93 : vector<80x256xf32>
      %c21 = arith.constant 21 : index
      %c0_55 = arith.constant 0 : index
      %95 = vector.load %arg7[%c21, %c0_55] : memref<108x64xf32, #tpu.memory_space<vmem>>, vector<80x64xf32>
      %96 = arith.truncf %95 : vector<80x64xf32> to vector<80x64xbf16>
      %c9_i32_56 = arith.constant 9 : i32
      %97 = arith.muli %30, %c9_i32_56 : i32
      %c7_i32 = arith.constant 7 : i32
      %98 = arith.addi %97, %c7_i32 : i32
      %99 = arith.index_cast %98 : i32 to index
      %c0_57 = arith.constant 0 : index
      %c0_58 = arith.constant 0 : index
      %100 = vector.load %arg2[%99, %c0_57, %c0_58] : memref<54x64x256xbf16, #tpu.memory_space<vmem>>, vector<1x64x256xbf16>
      %101 = vector.shape_cast %100 : vector<1x64x256xbf16> to vector<64x256xbf16>
      %cst_59 = arith.constant dense<0.000000e+00> : vector<80x256xf32>
      %102 = tpu.matmul %96, %101, %cst_59 {dimension_numbers = #tpu.dot_dimension_numbers<[1], [0], [0], [1], [0, 0, 1, 1], [], []>} : vector<80x64xbf16>, vector<64x256xbf16>, vector<80x256xf32> -> vector<80x256xf32>
      %103 = arith.addf %94, %102 : vector<80x256xf32>
      %c22 = arith.constant 22 : index
      %c0_60 = arith.constant 0 : index
      %104 = vector.load %arg7[%c22, %c0_60] : memref<108x64xf32, #tpu.memory_space<vmem>>, vector<80x64xf32>
      %105 = arith.truncf %104 : vector<80x64xf32> to vector<80x64xbf16>
      %c9_i32_61 = arith.constant 9 : i32
      %106 = arith.muli %30, %c9_i32_61 : i32
      %c8_i32_62 = arith.constant 8 : i32
      %107 = arith.addi %106, %c8_i32_62 : i32
      %108 = arith.index_cast %107 : i32 to index
      %c0_63 = arith.constant 0 : index
      %c0_64 = arith.constant 0 : index
      %109 = vector.load %arg2[%108, %c0_63, %c0_64] : memref<54x64x256xbf16, #tpu.memory_space<vmem>>, vector<1x64x256xbf16>
      %110 = vector.shape_cast %109 : vector<1x64x256xbf16> to vector<64x256xbf16>
      %cst_65 = arith.constant dense<0.000000e+00> : vector<80x256xf32>
      %111 = tpu.matmul %105, %110, %cst_65 {dimension_numbers = #tpu.dot_dimension_numbers<[1], [0], [0], [1], [0, 0, 1, 1], [], []>} : vector<80x64xbf16>, vector<64x256xbf16>, vector<80x256xf32> -> vector<80x256xf32>
      %112 = arith.addf %103, %111 : vector<80x256xf32>
      %113 = arith.index_cast %30 : i32 to index
      %c0_66 = arith.constant 0 : index
      %c0_67 = arith.constant 0 : index
      %114 = vector.load %arg3[%113, %c0_66, %c0_67] : memref<6x1x256xf32, #tpu.memory_space<vmem>>, vector<1x1x256xf32>
      %115 = vector.shape_cast %114 : vector<1x1x256xf32> to vector<1x256xf32>
      %116 = vector.broadcast %115 : vector<1x256xf32> to vector<80x256xf32>
      %117 = arith.addf %112, %116 : vector<80x256xf32>
      %118 = arith.truncf %117 : vector<80x256xf32> to vector<80x256xbf16>
      %119 = arith.negf %118 : vector<80x256xbf16>
      %120 = math.exp %119 : vector<80x256xbf16>
      %cst_68 = arith.constant 1.000000e+00 : bf16
      %121 = vector.broadcast %cst_68 : bf16 to vector<80x256xbf16>
      %122 = arith.addf %121, %120 : vector<80x256xbf16>
      %123 = arith.divf %121, %122 : vector<80x256xbf16>
      %124 = arith.extf %123 : vector<80x256xbf16> to vector<80x256xf32>
      %125 = arith.mulf %117, %124 : vector<80x256xf32>
      %126 = arith.truncf %125 : vector<80x256xf32> to vector<80x256xbf16>
      %127 = arith.index_cast %30 : i32 to index
      %c0_69 = arith.constant 0 : index
      %c0_70 = arith.constant 0 : index
      %128 = vector.load %arg4[%127, %c0_69, %c0_70] : memref<6x256x64xbf16, #tpu.memory_space<vmem>>, vector<1x256x64xbf16>
      %129 = vector.shape_cast %128 : vector<1x256x64xbf16> to vector<256x64xbf16>
      %cst_71 = arith.constant dense<0.000000e+00> : vector<80x64xf32>
      %130 = tpu.matmul %126, %129, %cst_71 {dimension_numbers = #tpu.dot_dimension_numbers<[1], [0], [0], [1], [0, 0, 1, 1], [], []>} : vector<80x256xbf16>, vector<256x64xbf16>, vector<80x64xf32> -> vector<80x64xf32>
      %131 = arith.index_cast %30 : i32 to index
      %c0_72 = arith.constant 0 : index
      %c0_73 = arith.constant 0 : index
      %132 = vector.load %arg5[%131, %c0_72, %c0_73] : memref<6x1x64xf32, #tpu.memory_space<vmem>>, vector<1x1x64xf32>
      %133 = vector.shape_cast %132 : vector<1x1x64xf32> to vector<1x64xf32>
      %134 = vector.broadcast %133 : vector<1x64xf32> to vector<80x64xf32>
      %135 = arith.addf %130, %134 : vector<80x64xf32>
      %c11_74 = arith.constant 11 : index
      %c0_75 = arith.constant 0 : index
      %136 = vector.load %arg7[%c11_74, %c0_75] : memref<108x64xf32, #tpu.memory_space<vmem>>, vector<80x64xf32>
      %137 = arith.addf %135, %136 : vector<80x64xf32>
      %cst_76 = arith.constant 0.000000e+00 : f32
      %138 = vector.shape_cast %22 : vector<80x1xi1> to vector<80x1xi1>
      %139 = vector.broadcast %138 : vector<80x1xi1> to vector<80x64xi1>
      %140 = vector.broadcast %cst_76 : f32 to vector<80x64xf32>
      %141 = arith.select %139, %137, %140 : vector<80x64xi1>, vector<80x64xf32>
      %c11_77 = arith.constant 11 : index
      %c0_78 = arith.constant 0 : index
      %142 = vector.load %arg7[%c11_77, %c0_78] : memref<108x64xf32, #tpu.memory_space<vmem>>, vector<80x64xf32>
      tpu.vector_store %arg7[%c11_77, %c0_78], %141 {strides = array<i32>} : memref<108x64xf32, #tpu.memory_space<vmem>>, vector<80x64xf32>,
    }
    %c6_i32_9 = arith.constant 6 : i32
    %c0_10 = arith.constant 0 : index
    %c0_11 = arith.constant 0 : index
    %24 = vector.load %arg7[%c0_10, %c0_11] : memref<108x64xf32, #tpu.memory_space<vmem>>, vector<108x64xf32>
    %25 = arith.truncf %24 : vector<108x64xf32> to vector<108x64xbf16>
    %c0_12 = arith.constant 0 : index
    %c0_13 = arith.constant 0 : index
    %c0_14 = arith.constant 0 : index
    %26 = vector.load %arg6[%c0_12, %c0_13, %c0_14] : memref<1x108x64xbf16, #tpu.memory_space<vmem>>, vector<1x108x64xbf16>
    %27 = vector.shape_cast %26 : vector<1x108x64xbf16> to vector<108x64xbf16>
    %28 = vector.shape_cast %25 : vector<108x64xbf16> to vector<1x108x64xbf16>
    tpu.vector_store %arg6[%c0_12, %c0_13, %c0_14], %28 {strides = array<i32>} : memref<1x108x64xbf16, #tpu.memory_space<vmem>>, vector<1x108x64xbf16>,
    return
  }
  func.func @transform_0(%arg0: i32) -> (i32, i32, i32) {
    %c0_i32 = arith.constant 0 : i32
    %c0_i32_0 = arith.constant 0 : i32
    %c0_i32_1 = arith.constant 0 : i32
    return %arg0, %c0_i32, %c0_i32_0 : i32, i32, i32
  }
  func.func @transform_1(%arg0: i32) -> (i32, i32, i32) {
    %c0_i32 = arith.constant 0 : i32
    %c0_i32_0 = arith.constant 0 : i32
    %c0_i32_1 = arith.constant 0 : i32
    %c0_i32_2 = arith.constant 0 : i32
    return %c0_i32, %c0_i32_0, %c0_i32_1 : i32, i32, i32
  }
  func.func @transform_2(%arg0: i32) -> (i32, i32, i32) {
    %c0_i32 = arith.constant 0 : i32
    %c0_i32_0 = arith.constant 0 : i32
    %c0_i32_1 = arith.constant 0 : i32
    %c0_i32_2 = arith.constant 0 : i32
    return %c0_i32, %c0_i32_0, %c0_i32_1 : i32, i32, i32
  }
  func.func @transform_3(%arg0: i32) -> (i32, i32, i32) {
    %c0_i32 = arith.constant 0 : i32
    %c0_i32_0 = arith.constant 0 : i32
    %c0_i32_1 = arith.constant 0 : i32
    %c0_i32_2 = arith.constant 0 : i32
    return %c0_i32, %c0_i32_0, %c0_i32_1 : i32, i32, i32
  }
  func.func @transform_4(%arg0: i32) -> (i32, i32, i32) {
    %c0_i32 = arith.constant 0 : i32
    %c0_i32_0 = arith.constant 0 : i32
    %c0_i32_1 = arith.constant 0 : i32
    %c0_i32_2 = arith.constant 0 : i32
    return %c0_i32, %c0_i32_0, %c0_i32_1 : i32, i32, i32
  }
  func.func @transform_5(%arg0: i32) -> (i32, i32, i32) {
    %c0_i32 = arith.constant 0 : i32
    %c0_i32_0 = arith.constant 0 : i32
    %c0_i32_1 = arith.constant 0 : i32
    return %arg0, %c0_i32, %c0_i32_0 : i32, i32, i32
  }
}

module attributes {stable_mosaic.version = 11 : i64} {
  func.func @kernel(%arg0: i32, %arg1: i32, %arg2: memref<1x16x16x32xbf16, #tpu.memory_space<vmem>>, %arg3: memref<1x8x16x64xbf16, #tpu.memory_space<vmem>>, %arg4: memref<1x96x256xbf16, #tpu.memory_space<vmem>>, %arg5: memref<1x1x1x1xf32, #tpu.memory_space<vmem>>, %arg6: memref<1x1x1x1xf32, #tpu.memory_space<vmem>>) attributes {dimension_semantics = [#tpu.dimension_semantics<parallel>, #tpu.dimension_semantics<parallel>], iteration_bounds = array<i64: 2, 1>, scalar_prefetch = 0 : i64, scratch_operands = 0 : i64, tpu.core_type = #tpu.core_type<tc>, window_params = [{transform_indices = @transform_0, window_bounds = array<i64: 1, 16, 16, 32>}, {transform_indices = @transform_1, window_bounds = array<i64: 1, 8, 16, 64>}, {transform_indices = @transform_2, window_bounds = array<i64: 1, 96, 256>}, {transform_indices = @transform_3, window_bounds = array<i64: 1, 1, 1, 1>}, {transform_indices = @transform_4, window_bounds = array<i64: 1, 1, 1, 1>}]} {
    %c0 = arith.constant 0 : index
    %c0_0 = arith.constant 0 : index
    %c0_1 = arith.constant 0 : index
    %c0_2 = arith.constant 0 : index
    %0 = vector.load %arg2[%c0, %c0_0, %c0_1, %c0_2] : memref<1x16x16x32xbf16, #tpu.memory_space<vmem>>, vector<1x16x16x32xbf16>
    %1 = vector.shape_cast %0 : vector<1x16x16x32xbf16> to vector<16x16x32xbf16>
    %2 = arith.extf %1 : vector<16x16x32xbf16> to vector<16x16x32xf32>
    %c0_3 = arith.constant 0 : index
    %c0_4 = arith.constant 0 : index
    %c0_5 = arith.constant 0 : index
    %c0_6 = arith.constant 0 : index
    %3 = vector.load %arg3[%c0_3, %c0_4, %c0_5, %c0_6] : memref<1x8x16x64xbf16, #tpu.memory_space<vmem>>, vector<1x8x16x64xbf16>
    %4 = vector.shape_cast %3 : vector<1x8x16x64xbf16> to vector<8x16x64xbf16>
    %5 = arith.extf %4 : vector<8x16x64xbf16> to vector<8x16x64xf32>
    %6 = vector.shape_cast %5 : vector<8x16x64xf32> to vector<8x1x16x64xf32>
    %7 = vector.shape_cast %6 : vector<8x1x16x64xf32> to vector<8x1x16x64xf32>
    %8 = vector.broadcast %7 : vector<8x1x16x64xf32> to vector<8x2x16x64xf32>
    %9 = vector.shape_cast %8 : vector<8x2x16x64xf32> to vector<16x16x64xf32>
    %10 = tpu.concatenate %2, %9 in 2 : vector<16x16x32xf32>, vector<16x16x64xf32> -> vector<16x16x96xf32>
    %11 = vector.shape_cast %10 : vector<16x16x96xf32> to vector<256x96xf32>
    %cst = arith.constant dense<0x7F800000> : vector<96xf32>
    %12 = vector.multi_reduction <minimumf>, %11, %cst [0] : vector<256x96xf32> to vector<96xf32>
    %13 = vector.shape_cast %12 : vector<96xf32> to vector<1x96xf32>
    %cst_7 = arith.constant dense<0x7F800000> : vector<1xf32>
    %14 = vector.multi_reduction <minimumf>, %13, %cst_7 [1] : vector<1x96xf32> to vector<1xf32>
    %15 = vector.shape_cast %14 : vector<1xf32> to vector<1x1xf32>
    %c0_8 = arith.constant 0 : index
    %c0_9 = arith.constant 0 : index
    %c0_10 = arith.constant 0 : index
    %c0_11 = arith.constant 0 : index
    %16 = vector.load %arg5[%c0_8, %c0_9, %c0_10, %c0_11] : memref<1x1x1x1xf32, #tpu.memory_space<vmem>>, vector<1x1x1x1xf32>
    %17 = vector.shape_cast %16 : vector<1x1x1x1xf32> to vector<1x1xf32>
    %18 = vector.shape_cast %15 : vector<1x1xf32> to vector<1x1x1x1xf32>
    tpu.vector_store %arg5[%c0_8, %c0_9, %c0_10, %c0_11], %18 {strides = array<i32>} : memref<1x1x1x1xf32, #tpu.memory_space<vmem>>, vector<1x1x1x1xf32>,
    %cst_12 = arith.constant dense<0xFF800000> : vector<96xf32>
    %19 = vector.multi_reduction <maximumf>, %11, %cst_12 [0] : vector<256x96xf32> to vector<96xf32>
    %20 = vector.shape_cast %19 : vector<96xf32> to vector<1x96xf32>
    %cst_13 = arith.constant dense<0xFF800000> : vector<1xf32>
    %21 = vector.multi_reduction <maximumf>, %20, %cst_13 [1] : vector<1x96xf32> to vector<1xf32>
    %22 = vector.shape_cast %21 : vector<1xf32> to vector<1x1xf32>
    %c0_14 = arith.constant 0 : index
    %c0_15 = arith.constant 0 : index
    %c0_16 = arith.constant 0 : index
    %c0_17 = arith.constant 0 : index
    %23 = vector.load %arg6[%c0_14, %c0_15, %c0_16, %c0_17] : memref<1x1x1x1xf32, #tpu.memory_space<vmem>>, vector<1x1x1x1xf32>
    %24 = vector.shape_cast %23 : vector<1x1x1x1xf32> to vector<1x1xf32>
    %25 = vector.shape_cast %22 : vector<1x1xf32> to vector<1x1x1x1xf32>
    tpu.vector_store %arg6[%c0_14, %c0_15, %c0_16, %c0_17], %25 {strides = array<i32>} : memref<1x1x1x1xf32, #tpu.memory_space<vmem>>, vector<1x1x1x1xf32>,
    %26 = arith.truncf %11 : vector<256x96xf32> to vector<256x96xbf16>
    %27 = tpu.transpose %26, [1, 0] : vector<256x96xbf16> -> vector<96x256xbf16>
    %c0_18 = arith.constant 0 : index
    %c0_19 = arith.constant 0 : index
    %c0_20 = arith.constant 0 : index
    %28 = vector.load %arg4[%c0_18, %c0_19, %c0_20] : memref<1x96x256xbf16, #tpu.memory_space<vmem>>, vector<1x96x256xbf16>
    %29 = vector.shape_cast %28 : vector<1x96x256xbf16> to vector<96x256xbf16>
    %30 = vector.shape_cast %27 : vector<96x256xbf16> to vector<1x96x256xbf16>
    tpu.vector_store %arg4[%c0_18, %c0_19, %c0_20], %30 {strides = array<i32>} : memref<1x96x256xbf16, #tpu.memory_space<vmem>>, vector<1x96x256xbf16>,
    return
  }
  func.func @transform_0(%arg0: i32, %arg1: i32) -> (i32, i32, i32, i32) {
    %c0_i32 = arith.constant 0 : i32
    %c0_i32_0 = arith.constant 0 : i32
    %c0_i32_1 = arith.constant 0 : i32
    return %arg0, %arg1, %c0_i32, %c0_i32_0 : i32, i32, i32, i32
  }
  func.func @transform_1(%arg0: i32, %arg1: i32) -> (i32, i32, i32, i32) {
    %c0_i32 = arith.constant 0 : i32
    %c0_i32_0 = arith.constant 0 : i32
    %c0_i32_1 = arith.constant 0 : i32
    return %arg0, %arg1, %c0_i32, %c0_i32_0 : i32, i32, i32, i32
  }
  func.func @transform_2(%arg0: i32, %arg1: i32) -> (i32, i32, i32) {
    %c0_i32 = arith.constant 0 : i32
    %c0_i32_0 = arith.constant 0 : i32
    return %arg0, %c0_i32, %arg1 : i32, i32, i32
  }
  func.func @transform_3(%arg0: i32, %arg1: i32) -> (i32, i32, i32, i32) {
    %c0_i32 = arith.constant 0 : i32
    %c0_i32_0 = arith.constant 0 : i32
    %c0_i32_1 = arith.constant 0 : i32
    return %arg0, %arg1, %c0_i32, %c0_i32_0 : i32, i32, i32, i32
  }
  func.func @transform_4(%arg0: i32, %arg1: i32) -> (i32, i32, i32, i32) {
    %c0_i32 = arith.constant 0 : i32
    %c0_i32_0 = arith.constant 0 : i32
    %c0_i32_1 = arith.constant 0 : i32
    return %arg0, %arg1, %c0_i32, %c0_i32_0 : i32, i32, i32, i32
  }
}

</mosaic_0001>

<bundles_post_ra>
// kernel: padim_forward.5
= control target key start
LH: loop header
LB: loop body
LE: loop exit
PB: predicated region body
PF: predicated region fallthrough
CT: control target
= control target key end

     0   :  { %8 = vsyncpa [#allocation3], 0  ;;  %s3027_s0 = inlined_call_operand.vmem [shape: bf16[512,27], index: 0, kind: input, shape index: {}]   ;;  %s3028_s1 = inlined_call_operand.hbm [shape: bf16[27,32], index: 1, kind: input, shape index: {}]   ;;  %s3029_s2 = inlined_call_operand.hbm [shape: f32[1,32], index: 2, kind: input, shape index: {}]   ;;  %s3030_s3 = inlined_call_operand.vmem [shape: bf16[512,32], index: 3, kind: output, shape index: {}]  }
   0x1   :  { %9 = vsyncpa [#allocation5], 0  ;;  %s2164_s12 = smov [#allocation2]   ;;  %s2116_s16 = scalar_lea.hbm %s3028_s1, 256 }
   0x2   :  { %s17_s13 = sshll.u32 %s2164_s12, 4  ;;  %p2117_p0 = scmp.ne.s32.totalorder %s3028_s1, %s2116_s16  ;;  %s18_s13 = int_to_ptr.vmem [resolvable:$true] %s17_s13 }
   0x3   :  { %p2120_p1 = scmp.lt.u32.totalorder %s2116_s16, %s3028_s1 }
   0x5   :  { %p2122_p2 = pnand %p2120_p1, %p2117_p0 }
   0x7   :  { %2125 = shalt.err (!%p2122_p2)
}
   0x8   :  { %s2126_s21 = scalar_lea.vmem %s18_s13, 256  ;;  %p2131_p4 = scmp.lt.s32.totalorder %s18_s13, %s18_s13 }
   0x9   :  { %p2127_p3 = scmp.ne.s32.totalorder %s18_s13, %s2126_s21  ;;  %p2132_p5 = scmp.lt.s32.totalorder %s2126_s21, %s2126_s21 }
   0xb   :  { %p2133_p6 = por %p2132_p5, %p2131_p4 }
   0xd   :  { %p2134_p7 = pnand %p2133_p6, %p2127_p3 }
   0xf   :  { %2137 = shalt.err (!%p2134_p7)
}
  0x10   :  { %s2165_s22 = smov 64   ;;  %s2166_s23 = smov 4  }
  0x11   :  { %23 = dma.hbm_to_vmem [thread:$0]  %s3028_s1, 256, %s18_s13, [#allocation3], %s2165_s22, %s2165_s22, %s2166_s23  }
  0x12   :  { %s2167_s26 = smov [#allocation4]   ;;  %s2138_s30 = scalar_lea.hbm %s3029_s2, 16 }
  0x13   :  { %s30_s27 = sshll.u32 %s2167_s26, 4  ;;  %p2139_p8 = scmp.ne.s32.totalorder %s3029_s2, %s2138_s30  ;;  %s31_s27 = int_to_ptr.vmem [resolvable:$true] %s30_s27 }
  0x14   :  { %p2142_p9 = scmp.lt.u32.totalorder %s2138_s30, %s3029_s2 }
  0x16   :  { %p2144_p10 = pnand %p2142_p9, %p2139_p8 }
  0x18   :  { %2147 = shalt.err (!%p2144_p10)
}
  0x19   :  { %s2148_s8 = scalar_lea.vmem %s31_s27, 16  ;;  %s2152_s1 = scalar_lea.vmem %s31_s27, 32 }
  0x1a   :  { %p2149_p11 = scmp.ne.s32.totalorder %s31_s27, %s2148_s8  ;;  %p2153_p12 = scmp.lt.s32.totalorder %s31_s27, %s31_s27 }
  0x1b   :  { %p2154_p13 = scmp.lt.s32.totalorder %s2152_s1, %s2148_s8 }
  0x1d   :  { %p2155_p0 = por %p2154_p13, %p2153_p12 }
  0x1f   :  { %p2156_p1 = pnand %p2155_p0, %p2149_p11 }
  0x21   :  { %2159 = shalt.err (!%p2156_p1)
}
  0x22   :  { %33 = dma.hbm_to_vmem [thread:$0]  %s3029_s2, 16, %s31_s27, [#allocation5]  }
  0x23   :  { %2160 = dma.done.wait [#allocation3], 256  }
  0x24   :  { %2161 = vsyncadd [#allocation3], 4294967040 }
  0x25   :  { %2162 = dma.done.wait [#allocation5], 16  }
  0x26   :  { %2163 = vsyncadd [#allocation5], 4294967280  ;;  %vm384_vm0 = vcmask 1044480   ;;  %vm385_vm1 = vcmask 1045504   ;;  %v2168_v0 = vmov 65535   ;;  %vm287_vm2 = vcmask 220160  }
  0x27   :  { %v386_v1 = vsel %vm384_vm0, 4294967295, %v2168_v0  ;;  %v1825_v2 = vld [vmem:[#allocation2] sm:$0xff]   ;;  %v1826_v4 = vld [vmem:[#allocation2 + $0x8] sm:$0x3f]   ;;  %v1831_v10 = vld [vmem:[%s3027_s0 + $0x10] sm:$0xff]   ;;  %vm1384_vm3 = vcmask 257024  }
  0x28   :  { %v387_v3 = vsel %vm385_vm1, %v386_v1, 0  ;;  %1748 = vmatprep.subr.bf16.mxu0 %v1825_v2  ;;  %1816 = vmatprep.subr.bf16.mxu1 %v1825_v2  ;;  %v1827_v5 = vld [vmem:[%s3027_s0] sm:$0xff]   ;;  %v1829_v8 = vld [vmem:[%s3027_s0 + $0x8] sm:$0xff]   ;;  %v1832_v11 = vld [vmem:[%s3027_s0 + $0x90] sm:$0xff]  }
  0x29   :  { %1749 = vmatpush3.bf16.msra.mxu0 %v1825_v2  ;;  %1818 = vmatpush3.bf16.msra.mxu1 %v1825_v2  ;;  %v389_v6 = vand.u32 %v1826_v4, %v387_v3  ;;  %v1828_v7 = vld [vmem:[%s3027_s0 + $0x80] sm:$0xff]   ;;  %v1830_v9 = vld [vmem:[%s3027_s0 + $0x88] sm:$0xff]   ;;  %v1833_v12 = vld [vmem:[%s3027_s0 + $0x18] sm:$0xff]  }
  0x2a   :  { %1752 = vmatprep.mubr.msk.bf16.mxu0 %vm287_vm2, %v1827_v5  ;;  %1784 = vmatprep.mubr.msk.bf16.mxu1 %vm287_vm2, %v1828_v7  ;;  %v1834_v13 = vld [vmem:[%s3027_s0 + $0x98] sm:$0xff]   ;;  %v1835_v14 = vld [vmem:[%s3027_s0 + $0x20] sm:$0xff]   ;;  %v1837_v16 = vld [vmem:[%s3027_s0 + $0x28] sm:$0xff]  }
  0x2b   :  { %1750 = vmatprep.subr.bf16.mxu0 %v389_v6  ;;  %1817 = vmatprep.subr.bf16.mxu1 %v389_v6  ;;  %v1836_v15 = vld [vmem:[%s3027_s0 + $0xa0] sm:$0xff]   ;;  %v1838_v17 = vld [vmem:[%s3027_s0 + $0xa8] sm:$0xff]   ;;  %v1839_v18 = vld [vmem:[%s3027_s0 + $0x30] sm:$0xff]  }
  0x2c   :  { %v1840_v19 = vld [vmem:[%s3027_s0 + $0xb0] sm:$0xff]   ;;  %v1841_v20 = vld [vmem:[%s3027_s0 + $0x38] sm:$0xff]   ;;  %v1843_v22 = vld [vmem:[%s3027_s0 + $0x40] sm:$0xff]  }
  0x2d   :  { %1751 = vmatpush3.bf16.msra.mxu0 %v389_v6  ;;  %1819 = vmatpush3.bf16.msra.mxu1 %v389_v6  ;;  %v1842_v21 = vld [vmem:[%s3027_s0 + $0xb8] sm:$0xff]   ;;  %v1844_v23 = vld [vmem:[%s3027_s0 + $0xc0] sm:$0xff]   ;;  %v1845_v24 = vld [vmem:[%s3027_s0 + $0x48] sm:$0xff]  }
  0x2e   :  { %v1846_v25 = vld [vmem:[%s3027_s0 + $0xc8] sm:$0xff]   ;;  %v1847_v26 = vld [vmem:[%s3027_s0 + $0x50] sm:$0xff]   ;;  %v1849_v28 = vld [vmem:[%s3027_s0 + $0x58] sm:$0xff]  }
  0x2f   :  { %v1848_v27 = vld [vmem:[%s3027_s0 + $0xd0] sm:$0xff]   ;;  %v1850_v29 = vld [vmem:[%s3027_s0 + $0xd8] sm:$0xff]   ;;  %v1851_v30 = vld [vmem:[%s3027_s0 + $0x60] sm:$0xff]  }
  0x30   :  { %1753 = vmatmul.mubr.msk.bf16.vlgmr.msra.gmra.mrb[0].mxu0 %vm287_vm2, %v1829_v8  ;;  %1785 = vmatmul.mubr.msk.bf16.vlgmr.msra.gmra.mrb[0].mxu1 %vm287_vm2, %v1830_v9  ;;  %v1852_v31 = vld [vmem:[%s3027_s0 + $0xe0] sm:$0xff]   ;;  %v1853_v32 = vld [vmem:[%s3027_s0 + $0x68] sm:$0xff]   ;;  %v1855_v34 = vld [vmem:[%s3027_s0 + $0x70] sm:$0xff]  }
  0x31   :  { %1756 = vmatprep.mubr.msk.bf16.mxu0 %vm287_vm2, %v1831_v10  ;;  %1788 = vmatprep.mubr.msk.bf16.mxu1 %vm287_vm2, %v1832_v11  ;;  %v1854_v33 = vld [vmem:[%s3027_s0 + $0xe8] sm:$0xff]   ;;  %v1856_v35 = vld [vmem:[%s3027_s0 + $0xf0] sm:$0xff]   ;;  %v1857_v36 = vld [vmem:[%s3027_s0 + $0x78] sm:$0xff]  }
  0x32   :  { %v1858_v37 = vld [vmem:[%s3027_s0 + $0xf8] sm:$0xff]   ;;  %v2341_v38 = vld [vmem:[#allocation4] ss:$0 sm:$0xff] }
  0x38   :  { %1757 = vmatmul.mubr.msk.bf16.gmra.mrb[4].mxu0 %vm287_vm2, %v1833_v12  ;;  %1789 = vmatmul.mubr.msk.bf16.gmra.mrb[4].mxu1 %vm287_vm2, %v1834_v13 }
  0x39   :  { %1760 = vmatprep.mubr.msk.bf16.mxu0 %vm287_vm2, %v1835_v14  ;;  %1792 = vmatprep.mubr.msk.bf16.mxu1 %vm287_vm2, %v1836_v15 }
  0x40   :  { %1761 = vmatmul.mubr.msk.bf16.gmra.mrb[8].mxu0 %vm287_vm2, %v1837_v16  ;;  %1793 = vmatmul.mubr.msk.bf16.gmra.mrb[8].mxu1 %vm287_vm2, %v1838_v17 }
  0x41   :  { %1764 = vmatprep.mubr.msk.bf16.mxu0 %vm287_vm2, %v1839_v18  ;;  %1796 = vmatprep.mubr.msk.bf16.mxu1 %vm287_vm2, %v1840_v19 }
  0x48   :  { %1765 = vmatmul.mubr.msk.bf16.gmra.mrb[12].mxu0 %vm287_vm2, %v1841_v20  ;;  %1797 = vmatmul.mubr.msk.bf16.gmra.mrb[12].mxu1 %vm287_vm2, %v1842_v21 }
  0x49   :  { %1768 = vmatprep.mubr.msk.bf16.mxu0 %vm287_vm2, %v1843_v22  ;;  %1800 = vmatprep.mubr.msk.bf16.mxu1 %vm287_vm2, %v1844_v23 }
  0x50   :  { %1769 = vmatmul.mubr.msk.bf16.gmra.mrb[16].mxu0 %vm287_vm2, %v1845_v24  ;;  %1801 = vmatmul.mubr.msk.bf16.gmra.mrb[16].mxu1 %vm287_vm2, %v1846_v25 }
  0x51   :  { %1772 = vmatprep.mubr.msk.bf16.mxu0 %vm287_vm2, %v1847_v26  ;;  %1804 = vmatprep.mubr.msk.bf16.mxu1 %vm287_vm2, %v1848_v27 }
  0x58   :  { %1773 = vmatmul.mubr.msk.bf16.gmra.mrb[20].mxu0 %vm287_vm2, %v1849_v28  ;;  %1805 = vmatmul.mubr.msk.bf16.gmra.mrb[20].mxu1 %vm287_vm2, %v1850_v29 }
  0x59   :  { %1776 = vmatprep.mubr.msk.bf16.mxu0 %vm287_vm2, %v1851_v30  ;;  %1808 = vmatprep.mubr.msk.bf16.mxu1 %vm287_vm2, %v1852_v31 }
  0x60   :  { %1777 = vmatmul.mubr.msk.bf16.gmra.mrb[24].mxu0 %vm287_vm2, %v1853_v32  ;;  %1809 = vmatmul.mubr.msk.bf16.gmra.mrb[24].mxu1 %vm287_vm2, %v1854_v33 }
  0x61   :  { %1780 = vmatprep.mubr.msk.bf16.mxu0 %vm287_vm2, %v1855_v34  ;;  %1812 = vmatprep.mubr.msk.bf16.mxu1 %vm287_vm2, %v1856_v35 }
  0x68   :  { %1781 = vmatmul.mubr.msk.bf16.gmra.mrb[28].mxu0 %vm287_vm2, %v1857_v36  ;;  %1813 = vmatmul.mubr.msk.bf16.gmra.mrb[28].mxu1 %vm287_vm2, %v1858_v37 }
 0x103   :  { %v1754_v39 = vpop.f32.mrb[0].mxu0  ;;  %v1786_v40 = vpop.f32.mrb[0].mxu1 }
 0x104   :  { %v2344_v41 = vadd.f32 %v1754_v39, %v2341_v38  ;;  %v2347_v42 = vadd.f32 %v1786_v40, %v2341_v38  ;;  %v425_v43 = vpop.f32.mrb[1].mxu0  ;;  %v553_v44 = vpop.f32.mrb[1].mxu1 }
 0x105   :  { %v2350_v45 = vadd.f32 %v2341_v38, %v425_v43  ;;  %v2353_v46 = vadd.f32 %v2341_v38, %v553_v44  ;;  %v1755_v47 = vpop.f32.mrb[2].mxu0  ;;  %v1787_v48 = vpop.f32.mrb[2].mxu1 }
 0x106   :  { %v1524_v49 = vmul.f32 -1.442695, %v2344_v41  ;;  %v1556_v50 = vmul.f32 -1.442695, %v2347_v42  ;;  %v2358_v51 = vadd.f32 %v1755_v47, %v2341_v38  ;;  %v2361_v52 = vadd.f32 %v1787_v48, %v2341_v38  ;;  %v428_v53 = vpop.f32.mrb[3].mxu0  ;;  %v556_v54 = vpop.f32.mrb[3].mxu1 }
 0x107   :  { %v1522_v55 = vmul.f32 -1.442695, %v2350_v45  ;;  %v1554_v56 = vmul.f32 -1.442695, %v2353_v46  ;;  %v2366_v57 = vadd.f32 %v2341_v38, %v428_v53  ;;  %v2369_v58 = vadd.f32 %v2341_v38, %v556_v54 }
 0x108   :  { %1859 = vpow2.f32 %v1524_v49  ;;  %v1525_v59 = vmul.f32 -1.442695, %v2358_v51  ;;  %v1557_v60 = vmul.f32 -1.442695, %v2361_v52 }
 0x109   :  { %1861 = vpow2.f32 %v1556_v50  ;;  %v1523_v61 = vmul.f32 -1.442695, %v2366_v57  ;;  %v1555_v62 = vmul.f32 -1.442695, %v2369_v58 }
 0x10a   :  { %1863 = vpow2.f32 %v1522_v55 }
 0x10b   :  { %1865 = vpow2.f32 %v1554_v56  ;;  %v1758_v63 = vpop.f32.mrb[4].mxu0  ;;  %v1790_v0 = vpop.f32.mrb[4].mxu1 }
 0x10c   :  { %1867 = vpow2.f32 %v1525_v59  ;;  %v2376_v1 = vadd.f32 %v1758_v63, %v2341_v38  ;;  %v2379_v2 = vadd.f32 %v1790_v0, %v2341_v38  ;;  %v441_v3 = vpop.f32.mrb[5].mxu0  ;;  %v569_v4 = vpop.f32.mrb[5].mxu1 }
 0x10d   :  { %1869 = vpow2.f32 %v1557_v60  ;;  %v2382_v5 = vadd.f32 %v2341_v38, %v441_v3  ;;  %v2385_v6 = vadd.f32 %v2341_v38, %v569_v4  ;;  %v1759_v7 = vpop.f32.mrb[6].mxu0  ;;  %v1791_v8 = vpop.f32.mrb[6].mxu1 }
 0x10e   :  { %1871 = vpow2.f32 %v1523_v61  ;;  %v1528_v9 = vmul.f32 -1.442695, %v2376_v1  ;;  %v1560_v10 = vmul.f32 -1.442695, %v2379_v2  ;;  %v2390_v11 = vadd.f32 %v1759_v7, %v2341_v38  ;;  %v444_v12 = vpop.f32.mrb[7].mxu0  ;;  %v572_v13 = vpop.f32.mrb[7].mxu1 }
 0x10f   :  { %1873 = vpow2.f32 %v1555_v62  ;;  %v1526_v14 = vmul.f32 -1.442695, %v2382_v5  ;;  %v1558_v15 = vmul.f32 -1.442695, %v2385_v6  ;;  %v2396_v35 = vadd.f32 %v1791_v8, %v2341_v38 }
 0x110   :  { %1875 = vpow2.f32 %v1528_v9  ;;  %v1529_v16 = vmul.f32 -1.442695, %v2390_v11  ;;  %v2399_v40 = vadd.f32 %v2341_v38, %v444_v12  ;;  %v2402_v47 = vadd.f32 %v2341_v38, %v572_v13 }
 0x111   :  { %1877 = vpow2.f32 %v1560_v10  ;;  %v1561_v55 = vmul.f32 -1.442695, %v2396_v35 }
 0x112   :  { %v1860_v17 = vpop.eup %1859  ;;  %1879 = vpow2.f32 %v1526_v14  ;;  %v1527_v62 = vmul.f32 -1.442695, %v2399_v40  ;;  %v1559_v8 = vmul.f32 -1.442695, %v2402_v47 }
 0x113   :  { %v1862_v18 = vpop.eup %1861  ;;  %v874_v19 = vadd.f32 1.0, %v1860_v17  ;;  %1881 = vpow2.f32 %v1558_v15  ;;  %v1762_v20 = vpop.f32.mrb[8].mxu0 }
 0x114   :  { %v1794_v21 = vpop.f32.mrb[8].mxu1  ;;  %v1864_v22 = vpop.eup %1863  ;;  %v906_v23 = vadd.f32 1.0, %v1862_v18  ;;  %1883 = vpow2.f32 %v1529_v16  ;;  %v2405_v50 = vadd.f32 %v1762_v20, %v2341_v38 }
 0x115   :  { %v457_v24 = vpop.f32.mrb[9].mxu0  ;;  %v585_v25 = vpop.f32.mrb[9].mxu1  ;;  %1885 = vrcp.f32 %v874_v19  ;;  %v872_v27 = vadd.f32 1.0, %v1864_v22  ;;  %v2409_v56 = vadd.f32 %v1794_v21, %v2341_v38 }
 0x116   :  { %v1866_v26 = vpop.eup %1865  ;;  %v1763_v28 = vpop.f32.mrb[10].mxu0  ;;  %1887 = vrcp.f32 %v906_v23  ;;  %v2415_v63 = vadd.f32 %v2341_v38, %v457_v24  ;;  %v2423_v9 = vadd.f32 %v2341_v38, %v585_v25  ;;  %v1532_v15 = vmul.f32 -1.442695, %v2405_v50 }
 0x117   :  { %v1795_v29 = vpop.f32.mrb[10].mxu1  ;;  %v1868_v30 = vpop.eup %1867  ;;  %v904_v31 = vadd.f32 1.0, %v1866_v26  ;;  %1889 = vrcp.f32 %v872_v27  ;;  %v1564_v20 = vmul.f32 -1.442695, %v2409_v56  ;;  %v2436_v21 = vadd.f32 %v1763_v28, %v2341_v38 }
 0x118   :  { %v460_v32 = vpop.f32.mrb[11].mxu0  ;;  %v1870_v33 = vpop.eup %1869  ;;  %v875_v34 = vadd.f32 1.0, %v1868_v30  ;;  %v1530_v25 = vmul.f32 -1.442695, %v2415_v63  ;;  %v2443_v26 = vadd.f32 %v1795_v29, %v2341_v38 }
 0x119   :  { %v588_v36 = vpop.f32.mrb[11].mxu1  ;;  %v1872_v37 = vpop.eup %1871  ;;  %1891 = vrcp.f32 %v904_v31  ;;  %v907_v39 = vadd.f32 1.0, %v1870_v33  ;;  %v1562_v31 = vmul.f32 -1.442695, %v2423_v9  ;;  %v2448_v28 = vadd.f32 %v2341_v38, %v460_v32 }
 0x11a   :  { %v1874_v43 = vpop.eup %1873  ;;  %1893 = vrcp.f32 %v875_v34  ;;  %v873_v44 = vadd.f32 1.0, %v1872_v37 }
 0x11b   :  { %v1876_v48 = vpop.eup %1875  ;;  %1895 = vrcp.f32 %v907_v39  ;;  %v905_v49 = vadd.f32 1.0, %v1874_v43  ;;  %v2411_v59 = vpop.f32.mrb[12].mxu0 }
 0x11c   :  { %v1878_v53 = vpop.eup %1877  ;;  %1897 = vrcp.f32 %v873_v44  ;;  %v878_v54 = vadd.f32 1.0, %v1876_v48  ;;  %v2417_v0 = vpop.f32.mrb[12].mxu1 }
 0x11d   :  { %v1880_v60 = vpop.eup %1879  ;;  %1899 = vrcp.f32 %v905_v49  ;;  %v910_v61 = vadd.f32 1.0, %v1878_v53  ;;  %v2419_v3 = vpop.f32.mrb[13].mxu0  ;;  %v1565_v49 = vmul.f32 -1.442695, %v2443_v26 }
 0x11e   :  { %v1882_v4 = vpop.eup %1881  ;;  %1901 = vrcp.f32 %v878_v54  ;;  %v876_v7 = vadd.f32 1.0, %v1880_v60  ;;  %v2425_v10 = vpop.f32.mrb[13].mxu1 }
 0x11f   :  { %v2427_v12 = vpop.f32.mrb[14].mxu0  ;;  %v1884_v13 = vpop.eup %1883  ;;  %1903 = vrcp.f32 %v910_v61  ;;  %v908_v14 = vadd.f32 1.0, %v1882_v4 }
 0x120   :  { %v2430_v16 = vpop.f32.mrb[14].mxu1  ;;  %v2432_v17 = vpop.f32.mrb[15].mxu0  ;;  %1905 = vrcp.f32 %v876_v7  ;;  %v879_v19 = vadd.f32 1.0, %v1884_v13 }
 0x121   :  { %v1886_v18 = vpop.eup %1885  ;;  %v2438_v22 = vpop.f32.mrb[15].mxu1  ;;  %1907 = vrcp.f32 %v908_v14 }
 0x122   :  { %v1888_v23 = vpop.eup %1887  ;;  %v1066_v24 = vmul.f32 %v1886_v18, %v2344_v41  ;;  %1909 = vrcp.f32 %v879_v19  ;;  %v2452_v41 = vadd.f32 %v2341_v38, %v588_v36 }
 0x123   :  { %v1890_v27 = vpop.eup %1889  ;;  %v1098_v30 = vmul.f32 %v1888_v23, %v2347_v42  ;;  %1911 = vpow2.f32 %v1561_v55  ;;  %v1533_v42 = vmul.f32 -1.442695, %v2436_v21  ;;  %v2456_v44 = vpop.f32.mrb[16].mxu0 }
 0x124   :  { %v1892_v33 = vpop.eup %1891  ;;  %v1652_v34 = vpack.c.bf16 %v1066_v24, %v1066_v24  ;;  %v1064_v37 = vmul.f32 %v1890_v27, %v2350_v45  ;;  %1913 = vpow2.f32 %v1527_v62  ;;  %v2458_v48 = vpop.f32.mrb[16].mxu1  ;;  %v1563_v23 = vmul.f32 -1.442695, %v2452_v41 }
 0x125   :  { %v1894_v39 = vpop.eup %1893  ;;  %v1684_v29 = vpack.c.bf16 %v1098_v30, %v1098_v30  ;;  %v1096_v43 = vmul.f32 %v1892_v33, %v2353_v46  ;;  %1915 = vpow2.f32 %v1559_v8  ;;  %v2466_v46 = vpop.f32.mrb[17].mxu0 }
 0x126   :  { %v1896_v32 = vpop.eup %1895  ;;  %1387 = vst.msk [vmem:[%s3030_s3 + $0x8] sm:$0xf] %vm1384_vm3, %v1652_v34  ;;  %v1650_v45 = vpack.c.bf16 %v1064_v37, %v1064_v37  ;;  %v1067_v36 = vmul.f32 %v1894_v39, %v2358_v51  ;;  %v2468_v53 = vpop.f32.mrb[17].mxu1  ;;  %1917 = vpow2.f32 %v1532_v15  ;;  %v2477_v51 = vadd.f32 %v2411_v59, %v2341_v38 }
 0x127   :  { %v1898_v54 = vpop.eup %1897  ;;  %1419 = vst.msk [vmem:[%s3030_s3 + $0x88] sm:$0xf] %vm1384_vm3, %v1684_v29  ;;  %v1682_v55 = vpack.c.bf16 %v1096_v43, %v1096_v43  ;;  %v1099_v60 = vmul.f32 %v1896_v32, %v2361_v52  ;;  %v2479_v61 = vpop.f32.mrb[18].mxu0  ;;  %1919 = vpow2.f32 %v1564_v20  ;;  %v2490_v52 = vadd.f32 %v2417_v0, %v2341_v38 }
 0x128   :  { %v2481_v62 = vpop.f32.mrb[18].mxu1  ;;  %v1900_v4 = vpop.eup %1899  ;;  %1385 = vst.msk [vmem:[%s3030_s3] sm:$0xf] %vm1384_vm3, %v1650_v45  ;;  %v1653_v7 = vpack.c.bf16 %v1067_v36, %v1067_v36  ;;  %v1065_v8 = vmul.f32 %v1898_v54, %v2366_v57  ;;  %1921 = vpow2.f32 %v1530_v25  ;;  %v1531_v57 = vmul.f32 -1.442695, %v2448_v28 }
 0x129   :  { %v2492_v59 = vpop.f32.mrb[19].mxu0  ;;  %v2494_v13 = vpop.f32.mrb[19].mxu1  ;;  %1417 = vst.msk [vmem:[%s3030_s3 + $0x80] sm:$0xf] %vm1384_vm3, %v1682_v55  ;;  %v1685_v15 = vpack.c.bf16 %v1099_v60, %v1099_v60  ;;  %v1097_v18 = vmul.f32 %v1900_v4, %v2369_v58  ;;  %1923 = vpow2.f32 %v1562_v31  ;;  %v1536_v27 = vmul.f32 -1.442695, %v2477_v51 }
 0x12a   :  { %v1902_v14 = vpop.eup %1901  ;;  %1388 = vst.msk [vmem:[%s3030_s3 + $0xc] sm:$0xf] %vm1384_vm3, %v1653_v7  ;;  %v1651_v0 = vpack.c.bf16 %v1065_v8, %v1065_v8  ;;  %1925 = vpow2.f32 %v1533_v42  ;;  %v1568_v33 = vmul.f32 -1.442695, %v2490_v52 }
 0x12b   :  { %v1904_v19 = vpop.eup %1903  ;;  %v1070_v20 = vmul.f32 %v1902_v14, %v2376_v1  ;;  %1420 = vst.msk [vmem:[%s3030_s3 + $0x8c] sm:$0xf] %vm1384_vm3, %v1685_v15  ;;  %v1683_v58 = vpack.c.bf16 %v1097_v18, %v1097_v18  ;;  %1927 = vpow2.f32 %v1565_v49  ;;  %v2525_v39 = vpop.f32.mrb[20].mxu0 }
 0x12c   :  { %v1906_v24 = vpop.eup %1905  ;;  %v1102_v25 = vmul.f32 %v1904_v19, %v2379_v2  ;;  %1386 = vst.msk [vmem:[%s3030_s3 + $0x4] sm:$0xf] %vm1384_vm3, %v1651_v0  ;;  %1929 = vpow2.f32 %v1531_v57  ;;  %v2527_v29 = vpop.f32.mrb[20].mxu1  ;;  %v2564_v19 = vadd.f32 %v2341_v38, %v2419_v3  ;;  %v2573_v3 = vadd.f32 %v2341_v38, %v2425_v10 }
 0x12d   :  { %v1908_v30 = vpop.eup %1907  ;;  %v1656_v1 = vpack.c.bf16 %v1070_v20, %v1070_v20  ;;  %v1068_v31 = vmul.f32 %v1906_v24, %v2382_v5  ;;  %1418 = vst.msk [vmem:[%s3030_s3 + $0x84] sm:$0xf] %vm1384_vm3, %v1683_v58  ;;  %1931 = vpow2.f32 %v1563_v23  ;;  %v2534_v32 = vpop.f32.mrb[21].mxu0 }
 0x12e   :  { %v1910_v34 = vpop.eup %1909  ;;  %v1688_v2 = vpack.c.bf16 %v1102_v25, %v1102_v25  ;;  %v1100_v37 = vmul.f32 %v1908_v30, %v2385_v6  ;;  %v2536_v45 = vpop.f32.mrb[21].mxu1  ;;  %1933 = vpow2.f32 %v1536_v27 }
 0x12f   :  { %v1912_v43 = vpop.eup %1911  ;;  %1391 = vst.msk [vmem:[%s3030_s3 + $0x18] sm:$0xf] %vm1384_vm3, %v1656_v1  ;;  %v1654_v5 = vpack.c.bf16 %v1068_v31, %v1068_v31  ;;  %v1071_v42 = vmul.f32 %v1910_v34, %v2390_v11  ;;  %v2542_v54 = vpop.f32.mrb[22].mxu0  ;;  %1935 = vpow2.f32 %v1568_v33  ;;  %v1534_v33 = vmul.f32 -1.442695, %v2564_v19 }
 0x130   :  { %v1914_v6 = vpop.eup %1913  ;;  %1423 = vst.msk [vmem:[%s3030_s3 + $0x98] sm:$0xf] %vm1384_vm3, %v1688_v2  ;;  %v1686_v36 = vpack.c.bf16 %v1100_v37, %v1100_v37  ;;  %v911_v49 = vadd.f32 1.0, %v1912_v43  ;;  %v2544_v55 = vpop.f32.mrb[22].mxu1 }
 0x131   :  { %v1916_v60 = vpop.eup %1915  ;;  %1389 = vst.msk [vmem:[%s3030_s3 + $0x10] sm:$0xf] %vm1384_vm3, %v1654_v5  ;;  %v1657_v11 = vpack.c.bf16 %v1071_v42, %v1071_v42  ;;  %v877_v4 = vadd.f32 1.0, %v1914_v6  ;;  %v2550_v7 = vpop.f32.mrb[23].mxu0  ;;  %v2581_v5 = vadd.f32 %v2427_v12, %v2341_v38  ;;  %v2585_v42 = vadd.f32 %v2430_v16, %v2341_v38 }
 0x132   :  { %v2552_v8 = vpop.f32.mrb[23].mxu1  ;;  %v1918_v14 = vpop.eup %1917  ;;  %1421 = vst.msk [vmem:[%s3030_s3 + $0x90] sm:$0xf] %vm1384_vm3, %v1686_v36  ;;  %1937 = vrcp.f32 %v911_v49  ;;  %v909_v15 = vadd.f32 1.0, %v1916_v60  ;;  %v2593_v60 = vadd.f32 %v2341_v38, %v2432_v17 }
 0x133   :  { %v1920_v18 = vpop.eup %1919  ;;  %1392 = vst.msk [vmem:[%s3030_s3 + $0x1c] sm:$0xf] %vm1384_vm3, %v1657_v11  ;;  %1939 = vrcp.f32 %v877_v4  ;;  %v882_v57 = vadd.f32 1.0, %v1918_v14  ;;  %v2566_v27 = vpop.f32.mrb[24].mxu0  ;;  %v2597_v11 = vadd.f32 %v2341_v38, %v2438_v22  ;;  %v1566_v22 = vmul.f32 -1.442695, %v2573_v3 }
 0x134   :  { %v1922_v0 = vpop.eup %1921  ;;  %1941 = vrcp.f32 %v909_v15  ;;  %v914_v20 = vadd.f32 1.0, %v1920_v18  ;;  %v2568_v30 = vpop.f32.mrb[24].mxu1  ;;  %v2605_v15 = vadd.f32 %v2456_v44, %v2341_v38  ;;  %v2609_v18 = vadd.f32 %v2458_v48, %v2341_v38 }
 0x135   :  { %v1924_v23 = vpop.eup %1923  ;;  %1943 = vrcp.f32 %v882_v57  ;;  %v880_v24 = vadd.f32 1.0, %v1922_v0  ;;  %v2575_v34 = vpop.f32.mrb[25].mxu0  ;;  %v2614_v0 = vadd.f32 %v2341_v38, %v2466_v46  ;;  %v1569_v44 = vmul.f32 -1.442695, %v2585_v42 }
 0x136   :  { %v1926_v58 = vpop.eup %1925  ;;  %1945 = vrcp.f32 %v914_v20  ;;  %v912_v25 = vadd.f32 1.0, %v1924_v23  ;;  %v2577_v2 = vpop.f32.mrb[25].mxu1  ;;  %v1540_v46 = vmul.f32 -1.442695, %v2605_v15 }
 0x137   :  { %v1928_v1 = vpop.eup %1927  ;;  %1947 = vrcp.f32 %v880_v24  ;;  %v883_v31 = vadd.f32 1.0, %v1926_v58  ;;  %v2587_v6 = vpop.f32.mrb[26].mxu0  ;;  %v1537_v24 = vmul.f32 -1.442695, %v2581_v5 }
 0x138   :  { %v1930_v37 = vpop.eup %1929  ;;  %1949 = vrcp.f32 %v912_v25  ;;  %v915_v43 = vadd.f32 1.0, %v1928_v1  ;;  %v2589_v36 = vpop.f32.mrb[26].mxu1  ;;  %v1535_v25 = vmul.f32 -1.442695, %v2593_v60  ;;  %v1567_v1 = vmul.f32 -1.442695, %v2597_v11 }
 0x139   :  { %v1932_v10 = vpop.eup %1931  ;;  %1951 = vrcp.f32 %v883_v31  ;;  %v881_v49 = vadd.f32 1.0, %v1930_v37  ;;  %v2599_v12 = vpop.f32.mrb[27].mxu0 }
 0x13a   :  { %v2601_v4 = vpop.f32.mrb[27].mxu1  ;;  %v1934_v16 = vpop.eup %1933  ;;  %1953 = vrcp.f32 %v915_v43  ;;  %v913_v14 = vadd.f32 1.0, %v1932_v10  ;;  %v1572_v43 = vmul.f32 -1.442695, %v2609_v18 }
 0x13b   :  { %v1936_v17 = vpop.eup %1935  ;;  %1955 = vrcp.f32 %v881_v49  ;;  %v886_v57 = vadd.f32 1.0, %v1934_v16  ;;  %v2624_v10 = vpop.f32.mrb[28].mxu0 }
 0x13c   :  { %v1938_v20 = vpop.eup %1937  ;;  %1957 = vrcp.f32 %v913_v14  ;;  %v918_v23 = vadd.f32 1.0, %v1936_v17  ;;  %3031 = vst [vmem:[#allocation8_spill] sm:$0xff] %v2624_v10  ;;  %v2626_v49 = vpop.f32.mrb[28].mxu1  ;;  %v1538_v17 = vmul.f32 -1.442695, %v2614_v0  ;;  %v2637_v10 = vadd.f32 %v2341_v38, %v2468_v53 }
 0x13d   :  { %v1940_v58 = vpop.eup %1939  ;;  %v1103_v48 = vmul.f32 %v1938_v20, %v2396_v35  ;;  %1959 = vrcp.f32 %v886_v57  ;;  %3032 = vst [vmem:[#allocation9_spill] sm:$0xff] %v2626_v49  ;;  %v2630_v57 = vpop.f32.mrb[29].mxu0 }
 0x13e   :  { %v1942_v31 = vpop.eup %1941  ;;  %v1069_v37 = vmul.f32 %v1940_v58, %v2399_v40  ;;  %1961 = vrcp.f32 %v918_v23  ;;  %v2632_v20 = vpop.f32.mrb[29].mxu1 }
 0x13f   :  { %v1944_v16 = vpop.eup %1943  ;;  %v1689_v14 = vpack.c.bf16 %v1103_v48, %v1103_v48  ;;  %v1101_v35 = vmul.f32 %v1942_v31, %v2402_v47  ;;  %1963 = vpow2.f32 %v1534_v33  ;;  %v2639_v49 = vpop.f32.mrb[30].mxu0 }
 0x140   :  { %v1946_v40 = vpop.eup %1945  ;;  %v1655_v23 = vpack.c.bf16 %v1069_v37, %v1069_v37  ;;  %v1074_v58 = vmul.f32 %v1944_v16, %v2405_v50  ;;  %1965 = vpow2.f32 %v1566_v22  ;;  %v2641_v48 = vpop.f32.mrb[30].mxu1  ;;  %v2650_v50 = vadd.f32 %v2479_v61, %v2341_v38 }
 0x141   :  { %v1948_v47 = vpop.eup %1947  ;;  %1424 = vst.msk [vmem:[%s3030_s3 + $0x9c] sm:$0xf] %vm1384_vm3, %v1689_v14  ;;  %v1687_v33 = vpack.c.bf16 %v1101_v35, %v1101_v35  ;;  %v1106_v31 = vmul.f32 %v1946_v40, %v2409_v56  ;;  %1967 = vpow2.f32 %v1537_v24  ;;  %v2652_v53 = vpop.f32.mrb[31].mxu0  ;;  %v2663_v56 = vadd.f32 %v2481_v62, %v2341_v38 }
 0x142   :  { %v2654_v22 = vpop.f32.mrb[31].mxu1  ;;  %v1950_v37 = vpop.eup %1949  ;;  %1390 = vst.msk [vmem:[%s3030_s3 + $0x14] sm:$0xf] %vm1384_vm3, %v1655_v23  ;;  %v1660_v16 = vpack.c.bf16 %v1074_v58, %v1074_v58  ;;  %v1072_v14 = vmul.f32 %v1948_v47, %v2415_v63  ;;  %1969 = vpow2.f32 %v1569_v44  ;;  %v2672_v40 = vadd.f32 %v2341_v38, %v2492_v59 }
 0x143   :  { %v1952_v61 = vpop.eup %1951  ;;  %1422 = vst.msk [vmem:[%s3030_s3 + $0x94] sm:$0xf] %vm1384_vm3, %v1687_v33  ;;  %v1692_v24 = vpack.c.bf16 %v1106_v31, %v1106_v31  ;;  %v1104_v35 = vmul.f32 %v1950_v37, %v2423_v9  ;;  %1971 = vpow2.f32 %v1535_v25  ;;  %v1570_v23 = vmul.f32 -1.442695, %v2637_v10 }
 0x144   :  { %v1954_v63 = vpop.eup %1953  ;;  %1395 = vst.msk [vmem:[%s3030_s3 + $0x28] sm:$0xf] %vm1384_vm3, %v1660_v16  ;;  %v1658_v62 = vpack.c.bf16 %v1072_v14, %v1072_v14  ;;  %v1075_v44 = vmul.f32 %v1952_v61, %v2436_v21  ;;  %1973 = vpow2.f32 %v1567_v1  ;;  %v1541_v25 = vmul.f32 -1.442695, %v2650_v50 }
 0x145   :  { %v1956_v58 = vpop.eup %1955  ;;  %1427 = vst.msk [vmem:[%s3030_s3 + $0xa8] sm:$0xf] %vm1384_vm3, %v1692_v24  ;;  %v1690_v9 = vpack.c.bf16 %v1104_v35, %v1104_v35  ;;  %v1107_v59 = vmul.f32 %v1954_v63, %v2443_v26  ;;  %1975 = vpow2.f32 %v1540_v46  ;;  %v1573_v33 = vmul.f32 -1.442695, %v2663_v56 }
 0x146   :  { %v1958_v47 = vpop.eup %1957  ;;  %1393 = vst.msk [vmem:[%s3030_s3 + $0x20] sm:$0xf] %vm1384_vm3, %v1658_v62  ;;  %v1661_v21 = vpack.c.bf16 %v1075_v44, %v1075_v44  ;;  %v1073_v1 = vmul.f32 %v1956_v58, %v2448_v28  ;;  %1977 = vpow2.f32 %v1572_v43  ;;  %v1539_v37 = vmul.f32 -1.442695, %v2672_v40 }
 0x147   :  { %v1960_v31 = vpop.eup %1959  ;;  %1425 = vst.msk [vmem:[%s3030_s3 + $0xa0] sm:$0xf] %vm1384_vm3, %v1690_v9  ;;  %v1693_v26 = vpack.c.bf16 %v1107_v59, %v1107_v59  ;;  %v1105_v46 = vmul.f32 %v1958_v47, %v2452_v41  ;;  %1979 = vpow2.f32 %v1538_v17 }
 0x148   :  { %v1962_v16 = vpop.eup %1961  ;;  %1396 = vst.msk [vmem:[%s3030_s3 + $0x2c] sm:$0xf] %vm1384_vm3, %v1661_v21  ;;  %v1659_v28 = vpack.c.bf16 %v1073_v1, %v1073_v1  ;;  %v1078_v43 = vmul.f32 %v1960_v31, %v2477_v51  ;;  %1981 = vpow2.f32 %v1570_v23 }
 0x149   :  { %v1964_v14 = vpop.eup %1963  ;;  %1428 = vst.msk [vmem:[%s3030_s3 + $0xac] sm:$0xf] %vm1384_vm3, %v1693_v26  ;;  %v1691_v41 = vpack.c.bf16 %v1105_v46, %v1105_v46  ;;  %v1110_v17 = vmul.f32 %v1962_v16, %v2490_v52  ;;  %1983 = vpow2.f32 %v1541_v25  ;;  %v2726_v25 = vadd.f32 %v2341_v38, %v2494_v13 }
 0x14a   :  { %v1966_v61 = vpop.eup %1965  ;;  %1394 = vst.msk [vmem:[%s3030_s3 + $0x24] sm:$0xf] %vm1384_vm3, %v1659_v28  ;;  %v1664_v24 = vpack.c.bf16 %v1078_v43, %v1078_v43  ;;  %v884_v35 = vadd.f32 1.0, %v1964_v14  ;;  %1985 = vpow2.f32 %v1573_v33  ;;  %v2730_v46 = vadd.f32 %v2525_v39, %v2341_v38 }
 0x14b   :  { %v1968_v51 = vpop.eup %1967  ;;  %1426 = vst.msk [vmem:[%s3030_s3 + $0xa4] sm:$0xf] %vm1384_vm3, %v1691_v41  ;;  %v1696_v63 = vpack.c.bf16 %v1110_v17, %v1110_v17  ;;  %v916_v62 = vadd.f32 1.0, %v1966_v61  ;;  %1987 = vpow2.f32 %v1539_v37  ;;  %v2734_v37 = vadd.f32 %v2527_v29, %v2341_v38 }
 0x14c   :  { %v1970_v52 = vpop.eup %1969  ;;  %1399 = vst.msk [vmem:[%s3030_s3 + $0x38] sm:$0xf] %vm1384_vm3, %v1664_v24  ;;  %1989 = vrcp.f32 %v884_v35  ;;  %v887_v44 = vadd.f32 1.0, %v1968_v51  ;;  %v1571_v28 = vmul.f32 -1.442695, %v2726_v25  ;;  %v2739_v43 = vadd.f32 %v2341_v38, %v2534_v32 }
 0x14d   :  { %v1972_v23 = vpop.eup %1971  ;;  %1431 = vst.msk [vmem:[%s3030_s3 + $0xb8] sm:$0xf] %vm1384_vm3, %v1696_v63  ;;  %1991 = vrcp.f32 %v916_v62  ;;  %v919_v58 = vadd.f32 1.0, %v1970_v52  ;;  %v2743_v39 = vadd.f32 %v2341_v38, %v2536_v45  ;;  %v2747_v29 = vadd.f32 %v2542_v54, %v2341_v38 }
 0x14e   :  { %v1974_v9 = vpop.eup %1973  ;;  %1993 = vrcp.f32 %v887_v44  ;;  %v885_v59 = vadd.f32 1.0, %v1972_v23  ;;  %v2751_v24 = vadd.f32 %v2544_v55, %v2341_v38  ;;  %v2755_v32 = vadd.f32 %v2341_v38, %v2550_v7 }
 0x14f   :  { %v1976_v47 = vpop.eup %1975  ;;  %1995 = vrcp.f32 %v919_v58  ;;  %v917_v21 = vadd.f32 1.0, %v1974_v9  ;;  %v1544_v45 = vmul.f32 -1.442695, %v2730_v46  ;;  %v1576_v63 = vmul.f32 -1.442695, %v2734_v37 }
 0x150   :  { %v1978_v1 = vpop.eup %1977  ;;  %1997 = vrcp.f32 %v885_v59  ;;  %v890_v33 = vadd.f32 1.0, %v1976_v47  ;;  %v1542_v52 = vmul.f32 -1.442695, %v2739_v43  ;;  %v2762_v55 = vadd.f32 %v2341_v38, %v2552_v8 }
 0x151   :  { %v1980_v31 = vpop.eup %1979  ;;  %1999 = vrcp.f32 %v917_v21  ;;  %v922_v26 = vadd.f32 1.0, %v1978_v1  ;;  %v1574_v23 = vmul.f32 -1.442695, %v2743_v39  ;;  %v1545_v58 = vmul.f32 -1.442695, %v2747_v29 }
 0x152   :  { %v1982_v16 = vpop.eup %1981  ;;  %2001 = vrcp.f32 %v890_v33  ;;  %v888_v13 = vadd.f32 1.0, %v1980_v31  ;;  %v1577_v47 = vmul.f32 -1.442695, %v2751_v24  ;;  %v1543_v21 = vmul.f32 -1.442695, %v2755_v32 }
 0x153   :  { %v1984_v14 = vpop.eup %1983  ;;  %2003 = vrcp.f32 %v922_v26  ;;  %v920_v41 = vadd.f32 1.0, %v1982_v16 }
 0x154   :  { %v1986_v17 = vpop.eup %1985  ;;  %2005 = vrcp.f32 %v888_v13  ;;  %v891_v61 = vadd.f32 1.0, %v1984_v14 }
 0x155   :  { %v1988_v35 = vpop.eup %1987  ;;  %2007 = vrcp.f32 %v920_v41  ;;  %v923_v51 = vadd.f32 1.0, %v1986_v17  ;;  %v2793_v17 = vadd.f32 %v2341_v38, %v2575_v34 }
 0x156   :  { %v1990_v54 = vpop.eup %1989  ;;  %2009 = vrcp.f32 %v891_v61  ;;  %v889_v62 = vadd.f32 1.0, %v1988_v35  ;;  %v2802_v35 = vadd.f32 %v2341_v38, %v2577_v2 }
 0x157   :  { %v1992_v44 = vpop.eup %1991  ;;  %v1076_v7 = vmul.f32 %v1990_v54, %v2564_v19  ;;  %2011 = vrcp.f32 %v923_v51  ;;  %v2773_v19 = vadd.f32 %v2566_v27, %v2341_v38  ;;  %v2784_v27 = vadd.f32 %v2568_v30, %v2341_v38 }
 0x158   :  { %v1994_v9 = vpop.eup %1993  ;;  %v1108_v59 = vmul.f32 %v1992_v44, %v2573_v3  ;;  %2013 = vrcp.f32 %v889_v62  ;;  %v1575_v3 = vmul.f32 -1.442695, %v2762_v55 }
 0x159   :  { %v1996_v1 = vpop.eup %1995  ;;  %v1662_v33 = vpack.c.bf16 %v1076_v7, %v1076_v7  ;;  %v1079_v8 = vmul.f32 %v1994_v9, %v2581_v5  ;;  %2015 = vpow2.f32 %v1571_v28 }
 0x15a   :  { %v1998_v31 = vpop.eup %1997  ;;  %v1694_v26 = vpack.c.bf16 %v1108_v59, %v1108_v59  ;;  %v1111_v16 = vmul.f32 %v1996_v1, %v2585_v42  ;;  %2017 = vpow2.f32 %v1544_v45  ;;  %v1548_v45 = vmul.f32 -1.442695, %v2773_v19 }
 0x15b   :  { %v2000_v13 = vpop.eup %1999  ;;  %1397 = vst.msk [vmem:[%s3030_s3 + $0x30] sm:$0xf] %vm1384_vm3, %v1662_v33  ;;  %v1665_v14 = vpack.c.bf16 %v1079_v8, %v1079_v8  ;;  %v1077_v5 = vmul.f32 %v1998_v31, %v2593_v60  ;;  %2019 = vpow2.f32 %v1576_v63 }
 0x15c   :  { %v2002_v28 = vpop.eup %2001  ;;  %1429 = vst.msk [vmem:[%s3030_s3 + $0xb0] sm:$0xf] %vm1384_vm3, %v1694_v26  ;;  %v1697_v42 = vpack.c.bf16 %v1111_v16, %v1111_v16  ;;  %v1109_v41 = vmul.f32 %v2000_v13, %v2597_v11  ;;  %2021 = vpow2.f32 %v1542_v52  ;;  %v1546_v52 = vmul.f32 -1.442695, %v2793_v17 }
 0x15d   :  { %v2004_v60 = vpop.eup %2003  ;;  %1400 = vst.msk [vmem:[%s3030_s3 + $0x3c] sm:$0xf] %vm1384_vm3, %v1665_v14  ;;  %v1663_v30 = vpack.c.bf16 %v1077_v5, %v1077_v5  ;;  %v1082_v61 = vmul.f32 %v2002_v28, %v2605_v15  ;;  %2023 = vpow2.f32 %v1574_v23  ;;  %v1580_v15 = vmul.f32 -1.442695, %v2784_v27 }
 0x15e   :  { %v2006_v11 = vpop.eup %2005  ;;  %1432 = vst.msk [vmem:[%s3030_s3 + $0xbc] sm:$0xf] %vm1384_vm3, %v1697_v42  ;;  %v1695_v34 = vpack.c.bf16 %v1109_v41, %v1109_v41  ;;  %v1114_v51 = vmul.f32 %v2004_v60, %v2609_v18  ;;  %2025 = vpow2.f32 %v1545_v58  ;;  %v1578_v23 = vmul.f32 -1.442695, %v2802_v35 }
 0x15f   :  { %v2008_v63 = vpop.eup %2007  ;;  %1398 = vst.msk [vmem:[%s3030_s3 + $0x34] sm:$0xf] %vm1384_vm3, %v1663_v30  ;;  %v1668_v38 = vpack.c.bf16 %v1082_v61, %v1082_v61  ;;  %v1080_v2 = vmul.f32 %v2006_v11, %v2614_v0  ;;  %2027 = vpow2.f32 %v1577_v47  ;;  %v2115_v61 = vld [vmem:[#allocation4] ss:$0 sm:$0xff] }
 0x160   :  { %v2010_v54 = vpop.eup %2009  ;;  %1430 = vst.msk [vmem:[%s3030_s3 + $0xb4] sm:$0xf] %vm1384_vm3, %v1695_v34  ;;  %v1700_v18 = vpack.c.bf16 %v1114_v51, %v1114_v51  ;;  %v1112_v62 = vmul.f32 %v2008_v63, %v2637_v10  ;;  %2029 = vpow2.f32 %v1543_v21  ;;  %v2855_v11 = vadd.f32 %v2115_v61, %v2587_v6  ;;  %v3034_v6 = vld [vmem:[#allocation9_spill] sm:$0xff] }
 0x161   :  { %v2012_v44 = vpop.eup %2011  ;;  %1403 = vst.msk [vmem:[%s3030_s3 + $0x48] sm:$0xf] %vm1384_vm3, %v1668_v38  ;;  %v1666_v0 = vpack.c.bf16 %v1080_v2, %v1080_v2  ;;  %v1083_v7 = vmul.f32 %v2010_v54, %v2650_v50  ;;  %2031 = vpow2.f32 %v1575_v3  ;;  %v2858_v34 = vadd.f32 %v2115_v61, %v2589_v36  ;;  %v3033_v54 = vld [vmem:[#allocation8_spill] sm:$0xff] }
 0x162   :  { %v2014_v58 = vpop.eup %2013  ;;  %1435 = vst.msk [vmem:[%s3030_s3 + $0xc8] sm:$0xf] %vm1384_vm3, %v1700_v18  ;;  %v1698_v10 = vpack.c.bf16 %v1112_v62, %v1112_v62  ;;  %v1115_v9 = vmul.f32 %v2012_v44, %v2663_v56  ;;  %2033 = vpow2.f32 %v1548_v45  ;;  %v2861_v63 = vadd.f32 %v2115_v61, %v2599_v12 }
 0x163   :  { %v2016_v59 = vpop.eup %2015  ;;  %1401 = vst.msk [vmem:[%s3030_s3 + $0x40] sm:$0xf] %vm1384_vm3, %v1666_v0  ;;  %v1669_v50 = vpack.c.bf16 %v1083_v7, %v1083_v7  ;;  %v1081_v47 = vmul.f32 %v2014_v58, %v2672_v40  ;;  %2035 = vpow2.f32 %v1580_v15  ;;  %v2864_v38 = vadd.f32 %v2115_v61, %v2601_v4 }
 0x164   :  { %v2018_v21 = vpop.eup %2017  ;;  %1433 = vst.msk [vmem:[%s3030_s3 + $0xc0] sm:$0xf] %vm1384_vm3, %v1698_v10  ;;  %v1701_v1 = vpack.c.bf16 %v1115_v9, %v1115_v9  ;;  %v921_v33 = vadd.f32 1.0, %v2016_v59  ;;  %2037 = vpow2.f32 %v1546_v52  ;;  %v2867_v18 = vadd.f32 %v2115_v61, %v3033_v54 }
 0x165   :  { %v2020_v56 = vpop.eup %2019  ;;  %1404 = vst.msk [vmem:[%s3030_s3 + $0x4c] sm:$0xf] %vm1384_vm3, %v1669_v50  ;;  %v1667_v8 = vpack.c.bf16 %v1081_v47, %v1081_v47  ;;  %v894_v31 = vadd.f32 1.0, %v2018_v21  ;;  %2039 = vpow2.f32 %v1578_v23  ;;  %v2870_v62 = vadd.f32 %v2115_v61, %v3034_v6 }
 0x166   :  { %v2022_v40 = vpop.eup %2021  ;;  %1436 = vst.msk [vmem:[%s3030_s3 + $0xcc] sm:$0xf] %vm1384_vm3, %v1701_v1  ;;  %2041 = vrcp.f32 %v921_v33  ;;  %v926_v26 = vadd.f32 1.0, %v2020_v56  ;;  %v2873_v44 = vadd.f32 %v2115_v61, %v2630_v57  ;;  %v2876_v12 = vadd.f32 %v2115_v61, %v2632_v20 }
 0x167   :  { %v2024_v16 = vpop.eup %2023  ;;  %1402 = vst.msk [vmem:[%s3030_s3 + $0x44] sm:$0xf] %vm1384_vm3, %v1667_v8  ;;  %2043 = vrcp.f32 %v894_v31  ;;  %v892_v3 = vadd.f32 1.0, %v2022_v40  ;;  %v1549_v7 = vmul.f32 -1.442695, %v2855_v11 }
 0x168   :  { %v2026_v13 = vpop.eup %2025  ;;  %2045 = vrcp.f32 %v926_v26  ;;  %v924_v14 = vadd.f32 1.0, %v2024_v16  ;;  %v1581_v23 = vmul.f32 -1.442695, %v2858_v34  ;;  %v1547_v9 = vmul.f32 -1.442695, %v2861_v63 }
 0x169   :  { %v2028_v5 = vpop.eup %2027  ;;  %2047 = vrcp.f32 %v892_v3  ;;  %v895_v28 = vadd.f32 1.0, %v2026_v13  ;;  %v1579_v59 = vmul.f32 -1.442695, %v2864_v38  ;;  %v1552_v20 = vmul.f32 -1.442695, %v2867_v18 }
 0x16a   :  { %v2030_v42 = vpop.eup %2029  ;;  %2049 = vrcp.f32 %v924_v14  ;;  %v927_v41 = vadd.f32 1.0, %v2028_v5  ;;  %v1584_v47 = vmul.f32 -1.442695, %v2870_v62  ;;  %v1550_v33 = vmul.f32 -1.442695, %v2873_v44 }
 0x16b   :  { %v2032_v60 = vpop.eup %2031  ;;  %2051 = vrcp.f32 %v895_v28  ;;  %v893_v30 = vadd.f32 1.0, %v2030_v42  ;;  %v1582_v56 = vmul.f32 -1.442695, %v2876_v12  ;;  %v2910_v28 = vadd.f32 %v2115_v61, %v2654_v22 }
 0x16c   :  { %v2034_v51 = vpop.eup %2033  ;;  %2053 = vrcp.f32 %v927_v41  ;;  %v925_v45 = vadd.f32 1.0, %v2032_v60 }
 0x16d   :  { %v2036_v2 = vpop.eup %2035  ;;  %2055 = vrcp.f32 %v893_v30  ;;  %v898_v15 = vadd.f32 1.0, %v2034_v51  ;;  %v1583_v54 = vmul.f32 -1.442695, %v2910_v28 }
 0x16e   :  { %v2038_v36 = vpop.eup %2037  ;;  %2057 = vrcp.f32 %v925_v45  ;;  %v930_v52 = vadd.f32 1.0, %v2036_v2 }
 0x16f   :  { %v2040_v4 = vpop.eup %2039  ;;  %2059 = vrcp.f32 %v898_v15  ;;  %v896_v0 = vadd.f32 1.0, %v2038_v36 }
 0x170   :  { %v2042_v58 = vpop.eup %2041  ;;  %2061 = vrcp.f32 %v930_v52  ;;  %v928_v10 = vadd.f32 1.0, %v2040_v4 }
 0x171   :  { %v2044_v50 = vpop.eup %2043  ;;  %v1113_v57 = vmul.f32 %v2042_v58, %v2726_v25  ;;  %2063 = vrcp.f32 %v896_v0  ;;  %v2890_v25 = vadd.f32 %v2115_v61, %v2639_v49  ;;  %v2902_v49 = vadd.f32 %v2115_v61, %v2652_v53 }
 0x172   :  { %v2046_v21 = vpop.eup %2045  ;;  %v1086_v1 = vmul.f32 %v2044_v50, %v2730_v46  ;;  %2065 = vrcp.f32 %v928_v10  ;;  %v2894_v46 = vadd.f32 %v2115_v61, %v2641_v48 }
 0x173   :  { %v2048_v8 = vpop.eup %2047  ;;  %v1699_v31 = vpack.c.bf16 %v1113_v57, %v1113_v57  ;;  %v1118_v40 = vmul.f32 %v2046_v21, %v2734_v37  ;;  %2067 = vpow2.f32 %v1549_v7  ;;  %v1553_v41 = vmul.f32 -1.442695, %v2890_v25 }
 0x174   :  { %v2050_v26 = vpop.eup %2049  ;;  %v1672_v16 = vpack.c.bf16 %v1086_v1, %v1086_v1  ;;  %v1084_v3 = vmul.f32 %v2048_v8, %v2739_v43  ;;  %2069 = vpow2.f32 %v1581_v23  ;;  %v1585_v30 = vmul.f32 -1.442695, %v2894_v46 }
 0x175   :  { %v2052_v13 = vpop.eup %2051  ;;  %1434 = vst.msk [vmem:[%s3030_s3 + $0xc4] sm:$0xf] %vm1384_vm3, %v1699_v31  ;;  %v1704_v14 = vpack.c.bf16 %v1118_v40, %v1118_v40  ;;  %v1116_v37 = vmul.f32 %v2050_v26, %v2743_v39  ;;  %2071 = vpow2.f32 %v1547_v9  ;;  %v1551_v45 = vmul.f32 -1.442695, %v2902_v49 }
 0x176   :  { %v2054_v5 = vpop.eup %2053  ;;  %1407 = vst.msk [vmem:[%s3030_s3 + $0x58] sm:$0xf] %vm1384_vm3, %v1672_v16  ;;  %v1670_v48 = vpack.c.bf16 %v1084_v3, %v1084_v3  ;;  %v1087_v43 = vmul.f32 %v2052_v13, %v2747_v29  ;;  %2073 = vpow2.f32 %v1579_v59 }
 0x177   :  { %v2056_v42 = vpop.eup %2055  ;;  %1439 = vst.msk [vmem:[%s3030_s3 + $0xd8] sm:$0xf] %vm1384_vm3, %v1704_v14  ;;  %v1702_v53 = vpack.c.bf16 %v1116_v37, %v1116_v37  ;;  %v1119_v39 = vmul.f32 %v2054_v5, %v2751_v24  ;;  %2075 = vpow2.f32 %v1552_v20 }
 0x178   :  { %v2058_v60 = vpop.eup %2057  ;;  %1405 = vst.msk [vmem:[%s3030_s3 + $0x50] sm:$0xf] %vm1384_vm3, %v1670_v48  ;;  %v1673_v22 = vpack.c.bf16 %v1087_v43, %v1087_v43  ;;  %v1085_v29 = vmul.f32 %v2056_v42, %v2755_v32  ;;  %2077 = vpow2.f32 %v1584_v47 }
 0x179   :  { %v2060_v61 = vpop.eup %2059  ;;  %1437 = vst.msk [vmem:[%s3030_s3 + $0xd0] sm:$0xf] %vm1384_vm3, %v1702_v53  ;;  %v1705_v24 = vpack.c.bf16 %v1119_v39, %v1119_v39  ;;  %v1117_v51 = vmul.f32 %v2058_v60, %v2762_v55  ;;  %2079 = vpow2.f32 %v1550_v33 }
 0x17a   :  { %v2062_v2 = vpop.eup %2061  ;;  %1408 = vst.msk [vmem:[%s3030_s3 + $0x5c] sm:$0xf] %vm1384_vm3, %v1673_v22  ;;  %v1671_v32 = vpack.c.bf16 %v1085_v29, %v1085_v29  ;;  %v1090_v15 = vmul.f32 %v2060_v61, %v2773_v19  ;;  %2081 = vpow2.f32 %v1582_v56 }
 0x17b   :  { %v2064_v6 = vpop.eup %2063  ;;  %1440 = vst.msk [vmem:[%s3030_s3 + $0xdc] sm:$0xf] %vm1384_vm3, %v1705_v24  ;;  %v1703_v55 = vpack.c.bf16 %v1117_v51, %v1117_v51  ;;  %v1122_v36 = vmul.f32 %v2062_v2, %v2784_v27  ;;  %2083 = vpow2.f32 %v1553_v41 }
 0x17c   :  { %v2066_v52 = vpop.eup %2065  ;;  %1406 = vst.msk [vmem:[%s3030_s3 + $0x54] sm:$0xf] %vm1384_vm3, %v1671_v32  ;;  %v1676_v19 = vpack.c.bf16 %v1090_v15, %v1090_v15  ;;  %v1088_v4 = vmul.f32 %v2064_v6, %v2793_v17  ;;  %2085 = vpow2.f32 %v1585_v30 }
 0x17d   :  { %v2068_v0 = vpop.eup %2067  ;;  %1438 = vst.msk [vmem:[%s3030_s3 + $0xd4] sm:$0xf] %vm1384_vm3, %v1703_v55  ;;  %v1708_v7 = vpack.c.bf16 %v1122_v36, %v1122_v36  ;;  %v1120_v27 = vmul.f32 %v2066_v52, %v2802_v35  ;;  %2087 = vpow2.f32 %v1551_v45 }
 0x17e   :  { %v2070_v23 = vpop.eup %2069  ;;  %1411 = vst.msk [vmem:[%s3030_s3 + $0x68] sm:$0xf] %vm1384_vm3, %v1676_v19  ;;  %v1674_v58 = vpack.c.bf16 %v1088_v4, %v1088_v4  ;;  %v899_v10 = vadd.f32 1.0, %v2068_v0  ;;  %2089 = vpow2.f32 %v1583_v54 }
 0x17f   :  { %v2072_v17 = vpop.eup %2071  ;;  %1443 = vst.msk [vmem:[%s3030_s3 + $0xe8] sm:$0xf] %vm1384_vm3, %v1708_v7  ;;  %v1706_v9 = vpack.c.bf16 %v1120_v27, %v1120_v27  ;;  %v931_v59 = vadd.f32 1.0, %v2070_v23 }
 0x180   :  { %v2074_v50 = vpop.eup %2073  ;;  %1409 = vst.msk [vmem:[%s3030_s3 + $0x60] sm:$0xf] %vm1384_vm3, %v1674_v58  ;;  %2091 = vrcp.f32 %v899_v10  ;;  %v897_v35 = vadd.f32 1.0, %v2072_v17 }
 0x181   :  { %v2076_v57 = vpop.eup %2075  ;;  %1441 = vst.msk [vmem:[%s3030_s3 + $0xe0] sm:$0xf] %vm1384_vm3, %v1706_v9  ;;  %2093 = vrcp.f32 %v931_v59  ;;  %v929_v20 = vadd.f32 1.0, %v2074_v50 }
 0x182   :  { %v2078_v47 = vpop.eup %2077  ;;  %2095 = vrcp.f32 %v897_v35  ;;  %v902_v21 = vadd.f32 1.0, %v2076_v57 }
 0x183   :  { %v2080_v1 = vpop.eup %2079  ;;  %2097 = vrcp.f32 %v929_v20  ;;  %v934_v33 = vadd.f32 1.0, %v2078_v47 }
 0x184   :  { %v2082_v56 = vpop.eup %2081  ;;  %2099 = vrcp.f32 %v902_v21  ;;  %v900_v8 = vadd.f32 1.0, %v2080_v1 }
 0x185   :  { %v2084_v31 = vpop.eup %2083  ;;  %2101 = vrcp.f32 %v934_v33  ;;  %v932_v40 = vadd.f32 1.0, %v2082_v56 }
 0x186   :  { %v2086_v26 = vpop.eup %2085  ;;  %2103 = vrcp.f32 %v900_v8  ;;  %v903_v16 = vadd.f32 1.0, %v2084_v31 }
 0x187   :  { %v2088_v3 = vpop.eup %2087  ;;  %2105 = vrcp.f32 %v932_v40  ;;  %v935_v13 = vadd.f32 1.0, %v2086_v26 }
 0x188   :  { %v2090_v14 = vpop.eup %2089  ;;  %2107 = vrcp.f32 %v903_v16  ;;  %v901_v37 = vadd.f32 1.0, %v2088_v3 }
 0x189   :  { %2109 = vrcp.f32 %v935_v13  ;;  %v933_v5 = vadd.f32 1.0, %v2090_v14 }
 0x18a   :  { %v2092_v48 = vpop.eup %2091  ;;  %2111 = vrcp.f32 %v901_v37 }
 0x18b   :  { %v2094_v43 = vpop.eup %2093  ;;  %v1091_v42 = vmul.f32 %v2092_v48, %v2855_v11  ;;  %2113 = vrcp.f32 %v933_v5 }
 0x18c   :  { %v2096_v53 = vpop.eup %2095  ;;  %v1123_v39 = vmul.f32 %v2094_v43, %v2858_v34 }
 0x18d   :  { %v2098_v41 = vpop.eup %2097  ;;  %v1677_v60 = vpack.c.bf16 %v1091_v42, %v1091_v42  ;;  %v1089_v22 = vmul.f32 %v2096_v53, %v2861_v63 }
 0x18e   :  { %v2100_v29 = vpop.eup %2099  ;;  %v1709_v30 = vpack.c.bf16 %v1123_v39, %v1123_v39  ;;  %v1121_v61 = vmul.f32 %v2098_v41, %v2864_v38 }
 0x18f   :  { %v2102_v24 = vpop.eup %2101  ;;  %1412 = vst.msk [vmem:[%s3030_s3 + $0x6c] sm:$0xf] %vm1384_vm3, %v1677_v60  ;;  %v1675_v51 = vpack.c.bf16 %v1089_v22, %v1089_v22  ;;  %v1094_v11 = vmul.f32 %v2100_v29, %v2867_v18 }
 0x190   :  { %v2104_v45 = vpop.eup %2103  ;;  %1444 = vst.msk [vmem:[%s3030_s3 + $0xec] sm:$0xf] %vm1384_vm3, %v1709_v30  ;;  %v1707_v34 = vpack.c.bf16 %v1121_v61, %v1121_v61  ;;  %v1126_v63 = vmul.f32 %v2102_v24, %v2870_v62 }
 0x191   :  { %v2106_v2 = vpop.eup %2105  ;;  %1410 = vst.msk [vmem:[%s3030_s3 + $0x64] sm:$0xf] %vm1384_vm3, %v1675_v51  ;;  %v1680_v38 = vpack.c.bf16 %v1094_v11, %v1094_v11  ;;  %v1092_v32 = vmul.f32 %v2104_v45, %v2873_v44 }
 0x192   :  { %v2108_v15 = vpop.eup %2107  ;;  %1442 = vst.msk [vmem:[%s3030_s3 + $0xe4] sm:$0xf] %vm1384_vm3, %v1707_v34  ;;  %v1712_v18 = vpack.c.bf16 %v1126_v63, %v1126_v63  ;;  %v1124_v54 = vmul.f32 %v2106_v2, %v2876_v12 }
 0x193   :  { %v2110_v6 = vpop.eup %2109  ;;  %1415 = vst.msk [vmem:[%s3030_s3 + $0x78] sm:$0xf] %vm1384_vm3, %v1680_v38  ;;  %v1678_v62 = vpack.c.bf16 %v1092_v32, %v1092_v32  ;;  %v1095_v55 = vmul.f32 %v2108_v15, %v2890_v25 }
 0x194   :  { %v2112_v36 = vpop.eup %2111  ;;  %1447 = vst.msk [vmem:[%s3030_s3 + $0xf8] sm:$0xf] %vm1384_vm3, %v1712_v18  ;;  %v1710_v44 = vpack.c.bf16 %v1124_v54, %v1124_v54  ;;  %v1127_v52 = vmul.f32 %v2110_v6, %v2894_v46 }
 0x195   :  { %v2114_v19 = vpop.eup %2113  ;;  %1413 = vst.msk [vmem:[%s3030_s3 + $0x70] sm:$0xf] %vm1384_vm3, %v1678_v62  ;;  %v1681_v12 = vpack.c.bf16 %v1095_v55, %v1095_v55  ;;  %v1093_v4 = vmul.f32 %v2112_v36, %v2902_v49 }
 0x196   :  { %1445 = vst.msk [vmem:[%s3030_s3 + $0xf0] sm:$0xf] %vm1384_vm3, %v1710_v44  ;;  %v1713_v25 = vpack.c.bf16 %v1127_v52, %v1127_v52  ;;  %v1125_v0 = vmul.f32 %v2114_v19, %v2910_v28 }
 0x197   :  { %1416 = vst.msk [vmem:[%s3030_s3 + $0x7c] sm:$0xf] %vm1384_vm3, %v1681_v12  ;;  %v1679_v46 = vpack.c.bf16 %v1093_v4, %v1093_v4 }
 0x198   :  { %1448 = vst.msk [vmem:[%s3030_s3 + $0xfc] sm:$0xf] %vm1384_vm3, %v1713_v25  ;;  %v1711_v49 = vpack.c.bf16 %v1125_v0, %v1125_v0 }
 0x199   :  { %1414 = vst.msk [vmem:[%s3030_s3 + $0x74] sm:$0xf] %vm1384_vm3, %v1679_v46 }
 0x19a   :  { %1446 = vst.msk [vmem:[%s3030_s3 + $0xf4] sm:$0xf] %vm1384_vm3, %v1711_v49 }
 0x19b   :  { %1453 = vsyncpa [#allocation3], 1 }
 0x19c   :  { %1454 = vsyncpa [#allocation5], 1 }

// kernel: padim_forward.6
= control target key start
LH: loop header
LB: loop body
LE: loop exit
PB: predicated region body
PF: predicated region fallthrough
CT: control target
= control target key end

     0   :  { %s6372_s12 = smov 0   ;;  %s8463_s0 = inlined_call_operand.vmem [shape: bf16[2,332,32], index: 0, kind: input, shape index: {}]   ;;  %s8464_s1 = inlined_call_operand.vmem [shape: bf16[36,32,32], index: 1, kind: input, shape index: {}]   ;;  %s8465_s2 = inlined_call_operand.vmem [shape: f32[4,1,32], index: 2, kind: input, shape index: {}]   ;;  %s8466_s3 = inlined_call_operand.vmem [shape: bf16[2,332,32], index: 3, kind: output, shape index: {}]  }
   0x1 LB: > { %s4776_s13 = sadd.s32 4294967295, %s6346_s12   ;;  %p4780_p0 = scmp.ge.s32.totalorder %s6346_s12, 1  ;;  %s6346_s12 = sphi %s6372_s12, %s13_s12  }
   0x2   : > { %p137_p1 = scmp.lt.s32.totalorder %s6346_s12, 3 }
   0x4   : > { %p138_p2 = pnand %p4780_p0, %p137_p1 }
   0x6   : > { %141 = sbr.rel (%p138_p2) target bundleno = 791 (0x317), region = 32 }
   0xd   : > { %p161_p3 = scmp.lt.s32.totalorder %s4776_s13, 1  ;;  %vm8473_vm0 = vcmask 261120   ;;  %vm8472_vm1 = vcmask 257024   ;;  %s7599_s21 = smov 0  }
   0xf   : > { %s9084_s13 = smov (!%p161_p3, %s4776_s13), 1 }
  0x10   : > { %s6060_s14 = smul.u32 168, %s9084_s13 }
  0x12   : > { %s6383_s17 = scalar_lea.vmem %s8463_s0, %s6060_s14  ;;  %s6388_s20 = scalar_lea.vmem %s8466_s3, %s6060_s14 }
  0x13   : > { %v5130_v0 = vld [vmem:[%s6383_s17] sm:$0xff]   ;;  %v5209_v1 = vld [vmem:[%s6383_s17 + $0x8] sm:$0xff]   ;;  %v5210_v2 = vld [vmem:[%s6383_s17 + $0x10] sm:$0xff]  }
  0x14   : > { %v5131_v3 = vunpack.c.l.bf16 %v5130_v0  ;;  %v5132_v4 = vunpack.c.h.bf16 %v5130_v0  ;;  %v5135_v5 = vunpack.c.l.bf16 %v5209_v1  ;;  %v5136_v6 = vunpack.c.h.bf16 %v5209_v1  ;;  %v5211_v7 = vld [vmem:[%s6383_s17 + $0x18] sm:$0xff]   ;;  %v5212_v8 = vld [vmem:[%s6383_s17 + $0x20] sm:$0xff]   ;;  %v5213_v9 = vld [vmem:[%s6383_s17 + $0x28] sm:$0xff]  }
  0x15   : > { %v5139_v10 = vunpack.c.l.bf16 %v5210_v2  ;;  %v5140_v11 = vunpack.c.h.bf16 %v5210_v2  ;;  %v5143_v12 = vunpack.c.l.bf16 %v5211_v7  ;;  %v5144_v13 = vunpack.c.h.bf16 %v5211_v7  ;;  %v5214_v14 = vld [vmem:[%s6383_s17 + $0x30] sm:$0xff]   ;;  %v5215_v15 = vld [vmem:[%s6383_s17 + $0x38] sm:$0xff]   ;;  %v5216_v16 = vld [vmem:[%s6383_s17 + $0x40] sm:$0xff]  }
  0x16   : > { %257 = vst.msk [vmem:[#allocation2] sm:$0xff] %vm8473_vm0, %v5131_v3  ;;  %258 = vst.msk [vmem:[#allocation2 + $0x8] sm:$0xff] %vm8473_vm0, %v5132_v4  ;;  %v5147_v17 = vunpack.c.l.bf16 %v5212_v8  ;;  %v5148_v18 = vunpack.c.h.bf16 %v5212_v8  ;;  %v5151_v19 = vunpack.c.l.bf16 %v5213_v9  ;;  %v5152_v20 = vunpack.c.h.bf16 %v5213_v9  ;;  %v5217_v21 = vld [vmem:[%s6383_s17 + $0x48] sm:$0xff]   ;;  %v5218_v22 = vld [vmem:[%s6383_s17 + $0x50] sm:$0xff]  }
  0x17   : > { %259 = vst.msk [vmem:[#allocation2 + $0x10] sm:$0xff] %vm8473_vm0, %v5135_v5  ;;  %260 = vst.msk [vmem:[#allocation2 + $0x18] sm:$0xff] %vm8473_vm0, %v5136_v6  ;;  %v5219_v23 = vld [vmem:[%s6383_s17 + $0x58] sm:$0xff]   ;;  %v5155_v24 = vunpack.c.l.bf16 %v5214_v14  ;;  %v5156_v25 = vunpack.c.h.bf16 %v5214_v14  ;;  %v5159_v26 = vunpack.c.l.bf16 %v5215_v15  ;;  %v5160_v27 = vunpack.c.h.bf16 %v5215_v15  ;;  %v5220_v28 = vld [vmem:[%s6383_s17 + $0x60] sm:$0xff]  }
  0x18   : > { %261 = vst.msk [vmem:[#allocation2 + $0x20] sm:$0xff] %vm8473_vm0, %v5139_v10  ;;  %262 = vst.msk [vmem:[#allocation2 + $0x28] sm:$0xff] %vm8473_vm0, %v5140_v11  ;;  %v5221_v29 = vld [vmem:[%s6383_s17 + $0x68] sm:$0xff]   ;;  %v5163_v30 = vunpack.c.l.bf16 %v5216_v16  ;;  %v5164_v31 = vunpack.c.h.bf16 %v5216_v16  ;;  %v5167_v32 = vunpack.c.l.bf16 %v5217_v21  ;;  %v5168_v33 = vunpack.c.h.bf16 %v5217_v21  ;;  %v5222_v34 = vld [vmem:[%s6383_s17 + $0x70] sm:$0xff]  }
  0x19   : > { %263 = vst.msk [vmem:[#allocation2 + $0x30] sm:$0xff] %vm8473_vm0, %v5143_v12  ;;  %264 = vst.msk [vmem:[#allocation2 + $0x38] sm:$0xff] %vm8473_vm0, %v5144_v13  ;;  %v5223_v35 = vld [vmem:[%s6383_s17 + $0x78] sm:$0xff]   ;;  %v5171_v36 = vunpack.c.l.bf16 %v5218_v22  ;;  %v5172_v37 = vunpack.c.h.bf16 %v5218_v22  ;;  %v5175_v38 = vunpack.c.l.bf16 %v5219_v23  ;;  %v5176_v39 = vunpack.c.h.bf16 %v5219_v23  ;;  %v5224_v40 = vld [vmem:[%s6383_s17 + $0x80] sm:$0xff]  }
  0x1a   : > { %265 = vst.msk [vmem:[#allocation2 + $0x40] sm:$0xff] %vm8473_vm0, %v5147_v17  ;;  %266 = vst.msk [vmem:[#allocation2 + $0x48] sm:$0xff] %vm8473_vm0, %v5148_v18  ;;  %v5225_v41 = vld [vmem:[%s6383_s17 + $0x88] sm:$0xff]   ;;  %v5179_v42 = vunpack.c.l.bf16 %v5220_v28  ;;  %v5180_v43 = vunpack.c.h.bf16 %v5220_v28  ;;  %v5183_v44 = vunpack.c.l.bf16 %v5221_v29  ;;  %v5184_v45 = vunpack.c.h.bf16 %v5221_v29  ;;  %v5226_v46 = vld [vmem:[%s6383_s17 + $0x90] sm:$0xff]  }
  0x1b   : > { %267 = vst.msk [vmem:[#allocation2 + $0x50] sm:$0xff] %vm8473_vm0, %v5151_v19  ;;  %268 = vst.msk [vmem:[#allocation2 + $0x58] sm:$0xff] %vm8473_vm0, %v5152_v20  ;;  %v5227_v47 = vld [vmem:[%s6383_s17 + $0x98] sm:$0xff]   ;;  %v5187_v48 = vunpack.c.l.bf16 %v5222_v34  ;;  %v5188_v49 = vunpack.c.h.bf16 %v5222_v34  ;;  %v5191_v50 = vunpack.c.l.bf16 %v5223_v35  ;;  %v5192_v51 = vunpack.c.h.bf16 %v5223_v35  ;;  %v212_v52 = vld [vmem:[%s6383_s17 + $0xa0] sm:$0xf] }
  0x1c   : > { %269 = vst.msk [vmem:[#allocation2 + $0x60] sm:$0xff] %vm8473_vm0, %v5155_v24  ;;  %270 = vst.msk [vmem:[#allocation2 + $0x68] sm:$0xff] %vm8473_vm0, %v5156_v25  ;;  %v213_v53 = vld [vmem:[%s6383_s17 + $0xa4] sm:$0x3]  ;;  %v5195_v54 = vunpack.c.l.bf16 %v5224_v40  ;;  %v5196_v55 = vunpack.c.h.bf16 %v5224_v40  ;;  %v5199_v56 = vunpack.c.l.bf16 %v5225_v41  ;;  %v5200_v57 = vunpack.c.h.bf16 %v5225_v41 }
  0x1d   : > { %271 = vst.msk [vmem:[#allocation2 + $0x70] sm:$0xff] %vm8473_vm0, %v5159_v26  ;;  %272 = vst.msk [vmem:[#allocation2 + $0x78] sm:$0xff] %vm8473_vm0, %v5160_v27  ;;  %v5203_v58 = vunpack.c.l.bf16 %v5226_v46  ;;  %v5204_v59 = vunpack.c.h.bf16 %v5226_v46  ;;  %v5207_v60 = vunpack.c.l.bf16 %v5227_v47  ;;  %v5208_v61 = vunpack.c.h.bf16 %v5227_v47 }
  0x1e   : > { %273 = vst.msk [vmem:[#allocation2 + $0x80] sm:$0xff] %vm8473_vm0, %v5163_v30  ;;  %274 = vst.msk [vmem:[#allocation2 + $0x88] sm:$0xff] %vm8473_vm0, %v5164_v31  ;;  %v254_v62 = vunpack.c.l.bf16 %v212_v52  ;;  %v255_v63 = vunpack.c.l.bf16 %v213_v53  ;;  %v300_v0 = vlaneseq }
  0x1f   : > { %275 = vst.msk [vmem:[#allocation2 + $0x90] sm:$0xff] %vm8473_vm0, %v5167_v32  ;;  %276 = vst.msk [vmem:[#allocation2 + $0x98] sm:$0xff] %vm8473_vm0, %v5168_v33 }
  0x20   : > { %277 = vst.msk [vmem:[#allocation2 + $0xa0] sm:$0xff] %vm8473_vm0, %v5171_v36  ;;  %278 = vst.msk [vmem:[#allocation2 + $0xa8] sm:$0xff] %vm8473_vm0, %v5172_v37  ;;  %v6454_v1 = vshrl.u32 %v300_v0, 7 }
  0x21   : > { %279 = vst.msk [vmem:[#allocation2 + $0xb0] sm:$0xff] %vm8473_vm0, %v5175_v38  ;;  %280 = vst.msk [vmem:[#allocation2 + $0xb8] sm:$0xff] %vm8473_vm0, %v5176_v39 }
  0x22   : > { %281 = vst.msk [vmem:[#allocation2 + $0xc0] sm:$0xff] %vm8473_vm0, %v5179_v42  ;;  %282 = vst.msk [vmem:[#allocation2 + $0xc8] sm:$0xff] %vm8473_vm0, %v5180_v43  ;;  %v6457_v2 = vadd.s32 8, %v6454_v1  ;;  %v6460_v3 = vadd.s32 16, %v6454_v1  ;;  %v6463_v4 = vadd.s32 24, %v6454_v1  ;;  %v6470_v7 = vadd.s32 32, %v6454_v1 }
  0x23   : > { %283 = vst.msk [vmem:[#allocation2 + $0xd0] sm:$0xff] %vm8473_vm0, %v5183_v44  ;;  %284 = vst.msk [vmem:[#allocation2 + $0xd8] sm:$0xff] %vm8473_vm0, %v5184_v45  ;;  %v6466_v5 = vmul.u32.u64.low 3817748708, %v6454_v1  ;;  %v6467_v6 = vmul.u32.u64.high 3817748708, %v6454_v1, %v6466_v5  ;;  %v6473_v8 = vadd.s32 40, %v6454_v1  ;;  %v6476_v9 = vadd.s32 48, %v6454_v1 }
  0x24   : > { %285 = vst.msk [vmem:[#allocation2 + $0xe0] sm:$0xff] %vm8473_vm0, %v5187_v48  ;;  %286 = vst.msk [vmem:[#allocation2 + $0xe8] sm:$0xff] %vm8473_vm0, %v5188_v49  ;;  %v6479_v10 = vadd.s32 56, %v6454_v1  ;;  %v6482_v11 = vadd.s32 64, %v6454_v1  ;;  %v6485_v12 = vadd.s32 72, %v6454_v1  ;;  %v6488_v13 = vadd.s32 80, %v6454_v1 }
  0x25   : > { %287 = vst.msk [vmem:[#allocation2 + $0xf0] sm:$0xff] %vm8473_vm0, %v5191_v50  ;;  %288 = vst.msk [vmem:[#allocation2 + $0xf8] sm:$0xff] %vm8473_vm0, %v5192_v51  ;;  %v6491_v14 = vadd.s32 88, %v6454_v1  ;;  %v6494_v15 = vmul.u32.u64.low 3817748708, %v6457_v2  ;;  %v6495_v16 = vmul.u32.u64.high 3817748708, %v6457_v2, %v6494_v15  ;;  %v6502_v19 = vadd.s32 96, %v6454_v1 }
  0x26   : > { %289 = vst.msk [vmem:[#allocation2 + $0x100] sm:$0xff] %vm8473_vm0, %v5195_v54  ;;  %290 = vst.msk [vmem:[#allocation2 + $0x108] sm:$0xff] %vm8473_vm0, %v5196_v55  ;;  %v6498_v17 = vmul.u32.u64.low 3817748708, %v6460_v3  ;;  %v6499_v18 = vmul.u32.u64.high 3817748708, %v6460_v3, %v6498_v17  ;;  %v6505_v20 = vadd.s32 104, %v6454_v1  ;;  %v6512_v23 = vadd.s32 112, %v6454_v1 }
  0x27   : > { %291 = vst.msk [vmem:[#allocation2 + $0x110] sm:$0xff] %vm8473_vm0, %v5199_v56  ;;  %292 = vst.msk [vmem:[#allocation2 + $0x118] sm:$0xff] %vm8473_vm0, %v5200_v57  ;;  %v6508_v21 = vmul.u32.u64.low 3817748708, %v6463_v4  ;;  %v6509_v22 = vmul.u32.u64.high 3817748708, %v6463_v4, %v6508_v21  ;;  %v6515_v24 = vadd.s32 120, %v6454_v1  ;;  %v6518_v25 = vadd.s32 128, %v6454_v1 }
  0x28   : > { %293 = vst.msk [vmem:[#allocation2 + $0x120] sm:$0xff] %vm8473_vm0, %v5203_v58  ;;  %294 = vst.msk [vmem:[#allocation2 + $0x128] sm:$0xff] %vm8473_vm0, %v5204_v59  ;;  %v6521_v26 = vadd.s32 136, %v6454_v1  ;;  %v6524_v27 = vadd.s32 144, %v6454_v1  ;;  %v6527_v28 = vadd.s32 152, %v6454_v1  ;;  %v6530_v29 = vadd.s32 160, %v6454_v1 }
  0x29   : > { %295 = vst.msk [vmem:[#allocation2 + $0x130] sm:$0xff] %vm8473_vm0, %v5207_v60  ;;  %296 = vst.msk [vmem:[#allocation2 + $0x138] sm:$0xff] %vm8473_vm0, %v5208_v61  ;;  %v6533_v30 = vadd.s32 168, %v6454_v1  ;;  %v6536_v31 = vadd.s32 176, %v6454_v1  ;;  %v6539_v32 = vadd.s32 184, %v6454_v1  ;;  %v6542_v33 = vadd.s32 192, %v6454_v1 }
  0x2a   : > { %297 = vst.msk [vmem:[#allocation2 + $0x140] sm:$0xff] %vm8473_vm0, %v254_v62  ;;  %8514 = vst [vmem:[#allocation3_spill] sm:$0xff] %v6527_v28  ;;  %v6545_v34 = vadd.s32 200, %v6454_v1  ;;  %v6548_v35 = vadd.s32 208, %v6454_v1  ;;  %v343_v36 = vshrl.u32 %v6467_v6, 4  ;;  %v6564_v43 = vadd.s32 216, %v6454_v1 }
  0x2b   : > { %299 = vst.msk [vmem:[#allocation2 + $0x148] sm:$0xf] %vm8472_vm1, %v255_v63  ;;  %v6552_v37 = vmul.u32.u64.low 3817748708, %v6470_v7  ;;  %v6553_v38 = vmul.u32.u64.high 3817748708, %v6470_v7, %v6552_v37  ;;  %v6556_v39 = vmul.u32.u64.low 3817748708, %v6473_v8  ;;  %v6557_v40 = vmul.u32.u64.high 3817748708, %v6473_v8, %v6556_v39 }
  0x2c   : > { %v6560_v41 = vmul.u32.u64.low 3817748708, %v6476_v9  ;;  %v6561_v42 = vmul.u32.u64.high 3817748708, %v6476_v9, %v6560_v41  ;;  %v6567_v44 = vadd.s32 224, %v6454_v1  ;;  %v6570_v45 = vadd.s32 232, %v6454_v1 }
  0x2d   : > { %v6573_v46 = vadd.s32 240, %v6454_v1  ;;  %v354_v47 = vshrl.u32 %v6495_v16, 4  ;;  %v365_v48 = vshrl.u32 %v6499_v18, 4  ;;  %v344_v51 = vmul.u32 18, %v343_v36 }
  0x2e   : > { %8515 = vst [vmem:[#allocation4_spill] sm:$0xff] %v6567_v44  ;;  %8516 = vst [vmem:[#allocation5_spill] sm:$0xff] %v6570_v45  ;;  %v6578_v49 = vmul.u32.u64.low 3817748708, %v6479_v10  ;;  %v6579_v50 = vmul.u32.u64.high 3817748708, %v6479_v10, %v6578_v49  ;;  %v376_v52 = vshrl.u32 %v6509_v22, 4  ;;  %v6603_v63 = vadd.s32 248, %v6454_v1 }
  0x2f   : > { %8517 = vst [vmem:[#allocation6_spill] sm:$0xff] %v6573_v46  ;;  %v6583_v53 = vmul.u32.u64.low 3817748708, %v6482_v11  ;;  %v6584_v54 = vmul.u32.u64.high 3817748708, %v6482_v11, %v6583_v53  ;;  %v6587_v55 = vmul.u32.u64.low 3817748708, %v6485_v12  ;;  %v6588_v56 = vmul.u32.u64.high 3817748708, %v6485_v12, %v6587_v55 }
  0x30   : > { %v6591_v57 = vmul.u32.u64.low 3817748708, %v6488_v13  ;;  %v6592_v58 = vmul.u32.u64.high 3817748708, %v6488_v13, %v6591_v57  ;;  %v6595_v59 = vmul.u32.u64.low 3817748708, %v6491_v14  ;;  %v6596_v60 = vmul.u32.u64.high 3817748708, %v6491_v14, %v6595_v59  ;;  %8518 = vst [vmem:[#allocation7_spill] sm:$0xff] %v6603_v63 }
  0x31   : > { %v6599_v61 = vmul.u32.u64.low 3817748708, %v6502_v19  ;;  %v6600_v62 = vmul.u32.u64.high 3817748708, %v6502_v19, %v6599_v61  ;;  %v6606_v0 = vadd.s32 256, %v6454_v1  ;;  %v6609_v5 = vadd.s32 264, %v6454_v1 }
  0x32   : > { %v6612_v6 = vadd.s32 272, %v6454_v1  ;;  %v6615_v15 = vadd.s32 280, %v6454_v1  ;;  %v355_v16 = vmul.u32 18, %v354_v47  ;;  %v366_v17 = vmul.u32 18, %v365_v48 }
  0x33   : > { %v387_v18 = vshrl.u32 %v6553_v38, 4  ;;  %v6619_v21 = vsub.s32 %v6454_v1, %v344_v51  ;;  %v377_v22 = vmul.u32 18, %v376_v52  ;;  %v398_v36 = vshrl.u32 %v6557_v40, 4 }
  0x34   : > { %v409_v37 = vshrl.u32 %v6561_v42, 4  ;;  %v6624_v39 = vmul.u32.u64.low 3817748708, %v6505_v20  ;;  %v6625_v41 = vmul.u32.u64.high 3817748708, %v6505_v20, %v6624_v39  ;;  %v6640_v40 = vsub.s32 %v6457_v2, %v355_v16 }
  0x35   : > { %v6628_v49 = vmul.u32.u64.low 3817748708, %v6512_v23  ;;  %v6629_v53 = vmul.u32.u64.high 3817748708, %v6512_v23, %v6628_v49  ;;  %v6632_v47 = vmul.u32.u64.low 3817748708, %v6515_v24  ;;  %v6633_v48 = vmul.u32.u64.high 3817748708, %v6515_v24, %v6632_v47 }
  0x36   : > { %v6636_v1 = vmul.u32.u64.low 3817748708, %v6518_v25  ;;  %v6637_v38 = vmul.u32.u64.high 3817748708, %v6518_v25, %v6636_v1  ;;  %v6643_v42 = vsub.s32 %v6460_v3, %v366_v17  ;;  %v388_v51 = vmul.u32 18, %v387_v18 }
  0x37   : > { %v420_v52 = vshrl.u32 %v6579_v50, 4  ;;  %v6647_v55 = vsub.s32 %v6463_v4, %v377_v22  ;;  %v399_v57 = vmul.u32 18, %v398_v36  ;;  %v410_v59 = vmul.u32 18, %v409_v37 }
  0x38   : > { %v431_v61 = vshrl.u32 %v6584_v54, 4  ;;  %v442_v39 = vshrl.u32 %v6588_v56, 4  ;;  %v453_v49 = vshrl.u32 %v6592_v58, 4  ;;  %v464_v2 = vshrl.u32 %v6596_v60, 4 }
  0x39   : > { %v475_v16 = vshrl.u32 %v6600_v62, 4  ;;  %v6655_v3 = vmul.u32.u64.low 3817748708, %v6521_v26  ;;  %v6656_v17 = vmul.u32.u64.high 3817748708, %v6521_v26, %v6655_v3  ;;  %v6671_v58 = vsub.s32 %v6470_v7, %v388_v51 }
  0x3a   : > { %v6659_v50 = vmul.u32.u64.low 3817748708, %v6524_v27  ;;  %v6660_v4 = vmul.u32.u64.high 3817748708, %v6524_v27, %v6659_v50  ;;  %v6663_v18 = vmul.u32.u64.low 3817748708, %v6527_v28  ;;  %v6664_v22 = vmul.u32.u64.high 3817748708, %v6527_v28, %v6663_v18 }
  0x3b   : > { %v6667_v54 = vmul.u32.u64.low 3817748708, %v6530_v29  ;;  %v6668_v56 = vmul.u32.u64.high 3817748708, %v6530_v29, %v6667_v54  ;;  %v6674_v60 = vsub.s32 %v6473_v8, %v399_v57  ;;  %v421_v62 = vmul.u32 18, %v420_v52 }
  0x3c   : > { %v432_v36 = vmul.u32 18, %v431_v61  ;;  %v443_v37 = vmul.u32 18, %v442_v39  ;;  %v486_v1 = vshrl.u32 %v6625_v41, 4  ;;  %v497_v3 = vshrl.u32 %v6629_v53, 4 }
  0x3d   : > { %v454_v47 = vmul.u32 18, %v453_v49  ;;  %v465_v50 = vmul.u32 18, %v464_v2  ;;  %v508_v28 = vshrl.u32 %v6633_v48, 4  ;;  %v519_v54 = vshrl.u32 %v6637_v38, 4 }
  0x3e   : > { %v476_v18 = vmul.u32 18, %v475_v16  ;;  %v6681_v7 = vmul.u32.u64.low 3817748708, %v6533_v30  ;;  %v6682_v51 = vmul.u32.u64.high 3817748708, %v6533_v30, %v6681_v7  ;;  %v6697_v48 = vsub.s32 %v6476_v9, %v410_v59 }
  0x3f   : > { %v6685_v8 = vmul.u32.u64.low 3817748708, %v6536_v31  ;;  %v6686_v52 = vmul.u32.u64.high 3817748708, %v6536_v31, %v6685_v8  ;;  %v6689_v57 = vmul.u32.u64.low 3817748708, %v6539_v32  ;;  %v6690_v61 = vmul.u32.u64.high 3817748708, %v6539_v32, %v6689_v57 }
  0x40   : > { %v6693_v41 = vmul.u32.u64.low 3817748708, %v6542_v33  ;;  %v6694_v53 = vmul.u32.u64.high 3817748708, %v6542_v33, %v6693_v41  ;;  %v6700_v38 = vsub.s32 %v6479_v10, %v421_v62  ;;  %v487_v39 = vmul.u32 18, %v486_v1 }
  0x41   : > { %v498_v49 = vmul.u32 18, %v497_v3  ;;  %v6703_v2 = vsub.s32 %v6482_v11, %v432_v36  ;;  %v6706_v16 = vsub.s32 %v6485_v12, %v443_v37  ;;  %v509_v7 = vmul.u32 18, %v508_v28 }
  0x42   : > { %v520_v8 = vmul.u32 18, %v519_v54  ;;  %v530_v57 = vshrl.u32 %v6656_v17, 4  ;;  %v541_v41 = vshrl.u32 %v6660_v4, 4  ;;  %v552_v9 = vshrl.u32 %v6664_v22, 4 }
  0x43   : > { %v563_v59 = vshrl.u32 %v6668_v56, 4  ;;  %v6713_v10 = vmul.u32.u64.low 3817748708, %v6545_v34  ;;  %v6714_v62 = vmul.u32.u64.high 3817748708, %v6545_v34, %v6713_v10  ;;  %v574_v3 = vshrl.u32 %v6682_v51, 4 }
  0x44   : > { %v6717_v11 = vmul.u32.u64.low 3817748708, %v6548_v35  ;;  %v6718_v36 = vmul.u32.u64.high 3817748708, %v6548_v35, %v6717_v11  ;;  %v6721_v12 = vmul.u32.u64.low 3817748708, %v6564_v43  ;;  %v6722_v28 = vmul.u32.u64.high 3817748708, %v6564_v43, %v6721_v12 }
  0x45   : > { %v6725_v17 = vmul.u32.u64.low 3817748708, %v6567_v44  ;;  %v6726_v37 = vmul.u32.u64.high 3817748708, %v6567_v44, %v6725_v17  ;;  %v6729_v4 = vmul.u32.u64.low 3817748708, %v6570_v45  ;;  %v6730_v22 = vmul.u32.u64.high 3817748708, %v6570_v45, %v6729_v4 }
  0x46   : > { %v6733_v56 = vmul.u32.u64.low 3817748708, %v6573_v46  ;;  %v6734_v1 = vmul.u32.u64.high 3817748708, %v6573_v46, %v6733_v56  ;;  %v585_v54 = vshrl.u32 %v6686_v52, 4  ;;  %v596_v12 = vshrl.u32 %v6690_v61, 4 }
  0x47   : > { %v6739_v10 = vmul.u32.u64.low 3817748708, %v6603_v63  ;;  %v6740_v11 = vmul.u32.u64.high 3817748708, %v6603_v63, %v6739_v10  ;;  %v607_v17 = vshrl.u32 %v6694_v53, 4  ;;  %v6749_v4 = vsub.s32 %v6488_v13, %v454_v47 }
  0x48   : > { %v6745_v44 = vmul.u32.u64.low 3817748708, %v6606_v0  ;;  %v6746_v45 = vmul.u32.u64.high 3817748708, %v6606_v0, %v6745_v44  ;;  %v6752_v56 = vsub.s32 %v6491_v14, %v465_v50  ;;  %v531_v51 = vmul.u32 18, %v530_v57 }
  0x49   : > { %v542_v52 = vmul.u32 18, %v541_v41  ;;  %v6755_v46 = vsub.s32 %v6502_v19, %v476_v18  ;;  %v6758_v10 = vsub.s32 %v6505_v20, %v487_v39  ;;  %v553_v61 = vmul.u32 18, %v552_v9 }
  0x4a   : > { %v564_v53 = vmul.u32 18, %v563_v59  ;;  %v6761_v63 = vsub.s32 %v6512_v23, %v498_v49  ;;  %v6764_v44 = vsub.s32 %v6515_v24, %v509_v7  ;;  %v575_v13 = vmul.u32 18, %v574_v3 }
  0x4b   : > { %v586_v47 = vmul.u32 18, %v585_v54  ;;  %v597_v14 = vmul.u32 18, %v596_v12  ;;  %v618_v57 = vshrl.u32 %v6714_v62, 4  ;;  %v629_v19 = vshrl.u32 %v6718_v36, 4 }
  0x4c   : > { %8519 = vst [vmem:[#allocation8_spill] sm:$0xff] %v6761_v63  ;;  %v608_v50 = vmul.u32 18, %v607_v17  ;;  %v640_v18 = vshrl.u32 %v6722_v28, 4  ;;  %v651_v20 = vshrl.u32 %v6726_v37, 4  ;;  %v662_v23 = vshrl.u32 %v6730_v22, 4 }
  0x4d   : > { %v6771_v39 = vmul.u32.u64.low 3817748708, %v6609_v5  ;;  %v6772_v41 = vmul.u32.u64.high 3817748708, %v6609_v5, %v6771_v39  ;;  %v673_v24 = vshrl.u32 %v6734_v1, 4  ;;  %v684_v9 = vshrl.u32 %v6740_v11, 4 }
  0x4e   : > { %v6777_v49 = vmul.u32.u64.low 3817748708, %v6612_v6  ;;  %v6778_v7 = vmul.u32.u64.high 3817748708, %v6612_v6, %v6777_v49  ;;  %v695_v59 = vshrl.u32 %v6746_v45, 4  ;;  %v6787_v28 = vsub.s32 %v6518_v25, %v520_v8  ;;  %v8520_v25 = vld [vmem:[#allocation3_spill] sm:$0xff] }
  0x4f   : > { %v6783_v62 = vmul.u32.u64.low 3817748708, %v6615_v15  ;;  %v6784_v36 = vmul.u32.u64.high 3817748708, %v6615_v15, %v6783_v62  ;;  %v6790_v37 = vsub.s32 %v6521_v26, %v531_v51  ;;  %v619_v22 = vmul.u32 18, %v618_v57 }
  0x50   : > { %v630_v1 = vmul.u32 18, %v629_v19  ;;  %v6793_v3 = vsub.s32 %v6524_v27, %v542_v52  ;;  %v641_v54 = vmul.u32 18, %v640_v18  ;;  %v706_v11 = vshrl.u32 %v6772_v41, 4 }
  0x51   : > { %v652_v12 = vmul.u32 18, %v651_v20  ;;  %vm733_vm2 = vcmp.ne.s32.totalorder %v6619_v21, 0  ;;  %vm734_vm3 = vcmp.ne.s32.totalorder %v6640_v40, 0  ;;  %vm735_vm4 = vcmp.ne.s32.totalorder %v6643_v42, 0 }
  0x52   : > { %vm736_vm5 = vcmp.ne.s32.totalorder %v6647_v55, 0  ;;  %v6801_v26 = vsub.s32 %v8520_v25, %v553_v61  ;;  %v663_v45 = vmul.u32 18, %v662_v23  ;;  %v674_v8 = vmul.u32 18, %v673_v24 }
  0x53   : > { %v717_v27 = vshrl.u32 %v6778_v7, 4  ;;  %v6809_v17 = vsub.s32 %v6530_v29, %v564_v53  ;;  %v685_v51 = vmul.u32 18, %v684_v9  ;;  %v696_v52 = vmul.u32 18, %v695_v59  ;;  %v8653_v9 = vld [vmem:[#allocation8_spill] sm:$0xff] }
  0x54   : > { %v728_v61 = vshrl.u32 %v6784_v36, 4  ;;  %v6817_v57 = vsub.s32 %v6533_v30, %v575_v13  ;;  %v6820_v19 = vsub.s32 %v6536_v31, %v586_v47  ;;  %v6823_v29 = vsub.s32 %v6539_v32, %v597_v14  ;;  %v8522_v31 = vld [vmem:[#allocation4_spill] sm:$0xff]  ;;  %v8524_v47 = vld [vmem:[#allocation5_spill] sm:$0xff]  ;;  %v8525_v14 = vld [vmem:[#allocation6_spill] sm:$0xff] }
  0x55   : > { %v6826_v53 = vsub.s32 %v6542_v33, %v608_v50  ;;  %v6830_v18 = vsub.s32 %v6545_v34, %v619_v22  ;;  %v6833_v20 = vsub.s32 %v6548_v35, %v630_v1  ;;  %v6836_v30 = vsub.s32 %v6564_v43, %v641_v54  ;;  %v8527_v35 = vld [vmem:[#allocation7_spill] sm:$0xff] }
  0x56   : > { %v707_v13 = vmul.u32 18, %v706_v11  ;;  %v6840_v32 = vsub.s32 %v8522_v31, %v652_v12  ;;  %v6843_v33 = vsub.s32 %v8524_v47, %v663_v45  ;;  %v6846_v50 = vsub.s32 %v8525_v14, %v674_v8 }
  0x57   : > { %8521 = vst [vmem:[#allocation3_spill] sm:$0xff] %v6836_v30  ;;  %v718_v34 = vmul.u32 18, %v717_v27  ;;  %v6850_v39 = vsub.s32 %v8527_v35, %v685_v51  ;;  %v6853_v43 = vsub.s32 %v6606_v0, %v696_v52  ;;  %v729_v41 = vmul.u32 18, %v728_v61 }
  0x58   : > { %8523 = vst [vmem:[#allocation4_spill] sm:$0xff] %v6840_v32  ;;  %8526 = vst [vmem:[#allocation5_spill] sm:$0xff] %v6846_v50  ;;  %vm769_vm15 = vcmp.lt.s32.totalorder %v6619_v21, 0  ;;  %vm770_vm13 = vcmp.lt.s32.totalorder %v6640_v40, 0  ;;  %vm771_vm12 = vcmp.lt.s32.totalorder %v6643_v42, 0  ;;  %v6863_v23 = vsub.s32 %v6609_v5, %v707_v13 }
  0x59   : > { %v6870_v0 = vsub.s32 %v6612_v6, %v718_v34  ;;  %v6877_v5 = vsub.s32 %v6615_v15, %v729_v41  ;;  %vm6892_vm10 = vmand %vm769_vm15, %vm733_vm2  ;;  %vm8534_vm2 = vcmp.lt.s32.totalorder %v6647_v55, 0  ;;  %vm8538_vm14 = vcmp.lt.s32.totalorder %v6671_v58, 0 }
  0x5a   : > { %vm6900_vm11 = vmand %vm770_vm13, %vm734_vm3  ;;  %vm8545_vm7 = vcmp.ne.s32.totalorder %v6697_v48, 0  ;;  %v8547_v59 = vmov 0  ;;  %vm8553_vm8 = vcmp.ne.s32.totalorder %v6703_v2, 0  ;;  %vm8554_vm0 = vcmp.lt.s32.totalorder %v6703_v2, 0 }
  0x5b   : > { %vm6908_vm6 = vmand %vm771_vm12, %vm735_vm4  ;;  %vm8537_vm12 = vcmp.ne.s32.totalorder %v6671_v58, 0  ;;  %vm8546_vm4 = vcmp.lt.s32.totalorder %v6697_v48, 0  ;;  %v8555_v36 = vmov 0  ;;  %v8567_v54 = vmov 0 }
  0x5c   : > { %vm6916_vm15 = vmand %vm8534_vm2, %vm736_vm5  ;;  %vm8541_vm5 = vcmp.ne.s32.totalorder %v6674_v60, 0  ;;  %vm8542_vm2 = vcmp.lt.s32.totalorder %v6674_v60, 0  ;;  %v6992_v12 = vadd.s32 18, %v6619_v21  ;;  %v6995_v11 = vadd.s32 18, %v6640_v40 }
  0x5d   : > { %vm6929_vm9 = vmand %vm8538_vm14, %vm8537_vm12  ;;  %vm8549_vm14 = vcmp.ne.s32.totalorder %v6700_v38, 0  ;;  %vm8550_vm12 = vcmp.lt.s32.totalorder %v6700_v38, 0  ;;  %v6998_v25 = vadd.s32 18, %v6643_v42  ;;  %v7001_v45 = vadd.s32 18, %v6647_v55 }
  0x5e   : > { %vm6937_vm3 = vmand %vm8542_vm2, %vm8541_vm5  ;;  %vm8562_vm2 = vcmp.lt.s32.totalorder %v6749_v4, 0  ;;  %v8572_v8 = vmov 0  ;;  %v7014_v27 = vadd.s32 18, %v6671_v58  ;;  %v7017_v51 = vadd.s32 18, %v6674_v60 }
  0x5f   : > { %vm6945_vm1 = vmand %vm8546_vm4, %vm8545_vm7  ;;  %vm8557_vm4 = vcmp.ne.s32.totalorder %v6706_v16, 0  ;;  %v7020_v52 = vadd.s32 18, %v6697_v48  ;;  %v7023_v61 = vadd.s32 18, %v6700_v38  ;;  %v8577_v13 = vmov 0  ;;  %v8704_v15 = vld [vmem:[#allocation4_spill] sm:$0xff] }
  0x60   : > { %v8548_v59 = vsel %vm6945_vm1, 4294967295, %v8547_v59  ;;  %vm6953_vm13 = vmand %vm8550_vm12, %vm8549_vm14  ;;  %vm8558_vm1 = vcmp.lt.s32.totalorder %v6706_v16, 0  ;;  %vm8561_vm12 = vcmp.ne.s32.totalorder %v6749_v4, 0  ;;  %v7036_v31 = vadd.s32 18, %v6703_v2 }
  0x61   : > { %vm6963_vm7 = vmand %vm8554_vm0, %vm8553_vm8  ;;  %vm8565_vm0 = vcmp.ne.s32.totalorder %v6752_v56, 0  ;;  %vm8566_vm8 = vcmp.lt.s32.totalorder %v6752_v56, 0  ;;  %v7039_v47 = vadd.s32 18, %v6706_v16  ;;  %v7042_v14 = vadd.s32 18, %v6749_v4 }
  0x62   : > { %v8556_v36 = vsel %vm6963_vm7, 4294967295, %v8555_v36  ;;  %vm6971_vm14 = vmand %vm8558_vm1, %vm8557_vm4  ;;  %vm8570_vm4 = vcmp.ne.s32.totalorder %v6755_v46, 0  ;;  %v7045_v34 = vadd.s32 18, %v6752_v56  ;;  %v8582_v35 = vmov 0 }
  0x63   : > { %vm6979_vm5 = vmand %vm8562_vm2, %vm8561_vm12  ;;  %vm8571_vm12 = vcmp.lt.s32.totalorder %v6755_v46, 0  ;;  %v7058_v41 = vadd.s32 18, %v6755_v46  ;;  %v884_v6 = vsel %vm6953_vm13, %v7023_v61, %v6700_v38 }
  0x64   : > { %vm6987_vm7 = vmand %vm8566_vm8, %vm8565_vm0  ;;  %vm8635_vm8 = vcmp.lt.s32.totalorder %v6817_v57, 0  ;;  %v887_v38 = vsel %vm6979_vm5, %v7042_v14, %v6749_v4 }
  0x65   : > { %v8568_v54 = vsel %vm6987_vm7, 4294967295, %v8567_v54  ;;  %vm7009_vm0 = vmand %vm8571_vm12, %vm8570_vm4  ;;  %vm8575_vm4 = vcmp.ne.s32.totalorder %v6758_v10, 0  ;;  %vm8576_vm12 = vcmp.lt.s32.totalorder %v6758_v10, 0  ;;  %v888_v24 = vsel %vm6987_vm7, %v7045_v34, %v6752_v56 }
  0x66   : > { %8569 = vst [vmem:[#allocation6_spill] sm:$0xff] %v8568_v54  ;;  %v8573_v8 = vsel %vm7009_vm0, 4294967295, %v8572_v8  ;;  %vm7031_vm1 = vmand %vm8576_vm12, %vm8575_vm4  ;;  %vm8580_vm4 = vcmp.ne.s32.totalorder %v6761_v63, 0  ;;  %vm8581_vm12 = vcmp.lt.s32.totalorder %v6761_v63, 0  ;;  %v7067_v54 = vadd.s32 18, %v6764_v44 }
  0x67   : > { %8574 = vst [vmem:[#allocation7_spill] sm:$0xff] %v8573_v8  ;;  %v8578_v13 = vsel %vm7031_vm1, 4294967295, %v8577_v13  ;;  %vm7053_vm1 = vmand %vm8581_vm12, %vm8580_vm4  ;;  %v7064_v8 = vadd.s32 18, %v6761_v63  ;;  %vm8588_vm4 = vcmp.ne.s32.totalorder %v6764_v44, 0  ;;  %vm8589_vm12 = vcmp.lt.s32.totalorder %v6764_v44, 0 }
  0x68   : > { %8579 = vst [vmem:[#allocation9_spill] sm:$0xff] %v8578_v13  ;;  %v8583_v35 = vsel %vm7053_vm1, 4294967295, %v8582_v35  ;;  %v7061_v13 = vadd.s32 18, %v6758_v10  ;;  %8587 = vst [vmem:[#allocation13_spill] sm:$0xff] %v7067_v54  ;;  %v7086_v54 = vadd.s32 18, %v6793_v3  ;;  %v7089_v63 = vadd.s32 18, %v6801_v26 }
  0x69   : > { %8584 = vst [vmem:[#allocation10_spill] sm:$0xff] %v8583_v35  ;;  %8586 = vst [vmem:[#allocation12_spill] sm:$0xff] %v7064_v8  ;;  %v8590_v35 = vmov 0  ;;  %v7083_v8 = vadd.s32 18, %v6790_v37  ;;  %v889_v4 = vsel %vm7009_vm0, %v7058_v41, %v6755_v46  ;;  %vm8660_vm0 = vcmp.ne.s32.totalorder %v6826_v53, 0 }
  0x6a   : > { %8585 = vst [vmem:[#allocation11_spill] sm:$0xff] %v7061_v13  ;;  %vm7075_vm1 = vmand %vm8589_vm12, %vm8588_vm4  ;;  %v7080_v13 = vadd.s32 18, %v6787_v28  ;;  %vm8597_vm4 = vcmp.ne.s32.totalorder %v6787_v28, 0  ;;  %vm8598_vm12 = vcmp.lt.s32.totalorder %v6787_v28, 0 }
  0x6b   : > { %v8591_v35 = vsel %vm7075_vm1, 4294967295, %v8590_v35  ;;  %8594 = vst [vmem:[#allocation16_spill] sm:$0xff] %v7083_v8  ;;  %8595 = vst [vmem:[#allocation17_spill] sm:$0xff] %v7086_v54  ;;  %v7102_v8 = vadd.s32 18, %v6809_v17  ;;  %v7105_v54 = vadd.s32 18, %v6817_v57 }
  0x6c   : > { %8592 = vst [vmem:[#allocation14_spill] sm:$0xff] %v8591_v35  ;;  %8593 = vst [vmem:[#allocation15_spill] sm:$0xff] %v7080_v13  ;;  %v8599_v35 = vmov 0  ;;  %v7111_v13 = vadd.s32 18, %v6823_v29 }
  0x6d   : > { %8596 = vst [vmem:[#allocation18_spill] sm:$0xff] %v7089_v63  ;;  %vm7097_vm1 = vmand %vm8598_vm12, %vm8597_vm4  ;;  %v7108_v63 = vadd.s32 18, %v6820_v19  ;;  %vm8606_vm4 = vcmp.ne.s32.totalorder %v6790_v37, 0  ;;  %vm8607_vm12 = vcmp.lt.s32.totalorder %v6790_v37, 0 }
  0x6e   : > { %v8600_v35 = vsel %vm7097_vm1, 4294967295, %v8599_v35  ;;  %8602 = vst [vmem:[#allocation20_spill] sm:$0xff] %v7102_v8  ;;  %8603 = vst [vmem:[#allocation21_spill] sm:$0xff] %v7105_v54  ;;  %v7124_v54 = vadd.s32 18, %v6826_v53  ;;  %v7133_v8 = vadd.s32 18, %v6836_v30  ;;  %v7155_v30 = vadd.s32 18, %v6850_v39 }
  0x6f   : > { %8601 = vst [vmem:[#allocation19_spill] sm:$0xff] %v8600_v35  ;;  %8604 = vst [vmem:[#allocation22_spill] sm:$0xff] %v7108_v63  ;;  %v8608_v35 = vmov 0  ;;  %v7127_v63 = vadd.s32 18, %v6830_v18  ;;  %v8651_v56 = vld [vmem:[#allocation9_spill] sm:$0xff] }
  0x70   : > { %8605 = vst [vmem:[#allocation23_spill] sm:$0xff] %v7111_v13  ;;  %vm7119_vm1 = vmand %vm8607_vm12, %vm8606_vm4  ;;  %v7130_v13 = vadd.s32 18, %v6833_v20  ;;  %vm8614_vm4 = vcmp.ne.s32.totalorder %v6793_v3, 0  ;;  %vm8615_vm12 = vcmp.lt.s32.totalorder %v6793_v3, 0  ;;  %vm8652_vm5 = vnez %v8651_v56  ;;  %v8655_v62 = vld [vmem:[#allocation10_spill] sm:$0xff]  ;;  %v8657_v22 = vld [vmem:[#allocation13_spill] sm:$0xff] }
  0x71   : > { %v8609_v35 = vsel %vm7119_vm1, 4294967295, %v8608_v35  ;;  %8611 = vst [vmem:[#allocation25_spill] sm:$0xff] %v7127_v63  ;;  %8613 = vst [vmem:[#allocation27_spill] sm:$0xff] %v7133_v8  ;;  %v7146_v63 = vadd.s32 18, %v6840_v32  ;;  %v7152_v8 = vadd.s32 18, %v6846_v50  ;;  %v8624_v32 = vmov 0 }
  0x72   : > { %8610 = vst [vmem:[#allocation24_spill] sm:$0xff] %v8609_v35  ;;  %8612 = vst [vmem:[#allocation26_spill] sm:$0xff] %v7130_v13  ;;  %v8616_v35 = vmov 0  ;;  %v7149_v13 = vadd.s32 18, %v6843_v33  ;;  %v8650_v49 = vld [vmem:[#allocation11_spill] sm:$0xff]  ;;  %vm8656_vm7 = vnez %v8655_v62  ;;  %v8721_v56 = vmov 0 }
  0x73   : > { %vm7141_vm1 = vmand %vm8615_vm12, %vm8614_vm4  ;;  %8618 = vst [vmem:[#allocation28_spill] sm:$0xff] %v7146_v63  ;;  %vm8622_vm4 = vcmp.ne.s32.totalorder %v6801_v26, 0  ;;  %vm8623_vm12 = vcmp.lt.s32.totalorder %v6801_v26, 0  ;;  %v7177_v63 = vadd.s32 18, %v6877_v5  ;;  %v890_v7 = vsel %vm8652_vm5, %v8650_v49, %v6758_v10  ;;  %v8658_v1 = vld [vmem:[#allocation14_spill] sm:$0xff]  ;;  %v8664_v10 = vld [vmem:[#allocation15_spill] sm:$0xff] }
  0x74   : > { %v8617_v35 = vsel %vm7141_vm1, 4294967295, %v8616_v35  ;;  %8619 = vst [vmem:[#allocation29_spill] sm:$0xff] %v7149_v13  ;;  %8620 = vst [vmem:[#allocation30_spill] sm:$0xff] %v7152_v8  ;;  %v7168_v13 = vadd.s32 18, %v6853_v43  ;;  %v7171_v8 = vadd.s32 18, %v6863_v23  ;;  %v8672_v61 = vld [vmem:[#allocation18_spill] sm:$0xff] }
  0x75   : > { %8621 = vst [vmem:[#allocation31_spill] sm:$0xff] %v7155_v30  ;;  %vm7163_vm1 = vmand %vm8623_vm12, %vm8622_vm4  ;;  %v7174_v30 = vadd.s32 18, %v6870_v0  ;;  %vm8630_vm4 = vcmp.ne.s32.totalorder %v6809_v17, 0  ;;  %vm8631_vm12 = vcmp.lt.s32.totalorder %v6809_v17, 0 }
  0x76   : > { %v8625_v32 = vsel %vm7163_vm1, 4294967295, %v8624_v32  ;;  %8626 = vst [vmem:[#allocation32_spill] sm:$0xff] %v7168_v13  ;;  %8627 = vst [vmem:[#allocation33_spill] sm:$0xff] %v7171_v8  ;;  %v879_v8 = vsel %vm6908_vm6, %v6998_v25, %v6643_v42  ;;  %v880_v13 = vsel %vm6916_vm15, %v7001_v45, %v6647_v55  ;;  %v882_v42 = vsel %vm6937_vm3, %v7017_v51, %v6674_v60  ;;  %v8667_v45 = vld [vmem:[#allocation16_spill] sm:$0xff]  ;;  %v8670_v51 = vld [vmem:[#allocation17_spill] sm:$0xff] }
  0x77   : > { %8628 = vst [vmem:[#allocation34_spill] sm:$0xff] %v7174_v30  ;;  %8629 = vst [vmem:[#allocation35_spill] sm:$0xff] %v7177_v63  ;;  %v877_v30 = vsel %vm6892_vm10, %v6992_v12, %v6619_v21  ;;  %v878_v63 = vsel %vm6900_vm11, %v6995_v11, %v6640_v40  ;;  %vm8634_vm10 = vcmp.ne.s32.totalorder %v6817_v57, 0  ;;  %v881_v40 = vsel %vm6929_vm9, %v7014_v27, %v6671_v58  ;;  %v8665_v11 = vld [vmem:[#allocation19_spill] sm:$0xff] }
  0x78   : > { %vm7185_vm1 = vmand %vm8631_vm12, %vm8630_vm4  ;;  %vm8638_vm6 = vnez %v8548_v59  ;;  %vm8639_vm9 = vcmp.ne.s32.totalorder %v6820_v19, 0  ;;  %vm8643_vm3 = vnez %v8556_v36  ;;  %v8654_v59 = vld [vmem:[#allocation12_spill] sm:$0xff]  ;;  %vm8666_vm5 = vnez %v8665_v11  ;;  %v8681_v34 = vld [vmem:[#allocation23_spill] sm:$0xff] }
  0x79   : > { %vm7211_vm2 = vmand %vm8635_vm8, %vm8634_vm10  ;;  %v883_v55 = vsel %vm8638_vm6, %v7020_v52, %v6697_v48  ;;  %vm8640_vm8 = vcmp.lt.s32.totalorder %v6820_v19, 0  ;;  %v885_v60 = vsel %vm8643_vm3, %v7036_v31, %v6703_v2  ;;  %v886_v48 = vsel %vm6971_vm14, %v7039_v47, %v6706_v16  ;;  %v8692_v21 = vld [vmem:[#allocation3_spill] sm:$0xff] }
  0x7a   : > { %vm7237_vm10 = vmand %vm8640_vm8, %vm8639_vm9  ;;  %vm8645_vm9 = vcmp.ne.s32.totalorder %v6823_v29, 0  ;;  %vm8646_vm8 = vcmp.lt.s32.totalorder %v6823_v29, 0  ;;  %v891_v36 = vsel %vm8656_vm7, %v8654_v59, %v8653_v9  ;;  %vm8659_vm14 = vnez %v8658_v1  ;;  %v8727_v59 = vld [vmem:[#allocation5_spill] sm:$0xff] }
  0x7b   : > { %vm7263_vm3 = vmand %vm8646_vm8, %vm8645_vm9  ;;  %v892_v12 = vsel %vm8659_vm14, %v8657_v22, %v6764_v44  ;;  %vm8661_vm6 = vcmp.lt.s32.totalorder %v6826_v53, 0  ;;  %v893_v25 = vsel %vm8666_vm5, %v8664_v10, %v6787_v28  ;;  %v8668_v44 = vld [vmem:[#allocation24_spill] sm:$0xff]  ;;  %vm8671_vm14 = vnez %v8617_v35 }
  0x7c   : > { %vm7289_vm13 = vmand %vm8661_vm6, %vm8660_vm0  ;;  %vm8669_vm7 = vnez %v8668_v44  ;;  %v895_v52 = vsel %vm8671_vm14, %v8670_v51, %v6793_v3  ;;  %vm8673_vm6 = vnez %v8625_v32  ;;  %vm8674_vm0 = vcmp.ne.s32.totalorder %v6830_v18, 0  ;;  %v8679_v3 = vld [vmem:[#allocation21_spill] sm:$0xff] }
  0x7d   : > { %v894_v27 = vsel %vm8669_vm7, %v8667_v45, %v6790_v37  ;;  %v896_v31 = vsel %vm8673_vm6, %v8672_v61, %v6801_v26  ;;  %vm8675_vm8 = vcmp.lt.s32.totalorder %v6830_v18, 0  ;;  %v8678_v37 = vld [vmem:[#allocation20_spill] sm:$0xff]  ;;  %v898_v14 = vsel %vm7211_vm2, %v8679_v3, %v6817_v57  ;;  %v8680_v26 = vld [vmem:[#allocation22_spill] sm:$0xff] }
  0x7e   : > { %vm7313_vm5 = vmand %vm8675_vm8, %vm8674_vm0  ;;  %v897_v47 = vsel %vm7185_vm1, %v8678_v37, %v6809_v17  ;;  %v899_v32 = vsel %vm7237_vm10, %v8680_v26, %v6820_v19  ;;  %v900_v35 = vsel %vm7263_vm3, %v8681_v34, %v6823_v29  ;;  %vm8682_vm8 = vcmp.ne.s32.totalorder %v6833_v20, 0  ;;  %v8686_v19 = vld [vmem:[#allocation25_spill] sm:$0xff]  ;;  %v8791_v26 = vld [vmem:[#allocation34_spill] sm:$0xff] }
  0x7f   : > { %vm8683_vm7 = vcmp.lt.s32.totalorder %v6833_v20, 0  ;;  %v901_v57 = vsel %vm7289_vm13, %v7124_v54, %v6826_v53  ;;  %v902_v50 = vsel %vm7313_vm5, %v8686_v19, %v6830_v18  ;;  %vm7349_vm2 = vcmp.lt.s32.totalorder %v877_v30, 16  ;;  %v8697_v53 = vld [vmem:[#allocation26_spill] sm:$0xff]  ;;  %v8801_v17 = vld [vmem:[#allocation35_spill] sm:$0xff] }
  0x80   : > { %vm7337_vm1 = vmand %vm8683_vm7, %vm8682_vm8  ;;  %v8687_v29 = vmov 0  ;;  %vm7353_vm10 = vcmp.lt.s32.totalorder %v878_v63, 16  ;;  %vm8693_vm3 = vcmp.ne.s32.totalorder %v8692_v21, 0  ;;  %vm8694_vm14 = vcmp.lt.s32.totalorder %v8692_v21, 0 }
  0x81   : > { %v8688_v29 = vsel %vm7349_vm2, 4294967295, %v8687_v29  ;;  %vm7361_vm6 = vmand %vm8694_vm14, %vm8693_vm3  ;;  %v903_v18 = vsel %vm7337_vm1, %v8697_v53, %v6833_v20  ;;  %vm7369_vm13 = vcmp.lt.s32.totalorder %v879_v8, 16  ;;  %vm7373_vm0 = vcmp.lt.s32.totalorder %v880_v13, 16  ;;  %v8709_v20 = vld [vmem:[#allocation27_spill] sm:$0xff] }
  0x82   : > { %8689 = vst [vmem:[#allocation6_spill] sm:$0xff] %v8688_v29  ;;  %v8700_v63 = vmov 0  ;;  %vm7377_vm5 = vcmp.lt.s32.totalorder %v881_v40, 16  ;;  %vm8705_vm8 = vcmp.ne.s32.totalorder %v8704_v15, 0  ;;  %vm8706_vm7 = vcmp.lt.s32.totalorder %v8704_v15, 0 }
  0x83   : > { %v8701_v63 = vsel %vm7373_vm0, 4294967295, %v8700_v63  ;;  %vm7385_vm3 = vmand %vm8706_vm7, %vm8705_vm8  ;;  %v904_v8 = vsel %vm7361_vm6, %v8709_v20, %v8692_v21  ;;  %vm7393_vm1 = vcmp.lt.s32.totalorder %v882_v42, 16  ;;  %vm7397_vm14 = vcmp.lt.s32.totalorder %v883_v55, 16  ;;  %v8720_v42 = vld [vmem:[#allocation28_spill] sm:$0xff] }
  0x84   : > { %vm7401_vm9 = vcmp.lt.s32.totalorder %v884_v6, 16  ;;  %vm8716_vm8 = vcmp.ne.s32.totalorder %v6843_v33, 0  ;;  %vm8717_vm7 = vcmp.lt.s32.totalorder %v6843_v33, 0  ;;  %v905_v55 = vsel %vm7385_vm3, %v8720_v42, %v8704_v15 }
  0x85   : > { %vm7409_vm15 = vmand %vm8717_vm7, %vm8716_vm8  ;;  %vm7417_vm6 = vcmp.lt.s32.totalorder %v885_v60, 16  ;;  %vm7421_vm11 = vcmp.lt.s32.totalorder %v886_v48, 16  ;;  %v8723_v6 = vmov 0  ;;  %vm7425_vm12 = vcmp.lt.s32.totalorder %v887_v38, 16  ;;  %v8732_v60 = vld [vmem:[#allocation29_spill] sm:$0xff] }
  0x86   : > { %v8722_v56 = vsel %vm7417_vm6, 4294967295, %v8721_v56  ;;  %v8724_v6 = vsel %vm7421_vm11, 4294967295, %v8723_v6  ;;  %v8725_v9 = vmov 0  ;;  %vm8728_vm8 = vcmp.ne.s32.totalorder %v8727_v59, 0 }
  0x87   : > { %v8726_v9 = vsel %vm7425_vm12, 4294967295, %v8725_v9  ;;  %vm8729_vm7 = vcmp.lt.s32.totalorder %v8727_v59, 0  ;;  %v906_v48 = vsel %vm7409_vm15, %v8732_v60, %v6843_v33  ;;  %vm7441_vm3 = vcmp.lt.s32.totalorder %v888_v24, 16  ;;  %v8743_v33 = vld [vmem:[#allocation30_spill] sm:$0xff] }
  0x88   : > { %vm7433_vm4 = vmand %vm8729_vm7, %vm8728_vm8  ;;  %v8733_v22 = vmov 0  ;;  %vm7445_vm11 = vcmp.lt.s32.totalorder %v889_v4, 16  ;;  %v8735_v38 = vmov 0  ;;  %vm7449_vm6 = vcmp.lt.s32.totalorder %v890_v7, 16 }
  0x89   : > { %v8734_v22 = vsel %vm7441_vm3, 4294967295, %v8733_v22  ;;  %v8736_v38 = vsel %vm7445_vm11, 4294967295, %v8735_v38  ;;  %v8737_v1 = vmov 0  ;;  %vm8739_vm8 = vcmp.ne.s32.totalorder %v6850_v39, 0 }
  0x8a   : > { %v8738_v1 = vsel %vm7449_vm6, 4294967295, %v8737_v1  ;;  %vm8740_vm7 = vcmp.lt.s32.totalorder %v6850_v39, 0  ;;  %v907_v24 = vsel %vm7433_vm4, %v8743_v33, %v8727_v59  ;;  %vm7465_vm15 = vcmp.lt.s32.totalorder %v891_v36, 16  ;;  %v8754_v36 = vld [vmem:[#allocation31_spill] sm:$0xff] }
  0x8b   : > { %vm7457_vm12 = vmand %vm8740_vm7, %vm8739_vm8  ;;  %v8744_v4 = vmov 0  ;;  %vm7469_vm11 = vcmp.lt.s32.totalorder %v892_v12, 16  ;;  %v8746_v7 = vmov 0  ;;  %vm7473_vm6 = vcmp.lt.s32.totalorder %v893_v25, 16 }
  0x8c   : > { %v8745_v4 = vsel %vm7465_vm15, 4294967295, %v8744_v4  ;;  %v8747_v7 = vsel %vm7469_vm11, 4294967295, %v8746_v7  ;;  %v8748_v10 = vmov 0  ;;  %vm8750_vm8 = vcmp.ne.s32.totalorder %v6853_v43, 0 }
  0x8d   : > { %v8749_v10 = vsel %vm7473_vm6, 4294967295, %v8748_v10  ;;  %vm8751_vm7 = vcmp.lt.s32.totalorder %v6853_v43, 0  ;;  %v908_v12 = vsel %vm7457_vm12, %v8754_v36, %v6850_v39  ;;  %vm7489_vm4 = vcmp.lt.s32.totalorder %v894_v27, 16  ;;  %v8765_v39 = vld [vmem:[#allocation32_spill] sm:$0xff] }
  0x8e   : > { %vm7481_vm3 = vmand %vm8751_vm7, %vm8750_vm8  ;;  %v8755_v45 = vmov 0  ;;  %vm7493_vm11 = vcmp.lt.s32.totalorder %v895_v52, 16  ;;  %v8757_v25 = vmov 0  ;;  %vm7497_vm6 = vcmp.lt.s32.totalorder %v896_v31, 16 }
  0x8f   : > { %v8756_v45 = vsel %vm7489_vm4, 4294967295, %v8755_v45  ;;  %v8758_v25 = vsel %vm7493_vm11, 4294967295, %v8757_v25  ;;  %v8759_v44 = vmov 0  ;;  %vm8761_vm8 = vcmp.ne.s32.totalorder %v6863_v23, 0 }
  0x90   : > { %v8760_v44 = vsel %vm7497_vm6, 4294967295, %v8759_v44  ;;  %vm8762_vm7 = vcmp.lt.s32.totalorder %v6863_v23, 0  ;;  %v909_v27 = vsel %vm7481_vm3, %v8765_v39, %v6853_v43  ;;  %vm7513_vm12 = vcmp.lt.s32.totalorder %v897_v47, 16  ;;  %v8779_v43 = vld [vmem:[#allocation33_spill] sm:$0xff] }
  0x91   : > { %vm7505_vm15 = vmand %vm8762_vm7, %vm8761_vm8  ;;  %v8766_v52 = vmov 0  ;;  %vm7517_vm4 = vcmp.lt.s32.totalorder %v898_v14, 16  ;;  %v8769_v61 = vmov 0  ;;  %vm7521_vm6 = vcmp.lt.s32.totalorder %v899_v32, 16 }
  0x92   : > { %v8767_v52 = vsel %vm7513_vm12, 4294967295, %v8766_v52  ;;  %v8770_v61 = vsel %vm7517_vm4, 4294967295, %v8769_v61  ;;  %v8772_v31 = vmov 0  ;;  %vm8775_vm8 = vcmp.ne.s32.totalorder %v6870_v0, 0 }
  0x93   : > { %8768 = vst [vmem:[#allocation7_spill] sm:$0xff] %v8767_v52  ;;  %8771 = vst [vmem:[#allocation11_spill] sm:$0xff] %v8770_v61  ;;  %v8773_v31 = vsel %vm7521_vm6, 4294967295, %v8772_v31  ;;  %vm8776_vm7 = vcmp.lt.s32.totalorder %v6870_v0, 0  ;;  %v910_v37 = vsel %vm7505_vm15, %v8779_v43, %v6863_v23  ;;  %vm7537_vm3 = vcmp.lt.s32.totalorder %v900_v35, 16 }
  0x94   : > { %8774 = vst [vmem:[#allocation9_spill] sm:$0xff] %v8773_v31  ;;  %vm7529_vm11 = vmand %vm8776_vm7, %vm8775_vm8  ;;  %v8780_v47 = vmov 0  ;;  %vm7541_vm4 = vcmp.lt.s32.totalorder %v901_v57, 16  ;;  %v8783_v3 = vmov 0  ;;  %vm7545_vm12 = vcmp.lt.s32.totalorder %v902_v50, 16 }
  0x95   : > { %v8781_v47 = vsel %vm7537_vm3, 4294967295, %v8780_v47  ;;  %v8784_v3 = vsel %vm7541_vm4, 4294967295, %v8783_v3  ;;  %v8786_v14 = vmov 0  ;;  %vm8789_vm8 = vcmp.ne.s32.totalorder %v6877_v5, 0 }
  0x96   : > { %8782 = vst [vmem:[#allocation8_spill] sm:$0xff] %v8781_v47  ;;  %8785 = vst [vmem:[#allocation12_spill] sm:$0xff] %v8784_v3  ;;  %v8787_v14 = vsel %vm7545_vm12, 4294967295, %v8786_v14  ;;  %vm8790_vm7 = vcmp.lt.s32.totalorder %v6877_v5, 0  ;;  %v911_v23 = vsel %vm7529_vm11, %v8791_v26, %v6870_v0  ;;  %vm7557_vm15 = vcmp.lt.s32.totalorder %v903_v18, 16 }
  0x97   : > { %8788 = vst [vmem:[#allocation10_spill] sm:$0xff] %v8787_v14  ;;  %vm840_vm6 = vmand %vm8790_vm7, %vm8789_vm8  ;;  %v8792_v32 = vmov 0  ;;  %vm7561_vm3 = vcmp.lt.s32.totalorder %v904_v8, 16  ;;  %v8795_v34 = vmov 0  ;;  %vm7565_vm4 = vcmp.lt.s32.totalorder %v905_v55, 16 }
  0x98   : > { %v8793_v32 = vsel %vm7557_vm15, 4294967295, %v8792_v32  ;;  %v8796_v34 = vsel %vm7561_vm3, 4294967295, %v8795_v34  ;;  %v8798_v35 = vmov 0  ;;  %v912_v57 = vsel %vm840_vm6, %v8801_v17, %v6877_v5 }
  0x99   : > { %8794 = vst [vmem:[#allocation13_spill] sm:$0xff] %v8793_v32  ;;  %8797 = vst [vmem:[#allocation14_spill] sm:$0xff] %v8796_v34  ;;  %v8799_v35 = vsel %vm7565_vm4, 4294967295, %v8798_v35  ;;  %vm7571_vm8 = vcmp.lt.s32.totalorder %v906_v48, 16  ;;  %v8802_v19 = vmov 0  ;;  %vm7575_vm11 = vcmp.lt.s32.totalorder %v907_v24, 16 }
  0x9a   : > { %8800 = vst [vmem:[#allocation15_spill] sm:$0xff] %v8799_v35  ;;  %v8803_v19 = vsel %vm7571_vm8, 4294967295, %v8802_v19  ;;  %v8805_v0 = vmov 0  ;;  %vm7579_vm7 = vcmp.lt.s32.totalorder %v908_v12, 16  ;;  %v8808_v50 = vmov 0 }
  0x9b   : > { %8804 = vst [vmem:[#allocation19_spill] sm:$0xff] %v8803_v19  ;;  %v8806_v0 = vsel %vm7575_vm11, 4294967295, %v8805_v0  ;;  %v8809_v50 = vsel %vm7579_vm7, 4294967295, %v8808_v50  ;;  %vm7583_vm12 = vcmp.lt.s32.totalorder %v909_v27, 16  ;;  %v8811_v21 = vmov 0 }
  0x9c   : > { %8807 = vst [vmem:[#allocation16_spill] sm:$0xff] %v8806_v0  ;;  %8810 = vst [vmem:[#allocation24_spill] sm:$0xff] %v8809_v50  ;;  %v8812_v21 = vsel %vm7583_vm12, 4294967295, %v8811_v21  ;;  %vm7587_vm4 = vcmp.lt.s32.totalorder %v910_v37, 16  ;;  %v8814_v58 = vmov 0  ;;  %vm7591_vm6 = vcmp.lt.s32.totalorder %v911_v23, 16 }
  0x9d   : > { %8813 = vst [vmem:[#allocation17_spill] sm:$0xff] %v8812_v21  ;;  %v8815_v58 = vsel %vm7587_vm4, 4294967295, %v8814_v58  ;;  %v8817_v5 = vmov 0  ;;  %vm7595_vm8 = vcmp.lt.s32.totalorder %v912_v57, 16  ;;  %v8820_v53 = vmov 0 }
  0x9e   : > { %8816 = vst [vmem:[#allocation18_spill] sm:$0xff] %v8815_v58  ;;  %v8818_v5 = vsel %vm7591_vm6, 4294967295, %v8817_v5  ;;  %v8821_v53 = vsel %vm7595_vm8, 4294967295, %v8820_v53 }
  0x9f   : > { %8819 = vst [vmem:[#allocation20_spill] sm:$0xff] %v8818_v5  ;;  %8822 = vst [vmem:[#allocation21_spill] sm:$0xff] %v8821_v53 }
  0xa0 LB: >> { %v1017_v18 = vld [vmem:[#allocation2 + $0x1] sm:$0xff]  ;;  %v1018_v15 = vld [vmem:[#allocation2 + $0x9] sm:$0xff]  ;;  %v2247_v2 = vld [vmem:[#allocation2 + $0x13] sm:$0xff]  ;;  %s5086_s22 = smul.u32 144, %s6350_s21  ;;  %vm8823_vm4 = vcmask 261120   ;;  %s3952_s28 = scalar_lea.vmem %s8465_s2, %s6350_s21  ;;  %vm8966_vm0 = vnez %v8701_v63  ;;  %s6350_s21 = sphi %s7599_s21, %s954_s21  }
  0xa1   : >> { %v1053_v20 = vpack.c.bf16 %v1018_v15, %v1017_v18  ;;  %v2248_v8 = vld [vmem:[#allocation2 + $0x1b] sm:$0xff]  ;;  %vm8824_vm8 = vmmov %vm8823_vm4  ;;  %v1019_v59 = vld [vmem:[#allocation2 + $0x11] sm:$0xff]  ;;  %s954_s21 = sadd.s32 1, %s6350_s21  }
  0xa2   : >> { %v2283_v49 = vpack.c.bf16 %v2248_v8, %v2247_v2  ;;  %s7609_s25 = scalar_lea.vmem %s8464_s1, %s5086_s22  ;;  %v1020_v62 = vld [vmem:[#allocation2 + $0x19] sm:$0xff]  ;;  %v2249_v48 = vld [vmem:[#allocation2 + $0x23] sm:$0xff]  ;;  %v2250_v46 = vld [vmem:[#allocation2 + $0x2b] sm:$0xff]  ;;  %p951_p4 = scmp.ge.s32.totalorder %s954_s21, 4  }
  0xa3   : >> { %5412 = vmatprep.mubr.msk.bf16.mxu1 %vm8823_vm4, %v1053_v20  ;;  %v6149_v42 = vld [vmem:[%s7609_s25 + $0x10] sm:$0xff]   ;;  %v7614_v55 = vld [vmem:[%s7609_s25 + $0x40] sm:$0xff]   ;;  %v6151_v60 = vld [vmem:[%s7609_s25 + $0x18] sm:$0xff]   ;;  %v1054_v27 = vpack.c.bf16 %v1020_v62, %v1019_v59  ;;  %v2284_v28 = vpack.c.bf16 %v2250_v46, %v2249_v48 }
  0xa4   : >> { %5572 = vmatprep.mubr.msk.bf16.mxu0 %vm8824_vm8, %v2283_v49  ;;  %5408 = vmatprep.subr.bf16.mxu1 %v6149_v42  ;;  %v1021_v33 = vld [vmem:[#allocation2 + $0x21] sm:$0xff]  ;;  %v1022_v24 = vld [vmem:[#allocation2 + $0x29] sm:$0xff]  ;;  %v2251_v36 = vld [vmem:[#allocation2 + $0x33] sm:$0xff] }
  0xa5   : >> { %5568 = vmatprep.subr.bf16.mxu0 %v7614_v55  ;;  %5409 = vmatpush3.bf16.msra.mxu1 %v6149_v42  ;;  %v7619_v11 = vld [vmem:[%s7609_s25 + $0x48] sm:$0xff]   ;;  %v2252_v12 = vld [vmem:[#allocation2 + $0x3b] sm:$0xff]  ;;  %v6153_v51 = vld [vmem:[%s7609_s25 + $0x50] sm:$0xff]   ;;  %v1055_v43 = vpack.c.bf16 %v1022_v24, %v1021_v33 }
  0xa6   : >> { %5569 = vmatpush3.bf16.msra.mxu0 %v7614_v55  ;;  %5410 = vmatprep.subr.bf16.mxu1 %v6151_v60  ;;  %v6154_v39 = vld [vmem:[%s7609_s25] sm:$0xff]   ;;  %v2285_v37 = vpack.c.bf16 %v2252_v12, %v2251_v36  ;;  %v6155_v26 = vld [vmem:[%s7609_s25 + $0x58] sm:$0xff]   ;;  %vm8825_vm8 = vmmov %vm8823_vm4 }
  0xa7   : >> { %5570 = vmatprep.subr.bf16.mxu0 %v7619_v11  ;;  %vm8826_vm12 = vmmov %vm8823_vm4  ;;  %v1023_v23 = vld [vmem:[#allocation2 + $0x31] sm:$0xff]  ;;  %v1024_v17 = vld [vmem:[#allocation2 + $0x39] sm:$0xff] }
  0xa8   : >> { %v2253_v57 = vld [vmem:[#allocation2 + $0x43] sm:$0xff]  ;;  %vm8827_vm6 = vmmov %vm8823_vm4  ;;  %v2254_v18 = vld [vmem:[#allocation2 + $0x4b] sm:$0xff]  ;;  %v1056_v49 = vpack.c.bf16 %v1024_v17, %v1023_v23 }
  0xa9   : >> { %5411 = vmatpush3.bf16.msra.mxu1 %v6151_v60  ;;  %v1025_v15 = vld [vmem:[#allocation2 + $0x41] sm:$0xff]  ;;  %v1026_v2 = vld [vmem:[#allocation2 + $0x49] sm:$0xff]  ;;  %v2255_v20 = vld [vmem:[#allocation2 + $0x53] sm:$0xff]  ;;  %v2286_v42 = vpack.c.bf16 %v2254_v18, %v2253_v57 }
  0xaa   : >> { %5571 = vmatpush3.bf16.msra.mxu0 %v7619_v11  ;;  %5448 = vmatprep.subr.bf16.mxu1 %v6154_v39  ;;  %v2256_v8 = vld [vmem:[#allocation2 + $0x5b] sm:$0xff]  ;;  %v1057_v59 = vpack.c.bf16 %v1026_v2, %v1025_v15  ;;  %v1027_v60 = vld [vmem:[#allocation2 + $0x51] sm:$0xff]  ;;  %v2257_v46 = vld [vmem:[#allocation2 + $0x63] sm:$0xff] }
  0xab   : >> { %5608 = vmatprep.subr.bf16.mxu0 %v6153_v51  ;;  %v2287_v62 = vpack.c.bf16 %v2256_v8, %v2255_v20  ;;  %v1028_v48 = vld [vmem:[#allocation2 + $0x59] sm:$0xff]  ;;  %v6157_v24 = vld [vmem:[%s7609_s25 + $0x8] sm:$0xff]   ;;  %v1031_v23 = vld [vmem:[#allocation2 + $0x71] sm:$0xff] }
  0xac   : >> { %5413 = vmatmul.mubr.msk.bf16.vlgmr.msra.gmra.mrb[0].mxu1 %vm8823_vm4, %v1054_v27  ;;  %v7633_v33 = vld [vmem:[%s7609_s25 + $0x60] sm:$0xff]   ;;  %v2258_v36 = vld [vmem:[#allocation2 + $0x6b] sm:$0xff]  ;;  %v2263_v20 = vld [vmem:[#allocation2 + $0x93] sm:$0xff] }
  0xad   : >> { %5573 = vmatmul.mubr.msk.bf16.vlgmr.msra.gmra.mrb[0].mxu0 %vm8825_vm8, %v2284_v28  ;;  %5416 = vmatprep.mubr.msk.bf16.mxu1 %vm8826_vm12, %v1055_v43  ;;  %vm8828_vm12 = vmmov %vm8823_vm4  ;;  %v1029_v12 = vld [vmem:[#allocation2 + $0x61] sm:$0xff]  ;;  %v1058_v28 = vpack.c.bf16 %v1028_v48, %v1027_v60  ;;  %v2288_v43 = vpack.c.bf16 %v2258_v36, %v2257_v46  ;;  %v1032_v17 = vld [vmem:[#allocation2 + $0x79] sm:$0xff] }
  0xae   : >> { %5609 = vmatpush3.bf16.msra.mxu0 %v6153_v51  ;;  %5576 = vmatprep.mubr.msk.bf16.mxu0 %vm8827_vm6, %v2285_v37  ;;  %vm8829_vm6 = vmmov %vm8823_vm4  ;;  %v1030_v51 = vld [vmem:[#allocation2 + $0x69] sm:$0xff]  ;;  %v2260_v27 = vld [vmem:[#allocation2 + $0x7b] sm:$0xff] }
  0xaf   : >> { %5449 = vmatpush3.bf16.msra.mxu1 %v6154_v39  ;;  %5610 = vmatprep.subr.bf16.mxu0 %v6155_v26  ;;  %vm8830_vm8 = vmmov %vm8823_vm4  ;;  %v2259_v39 = vld [vmem:[#allocation2 + $0x73] sm:$0xff]  ;;  %v1059_v37 = vpack.c.bf16 %v1030_v51, %v1029_v12  ;;  %v2261_v57 = vld [vmem:[#allocation2 + $0x83] sm:$0xff] }
  0xb0   : >> { %5450 = vmatprep.subr.bf16.mxu1 %v6157_v24  ;;  %v2262_v18 = vld [vmem:[#allocation2 + $0x8b] sm:$0xff]  ;;  %v1033_v15 = vld [vmem:[#allocation2 + $0x81] sm:$0xff]  ;;  %v1036_v46 = vld [vmem:[#allocation2 + $0x99] sm:$0xff] }
  0xb1   : >> { %v1034_v2 = vld [vmem:[#allocation2 + $0x89] sm:$0xff]  ;;  %v2264_v8 = vld [vmem:[#allocation2 + $0x9b] sm:$0xff]  ;;  %v1035_v48 = vld [vmem:[#allocation2 + $0x91] sm:$0xff] }
  0xb2   : >> { %5611 = vmatpush3.bf16.msra.mxu0 %v6155_v26  ;;  %v2289_v26 = vpack.c.bf16 %v2260_v27, %v2259_v39  ;;  %v7646_v60 = vld [vmem:[%s7609_s25 + $0x20] sm:$0xff]   ;;  %v2266_v36 = vld [vmem:[#allocation2 + $0xab] sm:$0xff]  ;;  %v2588_v39 = vld [vmem:[#allocation2 + $0x14] sm:$0xff] }
  0xb3   : >> { %5648 = vmatprep.subr.bf16.mxu0 %v7633_v33  ;;  %5451 = vmatpush3.bf16.msra.mxu1 %v6157_v24  ;;  %v2265_v24 = vld [vmem:[#allocation2 + $0xa3] sm:$0xff]  ;;  %v966_v58 = vld [vmem:[#allocation2 + $0x58] sm:$0xff]  ;;  %v2619_v5 = vld [vmem:[#allocation2 + $0x10c] sm:$0xff] }
  0xb4   : >> { %5417 = vmatmul.mubr.msk.bf16.gmra.mrb[4].mxu1 %vm8828_vm12, %v1056_v49  ;;  %vm8831_vm12 = vmmov %vm8823_vm4  ;;  %v1060_v49 = vpack.c.bf16 %v1032_v17, %v1031_v23  ;;  %v1037_v12 = vld [vmem:[#allocation2 + $0xa1] sm:$0xff]  ;;  %v1038_v51 = vld [vmem:[#allocation2 + $0xa9] sm:$0xff]  ;;  %5488 = vmatprep.subr.bf16.mxu1 %v7646_v60 }
  0xb5   : >> { %5577 = vmatmul.mubr.msk.bf16.gmra.mrb[4].mxu0 %vm8829_vm6, %v2286_v42  ;;  %5420 = vmatprep.mubr.msk.bf16.mxu1 %vm8823_vm4, %v1057_v59  ;;  %vm8832_vm6 = vmmov %vm8823_vm4  ;;  %v2290_v42 = vpack.c.bf16 %v2262_v18, %v2261_v57  ;;  %v1061_v59 = vpack.c.bf16 %v1034_v2, %v1033_v15  ;;  %v2589_v27 = vld [vmem:[#allocation2 + $0x1c] sm:$0xff]  ;;  %v1039_v23 = vld [vmem:[#allocation2 + $0xb1] sm:$0xff] }
  0xb6   : >> { %5580 = vmatprep.mubr.msk.bf16.mxu0 %vm8830_vm8, %v2287_v62  ;;  %vm8833_vm8 = vmmov %vm8823_vm4  ;;  %v2291_v62 = vpack.c.bf16 %v2264_v8, %v2263_v20  ;;  %v1040_v17 = vld [vmem:[#allocation2 + $0xb9] sm:$0xff]  ;;  %v2590_v57 = vld [vmem:[#allocation2 + $0x24] sm:$0xff] }
  0xb7   : >> { %v2591_v18 = vld [vmem:[#allocation2 + $0x2c] sm:$0xff]  ;;  %v1041_v15 = vld [vmem:[#allocation2 + $0xc1] sm:$0xff]  ;;  %v2592_v20 = vld [vmem:[#allocation2 + $0x34] sm:$0xff] }
  0xb8   : >> { %v1042_v2 = vld [vmem:[#allocation2 + $0xc9] sm:$0xff]  ;;  %v2593_v8 = vld [vmem:[#allocation2 + $0x3c] sm:$0xff]  ;;  %vm8866_vm7 = vmmov %vm8823_vm4 }
  0xb9   : >> { %v2614_v53 = vld [vmem:[#allocation2 + $0xe4] sm:$0xff]  ;;  %v2623_v50 = vld [vmem:[#allocation2 + $0x12c] sm:$0xff]  ;;  %vm8869_vm11 = vmmov %vm8823_vm4 }
  0xba   : >> { %v2618_v21 = vld [vmem:[#allocation2 + $0x104] sm:$0xff]  ;;  %v6312_v52 = vld [vmem:[#allocation2 + $0x13] sm:$0xff] }
  0xbb   : >> { %v2622_v19 = vld [vmem:[#allocation2 + $0x124] sm:$0xff] }
  0xbc   : >> { %5421 = vmatmul.mubr.msk.bf16.gmra.mrb[8].mxu1 %vm8831_vm12, %v1058_v28  ;;  %vm8834_vm12 = vmmov %vm8823_vm4  ;;  %v1062_v28 = vpack.c.bf16 %v1036_v46, %v1035_v48  ;;  %v6158_v48 = vld [vmem:[%s7609_s25 + $0x68] sm:$0xff]   ;;  %v1043_v46 = vld [vmem:[#allocation2 + $0xd1] sm:$0xff] }
  0xbd   : >> { %5581 = vmatmul.mubr.msk.bf16.gmra.mrb[8].mxu0 %vm8832_vm6, %v2288_v43  ;;  %5424 = vmatprep.mubr.msk.bf16.mxu1 %vm8823_vm4, %v1059_v37  ;;  %vm8835_vm6 = vmmov %vm8823_vm4  ;;  %v2292_v43 = vpack.c.bf16 %v2266_v36, %v2265_v24  ;;  %v1063_v37 = vpack.c.bf16 %v1038_v51, %v1037_v12  ;;  %v1044_v24 = vld [vmem:[#allocation2 + $0xd9] sm:$0xff]  ;;  %v2594_v36 = vld [vmem:[#allocation2 + $0x44] sm:$0xff] }
  0xbe   : >> { %5584 = vmatprep.mubr.msk.bf16.mxu0 %vm8833_vm8, %v2289_v26  ;;  %vm8836_vm8 = vmmov %vm8823_vm4  ;;  %v2624_v26 = vpack.c.bf16 %v2589_v27, %v2588_v39  ;;  %v2595_v12 = vld [vmem:[#allocation2 + $0x4c] sm:$0xff]  ;;  %v1045_v51 = vld [vmem:[#allocation2 + $0xe1] sm:$0xff] }
  0xbf   : >> { %v1046_v39 = vld [vmem:[#allocation2 + $0xe9] sm:$0xff]  ;;  %v2596_v27 = vld [vmem:[#allocation2 + $0x54] sm:$0xff] }
  0xc4   : >> { %5425 = vmatmul.mubr.msk.bf16.gmra.mrb[12].mxu1 %vm8834_vm12, %v1060_v49  ;;  %vm8837_vm12 = vmmov %vm8823_vm4  ;;  %v1064_v49 = vpack.c.bf16 %v1040_v17, %v1039_v23  ;;  %v1067_v23 = vpack.c.bf16 %v1046_v39, %v1045_v51  ;;  %v2602_v51 = vld [vmem:[#allocation2 + $0x84] sm:$0xff]  ;;  %v2603_v39 = vld [vmem:[#allocation2 + $0x8c] sm:$0xff] }
  0xc5   : >> { %5585 = vmatmul.mubr.msk.bf16.gmra.mrb[12].mxu0 %vm8835_vm6, %v2290_v42  ;;  %5428 = vmatprep.mubr.msk.bf16.mxu1 %vm8823_vm4, %v1061_v59  ;;  %vm8838_vm6 = vmmov %vm8823_vm4  ;;  %v7656_v42 = vpack.c.bf16 %v2591_v18, %v2590_v57  ;;  %v1065_v59 = vpack.c.bf16 %v1042_v2, %v1041_v15  ;;  %v1048_v57 = vld [vmem:[#allocation2 + $0xf9] sm:$0xff]  ;;  %v2598_v18 = vld [vmem:[#allocation2 + $0x64] sm:$0xff] }
  0xc6   : >> { %5588 = vmatprep.mubr.msk.bf16.mxu0 %vm8836_vm8, %v2291_v62  ;;  %vm8839_vm8 = vmmov %vm8823_vm4  ;;  %v7658_v62 = vpack.c.bf16 %v2593_v8, %v2592_v20  ;;  %v2599_v15 = vld [vmem:[#allocation2 + $0x6c] sm:$0xff]  ;;  %v1049_v2 = vld [vmem:[#allocation2 + $0x101] sm:$0xff] }
  0xc7   : >> { %v1050_v20 = vld [vmem:[#allocation2 + $0x109] sm:$0xff]  ;;  %v2600_v8 = vld [vmem:[#allocation2 + $0x74] sm:$0xff] }
  0xcc   : >> { %5429 = vmatmul.mubr.msk.bf16.gmra.mrb[16].mxu1 %vm8837_vm12, %v1062_v28  ;;  %vm8840_vm12 = vmmov %vm8823_vm4  ;;  %v2597_v28 = vld [vmem:[#allocation2 + $0x5c] sm:$0xff] }
  0xcd   : >> { %5589 = vmatmul.mubr.msk.bf16.gmra.mrb[16].mxu0 %vm8838_vm6, %v2292_v43  ;;  %5432 = vmatprep.mubr.msk.bf16.mxu1 %vm8823_vm4, %v1063_v37  ;;  %vm8841_vm6 = vmmov %vm8823_vm4  ;;  %v7669_v43 = vld [vmem:[%s7609_s25 + $0x70] sm:$0xff]   ;;  %v1066_v37 = vpack.c.bf16 %v1044_v24, %v1043_v46  ;;  %v7673_v17 = vpack.c.bf16 %v2597_v28, %v2596_v27  ;;  %v1069_v46 = vpack.c.bf16 %v1050_v20, %v1049_v2  ;;  %v955_v27 = vld [vmem:[#allocation2] sm:$0xff] }
  0xce   : >> { %5612 = vmatprep.mubr.msk.bf16.mxu0 %vm8839_vm8, %v2624_v26  ;;  %vm8842_vm8 = vmmov %vm8823_vm4  ;;  %v7671_v26 = vpack.c.bf16 %v2595_v12, %v2594_v36  ;;  %v1051_v36 = vld [vmem:[#allocation2 + $0x111] sm:$0xff]  ;;  %v1052_v12 = vld [vmem:[#allocation2 + $0x119] sm:$0xff] }
  0xcf   : >> { %v956_v28 = vld [vmem:[#allocation2 + $0x8] sm:$0xff]  ;;  %v957_v2 = vld [vmem:[#allocation2 + $0x10] sm:$0xff]  ;;  %v958_v20 = vld [vmem:[#allocation2 + $0x18] sm:$0xff] }
  0xd4   : >> { %5433 = vmatmul.mubr.msk.bf16.gmra.mrb[20].mxu1 %vm8840_vm12, %v1064_v49  ;;  %vm8843_vm12 = vmmov %vm8823_vm4  ;;  %v2601_v49 = vld [vmem:[#allocation2 + $0x7c] sm:$0xff] }
  0xd5   : >> { %5613 = vmatmul.mubr.msk.bf16.vlgmr.msra.gmra.mrb[0].mxu0 %vm8841_vm6, %v7656_v42  ;;  %5436 = vmatprep.mubr.msk.bf16.mxu1 %vm8823_vm4, %v1065_v59  ;;  %vm8844_vm6 = vmmov %vm8823_vm4  ;;  %v7684_v24 = vpack.c.bf16 %v2601_v49, %v2600_v8  ;;  %v2606_v8 = vld [vmem:[#allocation2 + $0xa4] sm:$0xff]  ;;  %v2607_v49 = vld [vmem:[#allocation2 + $0xac] sm:$0xff] }
  0xd6   : >> { %5649 = vmatpush3.bf16.msra.mxu0 %v7633_v33  ;;  %5616 = vmatprep.mubr.msk.bf16.mxu0 %vm8842_vm8, %v7658_v62  ;;  %v1047_v33 = vld [vmem:[#allocation2 + $0xf1] sm:$0xff]  ;;  %vm8845_vm8 = vmmov %vm8823_vm4 }
  0xd7   : >> { %5650 = vmatprep.subr.bf16.mxu0 %v6158_v48  ;;  %v1068_v59 = vpack.c.bf16 %v1048_v57, %v1047_v33  ;;  %v1070_v33 = vpack.c.bf16 %v1052_v12, %v1051_v36  ;;  %v7692_v57 = vpack.c.bf16 %v2603_v39, %v2602_v51  ;;  %v2608_v36 = vld [vmem:[#allocation2 + $0xb4] sm:$0xff]  ;;  %v2609_v12 = vld [vmem:[#allocation2 + $0xbc] sm:$0xff]  ;;  %v992_v51 = vpack.c.bf16 %v958_v20, %v957_v2  ;;  %v2611_v2 = vld [vmem:[#allocation2 + $0xcc] sm:$0xff] }
  0xd8   : >> { %v7702_v39 = vpack.c.bf16 %v2607_v49, %v2606_v8  ;;  %v963_v20 = vld [vmem:[#allocation2 + $0x40] sm:$0xff]  ;;  %v964_v8 = vld [vmem:[#allocation2 + $0x48] sm:$0xff]  ;;  %v2612_v49 = vld [vmem:[#allocation2 + $0xd4] sm:$0xff] }
  0xda   : >> { %5651 = vmatpush3.bf16.msra.mxu0 %v6158_v48  ;;  %v7682_v48 = vpack.c.bf16 %v2599_v15, %v2598_v18  ;;  %v991_v18 = vpack.c.bf16 %v956_v28, %v955_v27  ;;  %v7704_v28 = vpack.c.bf16 %v2609_v12, %v2608_v36 }
  0xdb   : >> { %5688 = vmatprep.subr.bf16.mxu0 %v7669_v43 }
  0xdc   : >> { %5437 = vmatmul.mubr.msk.bf16.gmra.mrb[24].mxu1 %vm8843_vm12, %v1066_v37  ;;  %vm8846_vm12 = vmmov %vm8823_vm4  ;;  %v2604_v37 = vld [vmem:[#allocation2 + $0x94] sm:$0xff] }
  0xdd   : >> { %5617 = vmatmul.mubr.msk.bf16.gmra.mrb[4].mxu0 %vm8844_vm6, %v7671_v26  ;;  %5440 = vmatprep.mubr.msk.bf16.mxu1 %vm8823_vm4, %v1067_v23  ;;  %vm8847_vm6 = vmmov %vm8823_vm4  ;;  %v2605_v23 = vld [vmem:[#allocation2 + $0x9c] sm:$0xff] }
  0xde   : >> { %5620 = vmatprep.mubr.msk.bf16.mxu0 %vm8845_vm8, %v7673_v17  ;;  %vm8848_vm8 = vmmov %vm8823_vm4  ;;  %v7694_v15 = vpack.c.bf16 %v2605_v23, %v2604_v37  ;;  %v6161_v37 = vld [vmem:[%s7609_s25 + $0x28] sm:$0xff]   ;;  %v961_v23 = vld [vmem:[#allocation2 + $0x30] sm:$0xff] }
  0xe4   : >> { %5441 = vmatmul.mubr.msk.bf16.gmra.mrb[28].mxu1 %vm8846_vm12, %v1068_v59  ;;  %vm8849_vm12 = vmmov %vm8823_vm4  ;;  %v959_v59 = vld [vmem:[#allocation2 + $0x20] sm:$0xff] }
  0xe5   : >> { %5621 = vmatmul.mubr.msk.bf16.gmra.mrb[8].mxu0 %vm8847_vm6, %v7682_v48  ;;  %5444 = vmatprep.mubr.msk.bf16.mxu1 %vm8823_vm4, %v1069_v46  ;;  %vm8850_vm6 = vmmov %vm8823_vm4  ;;  %v960_v46 = vld [vmem:[#allocation2 + $0x28] sm:$0xff] }
  0xe6   : >> { %5624 = vmatprep.mubr.msk.bf16.mxu0 %vm8848_vm8, %v7684_v24  ;;  %vm8851_vm8 = vmmov %vm8823_vm4  ;;  %v993_v27 = vpack.c.bf16 %v960_v46, %v959_v59  ;;  %v2613_v59 = vld [vmem:[#allocation2 + $0xdc] sm:$0xff]  ;;  %v7715_v46 = vld [vmem:[%s7609_s25 + $0x30] sm:$0xff]  }
  0xec   : >> { %5445 = vmatmul.mubr.msk.bf16.gmra.mrb[32].mxu1 %vm8849_vm12, %v1070_v33  ;;  %vm8852_vm12 = vmmov %vm8823_vm4  ;;  %v962_v33 = vld [vmem:[#allocation2 + $0x38] sm:$0xff] }
  0xed   : >> { %5625 = vmatmul.mubr.msk.bf16.gmra.mrb[12].mxu0 %vm8850_vm6, %v7692_v57  ;;  %5452 = vmatprep.mubr.msk.bf16.mxu1 %vm8823_vm4, %v991_v18  ;;  %vm8853_vm6 = vmmov %vm8823_vm4  ;;  %v2610_v18 = vld [vmem:[#allocation2 + $0xc4] sm:$0xff]  ;;  %v994_v36 = vpack.c.bf16 %v962_v33, %v961_v23  ;;  %v2615_v23 = vld [vmem:[#allocation2 + $0xec] sm:$0xff] }
  0xee   : >> { %5628 = vmatprep.mubr.msk.bf16.mxu0 %vm8851_vm8, %v7694_v15  ;;  %vm8854_vm8 = vmmov %vm8823_vm4  ;;  %v7717_v12 = vpack.c.bf16 %v2611_v2, %v2610_v18  ;;  %v967_v33 = vld [vmem:[#allocation2 + $0x60] sm:$0xff]  ;;  %v968_v18 = vld [vmem:[#allocation2 + $0x68] sm:$0xff] }
  0xef   : >> { %v2616_v2 = vld [vmem:[#allocation2 + $0xf4] sm:$0xff] }
  0xf4   : >> { %5453 = vmatmul.mubr.msk.bf16.vlgmr.msra.gmra.mrb[0].mxu1 %vm8852_vm12, %v992_v51  ;;  %v995_v51 = vpack.c.bf16 %v964_v8, %v963_v20  ;;  %vm8855_vm12 = vmmov %vm8823_vm4  ;;  %v7728_v8 = vpack.c.bf16 %v2615_v23, %v2614_v53  ;;  %v972_v53 = vld [vmem:[#allocation2 + $0x88] sm:$0xff]  ;;  %v2621_v23 = vld [vmem:[#allocation2 + $0x11c] sm:$0xff] }
  0xf5   : >> { %5629 = vmatmul.mubr.msk.bf16.gmra.mrb[16].mxu0 %vm8853_vm6, %v7702_v39  ;;  %5456 = vmatprep.mubr.msk.bf16.mxu1 %vm8823_vm4, %v993_v27  ;;  %v7719_v27 = vpack.c.bf16 %v2613_v59, %v2612_v49  ;;  %vm8856_vm6 = vmmov %vm8823_vm4  ;;  %v997_v49 = vpack.c.bf16 %v968_v18, %v967_v33  ;;  %v7738_v18 = vpack.c.bf16 %v2619_v5, %v2618_v21  ;;  %v975_v21 = vld [vmem:[#allocation2 + $0xa0] sm:$0xff]  ;;  %v976_v5 = vld [vmem:[#allocation2 + $0xa8] sm:$0xff] }
  0xf6   : >> { %5632 = vmatprep.mubr.msk.bf16.mxu0 %vm8854_vm8, %v7704_v28  ;;  %5489 = vmatpush3.bf16.msra.mxu1 %v7646_v60  ;;  %v965_v60 = vld [vmem:[#allocation2 + $0x50] sm:$0xff]  ;;  %vm8857_vm8 = vmmov %vm8823_vm4 }
  0xf7   : >> { %5490 = vmatprep.subr.bf16.mxu1 %v6161_v37  ;;  %v996_v20 = vpack.c.bf16 %v966_v58, %v965_v60  ;;  %v971_v58 = vld [vmem:[#allocation2 + $0x80] sm:$0xff]  ;;  %v2620_v60 = vld [vmem:[#allocation2 + $0x114] sm:$0xff] }
  0xfa   : >> { %5491 = vmatpush3.bf16.msra.mxu1 %v6161_v37  ;;  %v2617_v37 = vld [vmem:[#allocation2 + $0xfc] sm:$0xff] }
  0xfb   : >> { %5528 = vmatprep.subr.bf16.mxu1 %v7715_v46  ;;  %v7730_v59 = vpack.c.bf16 %v2617_v37, %v2616_v2  ;;  %v999_v2 = vpack.c.bf16 %v972_v53, %v971_v58  ;;  %v7740_v37 = vpack.c.bf16 %v2621_v23, %v2620_v60  ;;  %v1001_v58 = vpack.c.bf16 %v976_v5, %v975_v21  ;;  %v977_v53 = vld [vmem:[#allocation2 + $0xb0] sm:$0xff]  ;;  %v978_v60 = vld [vmem:[#allocation2 + $0xb8] sm:$0xff]  ;;  %v979_v23 = vld [vmem:[#allocation2 + $0xc0] sm:$0xff] }
  0xfc   : >> { %5457 = vmatmul.mubr.msk.bf16.gmra.mrb[4].mxu1 %vm8855_vm12, %v994_v36  ;;  %vm8858_vm12 = vmmov %vm8823_vm4  ;;  %v969_v36 = vld [vmem:[#allocation2 + $0x70] sm:$0xff]  ;;  %v984_v21 = vld [vmem:[#allocation2 + $0xe8] sm:$0xff] }
  0xfd   : >> { %5633 = vmatmul.mubr.msk.bf16.gmra.mrb[20].mxu0 %vm8856_vm6, %v7717_v12  ;;  %5460 = vmatprep.mubr.msk.bf16.mxu1 %vm8823_vm4, %v995_v51  ;;  %vm8859_vm6 = vmmov %vm8823_vm4  ;;  %v970_v51 = vld [vmem:[#allocation2 + $0x78] sm:$0xff]  ;;  %v7765_v5 = vld [vmem:[%s7609_s25 + $0x80] sm:$0xff]  }
  0xfe   : >> { %5636 = vmatprep.mubr.msk.bf16.mxu0 %vm8857_vm8, %v7719_v27  ;;  %vm8860_vm8 = vmmov %vm8823_vm4  ;;  %v998_v33 = vpack.c.bf16 %v970_v51, %v969_v36  ;;  %v7748_v51 = vpack.c.bf16 %v2623_v50, %v2622_v19  ;;  %v6162_v19 = vld [vmem:[%s7609_s25 + $0x78] sm:$0xff]   ;;  %v981_v50 = vld [vmem:[#allocation2 + $0xd0] sm:$0xff] }
 0x104   : >> { %5461 = vmatmul.mubr.msk.bf16.gmra.mrb[8].mxu1 %vm8858_vm12, %v996_v20  ;;  %vm8861_vm12 = vmmov %vm8823_vm4  ;;  %v973_v20 = vld [vmem:[#allocation2 + $0x90] sm:$0xff] }
 0x105   : >> { %5637 = vmatmul.mubr.msk.bf16.gmra.mrb[24].mxu0 %vm8859_vm6, %v7728_v8  ;;  %5464 = vmatprep.mubr.msk.bf16.mxu1 %vm8823_vm4, %v997_v49  ;;  %vm8862_vm6 = vmmov %vm8823_vm4  ;;  %v974_v49 = vld [vmem:[#allocation2 + $0x98] sm:$0xff] }
 0x106   : >> { %5640 = vmatprep.mubr.msk.bf16.mxu0 %vm8860_vm8, %v7730_v59  ;;  %vm8863_vm8 = vmmov %vm8823_vm4  ;;  %v1000_v36 = vpack.c.bf16 %v974_v49, %v973_v20  ;;  %v982_v49 = vld [vmem:[#allocation2 + $0xd8] sm:$0xff] }
 0x10c   : >> { %5465 = vmatmul.mubr.msk.bf16.gmra.mrb[12].mxu1 %vm8861_vm12, %v998_v33  ;;  %vm8864_vm12 = vmmov %vm8823_vm4  ;;  %v980_v33 = vld [vmem:[#allocation2 + $0xc8] sm:$0xff] }
 0x10d   : >> { %5641 = vmatmul.mubr.msk.bf16.gmra.mrb[28].mxu0 %vm8862_vm6, %v7738_v18  ;;  %5468 = vmatprep.mubr.msk.bf16.mxu1 %vm8823_vm4, %v999_v2  ;;  %vm8865_vm6 = vmmov %vm8823_vm4  ;;  %v1002_v2 = vpack.c.bf16 %v978_v60, %v977_v53  ;;  %v1003_v20 = vpack.c.bf16 %v980_v33, %v979_v23  ;;  %v988_v53 = vld [vmem:[#allocation2 + $0x108] sm:$0xff]  ;;  %v989_v33 = vld [vmem:[#allocation2 + $0x110] sm:$0xff] }
 0x10e   : >> { %5644 = vmatprep.mubr.msk.bf16.mxu0 %vm8863_vm8, %v7740_v37  ;;  %vm8867_vm8 = vmmov %vm8823_vm4 }
 0x114   : >> { %5469 = vmatmul.mubr.msk.bf16.gmra.mrb[16].mxu1 %vm8864_vm12, %v1000_v36  ;;  %vm8868_vm12 = vmmov %vm8823_vm4  ;;  %v1004_v36 = vpack.c.bf16 %v982_v49, %v981_v50  ;;  %v1568_v50 = vld [vmem:[#allocation2 + $0x1a] sm:$0xff]  ;;  %v1569_v49 = vld [vmem:[#allocation2 + $0x22] sm:$0xff] }
 0x115   : >> { %5645 = vmatmul.mubr.msk.bf16.gmra.mrb[32].mxu0 %vm8865_vm6, %v7748_v51  ;;  %5472 = vmatprep.mubr.msk.bf16.mxu1 %vm8823_vm4, %v1001_v58  ;;  %vm8870_vm6 = vmmov %vm8823_vm4 }
 0x116   : >> { %5652 = vmatprep.mubr.msk.bf16.mxu0 %vm8866_vm7, %v7656_v42  ;;  %v983_v42 = vld [vmem:[#allocation2 + $0xe0] sm:$0xff]  ;;  %vm8871_vm7 = vmmov %vm8823_vm4 }
 0x117   : >> { %v1005_v58 = vpack.c.bf16 %v984_v21, %v983_v42  ;;  %v1570_v42 = vld [vmem:[#allocation2 + $0x2a] sm:$0xff] }
 0x11c   : >> { %5473 = vmatmul.mubr.msk.bf16.gmra.mrb[20].mxu1 %vm8867_vm8, %v1002_v2  ;;  %vm8873_vm8 = vmmov %vm8823_vm4  ;;  %v1565_v2 = vld [vmem:[#allocation2 + $0x2] sm:$0xff] }
 0x11d   : >> { %5653 = vmatmul.mubr.msk.bf16.vlgmr.msra.gmra.mrb[0].mxu0 %vm8868_vm12, %v7658_v62  ;;  %5476 = vmatprep.mubr.msk.bf16.mxu1 %vm8869_vm11, %v1003_v20  ;;  %vm8872_vm11 = vmmov %vm8823_vm4  ;;  %v985_v62 = vld [vmem:[#allocation2 + $0xf0] sm:$0xff] }
 0x11e   : >> { %5689 = vmatpush3.bf16.msra.mxu0 %v7669_v43  ;;  %5656 = vmatprep.mubr.msk.bf16.mxu0 %vm8870_vm6, %v7671_v26  ;;  %v986_v43 = vld [vmem:[#allocation2 + $0xf8] sm:$0xff]  ;;  %v987_v26 = vld [vmem:[#allocation2 + $0x100] sm:$0xff]  ;;  %vm8874_vm12 = vmmov %vm8823_vm4 }
 0x11f   : >> { %5690 = vmatprep.subr.bf16.mxu0 %v6162_v19  ;;  %v1006_v60 = vpack.c.bf16 %v986_v43, %v985_v62  ;;  %v1007_v23 = vpack.c.bf16 %v988_v53, %v987_v26  ;;  %vm8875_vm6 = vmmov %vm8823_vm4  ;;  %v1566_v20 = vld [vmem:[#allocation2 + $0xa] sm:$0xff] }
 0x120   : >> { %v1574_v62 = vld [vmem:[#allocation2 + $0x4a] sm:$0xff] }
 0x121   : >> { %v1578_v53 = vld [vmem:[#allocation2 + $0x6a] sm:$0xff] }
 0x122   : >> { %5691 = vmatpush3.bf16.msra.mxu0 %v6162_v19  ;;  %v1601_v19 = vpack.c.bf16 %v1566_v20, %v1565_v2 }
 0x123   : >> { %5728 = vmatprep.subr.bf16.mxu0 %v7765_v5 }
 0x124   : >> { %5477 = vmatmul.mubr.msk.bf16.gmra.mrb[24].mxu1 %vm8871_vm7, %v1004_v36  ;;  %vm8876_vm7 = vmmov %vm8823_vm4  ;;  %v6165_v36 = vld [vmem:[%s7609_s25 + $0x38] sm:$0xff]  }
 0x125   : >> { %5657 = vmatmul.mubr.msk.bf16.gmra.mrb[4].mxu0 %vm8872_vm11, %v7673_v17  ;;  %5480 = vmatprep.mubr.msk.bf16.mxu1 %vm8823_vm4, %v1005_v58  ;;  %v990_v17 = vld [vmem:[#allocation2 + $0x118] sm:$0xff]  ;;  %vm8877_vm11 = vmmov %vm8823_vm4 }
 0x126   : >> { %5660 = vmatprep.mubr.msk.bf16.mxu0 %vm8873_vm8, %v7682_v48  ;;  %v1008_v48 = vpack.c.bf16 %v990_v17, %v989_v33  ;;  %vm8878_vm8 = vmmov %vm8823_vm4  ;;  %v1572_v58 = vld [vmem:[#allocation2 + $0x3a] sm:$0xff]  ;;  %v1582_v17 = vld [vmem:[#allocation2 + $0x8a] sm:$0xff] }
 0x127   : >> { %v1580_v33 = vld [vmem:[#allocation2 + $0x7a] sm:$0xff] }
 0x12c   : >> { %5481 = vmatmul.mubr.msk.bf16.gmra.mrb[28].mxu1 %vm8874_vm12, %v1006_v60  ;;  %vm8879_vm12 = vmmov %vm8823_vm4 }
 0x12d   : >> { %5661 = vmatmul.mubr.msk.bf16.gmra.mrb[8].mxu0 %vm8875_vm6, %v7684_v24  ;;  %5484 = vmatprep.mubr.msk.bf16.mxu1 %vm8876_vm7, %v1007_v23  ;;  %v1567_v24 = vld [vmem:[#allocation2 + $0x12] sm:$0xff]  ;;  %vm8880_vm6 = vmmov %vm8823_vm4 }
 0x12e   : >> { %5664 = vmatprep.mubr.msk.bf16.mxu0 %vm8877_vm11, %v7692_v57  ;;  %v7786_v21 = vpack.c.bf16 %v1568_v50, %v1567_v24  ;;  %v7788_v57 = vpack.c.bf16 %v1570_v42, %v1569_v49  ;;  %vm8881_vm7 = vmmov %vm8823_vm4  ;;  %v1585_v24 = vld [vmem:[#allocation2 + $0xa2] sm:$0xff]  ;;  %v1586_v50 = vld [vmem:[#allocation2 + $0xaa] sm:$0xff] }
 0x12f   : >> { %vm8882_vm11 = vmmov %vm8823_vm4  ;;  %v3270_v49 = vld [vmem:[#allocation2 + $0x25] sm:$0xff]  ;;  %v3271_v42 = vld [vmem:[#allocation2 + $0x2d] sm:$0xff] }
 0x134   : >> { %5485 = vmatmul.mubr.msk.bf16.gmra.mrb[32].mxu1 %vm8823_vm4, %v1008_v48  ;;  %v1584_v48 = vld [vmem:[#allocation2 + $0x9a] sm:$0xff] }
 0x135   : >> { %5665 = vmatmul.mubr.msk.bf16.gmra.mrb[12].mxu0 %vm8878_vm8, %v7694_v15  ;;  %5492 = vmatprep.mubr.msk.bf16.mxu1 %vm8879_vm12, %v1601_v19  ;;  %v1571_v15 = vld [vmem:[#allocation2 + $0x32] sm:$0xff]  ;;  %vm8883_vm8 = vmmov %vm8823_vm4 }
 0x136   : >> { %5668 = vmatprep.mubr.msk.bf16.mxu0 %vm8880_vm6, %v7702_v39  ;;  %v1573_v39 = vld [vmem:[#allocation2 + $0x42] sm:$0xff]  ;;  %v7800_v43 = vpack.c.bf16 %v1572_v58, %v1571_v15  ;;  %vm8884_vm12 = vmmov %vm8823_vm4  ;;  %v2963_v19 = vld [vmem:[#allocation2 + $0x134] sm:$0xff]  ;;  %v7839_v58 = vpack.c.bf16 %v1586_v50, %v1585_v24 }
 0x137   : >> { %v7802_v26 = vpack.c.bf16 %v1574_v62, %v1573_v39  ;;  %vm8885_vm6 = vmmov %vm8823_vm4  ;;  %v1588_v39 = vld [vmem:[#allocation2 + $0xba] sm:$0xff] }
 0x138   : >> { %v3272_v62 = vld [vmem:[#allocation2 + $0x35] sm:$0xff]  ;;  %v3277_v50 = vld [vmem:[#allocation2 + $0x5d] sm:$0xff] }
 0x139   : >> { %v3276_v24 = vld [vmem:[#allocation2 + $0x55] sm:$0xff] }
 0x13c   : >> { %5493 = vmatmul.mubr.msk.bf16.vlgmr.msra.gmra.mrb[0].mxu1 %vm8881_vm7, %v7786_v21  ;;  %vm8886_vm7 = vmmov %vm8823_vm4 }
 0x13d   : >> { %5669 = vmatmul.mubr.msk.bf16.gmra.mrb[16].mxu0 %vm8882_vm11, %v7704_v28  ;;  %5496 = vmatprep.mubr.msk.bf16.mxu1 %vm8823_vm4, %v7788_v57  ;;  %v1575_v28 = vld [vmem:[#allocation2 + $0x52] sm:$0xff]  ;;  %vm8887_vm11 = vmmov %vm8823_vm4 }
 0x13e   : >> { %5672 = vmatprep.mubr.msk.bf16.mxu0 %vm8883_vm8, %v7717_v12  ;;  %5529 = vmatpush3.bf16.msra.mxu1 %v7715_v46  ;;  %v1576_v46 = vld [vmem:[#allocation2 + $0x5a] sm:$0xff]  ;;  %v1577_v12 = vld [vmem:[#allocation2 + $0x62] sm:$0xff]  ;;  %vm8888_vm8 = vmmov %vm8823_vm4 }
 0x13f   : >> { %5530 = vmatprep.subr.bf16.mxu1 %v6165_v36  ;;  %v7813_v60 = vpack.c.bf16 %v1576_v46, %v1575_v28  ;;  %v7815_v23 = vpack.c.bf16 %v1578_v53, %v1577_v12  ;;  %v3273_v28 = vld [vmem:[#allocation2 + $0x3d] sm:$0xff]  ;;  %v1590_v12 = vld [vmem:[#allocation2 + $0xca] sm:$0xff] }
 0x140   : >> { %v1589_v46 = vld [vmem:[#allocation2 + $0xc2] sm:$0xff] }
 0x141   : >> { %v3274_v53 = vld [vmem:[#allocation2 + $0x45] sm:$0xff] }
 0x142   : >> { %5531 = vmatpush3.bf16.msra.mxu1 %v6165_v36 }
 0x143   : >> { %5768 = vmatprep.subr.bf16.mxu1 %v7614_v55 }
 0x144   : >> { %5497 = vmatmul.mubr.msk.bf16.gmra.mrb[4].mxu1 %vm8884_vm12, %v7800_v43  ;;  %vm8889_vm12 = vmmov %vm8823_vm4 }
 0x145   : >> { %5673 = vmatmul.mubr.msk.bf16.gmra.mrb[20].mxu0 %vm8885_vm6, %v7719_v27  ;;  %5500 = vmatprep.mubr.msk.bf16.mxu1 %vm8886_vm7, %v7802_v26  ;;  %v1579_v27 = vld [vmem:[#allocation2 + $0x72] sm:$0xff]  ;;  %vm8890_vm6 = vmmov %vm8823_vm4 }
 0x146   : >> { %5676 = vmatprep.mubr.msk.bf16.mxu0 %vm8887_vm11, %v7728_v8  ;;  %v1581_v8 = vld [vmem:[#allocation2 + $0x82] sm:$0xff]  ;;  %v7825_v2 = vpack.c.bf16 %v1580_v33, %v1579_v27  ;;  %vm8891_vm7 = vmmov %vm8823_vm4  ;;  %v3275_v27 = vld [vmem:[#allocation2 + $0x4d] sm:$0xff] }
 0x147   : >> { %v7827_v20 = vpack.c.bf16 %v1582_v17, %v1581_v8  ;;  %vm8892_vm11 = vmmov %vm8823_vm4  ;;  %v3307_v8 = vpack.c.bf16 %v3273_v28, %v3272_v62  ;;  %v7849_v17 = vpack.c.bf16 %v1590_v12, %v1589_v46  ;;  %v1596_v46 = vld [vmem:[#allocation2 + $0xfa] sm:$0xff] }
 0x148   : >> { %v3280_v12 = vld [vmem:[#allocation2 + $0x75] sm:$0xff] }
 0x14c   : >> { %5501 = vmatmul.mubr.msk.bf16.gmra.mrb[8].mxu1 %vm8823_vm4, %v7813_v60 }
 0x14d   : >> { %5677 = vmatmul.mubr.msk.bf16.gmra.mrb[24].mxu0 %vm8888_vm8, %v7730_v59  ;;  %5504 = vmatprep.mubr.msk.bf16.mxu1 %vm8889_vm12, %v7815_v23  ;;  %v1583_v59 = vld [vmem:[#allocation2 + $0x92] sm:$0xff]  ;;  %vm8893_vm8 = vmmov %vm8823_vm4 }
 0x14e   : >> { %5680 = vmatprep.mubr.msk.bf16.mxu0 %vm8890_vm6, %v7738_v18  ;;  %v2964_v18 = vld [vmem:[#allocation2 + $0x13c] sm:$0xff]  ;;  %v7837_v36 = vpack.c.bf16 %v1584_v48, %v1583_v59  ;;  %vm8894_vm12 = vmmov %vm8823_vm4  ;;  %v3308_v59 = vpack.c.bf16 %v3275_v27, %v3274_v53  ;;  %v6166_v48 = vld [vmem:[%s7609_s25 + $0x88] sm:$0xff]  }
 0x14f   : >> { %v2982_v15 = vpack.c.bf16 %v2964_v18, %v2963_v19  ;;  %vm8895_vm6 = vmmov %vm8823_vm4  ;;  %v1591_v19 = vld [vmem:[#allocation2 + $0xd2] sm:$0xff]  ;;  %v1592_v18 = vld [vmem:[#allocation2 + $0xda] sm:$0xff] }
 0x150   : >> { %v3281_v53 = vld [vmem:[#allocation2 + $0x7d] sm:$0xff] }
 0x151   : >> { %v1597_v27 = vld [vmem:[#allocation2 + $0x102] sm:$0xff] }
 0x154   : >> { %5505 = vmatmul.mubr.msk.bf16.gmra.mrb[12].mxu1 %vm8891_vm7, %v7825_v2  ;;  %vm8896_vm7 = vmmov %vm8823_vm4 }
 0x155   : >> { %5681 = vmatmul.mubr.msk.bf16.gmra.mrb[28].mxu0 %vm8892_vm11, %v7740_v37  ;;  %5508 = vmatprep.mubr.msk.bf16.mxu1 %vm8823_vm4, %v7827_v20  ;;  %v3306_v37 = vpack.c.bf16 %v3271_v42, %v3270_v49  ;;  %vm8897_vm11 = vmmov %vm8823_vm4  ;;  %v1593_v49 = vld [vmem:[#allocation2 + $0xe2] sm:$0xff]  ;;  %v1594_v42 = vld [vmem:[#allocation2 + $0xea] sm:$0xff] }
 0x156   : >> { %5684 = vmatprep.mubr.msk.bf16.mxu0 %vm8893_vm8, %v7748_v51  ;;  %v1587_v51 = vld [vmem:[#allocation2 + $0xb2] sm:$0xff]  ;;  %vm8898_vm8 = vmmov %vm8823_vm4  ;;  %v7861_v62 = vpack.c.bf16 %v1594_v42, %v1593_v49  ;;  %v1600_v42 = vld [vmem:[#allocation2 + $0x11a] sm:$0xff] }
 0x157   : >> { %v7847_v33 = vpack.c.bf16 %v1588_v39, %v1587_v51  ;;  %v7859_v51 = vpack.c.bf16 %v1592_v18, %v1591_v19  ;;  %v3309_v39 = vpack.c.bf16 %v3277_v50, %v3276_v24  ;;  %v3283_v19 = vld [vmem:[#allocation2 + $0x8d] sm:$0xff] }
 0x158   : >> { %v1599_v49 = vld [vmem:[#allocation2 + $0x112] sm:$0xff] }
 0x15c   : >> { %5509 = vmatmul.mubr.msk.bf16.gmra.mrb[16].mxu1 %vm8894_vm12, %v7837_v36  ;;  %vm8899_vm12 = vmmov %vm8823_vm4 }
 0x15d   : >> { %5685 = vmatmul.mubr.msk.bf16.gmra.mrb[32].mxu0 %vm8895_vm6, %v2982_v15  ;;  %5512 = vmatprep.mubr.msk.bf16.mxu1 %vm8896_vm7, %v7839_v58  ;;  %vm8900_vm6 = vmmov %vm8823_vm4  ;;  %v3278_v15 = vld [vmem:[#allocation2 + $0x65] sm:$0xff] }
 0x15e   : >> { %5692 = vmatprep.mubr.msk.bf16.mxu0 %vm8897_vm11, %v3306_v37  ;;  %v3279_v37 = vld [vmem:[#allocation2 + $0x6d] sm:$0xff]  ;;  %vm8901_vm7 = vmmov %vm8823_vm4 }
 0x15f   : >> { %v3310_v28 = vpack.c.bf16 %v3279_v37, %v3278_v15  ;;  %vm8902_vm11 = vmmov %vm8823_vm4  ;;  %v3284_v15 = vld [vmem:[#allocation2 + $0x95] sm:$0xff]  ;;  %v3285_v37 = vld [vmem:[#allocation2 + $0x9d] sm:$0xff] }
 0x164   : >> { %5513 = vmatmul.mubr.msk.bf16.gmra.mrb[20].mxu1 %vm8823_vm4, %v7847_v33 }
 0x165   : >> { %5693 = vmatmul.mubr.msk.bf16.vlgmr.msra.gmra.mrb[0].mxu0 %vm8898_vm8, %v3307_v8  ;;  %5516 = vmatprep.mubr.msk.bf16.mxu1 %vm8899_vm12, %v7849_v17  ;;  %vm8903_vm8 = vmmov %vm8823_vm4  ;;  %v1598_v8 = vld [vmem:[#allocation2 + $0x10a] sm:$0xff] }
 0x166   : >> { %5729 = vmatpush3.bf16.msra.mxu0 %v7765_v5  ;;  %5696 = vmatprep.mubr.msk.bf16.mxu0 %vm8900_vm6, %v3308_v59  ;;  %v1595_v5 = vld [vmem:[#allocation2 + $0xf2] sm:$0xff]  ;;  %v3282_v59 = vld [vmem:[#allocation2 + $0x85] sm:$0xff]  ;;  %v7871_v24 = vpack.c.bf16 %v1598_v8, %v1597_v27  ;;  %vm8904_vm12 = vmmov %vm8823_vm4 }
 0x167   : >> { %5730 = vmatprep.subr.bf16.mxu0 %v6166_v48  ;;  %v7869_v18 = vpack.c.bf16 %v1596_v46, %v1595_v5  ;;  %v3312_v50 = vpack.c.bf16 %v3283_v19, %v3282_v59  ;;  %vm8905_vm6 = vmmov %vm8823_vm4  ;;  %v7879_v5 = vpack.c.bf16 %v1600_v42, %v1599_v49  ;;  %v3313_v46 = vpack.c.bf16 %v3285_v37, %v3284_v15  ;;  %v3289_v27 = vld [vmem:[#allocation2 + $0xbd] sm:$0xff]  ;;  %v3290_v8 = vld [vmem:[#allocation2 + $0xc5] sm:$0xff] }
 0x168   : >> { %v3291_v59 = vld [vmem:[#allocation2 + $0xcd] sm:$0xff]  ;;  %v3294_v49 = vld [vmem:[#allocation2 + $0xe5] sm:$0xff] }
 0x169   : >> { %v3295_v42 = vld [vmem:[#allocation2 + $0xed] sm:$0xff] }
 0x16a   : >> { %5731 = vmatpush3.bf16.msra.mxu0 %v6166_v48  ;;  %v3311_v48 = vpack.c.bf16 %v3281_v53, %v3280_v12  ;;  %v3288_v53 = vld [vmem:[#allocation2 + $0xb5] sm:$0xff]  ;;  %v3318_v37 = vpack.c.bf16 %v3295_v42, %v3294_v49 }
 0x16b   : >> { %v3315_v19 = vpack.c.bf16 %v3289_v27, %v3288_v53 }
 0x16c   : >> { %5517 = vmatmul.mubr.msk.bf16.gmra.mrb[24].mxu1 %vm8901_vm7, %v7859_v51  ;;  %vm8906_vm7 = vmmov %vm8823_vm4 }
 0x16d   : >> { %5697 = vmatmul.mubr.msk.bf16.gmra.mrb[4].mxu0 %vm8902_vm11, %v3309_v39  ;;  %5520 = vmatprep.mubr.msk.bf16.mxu1 %vm8823_vm4, %v7861_v62  ;;  %vm8907_vm11 = vmmov %vm8823_vm4  ;;  %v3286_v39 = vld [vmem:[#allocation2 + $0xa5] sm:$0xff] }
 0x16e   : >> { %5700 = vmatprep.mubr.msk.bf16.mxu0 %vm8903_vm8, %v3310_v28  ;;  %v3287_v28 = vld [vmem:[#allocation2 + $0xad] sm:$0xff]  ;;  %vm8908_vm8 = vmmov %vm8823_vm4 }
 0x16f   : >> { %v3314_v12 = vpack.c.bf16 %v3287_v28, %v3286_v39  ;;  %v3299_v39 = vld [vmem:[#allocation2 + $0x10d] sm:$0xff] }
 0x174   : >> { %5521 = vmatmul.mubr.msk.bf16.gmra.mrb[28].mxu1 %vm8904_vm12, %v7869_v18  ;;  %vm8909_vm12 = vmmov %vm8823_vm4 }
 0x175   : >> { %5701 = vmatmul.mubr.msk.bf16.gmra.mrb[8].mxu0 %vm8905_vm6, %v3311_v48  ;;  %5524 = vmatprep.mubr.msk.bf16.mxu1 %vm8906_vm7, %v7871_v24  ;;  %vm8910_vm6 = vmmov %vm8823_vm4  ;;  %v3316_v48 = vpack.c.bf16 %v3291_v59, %v3290_v8  ;;  %v3611_v8 = vld [vmem:[#allocation2 + $0x26] sm:$0xff]  ;;  %v3612_v59 = vld [vmem:[#allocation2 + $0x2e] sm:$0xff] }
 0x176   : >> { %5704 = vmatprep.mubr.msk.bf16.mxu0 %vm8907_vm11, %v3312_v50  ;;  %vm8911_vm7 = vmmov %vm8823_vm4  ;;  %v3292_v50 = vld [vmem:[#allocation2 + $0xd5] sm:$0xff] }
 0x177   : >> { %vm8912_vm11 = vmmov %vm8823_vm4 }
 0x17c   : >> { %5525 = vmatmul.mubr.msk.bf16.gmra.mrb[32].mxu1 %vm8823_vm4, %v7879_v5 }
 0x17d   : >> { %5705 = vmatmul.mubr.msk.bf16.gmra.mrb[12].mxu0 %vm8908_vm8, %v3313_v46  ;;  %5532 = vmatprep.mubr.msk.bf16.mxu1 %vm8909_vm12, %v7786_v21  ;;  %vm8913_vm8 = vmmov %vm8823_vm4  ;;  %v3293_v21 = vld [vmem:[#allocation2 + $0xdd] sm:$0xff] }
 0x17e   : >> { %5708 = vmatprep.mubr.msk.bf16.mxu0 %vm8910_vm6, %v3314_v12  ;;  %v3317_v15 = vpack.c.bf16 %v3293_v21, %v3292_v50  ;;  %vm8914_vm12 = vmmov %vm8823_vm4  ;;  %v3303_v12 = vld [vmem:[#allocation2 + $0x12d] sm:$0xff] }
 0x17f   : >> { %vm8915_vm6 = vmmov %vm8823_vm4  ;;  %v3615_v50 = vld [vmem:[#allocation2 + $0x46] sm:$0xff]  ;;  %v3616_v21 = vld [vmem:[#allocation2 + $0x4e] sm:$0xff] }
 0x180   : >> { %v3649_v42 = vpack.c.bf16 %v3616_v21, %v3615_v50  ;;  %v3631_v50 = vld [vmem:[#allocation2 + $0xc6] sm:$0xff]  ;;  %v3632_v21 = vld [vmem:[#allocation2 + $0xce] sm:$0xff] }
 0x184   : >> { %5533 = vmatmul.mubr.msk.bf16.vlgmr.msra.gmra.mrb[0].mxu1 %vm8911_vm7, %v7788_v57  ;;  %vm8916_vm7 = vmmov %vm8823_vm4  ;;  %v3296_v57 = vld [vmem:[#allocation2 + $0xf5] sm:$0xff] }
 0x185   : >> { %5709 = vmatmul.mubr.msk.bf16.gmra.mrb[16].mxu0 %vm8912_vm11, %v3315_v19  ;;  %5536 = vmatprep.mubr.msk.bf16.mxu1 %vm8823_vm4, %v7800_v43  ;;  %vm8917_vm11 = vmmov %vm8823_vm4  ;;  %v3298_v43 = vld [vmem:[#allocation2 + $0x105] sm:$0xff] }
 0x186   : >> { %5712 = vmatprep.mubr.msk.bf16.mxu0 %vm8913_vm8, %v3316_v48  ;;  %5770 = vmatpush3.bf16.msra.mxu1 %v7614_v55  ;;  %v3297_v55 = vld [vmem:[#allocation2 + $0xfd] sm:$0xff]  ;;  %v3320_v46 = vpack.c.bf16 %v3299_v39, %v3298_v43  ;;  %vm8918_vm8 = vmmov %vm8823_vm4  ;;  %v3647_v48 = vpack.c.bf16 %v3612_v59, %v3611_v8  ;;  %v3623_v43 = vld [vmem:[#allocation2 + $0x86] sm:$0xff] }
 0x187   : >> { %5769 = vmatprep.subr.bf16.mxu1 %v7619_v11  ;;  %v3319_v28 = vpack.c.bf16 %v3297_v55, %v3296_v57  ;;  %v3624_v39 = vld [vmem:[#allocation2 + $0x8e] sm:$0xff] }
 0x188   : >> { %v7949_v59 = vld [vmem:[#allocation2 + $0xcb] sm:$0xff] }
 0x189   : >> { %8941 = vst [vmem:[#allocation37_spill] sm:$0xff] %v7949_v59 }
 0x18a   : >> { %5771 = vmatpush3.bf16.msra.mxu1 %v7619_v11  ;;  %v3300_v11 = vld [vmem:[#allocation2 + $0x115] sm:$0xff] }
 0x18c   : >> { %5537 = vmatmul.mubr.msk.bf16.gmra.mrb[4].mxu1 %vm8914_vm12, %v7802_v26  ;;  %vm8919_vm12 = vmmov %vm8823_vm4  ;;  %v3301_v26 = vld [vmem:[#allocation2 + $0x11d] sm:$0xff] }
 0x18d   : >> { %5713 = vmatmul.mubr.msk.bf16.gmra.mrb[20].mxu0 %vm8915_vm6, %v3317_v15  ;;  %5540 = vmatprep.mubr.msk.bf16.mxu1 %vm8916_vm7, %v7813_v60  ;;  %vm8920_vm6 = vmmov %vm8823_vm4  ;;  %v3302_v60 = vld [vmem:[#allocation2 + $0x125] sm:$0xff]  ;;  %v3321_v53 = vpack.c.bf16 %v3301_v26, %v3300_v11  ;;  %v3625_v26 = vld [vmem:[#allocation2 + $0x96] sm:$0xff] }
 0x18e   : >> { %5716 = vmatprep.mubr.msk.bf16.mxu0 %vm8917_vm11, %v3318_v37  ;;  %v3322_v27 = vpack.c.bf16 %v3303_v12, %v3302_v60  ;;  %vm8921_vm7 = vmmov %vm8823_vm4  ;;  %v3619_v15 = vld [vmem:[#allocation2 + $0x66] sm:$0xff]  ;;  %v3620_v37 = vld [vmem:[#allocation2 + $0x6e] sm:$0xff] }
 0x18f   : >> { %vm8922_vm11 = vmmov %vm8823_vm4  ;;  %v3651_v55 = vpack.c.bf16 %v3620_v37, %v3619_v15  ;;  %v1941_v11 = vld [vmem:[#allocation2 + $0x12a] sm:$0xff]  ;;  %v7938_v60 = vld [vmem:[#allocation2 + $0xb3] sm:$0xff] }
 0x190   : >> { %v7940_v12 = vld [vmem:[#allocation2 + $0xbb] sm:$0xff]  ;;  %v7960_v15 = vld [vmem:[#allocation2 + $0xe3] sm:$0xff]  ;;  %v7962_v37 = vld [vmem:[#allocation2 + $0xeb] sm:$0xff] }
 0x191   : >> { %8938 = vst [vmem:[#allocation36_spill] sm:$0xff] %v7940_v12  ;;  %8946 = vst [vmem:[#allocation39_spill] sm:$0xff] %v7960_v15 }
 0x192   : >> { %8947 = vst [vmem:[#allocation40_spill] sm:$0xff] %v7962_v37 }
 0x194   : >> { %5541 = vmatmul.mubr.msk.bf16.gmra.mrb[8].mxu1 %vm8823_vm4, %v7815_v23  ;;  %v3304_v23 = vld [vmem:[#allocation2 + $0x135] sm:$0xff] }
 0x195   : >> { %5717 = vmatmul.mubr.msk.bf16.gmra.mrb[24].mxu0 %vm8918_vm8, %v3319_v28  ;;  %5544 = vmatprep.mubr.msk.bf16.mxu1 %vm8919_vm12, %v7825_v2  ;;  %vm8923_vm8 = vmmov %vm8823_vm4  ;;  %v3305_v2 = vld [vmem:[#allocation2 + $0x13d] sm:$0xff] }
 0x196   : >> { %5720 = vmatprep.mubr.msk.bf16.mxu0 %vm8920_vm6, %v3320_v46  ;;  %v3323_v19 = vpack.c.bf16 %v3305_v2, %v3304_v23  ;;  %vm8924_vm12 = vmmov %vm8823_vm4  ;;  %v3653_v46 = vpack.c.bf16 %v3624_v39, %v3623_v43  ;;  %v3635_v43 = vld [vmem:[#allocation2 + $0xe6] sm:$0xff]  ;;  %v3636_v39 = vld [vmem:[#allocation2 + $0xee] sm:$0xff] }
 0x197   : >> { %vm8925_vm6 = vmmov %vm8823_vm4 }
 0x19c   : >> { %5545 = vmatmul.mubr.msk.bf16.gmra.mrb[12].mxu1 %vm8921_vm7, %v7827_v20  ;;  %vm8926_vm7 = vmmov %vm8823_vm4  ;;  %v3613_v20 = vld [vmem:[#allocation2 + $0x36] sm:$0xff] }
 0x19d   : >> { %5721 = vmatmul.mubr.msk.bf16.gmra.mrb[28].mxu0 %vm8922_vm11, %v3321_v53  ;;  %5548 = vmatprep.mubr.msk.bf16.mxu1 %vm8823_vm4, %v7837_v36  ;;  %vm8927_vm11 = vmmov %vm8823_vm4  ;;  %v3614_v36 = vld [vmem:[#allocation2 + $0x3e] sm:$0xff]  ;;  %v3627_v53 = vld [vmem:[#allocation2 + $0xa6] sm:$0xff] }
 0x19e   : >> { %5724 = vmatprep.mubr.msk.bf16.mxu0 %vm8923_vm8, %v3322_v27  ;;  %v3648_v49 = vpack.c.bf16 %v3614_v36, %v3613_v20  ;;  %vm8928_vm8 = vmmov %vm8823_vm4  ;;  %v3628_v27 = vld [vmem:[#allocation2 + $0xae] sm:$0xff]  ;;  %v2272_v36 = vld [vmem:[#allocation2 + $0xdb] sm:$0xff] }
 0x19f   : >> { %v3655_v8 = vpack.c.bf16 %v3628_v27, %v3627_v53  ;;  %v7952_v20 = vld [vmem:[#allocation2 + $0xd3] sm:$0xff]  ;;  %v3638_v27 = vld [vmem:[#allocation2 + $0xfe] sm:$0xff] }
 0x1a0   : >> { %8943 = vst [vmem:[#allocation38_spill] sm:$0xff] %v7952_v20  ;;  %v3637_v53 = vld [vmem:[#allocation2 + $0xf6] sm:$0xff] }
 0x1a4   : >> { %5549 = vmatmul.mubr.msk.bf16.gmra.mrb[16].mxu1 %vm8924_vm12, %v7839_v58  ;;  %vm8929_vm12 = vmmov %vm8823_vm4  ;;  %v3617_v58 = vld [vmem:[#allocation2 + $0x56] sm:$0xff] }
 0x1a5   : >> { %5725 = vmatmul.mubr.msk.bf16.gmra.mrb[32].mxu0 %vm8925_vm6, %v3323_v19  ;;  %5552 = vmatprep.mubr.msk.bf16.mxu1 %vm8926_vm7, %v7847_v33  ;;  %vm8930_vm6 = vmmov %vm8823_vm4  ;;  %v3618_v33 = vld [vmem:[#allocation2 + $0x5e] sm:$0xff]  ;;  %v3629_v19 = vld [vmem:[#allocation2 + $0xb6] sm:$0xff] }
 0x1a6   : >> { %5732 = vmatprep.mubr.msk.bf16.mxu0 %vm8927_vm11, %v3647_v48  ;;  %v3650_v57 = vpack.c.bf16 %v3618_v33, %v3617_v58  ;;  %vm8931_vm7 = vmmov %vm8823_vm4  ;;  %v3630_v48 = vld [vmem:[#allocation2 + $0xbe] sm:$0xff]  ;;  %v2295_v58 = vpack.c.bf16 %v2272_v36, %v7952_v20  ;;  %v3657_v33 = vpack.c.bf16 %v3632_v21, %v3631_v50 }
 0x1a7   : >> { %vm8932_vm11 = vmmov %vm8823_vm4  ;;  %v7980_v21 = vld [vmem:[#allocation2 + $0x123] sm:$0xff] }
 0x1a8   : >> { %8957 = vst [vmem:[#allocation43_spill] sm:$0xff] %v7980_v21 }
 0x1ac   : >> { %5553 = vmatmul.mubr.msk.bf16.gmra.mrb[20].mxu1 %vm8823_vm4, %v7849_v17  ;;  %v3621_v17 = vld [vmem:[#allocation2 + $0x76] sm:$0xff] }
 0x1ad   : >> { %5733 = vmatmul.mubr.msk.bf16.vlgmr.msra.gmra.mrb[0].mxu0 %vm8928_vm8, %v3648_v49  ;;  %5556 = vmatprep.mubr.msk.bf16.mxu1 %vm8929_vm12, %v7859_v51  ;;  %vm8933_vm8 = vmmov %vm8823_vm4  ;;  %v3622_v51 = vld [vmem:[#allocation2 + $0x7e] sm:$0xff] }
 0x1ae   : >> { %5736 = vmatprep.mubr.msk.bf16.mxu0 %vm8930_vm6, %v3649_v42  ;;  %v3652_v28 = vpack.c.bf16 %v3622_v51, %v3621_v17  ;;  %vm8934_vm12 = vmmov %vm8823_vm4  ;;  %v3656_v42 = vpack.c.bf16 %v3630_v48, %v3629_v19  ;;  %v2275_v17 = vld [vmem:[#allocation2 + $0xf3] sm:$0xff]  ;;  %v2276_v51 = vld [vmem:[#allocation2 + $0xfb] sm:$0xff]  ;;  %v3660_v48 = vpack.c.bf16 %v3638_v27, %v3637_v53 }
 0x1af   : >> { %vm8935_vm6 = vmmov %vm8823_vm4 }
 0x1b4   : >> { %5557 = vmatmul.mubr.msk.bf16.gmra.mrb[24].mxu1 %vm8931_vm7, %v7861_v62  ;;  %vm8936_vm7 = vmmov %vm8823_vm4  ;;  %v1940_v62 = vld [vmem:[#allocation2 + $0x122] sm:$0xff] }
 0x1b5   : >> { %5737 = vmatmul.mubr.msk.bf16.gmra.mrb[4].mxu0 %vm8932_vm11, %v3650_v57  ;;  %5560 = vmatprep.mubr.msk.bf16.mxu1 %vm8823_vm4, %v7869_v18  ;;  %vm8937_vm11 = vmmov %vm8823_vm4  ;;  %v3626_v18 = vld [vmem:[#allocation2 + $0x9e] sm:$0xff]  ;;  %v1959_v23 = vpack.c.bf16 %v1941_v11, %v1940_v62  ;;  %v3633_v57 = vld [vmem:[#allocation2 + $0xd6] sm:$0xff]  ;;  %v2297_v62 = vpack.c.bf16 %v2276_v51, %v2275_v17  ;;  %v3659_v11 = vpack.c.bf16 %v3636_v39, %v3635_v43 }
 0x1b6   : >> { %5740 = vmatprep.mubr.msk.bf16.mxu0 %vm8933_vm8, %v3651_v55  ;;  %v3654_v2 = vpack.c.bf16 %v3626_v18, %v3625_v26  ;;  %vm8939_vm8 = vmmov %vm8823_vm4  ;;  %v3634_v55 = vld [vmem:[#allocation2 + $0xde] sm:$0xff]  ;;  %v7972_v18 = vld [vmem:[#allocation2 + $0x10b] sm:$0xff] }
 0x1b7   : >> { %v7970_v26 = vld [vmem:[#allocation2 + $0x103] sm:$0xff]  ;;  %8953 = vst [vmem:[#allocation42_spill] sm:$0xff] %v7972_v18  ;;  %v3645_v43 = vld [vmem:[#allocation2 + $0x136] sm:$0xff] }
 0x1b8   : >> { %8952 = vst [vmem:[#allocation41_spill] sm:$0xff] %v7970_v26  ;;  %v2298_v19 = vpack.c.bf16 %v7972_v18, %v7970_v26  ;;  %v3646_v39 = vld [vmem:[#allocation2 + $0x13e] sm:$0xff] }
 0x1bc   : >> { %5561 = vmatmul.mubr.msk.bf16.gmra.mrb[28].mxu1 %vm8934_vm12, %v7871_v24  ;;  %v2293_v24 = vpack.c.bf16 %v7940_v12, %v7938_v60  ;;  %vm8940_vm12 = vmmov %vm8823_vm4 }
 0x1bd   : >> { %5741 = vmatmul.mubr.msk.bf16.gmra.mrb[8].mxu0 %vm8935_vm6, %v3652_v28  ;;  %5564 = vmatprep.mubr.msk.bf16.mxu1 %vm8936_vm7, %v7879_v5  ;;  %v7947_v5 = vld [vmem:[#allocation2 + $0xc3] sm:$0xff]  ;;  %vm8942_vm6 = vmmov %vm8823_vm4  ;;  %v2296_v28 = vpack.c.bf16 %v7962_v37, %v7960_v15 }
 0x1be   : >> { %5744 = vmatprep.mubr.msk.bf16.mxu0 %vm8937_vm11, %v3653_v46  ;;  %v2294_v49 = vpack.c.bf16 %v7949_v59, %v7947_v5  ;;  %vm8944_vm7 = vmmov %vm8823_vm4  ;;  %v3658_v46 = vpack.c.bf16 %v3634_v55, %v3633_v57  ;;  %v3644_v57 = vld [vmem:[#allocation2 + $0x12e] sm:$0xff] }
 0x1bf   : >> { %vm8945_vm11 = vmmov %vm8823_vm4 }
 0x1c4   : >> { %5565 = vmatmul.mubr.msk.bf16.gmra.mrb[32].mxu1 %vm8823_vm4, %v1959_v23  ;;  %v2279_v23 = vld [vmem:[#allocation2 + $0x113] sm:$0xff] }
 0x1c5   : >> { %5745 = vmatmul.mubr.msk.bf16.gmra.mrb[12].mxu0 %vm8939_vm8, %v3654_v2  ;;  %5592 = vmatprep.mubr.msk.bf16.mxu1 %vm8940_vm12, %v2293_v24  ;;  %vm8948_vm8 = vmmov %vm8823_vm4  ;;  %v2280_v2 = vld [vmem:[#allocation2 + $0x11b] sm:$0xff]  ;;  %v3639_v24 = vld [vmem:[#allocation2 + $0x106] sm:$0xff] }
 0x1c6   : >> { %5748 = vmatprep.mubr.msk.bf16.mxu0 %vm8942_vm6, %v3655_v8  ;;  %vm8949_vm12 = vmmov %vm8823_vm4  ;;  %v3640_v8 = vld [vmem:[#allocation2 + $0x10e] sm:$0xff]  ;;  %v2299_v36 = vpack.c.bf16 %v2280_v2, %v2279_v23 }
 0x1c7   : >> { %vm8950_vm6 = vmmov %vm8823_vm4  ;;  %v3661_v50 = vpack.c.bf16 %v3640_v8, %v3639_v24 }
 0x1cc   : >> { %5593 = vmatmul.mubr.msk.bf16.vlgmr.msra.gmra.mrb[20].mxu1 %vm8944_vm7, %v2294_v49  ;;  %vm8951_vm7 = vmmov %vm8823_vm4  ;;  %v7982_v49 = vld [vmem:[#allocation2 + $0x12b] sm:$0xff] }
 0x1cd   : >> { %5749 = vmatmul.mubr.msk.bf16.gmra.mrb[16].mxu0 %vm8945_vm11, %v3656_v42  ;;  %5596 = vmatprep.mubr.msk.bf16.mxu1 %vm8823_vm4, %v2295_v58  ;;  %vm8954_vm11 = vmmov %vm8823_vm4  ;;  %8958 = vst [vmem:[#allocation44_spill] sm:$0xff] %v7982_v49  ;;  %v3641_v42 = vld [vmem:[#allocation2 + $0x116] sm:$0xff]  ;;  %v3642_v58 = vld [vmem:[#allocation2 + $0x11e] sm:$0xff]  ;;  %v2300_v55 = vpack.c.bf16 %v7982_v49, %v7980_v21 }
 0x1ce   : >> { %5752 = vmatprep.mubr.msk.bf16.mxu0 %vm8948_vm8, %v3657_v33  ;;  %vm8955_vm8 = vmmov %vm8823_vm4  ;;  %v3643_v33 = vld [vmem:[#allocation2 + $0x126] sm:$0xff]  ;;  %v3662_v17 = vpack.c.bf16 %v3642_v58, %v3641_v42 }
 0x1cf   : >> { %v3663_v51 = vpack.c.bf16 %v3644_v57, %v3643_v33 }
 0x1d4   : >> { %5597 = vmatmul.mubr.msk.bf16.gmra.mrb[24].mxu1 %vm8949_vm12, %v2296_v28  ;;  %vm8956_vm12 = vmmov %vm8823_vm4  ;;  %v3664_v28 = vpack.c.bf16 %v3646_v39, %v3645_v43  ;;  %v8015_v39 = vld [vmem:[%s3952_s28] ss:$0 sm:$0xff] }
 0x1d5   : >> { %5753 = vmatmul.mubr.msk.bf16.gmra.mrb[20].mxu0 %vm8950_vm6, %v3658_v46  ;;  %5600 = vmatprep.mubr.msk.bf16.mxu1 %vm8951_vm7, %v2297_v62  ;;  %vm8959_vm6 = vmmov %vm8823_vm4 }
 0x1d6   : >> { %5756 = vmatprep.mubr.msk.bf16.mxu0 %vm8954_vm11, %v3659_v11  ;;  %vm8960_vm7 = vmmov %vm8823_vm4 }
 0x1d7   : >> { %vm8961_vm11 = vmmov %vm8823_vm4 }
 0x1dc   : >> { %5601 = vmatmul.mubr.msk.bf16.gmra.mrb[28].mxu1 %vm8823_vm4, %v2298_v19 }
 0x1dd   : >> { %5757 = vmatmul.mubr.msk.bf16.gmra.mrb[24].mxu0 %vm8955_vm8, %v3660_v48  ;;  %5604 = vmatprep.mubr.msk.bf16.mxu1 %vm8956_vm12, %v2299_v36  ;;  %vm8962_vm8 = vmmov %vm8823_vm4 }
 0x1de   : >> { %5760 = vmatprep.mubr.msk.bf16.mxu0 %vm8959_vm6, %v3661_v50  ;;  %vm8963_vm12 = vmmov %vm8823_vm4 }
 0x1df   : >> { %vm8965_vm6 = vmmov %vm8823_vm4 }
 0x1e4   : >> { %5605 = vmatmul.mubr.msk.bf16.gmra.mrb[32].mxu1 %vm8960_vm7, %v2300_v55  ;;  %vm8967_vm7 = vmmov %vm8823_vm4 }
 0x1e5   : >> { %5761 = vmatmul.mubr.msk.bf16.gmra.mrb[28].mxu0 %vm8961_vm11, %v3662_v17  ;;  %vm8968_vm11 = vmmov %vm8823_vm4 }
 0x1e6   : >> { %5764 = vmatprep.mubr.msk.bf16.mxu0 %vm8823_vm4, %v3663_v51 }
 0x1ed   : >> { %5765 = vmatmul.mubr.msk.bf16.gmra.mrb[32].mxu0 %vm8962_vm8, %v3664_v28  ;;  %vm8969_vm8 = vmmov %vm8823_vm4 }
 0x257   : >> { %v5534_v46 = vpop.f32.mrb[0].mxu1 }
 0x258   : >> { %v2068_v62 = vpop.f32.mrb[1].mxu1 }
 0x259   : >> { %v5535_v11 = vpop.f32.mrb[2].mxu1 }
 0x25a   : >> { %v2071_v53 = vpop.f32.mrb[3].mxu1 }
 0x25f   : >> { %v5538_v27 = vpop.f32.mrb[4].mxu1 }
 0x260   : >> { %v2084_v23 = vpop.f32.mrb[5].mxu1 }
 0x261   : >> { %v5539_v2 = vpop.f32.mrb[6].mxu1 }
 0x262   : >> { %v2087_v24 = vpop.f32.mrb[7].mxu1 }
 0x267   : >> { %v5542_v8 = vpop.f32.mrb[8].mxu1 }
 0x268   : >> { %v2100_v19 = vpop.f32.mrb[9].mxu1 }
 0x269   : >> { %v7991_v48 = vpop.f32.mrb[10].mxu1 }
 0x26a   : >> { %v7993_v36 = vpop.f32.mrb[11].mxu1 }
 0x26f   : >> { %v7995_v50 = vpop.f32.mrb[12].mxu1 }
 0x270   : >> { %v7997_v42 = vpop.f32.mrb[13].mxu1 }
 0x271   : >> { %v7999_v58 = vpop.f32.mrb[14].mxu1 }
 0x272   : >> { %v8001_v33 = vpop.f32.mrb[15].mxu1 }
 0x277   : >> { %v8003_v57 = vpop.f32.mrb[16].mxu1 }
 0x278   : >> { %v8005_v55 = vpop.f32.mrb[17].mxu1 }
 0x279   : >> { %v8007_v17 = vpop.f32.mrb[18].mxu1 }
 0x27a   : >> { %v8009_v51 = vpop.f32.mrb[19].mxu1 }
 0x280   : >> { %v5734_v43 = vpop.f32.mrb[0].mxu0 }
 0x281   : >> { %v5772_v28 = vadd.f32 %v5734_v43, %v5534_v46  ;;  %v3773_v49 = vpop.f32.mrb[1].mxu0 }
 0x282   : >> { %v5773_v21 = vadd.f32 %v3773_v49, %v2068_v62  ;;  %v5735_v18 = vpop.f32.mrb[2].mxu0 }
 0x283   : >> { %v8018_v35 = vadd.f32 %v5772_v28, %v8015_v39  ;;  %v5774_v0 = vadd.f32 %v5735_v18, %v5535_v11  ;;  %v3776_v14 = vpop.f32.mrb[3].mxu0 }
 0x284   : >> { %v8021_v26 = vadd.f32 %v5773_v21, %v8015_v39  ;;  %v5775_v34 = vadd.f32 %v3776_v14, %v2071_v53 }
 0x285   : >> { %v5008_v37 = vmul.f32 -1.442695, %v8018_v35  ;;  %v8025_v3 = vadd.f32 %v5774_v0, %v8015_v39 }
 0x286   : >> { %v5006_v32 = vmul.f32 -1.442695, %v8021_v26  ;;  %v8029_v46 = vadd.f32 %v5775_v34, %v8015_v39 }
 0x287   : >> { %6167 = vpow2.f32 %v5008_v37  ;;  %v5009_v49 = vmul.f32 -1.442695, %v8025_v3 }
 0x288   : >> { %6169 = vpow2.f32 %v5006_v32  ;;  %v5007_v18 = vmul.f32 -1.442695, %v8029_v46  ;;  %v5738_v62 = vpop.f32.mrb[4].mxu0 }
 0x289   : >> { %6171 = vpow2.f32 %v5009_v49  ;;  %v5776_v21 = vadd.f32 %v5738_v62, %v5538_v27  ;;  %v3789_v14 = vpop.f32.mrb[5].mxu0 }
 0x28a   : >> { %6173 = vpow2.f32 %v5007_v18  ;;  %v5777_v11 = vadd.f32 %v3789_v14, %v2084_v23  ;;  %v5739_v53 = vpop.f32.mrb[6].mxu0 }
 0x28b   : >> { %v8034_v0 = vadd.f32 %v5776_v21, %v8015_v39  ;;  %v5778_v43 = vadd.f32 %v5739_v53, %v5539_v2  ;;  %v3792_v28 = vpop.f32.mrb[7].mxu0 }
 0x28c   : >> { %v8037_v34 = vadd.f32 %v5777_v11, %v8015_v39  ;;  %v5779_v37 = vadd.f32 %v3792_v28, %v2087_v24 }
 0x28d   : >> { %v5012_v32 = vmul.f32 -1.442695, %v8034_v0  ;;  %v8041_v20 = vadd.f32 %v5778_v43, %v8015_v39 }
 0x28e   : >> { %v5010_v27 = vmul.f32 -1.442695, %v8037_v34  ;;  %v8045_v49 = vadd.f32 %v5779_v37, %v8015_v39 }
 0x28f   : >> { %6175 = vpow2.f32 %v5012_v32  ;;  %v5013_v23 = vmul.f32 -1.442695, %v8041_v20 }
 0x290   : >> { %6177 = vpow2.f32 %v5010_v27  ;;  %v5011_v2 = vmul.f32 -1.442695, %v8045_v49  ;;  %v5742_v18 = vpop.f32.mrb[8].mxu0 }
 0x291   : >> { %v6168_v62 = vpop.eup %6167  ;;  %6179 = vpow2.f32 %v5013_v23  ;;  %v5780_v24 = vadd.f32 %v5742_v18, %v5542_v8  ;;  %v3805_v21 = vpop.f32.mrb[9].mxu0 }
 0x292   : >> { %v6170_v14 = vpop.eup %6169  ;;  %v4106_v11 = vadd.f32 1.0, %v6168_v62  ;;  %6181 = vpow2.f32 %v5011_v2  ;;  %v5781_v53 = vadd.f32 %v3805_v21, %v2100_v19  ;;  %v5743_v43 = vpop.f32.mrb[10].mxu0 }
 0x293   : >> { %v6172_v28 = vpop.eup %6171  ;;  %v4104_v15 = vadd.f32 1.0, %v6170_v14  ;;  %v8050_v37 = vadd.f32 %v5780_v24, %v8015_v39  ;;  %v5782_v32 = vadd.f32 %v5743_v43, %v7991_v48  ;;  %v3808_v27 = vpop.f32.mrb[11].mxu0 }
 0x294   : >> { %v6174_v61 = vpop.eup %6173  ;;  %6183 = vrcp.f32 %v4106_v11  ;;  %v4107_v12 = vadd.f32 1.0, %v6172_v28  ;;  %v8054_v23 = vadd.f32 %v5781_v53, %v8015_v39  ;;  %v5783_v8 = vadd.f32 %v3808_v27, %v7993_v36 }
 0x295   : >> { %6185 = vrcp.f32 %v4104_v15  ;;  %v4105_v2 = vadd.f32 1.0, %v6174_v61  ;;  %v5016_v19 = vmul.f32 -1.442695, %v8050_v37  ;;  %v8059_v18 = vadd.f32 %v5782_v32, %v8015_v39 }
 0x296   : >> { %6187 = vrcp.f32 %v4107_v12  ;;  %v5014_v62 = vmul.f32 -1.442695, %v8054_v23  ;;  %v8063_v48 = vadd.f32 %v5783_v8, %v8015_v39 }
 0x297   : >> { %6189 = vrcp.f32 %v4105_v2  ;;  %v5017_v24 = vmul.f32 -1.442695, %v8059_v18 }
 0x298   : >> { %6191 = vpow2.f32 %v5016_v19  ;;  %v5015_v21 = vmul.f32 -1.442695, %v8063_v48  ;;  %v5746_v36 = vpop.f32.mrb[12].mxu0 }
 0x299   : >> { %v6176_v15 = vpop.eup %6175  ;;  %6193 = vpow2.f32 %v5014_v62  ;;  %v5784_v61 = vadd.f32 %v5746_v36, %v7995_v50  ;;  %v3821_v14 = vpop.f32.mrb[13].mxu0 }
 0x29a   : >> { %v6178_v11 = vpop.eup %6177  ;;  %v4110_v53 = vadd.f32 1.0, %v6176_v15  ;;  %6195 = vpow2.f32 %v5017_v24  ;;  %v5785_v12 = vadd.f32 %v3821_v14, %v7997_v42  ;;  %v5747_v43 = vpop.f32.mrb[14].mxu0 }
 0x29b   : >> { %v6180_v28 = vpop.eup %6179  ;;  %v4108_v32 = vadd.f32 1.0, %v6178_v11  ;;  %6197 = vpow2.f32 %v5015_v21  ;;  %v8070_v27 = vadd.f32 %v5784_v61, %v8015_v39  ;;  %v5786_v8 = vadd.f32 %v5747_v43, %v7999_v58  ;;  %v3824_v2 = vpop.f32.mrb[15].mxu0 }
 0x29c   : >> { %v6182_v19 = vpop.eup %6181  ;;  %6199 = vrcp.f32 %v4110_v53  ;;  %v4111_v62 = vadd.f32 1.0, %v6180_v28  ;;  %v8074_v50 = vadd.f32 %v5785_v12, %v8015_v39  ;;  %v5787_v24 = vadd.f32 %v3824_v2, %v8001_v33 }
 0x29d   : >> { %6201 = vrcp.f32 %v4108_v32  ;;  %v4109_v42 = vadd.f32 1.0, %v6182_v19  ;;  %v5020_v36 = vmul.f32 -1.442695, %v8070_v27  ;;  %v8079_v21 = vadd.f32 %v5786_v8, %v8015_v39  ;;  %v6311_v19 = vld [vmem:[#allocation2 + $0x23] sm:$0xff] }
 0x29e   : >> { %v6184_v15 = vpop.eup %6183  ;;  %6203 = vrcp.f32 %v4111_v62  ;;  %v5018_v58 = vmul.f32 -1.442695, %v8074_v50  ;;  %v8083_v61 = vadd.f32 %v5787_v24, %v8015_v39 }
 0x29f   : >> { %v6186_v14 = vpop.eup %6185  ;;  %v4214_v11 = vmul.f32 %v6184_v15, %v8018_v35  ;;  %6205 = vrcp.f32 %v4109_v42  ;;  %v5021_v33 = vmul.f32 -1.442695, %v8079_v21  ;;  %v8087_v53 = vpop.f32.mrb[20].mxu1 }
 0x2a0   : >> { %v6188_v12 = vpop.eup %6187  ;;  %v4212_v43 = vmul.f32 %v6186_v14, %v8021_v26  ;;  %6207 = vpow2.f32 %v5020_v36  ;;  %v5019_v28 = vmul.f32 -1.442695, %v8083_v61  ;;  %v5750_v32 = vpop.f32.mrb[16].mxu0 }
 0x2a1   : >> { %v8091_v8 = vpop.f32.mrb[21].mxu1  ;;  %v6190_v2 = vpop.eup %6189  ;;  %v4250_v62 = vadd.f32 %v6311_v19, %v4214_v11  ;;  %v4215_v24 = vmul.f32 %v6188_v12, %v8025_v3  ;;  %6209 = vpow2.f32 %v5018_v58  ;;  %v5788_v35 = vadd.f32 %v5750_v32, %v8003_v57  ;;  %v6313_v58 = vld [vmem:[#allocation2 + $0x2b] sm:$0xff] }
 0x2a2   : >> { %v3837_v42 = vpop.f32.mrb[17].mxu0  ;;  %v8095_v15 = vpop.f32.mrb[22].mxu1  ;;  %v4248_v26 = vadd.f32 %v6312_v52, %v4212_v43  ;;  %v4213_v36 = vmul.f32 %v6190_v2, %v8029_v46  ;;  %6211 = vpow2.f32 %v5021_v33  ;;  %v6314_v46 = vld [vmem:[#allocation2 + $0x1b] sm:$0xff] }
 0x2a3   : >> { %v6192_v47 = vpop.eup %6191  ;;  %v5789_v14 = vadd.f32 %v3837_v42, %v8005_v55  ;;  %v5751_v59 = vpop.f32.mrb[18].mxu0  ;;  %v4358_v3 = vsel %vm7369_vm13, %v4250_v62, 0.0  ;;  %v4251_v57 = vadd.f32 %v6313_v58, %v4215_v24  ;;  %6213 = vpow2.f32 %v5019_v28 }
 0x2a4   : >> { %v8099_v31 = vpop.f32.mrb[23].mxu1  ;;  %v6194_v11 = vpop.eup %6193  ;;  %v4114_v12 = vadd.f32 1.0, %v6192_v47  ;;  %4394 = vst.msk [vmem:[#allocation2 + $0x23] sm:$0xff] %vm8963_vm12, %v4358_v3  ;;  %v4356_v52 = vsel %vm7349_vm2, %v4248_v26, 0.0  ;;  %v4249_v55 = vadd.f32 %v6314_v46, %v4213_v36  ;;  %v8107_v43 = vadd.f32 %v5788_v35, %v8015_v39  ;;  %vm8970_vm12 = vmmov %vm8823_vm4 }
 0x2a5   : >> { %v3840_v32 = vpop.f32.mrb[19].mxu0  ;;  %v6196_v19 = vpop.eup %6195  ;;  %v4112_v33 = vadd.f32 1.0, %v6194_v11  ;;  %4392 = vst.msk [vmem:[#allocation2 + $0x13] sm:$0xff] %vm8965_vm6, %v4356_v52  ;;  %v4359_v47 = vsel %vm8966_vm0, %v4251_v57, 0.0  ;;  %v8113_v62 = vadd.f32 %v5789_v14, %v8015_v39  ;;  %v5790_v14 = vadd.f32 %v5751_v59, %v8007_v17  ;;  %vm8971_vm6 = vmmov %vm8823_vm4 }
 0x2a6   : >> { %v6198_v2 = vpop.eup %6197  ;;  %6215 = vrcp.f32 %v4114_v12  ;;  %v4115_v28 = vadd.f32 1.0, %v6196_v19  ;;  %4395 = vst.msk [vmem:[#allocation2 + $0x2b] sm:$0xff] %vm8967_vm7, %v4359_v47  ;;  %v4357_v42 = vsel %vm7353_vm10, %v4249_v55, 0.0  ;;  %v5024_v26 = vmul.f32 -1.442695, %v8107_v43 }
 0x2a7   : >> { %v6200_v24 = vpop.eup %6199  ;;  %6217 = vrcp.f32 %v4112_v33  ;;  %v4113_v35 = vadd.f32 1.0, %v6198_v2  ;;  %4393 = vst.msk [vmem:[#allocation2 + $0x1b] sm:$0xff] %vm8968_vm11, %v4357_v42  ;;  %v5022_v3 = vmul.f32 -1.442695, %v8113_v62  ;;  %v8123_v58 = vpop.f32.mrb[24].mxu1  ;;  %v5791_v19 = vadd.f32 %v3840_v32, %v8009_v51  ;;  %v6315_v33 = vld [vmem:[#allocation2 + $0x43] sm:$0xff]  ;;  %vm8973_vm11 = vmmov %vm8823_vm4 }
 0x2a8   : >> { %v6202_v36 = vpop.eup %6201  ;;  %v4218_v11 = vmul.f32 %v6200_v24, %v8034_v0  ;;  %6219 = vrcp.f32 %v4115_v28  ;;  %v5754_v52 = vpop.f32.mrb[20].mxu0  ;;  %v8131_v47 = vadd.f32 %v5790_v14, %v8015_v39  ;;  %vm8972_vm7 = vnez %v8726_v9 }
 0x2a9   : >> { %v6204_v57 = vpop.eup %6203  ;;  %v4216_v12 = vmul.f32 %v6202_v36, %v8037_v34  ;;  %6221 = vrcp.f32 %v4113_v35  ;;  %v8127_v46 = vpop.f32.mrb[25].mxu1  ;;  %v6316_v34 = vld [vmem:[#allocation2 + $0x33] sm:$0xff]  ;;  %v8137_v32 = vadd.f32 %v5791_v19, %v8015_v39  ;;  %v6317_v36 = vld [vmem:[#allocation2 + $0x4b] sm:$0xff] }
 0x2aa   : >> { %v6206_v55 = vpop.eup %6205  ;;  %v4254_v2 = vadd.f32 %v6315_v33, %v4218_v11  ;;  %v4219_v0 = vmul.f32 %v6204_v57, %v8041_v20  ;;  %6223 = vpow2.f32 %v5024_v26  ;;  %v3853_v59 = vpop.f32.mrb[21].mxu0  ;;  %v5025_v57 = vmul.f32 -1.442695, %v8131_v47 }
 0x2ab   : >> { %v8133_v17 = vpop.f32.mrb[26].mxu1  ;;  %v6208_v28 = vpop.eup %6207  ;;  %v4252_v24 = vadd.f32 %v6316_v34, %v4216_v12  ;;  %v4217_v51 = vmul.f32 %v6206_v55, %v8045_v49  ;;  %6225 = vpow2.f32 %v5022_v3  ;;  %v6318_v3 = vld [vmem:[#allocation2 + $0x3b] sm:$0xff]  ;;  %v5023_v34 = vmul.f32 -1.442695, %v8137_v32 }
 0x2ac   : >> { %v5755_v42 = vpop.f32.mrb[22].mxu0  ;;  %v8139_v35 = vpop.f32.mrb[27].mxu1  ;;  %v4362_v26 = vsel %vm7397_vm14, %v4254_v2, 0.0  ;;  %v4255_v11 = vadd.f32 %v6317_v36, %v4219_v0  ;;  %v4118_v14 = vadd.f32 1.0, %v6208_v28  ;;  %v5792_v28 = vadd.f32 %v5754_v52, %v8087_v53 }
 0x2ad   : >> { %v6210_v20 = vpop.eup %6209  ;;  %v3856_v33 = vpop.f32.mrb[23].mxu0  ;;  %4398 = vst.msk [vmem:[#allocation2 + $0x43] sm:$0xff] %vm8823_vm4, %v4362_v26  ;;  %v4360_v49 = vsel %vm7377_vm5, %v4252_v24, 0.0  ;;  %v4253_v19 = vadd.f32 %v6318_v3, %v4217_v51  ;;  %vm8974_vm4 = vnez %v8722_v56 }
 0x2ae   : >> { %v6212_v12 = vpop.eup %6211  ;;  %v4116_v55 = vadd.f32 1.0, %v6210_v20  ;;  %4396 = vst.msk [vmem:[#allocation2 + $0x33] sm:$0xff] %vm8969_vm8, %v4360_v49  ;;  %v4363_v2 = vsel %vm7401_vm9, %v4255_v11, 0.0  ;;  %6227 = vrcp.f32 %v4118_v14  ;;  %v5793_v20 = vadd.f32 %v3853_v59, %v8091_v8  ;;  %vm8975_vm8 = vmmov %vm8971_vm6 }
 0x2af   : >> { %v6214_v29 = vpop.eup %6213  ;;  %v4119_v0 = vadd.f32 1.0, %v6212_v12  ;;  %4399 = vst.msk [vmem:[#allocation2 + $0x4b] sm:$0xff] %vm8970_vm12, %v4363_v2  ;;  %v4361_v24 = vsel %vm7393_vm1, %v4253_v19, 0.0  ;;  %v8158_v36 = vadd.f32 %v5792_v28, %v8015_v39  ;;  %v5794_v11 = vadd.f32 %v5755_v42, %v8095_v15  ;;  %v8162_v52 = vpop.f32.mrb[28].mxu1  ;;  %v6319_v19 = vld [vmem:[#allocation2 + $0x63] sm:$0xff] }
 0x2b0   : >> { %6229 = vrcp.f32 %v4116_v55  ;;  %v4117_v51 = vadd.f32 1.0, %v6214_v29  ;;  %v6216_v26 = vpop.eup %6215  ;;  %4397 = vst.msk [vmem:[#allocation2 + $0x3b] sm:$0xff] %vm8971_vm6, %v4361_v24  ;;  %v5795_v53 = vadd.f32 %v3856_v33, %v8099_v31  ;;  %v8166_v29 = vadd.f32 %v5793_v20, %v8015_v39  ;;  %v5758_v8 = vpop.f32.mrb[24].mxu0 }
 0x2b1   : >> { %6231 = vrcp.f32 %v4119_v0  ;;  %v6218_v14 = vpop.eup %6217  ;;  %v4222_v12 = vmul.f32 %v6216_v26, %v8050_v37  ;;  %v8168_v59 = vpop.f32.mrb[29].mxu1  ;;  %v5028_v15 = vmul.f32 -1.442695, %v8158_v36  ;;  %v8173_v31 = vadd.f32 %v5794_v11, %v8015_v39 }
 0x2b2   : >> { %6233 = vrcp.f32 %v4117_v51  ;;  %v6220_v49 = vpop.eup %6219  ;;  %v4220_v3 = vmul.f32 %v6218_v14, %v8054_v23  ;;  %v3869_v42 = vpop.f32.mrb[25].mxu0  ;;  %v5026_v0 = vmul.f32 -1.442695, %v8166_v29  ;;  %vm8976_vm12 = vnez %v8734_v22 }
 0x2b3   : >> { %6235 = vpow2.f32 %v5025_v57  ;;  %v8175_v33 = vpop.f32.mrb[30].mxu1  ;;  %v6222_v37 = vpop.eup %6221  ;;  %v4258_v55 = vadd.f32 %v6319_v19, %v4222_v12  ;;  %v4223_v2 = vmul.f32 %v6220_v49, %v8059_v18  ;;  %v6320_v57 = vld [vmem:[#allocation2 + $0x53] sm:$0xff]  ;;  %v5029_v26 = vmul.f32 -1.442695, %v8173_v31  ;;  %v6321_v18 = vld [vmem:[#allocation2 + $0x6b] sm:$0xff] }
 0x2b4   : >> { %6237 = vpow2.f32 %v5023_v34  ;;  %v5759_v28 = vpop.f32.mrb[26].mxu0  ;;  %v8179_v24 = vpop.f32.mrb[31].mxu1  ;;  %v4256_v51 = vadd.f32 %v6320_v57, %v4220_v3  ;;  %v4221_v20 = vmul.f32 %v6222_v37, %v8063_v48  ;;  %v6322_v3 = vld [vmem:[#allocation2 + $0x5b] sm:$0xff]  ;;  %v8192_v37 = vadd.f32 %v5795_v53, %v8015_v39 }
 0x2b5   : >> { %v6224_v23 = vpop.eup %6223  ;;  %6239 = vpow2.f32 %v5028_v15  ;;  %v3872_v11 = vpop.f32.mrb[27].mxu0  ;;  %v4366_v12 = vsel %vm8972_vm7, %v4258_v55, 0.0  ;;  %v4259_v34 = vadd.f32 %v6321_v18, %v4223_v2  ;;  %v5796_v55 = vadd.f32 %v5758_v8, %v8123_v58 }
 0x2b6   : >> { %v6226_v14 = vpop.eup %6225  ;;  %v4122_v49 = vadd.f32 1.0, %v6224_v23  ;;  %6241 = vpow2.f32 %v5026_v0  ;;  %4402 = vst.msk [vmem:[#allocation2 + $0x63] sm:$0xff] %vm8973_vm11, %v4366_v12  ;;  %v4364_v19 = vsel %vm8974_vm4, %v4256_v51, 0.0  ;;  %v4257_v57 = vadd.f32 %v6322_v3, %v4221_v20  ;;  %vm8978_vm11 = vmmov %vm8971_vm6  ;;  %v6323_v3 = vld [vmem:[#allocation2 + $0x83] sm:$0xff] }
 0x2b7   : >> { %v4120_v48 = vadd.f32 1.0, %v6226_v14  ;;  %6243 = vpow2.f32 %v5029_v26  ;;  %4400 = vst.msk [vmem:[#allocation2 + $0x53] sm:$0xff] %vm8975_vm8, %v4364_v19  ;;  %v4367_v15 = vsel %vm8976_vm12, %v4259_v34, 0.0  ;;  %vm8977_vm7 = vnez %v8724_v6  ;;  %v8200_v20 = vpop.f32.mrb[32].mxu1  ;;  %vm8980_vm8 = vmmov %vm8971_vm6  ;;  %v4436_v41 = vld [vmem:[#allocation2 + $0x40] sm:$0xff] (%p951_p4)  ;;  %v4437_v13 = vld [vmem:[#allocation2 + $0x48] sm:$0xff] (%p951_p4) }
 0x2b8   : >> { %6245 = vrcp.f32 %v4122_v49  ;;  %v6228_v2 = vpop.eup %6227  ;;  %4403 = vst.msk [vmem:[#allocation2 + $0x6b] sm:$0xff] %vm8971_vm6, %v4367_v15  ;;  %v4365_v0 = vsel %vm8977_vm7, %v4257_v57, 0.0  ;;  %v5797_v23 = vadd.f32 %v3869_v42, %v8127_v46  ;;  %v5798_v51 = vadd.f32 %v5759_v28, %v8133_v17  ;;  %v5762_v12 = vpop.f32.mrb[28].mxu0 }
 0x2b9   : >> { %6247 = vrcp.f32 %v4120_v48  ;;  %4401 = vst.msk [vmem:[#allocation2 + $0x5b] sm:$0xff] %vm8978_vm11, %v4365_v0  ;;  %v4226_v53 = vmul.f32 %v6228_v2, %v8070_v27  ;;  %v5027_v58 = vmul.f32 -1.442695, %v8192_v37  ;;  %v8206_v8 = vadd.f32 %v5796_v55, %v8015_v39  ;;  %v8209_v18 = vpop.f32.mrb[33].mxu1  ;;  %v3885_v34 = vpop.f32.mrb[29].mxu0  ;;  %v6324_v55 = vld [vmem:[#allocation2 + $0x73] sm:$0xff]  ;;  %vm8983_vm11 = vmmov %vm8971_vm6 }
 0x2ba   : >> { %v6230_v26 = vpop.eup %6229  ;;  %v5799_v14 = vadd.f32 %v3872_v11, %v8139_v35  ;;  %v8213_v42 = vadd.f32 %v5797_v23, %v8015_v39  ;;  %v8216_v28 = vadd.f32 %v5798_v51, %v8015_v39  ;;  %v5800_v27 = vadd.f32 %v5762_v12, %v8162_v52  ;;  %v8219_v49 = vpop.f32.mrb[34].mxu1 }
 0x2bb   : >> { %v6232_v46 = vpop.eup %6231  ;;  %v4224_v17 = vmul.f32 %v6230_v26, %v8074_v50  ;;  %v4262_v35 = vadd.f32 %v6323_v3, %v4226_v53  ;;  %6249 = vpow2.f32 %v5027_v58  ;;  %v5032_v57 = vmul.f32 -1.442695, %v8206_v8  ;;  %v5763_v50 = vpop.f32.mrb[30].mxu0  ;;  %v6325_v53 = vld [vmem:[#allocation2 + $0x8b] sm:$0xff] }
 0x2bc   : >> { %v6234_v19 = vpop.eup %6233  ;;  %v4227_v11 = vmul.f32 %v6232_v46, %v8079_v21  ;;  %v8223_v48 = vpop.f32.mrb[35].mxu1  ;;  %v5030_v52 = vmul.f32 -1.442695, %v8213_v42  ;;  %v5033_v23 = vmul.f32 -1.442695, %v8216_v28  ;;  %vm8979_vm4 = vnez %v8745_v4 }
 0x2bd   : >> { %v6236_v15 = vpop.eup %6235  ;;  %v4260_v2 = vadd.f32 %v6324_v55, %v4224_v17  ;;  %v4225_v0 = vmul.f32 %v6234_v19, %v8083_v61  ;;  %v3888_v51 = vpop.f32.mrb[31].mxu0  ;;  %v4370_v21 = vsel %vm8979_vm4, %v4262_v35, 0.0  ;;  %6251 = vpow2.f32 %v5032_v57  ;;  %v6326_v61 = vld [vmem:[#allocation2 + $0x7b] sm:$0xff] }
 0x2be   : >> { %v6238_v26 = vpop.eup %6237  ;;  %v4263_v58 = vadd.f32 %v6325_v53, %v4227_v11  ;;  %v4123_v12 = vadd.f32 1.0, %v6236_v15  ;;  %4406 = vst.msk [vmem:[#allocation2 + $0x83] sm:$0xff] %vm8980_vm8, %v4370_v21  ;;  %vm8981_vm12 = vnez %v8736_v38  ;;  %6253 = vpow2.f32 %v5030_v52  ;;  %vm8985_vm8 = vmmov %vm8971_vm6  ;;  %v4438_v40 = vld [vmem:[#allocation2 + $0x50] sm:$0xff] (%p951_p4) }
 0x2bf   : >> { %v6240_v46 = vpop.eup %6239  ;;  %v4368_v17 = vsel %vm8981_vm12, %v4260_v2, 0.0  ;;  %v4261_v19 = vadd.f32 %v6326_v61, %v4225_v0  ;;  %v4121_v3 = vadd.f32 1.0, %v6238_v26  ;;  %vm8982_vm7 = vnez %v8747_v7  ;;  %v4441_v38 = vld [vmem:[#allocation2 + $0x68] sm:$0xff] (%p951_p4) }
 0x2c0   : >> { %v6242_v55 = vpop.eup %6241  ;;  %4404 = vst.msk [vmem:[#allocation2 + $0x73] sm:$0xff] %vm8971_vm6, %v4368_v17  ;;  %v4371_v35 = vsel %vm8982_vm7, %v4263_v58, 0.0  ;;  %6255 = vrcp.f32 %v4123_v12  ;;  %v4126_v11 = vadd.f32 1.0, %v6240_v46  ;;  %v8237_v57 = vadd.f32 %v5799_v14, %v8015_v39  ;;  %v5766_v58 = vpop.f32.mrb[32].mxu0  ;;  %v4439_v16 = vld [vmem:[#allocation2 + $0x58] sm:$0xff] (%p951_p4)  ;;  %v4440_v22 = vld [vmem:[#allocation2 + $0x60] sm:$0xff] (%p951_p4) }
 0x2c1   : >> { %v6244_v15 = vpop.eup %6243  ;;  %4407 = vst.msk [vmem:[#allocation2 + $0x8b] sm:$0xff] %vm8983_vm11, %v4371_v35  ;;  %vm8984_vm4 = vnez %v8738_v1  ;;  %6257 = vrcp.f32 %v4121_v3  ;;  %v4124_v0 = vadd.f32 1.0, %v6242_v55  ;;  %v8243_v52 = vadd.f32 %v5800_v27, %v8015_v39  ;;  %v3901_v27 = vpop.f32.mrb[33].mxu0  ;;  %vm8988_vm11 = vmmov %vm8971_vm6 }
 0x2c2   : >> { %v4369_v2 = vsel %vm8984_vm4, %v4261_v19, 0.0  ;;  %v6246_v26 = vpop.eup %6245  ;;  %6259 = vrcp.f32 %v4126_v11  ;;  %v4127_v21 = vadd.f32 1.0, %v6244_v15  ;;  %v5031_v53 = vmul.f32 -1.442695, %v8237_v57  ;;  %v5767_v35 = vpop.f32.mrb[34].mxu0 }
 0x2c3   : >> { %4405 = vst.msk [vmem:[#allocation2 + $0x7b] sm:$0xff] %vm8985_vm8, %v4369_v2  ;;  %v5801_v14 = vadd.f32 %v3885_v34, %v8168_v59  ;;  %v6248_v12 = vpop.eup %6247  ;;  %v4230_v46 = vmul.f32 %v6246_v26, %v8107_v43  ;;  %6261 = vrcp.f32 %v4124_v0  ;;  %v5036_v17 = vmul.f32 -1.442695, %v8243_v52  ;;  %v6327_v59 = vld [vmem:[#allocation2 + $0xa3] sm:$0xff]  ;;  %v3904_v15 = vpop.f32.mrb[35].mxu0  ;;  %vm8990_vm8 = vmmov %vm8971_vm6 }
 0x2c4   : >> { %v5802_v61 = vadd.f32 %v5763_v50, %v8175_v33  ;;  %v4228_v19 = vmul.f32 %v6248_v12, %v8113_v62  ;;  %6263 = vrcp.f32 %v4127_v21  ;;  %v5803_v55 = vadd.f32 %v3888_v51, %v8179_v24  ;;  %v6328_v50 = vld [vmem:[#allocation2 + $0x93] sm:$0xff] }
 0x2c5   : >> { %v8253_v3 = vadd.f32 %v5801_v14, %v8015_v39  ;;  %v4266_v34 = vadd.f32 %v6327_v59, %v4230_v46  ;;  %6265 = vpow2.f32 %v5033_v23  ;;  %v5804_v11 = vadd.f32 %v5766_v58, %v8200_v20  ;;  %v6250_v33 = vpop.eup %6249 }
 0x2c6   : >> { %v8257_v43 = vadd.f32 %v5802_v61, %v8015_v39  ;;  %v4264_v2 = vadd.f32 %v6328_v50, %v4228_v19  ;;  %6267 = vpow2.f32 %v5031_v53  ;;  %v8262_v0 = vadd.f32 %v5803_v55, %v8015_v39  ;;  %v6329_v50 = vld [vmem:[#allocation2 + $0xab] sm:$0xff] }
 0x2c7   : >> { %v5034_v62 = vmul.f32 -1.442695, %v8253_v3  ;;  %vm8986_vm12 = vnez %v8758_v25  ;;  %v4125_v51 = vadd.f32 1.0, %v6250_v33  ;;  %6269 = vpow2.f32 %v5036_v17  ;;  %v6252_v26 = vpop.eup %6251  ;;  %v4442_v1 = vld [vmem:[#allocation2 + $0x70] sm:$0xff] (%p951_p4) }
 0x2c8   : >> { %v4374_v24 = vsel %vm8986_vm12, %v4266_v34, 0.0  ;;  %v5037_v23 = vmul.f32 -1.442695, %v8257_v43  ;;  %vm8987_vm7 = vnez %v8749_v10  ;;  %v5035_v21 = vmul.f32 -1.442695, %v8262_v0  ;;  %v6254_v14 = vpop.eup %6253 }
 0x2c9   : >> { %4410 = vst.msk [vmem:[#allocation2 + $0xa3] sm:$0xff] %vm8971_vm6, %v4374_v24  ;;  %v4372_v20 = vsel %vm8987_vm7, %v4264_v2, 0.0  ;;  %6271 = vpow2.f32 %v5034_v62  ;;  %v8272_v53 = vadd.f32 %v5804_v11, %v8015_v39  ;;  %v4130_v58 = vadd.f32 1.0, %v6252_v26  ;;  %v6330_v62 = vld [vmem:[#allocation2 + $0x9b] sm:$0xff] }
 0x2ca   : >> { %4408 = vst.msk [vmem:[#allocation2 + $0x93] sm:$0xff] %vm8988_vm11, %v4372_v20  ;;  %6273 = vrcp.f32 %v4125_v51  ;;  %v5805_v12 = vadd.f32 %v3901_v27, %v8209_v18  ;;  %v5806_v46 = vadd.f32 %v5767_v35, %v8219_v49  ;;  %v6256_v17 = vpop.eup %6255  ;;  %v4128_v61 = vadd.f32 1.0, %v6254_v14  ;;  %vm8995_vm11 = vmmov %vm8971_vm6  ;;  %v4444_v25 = vld [vmem:[#allocation2 + $0x80] sm:$0xff] (%p951_p4) }
 0x2cb   : >> { %6275 = vpow2.f32 %v5037_v23  ;;  %v5040_v19 = vmul.f32 -1.442695, %v8272_v53  ;;  %v5807_v55 = vadd.f32 %v3904_v15, %v8223_v48  ;;  %v6258_v59 = vpop.eup %6257  ;;  %v4231_v34 = vmul.f32 %v6256_v17, %v8131_v47 }
 0x2cc   : >> { %6277 = vrcp.f32 %v4130_v58  ;;  %v8281_v11 = vadd.f32 %v5805_v12, %v8015_v39  ;;  %v8284_v33 = vadd.f32 %v5806_v46, %v8015_v39  ;;  %v6260_v18 = vpop.eup %6259  ;;  %v4229_v49 = vmul.f32 %v6258_v59, %v8137_v32  ;;  %v8992_v12 = vld [vmem:[#allocation9_spill] sm:$0xff] }
 0x2cd   : >> { %6279 = vrcp.f32 %v4128_v61  ;;  %v8288_v27 = vadd.f32 %v5807_v55, %v8015_v39  ;;  %v6262_v35 = vpop.eup %6261  ;;  %v4267_v48 = vadd.f32 %v6329_v50, %v4231_v34  ;;  %v4234_v15 = vmul.f32 %v6260_v18, %v8158_v36  ;;  %v8999_v18 = vld [vmem:[#allocation8_spill] sm:$0xff] }
 0x2ce   : >> { %6281 = vpow2.f32 %v5035_v21  ;;  %v5038_v47 = vmul.f32 -1.442695, %v8281_v11  ;;  %v6264_v2 = vpop.eup %6263  ;;  %v4265_v24 = vadd.f32 %v6330_v62, %v4229_v49  ;;  %v4232_v51 = vmul.f32 %v6262_v35, %v8166_v29  ;;  %v9001_v62 = vld [vmem:[#allocation36_spill] sm:$0xff] }
 0x2cf   : >> { %6283 = vpow2.f32 %v5040_v19  ;;  %v5041_v32 = vmul.f32 -1.442695, %v8284_v33  ;;  %v6266_v23 = vpop.eup %6265  ;;  %vm8989_vm4 = vnez %v8760_v44  ;;  %v4270_v26 = vadd.f32 %v4234_v15, %v7947_v5  ;;  %v8994_v5 = vld [vmem:[#allocation37_spill] sm:$0xff]  ;;  %v8996_v19 = vld [vmem:[#allocation7_spill] sm:$0xff]  ;;  %v4445_v44 = vld [vmem:[#allocation2 + $0x88] sm:$0xff] (%p951_p4) }
 0x2d0   : >> { %v4375_v39 = vsel %vm8989_vm4, %v4267_v48, 0.0  ;;  %v4235_v20 = vmul.f32 %v6264_v2, %v8173_v31  ;;  %6285 = vpow2.f32 %v5038_v47  ;;  %v6268_v36 = vpop.eup %6267  ;;  %vm8991_vm12 = vnez %v8756_v45  ;;  %v4443_v45 = vld [vmem:[#allocation2 + $0x78] sm:$0xff] (%p951_p4) }
 0x2d1   : >> { %4411 = vst.msk [vmem:[#allocation2 + $0xab] sm:$0xff] %vm8990_vm8, %v4375_v39  ;;  %v4373_v21 = vsel %vm8991_vm12, %v4265_v24, 0.0  ;;  %v4268_v29 = vadd.f32 %v4232_v51, %v7938_v60  ;;  %v4131_v14 = vadd.f32 1.0, %v6266_v23  ;;  %6287 = vpow2.f32 %v5041_v32  ;;  %v6270_v58 = vpop.eup %6269  ;;  %vm8998_vm8 = vmmov %vm8971_vm6 }
 0x2d2   : >> { %4409 = vst.msk [vmem:[#allocation2 + $0x9b] sm:$0xff] %vm8971_vm6, %v4373_v21  ;;  %vm8993_vm7 = vnez %v8992_v12  ;;  %v4271_v17 = vadd.f32 %v4235_v20, %v8994_v5  ;;  %v4129_v31 = vadd.f32 1.0, %v6268_v36  ;;  %vm8997_vm4 = vnez %v8996_v19  ;;  %v9004_v36 = vld [vmem:[#allocation39_spill] sm:$0xff] }
 0x2d3   : >> { %v4378_v46 = vsel %vm8993_vm7, %v4270_v26, 0.0  ;;  %v6272_v61 = vpop.eup %6271  ;;  %v4376_v55 = vsel %vm8997_vm4, %v4268_v29, 0.0  ;;  %6289 = vrcp.f32 %v4131_v14  ;;  %v4134_v59 = vadd.f32 1.0, %v6270_v58  ;;  %v9002_v26 = vld [vmem:[#allocation11_spill] sm:$0xff]  ;;  %v9006_v14 = vld [vmem:[#allocation38_spill] sm:$0xff]  ;;  %vm9008_vm4 = vmmov %vm8971_vm6 }
 0x2d4   : >> { %4414 = vst.msk [vmem:[#allocation2 + $0xc3] sm:$0xff] %vm8995_vm11, %v4378_v46  ;;  %v5039_v60 = vmul.f32 -1.442695, %v8288_v27  ;;  %v6274_v34 = vpop.eup %6273  ;;  %vm9000_vm12 = vnez %v8999_v18  ;;  %6291 = vrcp.f32 %v4129_v31  ;;  %v4132_v35 = vadd.f32 1.0, %v6272_v61  ;;  %vm9005_vm11 = vmmov %vm8971_vm6 }
 0x2d5   : >> { %4412 = vst.msk [vmem:[#allocation2 + $0xb3] sm:$0xff] %vm8998_vm8, %v4376_v55  ;;  %v4379_v49 = vsel %vm9000_vm12, %v4271_v17, 0.0  ;;  %v6276_v50 = vpop.eup %6275  ;;  %v4233_v48 = vmul.f32 %v6274_v34, %v8192_v37  ;;  %6293 = vrcp.f32 %v4134_v59  ;;  %vm9003_vm7 = vnez %v9002_v26  ;;  %v9009_v17 = vld [vmem:[#allocation12_spill] sm:$0xff]  ;;  %vm9011_vm12 = vmmov %vm9008_vm4 }
 0x2d6   : >> { %4415 = vst.msk [vmem:[#allocation2 + $0xcb] sm:$0xff] %vm8971_vm6, %v4379_v49  ;;  %v6278_v15 = vpop.eup %6277  ;;  %6295 = vrcp.f32 %v4132_v35  ;;  %v4135_v47 = vadd.f32 1.0, %v6276_v50  ;;  %vm9010_vm8 = vnez %v9009_v17  ;;  %v9012_v49 = vld [vmem:[#allocation40_spill] sm:$0xff]  ;;  %vm9015_vm6 = vmmov %vm9008_vm4  ;;  %vm9044_vm9 = vcmask (%p951_p4), 257024  }
 0x2d7   : >> { %v6280_v2 = vpop.eup %6279  ;;  %v4269_v24 = vadd.f32 %v4233_v48, %v9001_v62  ;;  %v4238_v51 = vmul.f32 %v6278_v15, %v8206_v8  ;;  %6297 = vpow2.f32 %v5039_v60  ;;  %v6331_v15 = vld [vmem:[#allocation2 + $0xdb] sm:$0xff]  ;;  %v6332_v26 = vld [vmem:[#allocation2 + $0xf3] sm:$0xff]  ;;  %vm9045_vm2 = vmmov (%p951_p4), %vm9044_vm9  ;;  %v5095_v54 = vpack.c.bf16 (%p951_p4), %v4436_v41, %v4436_v41 }
 0x2d8   : >> { %v6282_v32 = vpop.eup %6281  ;;  %v4236_v23 = vmul.f32 %v6280_v2, %v8213_v42  ;;  %6299 = vrcp.f32 %v4135_v47  ;;  %v9025_v8 = vld [vmem:[#allocation24_spill] sm:$0xff]  ;;  %vm9046_vm10 = vmmov (%p951_p4), %vm9045_vm2  ;;  %v5096_v56 = vpack.c.bf16 (%p951_p4), %v4437_v13, %v4437_v13  ;;  %v5097_v6 = vpack.c.bf16 (%p951_p4), %v4438_v40, %v4438_v40 }
 0x2d9   : >> { %v6284_v39 = vpop.eup %6283  ;;  %v4377_v20 = vsel %vm9003_vm7, %v4269_v24, 0.0  ;;  %v4274_v37 = vadd.f32 %v4238_v51, %v9004_v36  ;;  %v4133_v21 = vadd.f32 1.0, %v6282_v32  ;;  %v9014_v32 = vld [vmem:[#allocation41_spill] sm:$0xff]  ;;  %v9019_v36 = vld [vmem:[#allocation16_spill] sm:$0xff]  ;;  %vm9047_vm13 = vmmov (%p951_p4), %vm9045_vm2  ;;  %v5098_v9 = vpack.c.bf16 (%p951_p4), %v4439_v16, %v4439_v16 }
 0x2da   : >> { %v6286_v29 = vpop.eup %6285  ;;  %4413 = vst.msk [vmem:[#allocation2 + $0xbb] sm:$0xff] %vm9005_vm11, %v4377_v20  ;;  %v4272_v58 = vadd.f32 %v4236_v23, %v9006_v14  ;;  %v4138_v12 = vadd.f32 1.0, %v6284_v39  ;;  %vm9018_vm11 = vmmov %vm9008_vm4  ;;  %v9024_v14 = vld [vmem:[#allocation42_spill] sm:$0xff]  ;;  %v6335_v24 = vld [vmem:[#allocation2 + $0x11b] sm:$0xff]  ;;  %v5099_v4 = vpack.c.bf16 (%p951_p4), %v4440_v22, %v4440_v22  ;;  %v5100_v7 = vpack.c.bf16 (%p951_p4), %v4441_v38, %v4441_v38 }
 0x2db   : >> { %v6288_v46 = vpop.eup %6287  ;;  %v4382_v5 = vsel %vm7557_vm15, %v4274_v37, 0.0  ;;  %6301 = vrcp.f32 %v4133_v21  ;;  %v4136_v42 = vadd.f32 1.0, %v6286_v29  ;;  %v9022_v21 = vld [vmem:[#allocation15_spill] sm:$0xff]  ;;  %v5101_v10 = vpack.c.bf16 (%p951_p4), %v4442_v1, %v4442_v1  ;;  %v4467_v41 = vld [vmem:[#allocation2 + $0x138] sm:$0xff] (%p951_p4) }
 0x2dc   : >> { %4418 = vst.msk [vmem:[#allocation2 + $0xe3] sm:$0xff] %vm9008_vm4, %v4382_v5  ;;  %v4380_v31 = vsel %vm9010_vm8, %v4272_v58, 0.0  ;;  %6303 = vrcp.f32 %v4138_v12  ;;  %v4139_v61 = vadd.f32 1.0, %v6288_v46  ;;  %vm9020_vm4 = vnez %v9019_v36  ;;  %vm9021_vm8 = vmmov %vm9015_vm6  ;;  %v4432_v36 = vld [vmem:[#allocation2 + $0x20] sm:$0xff] (%p951_p4) }
 0x2dd   : >> { %v6290_v19 = vpop.eup %6289  ;;  %4416 = vst.msk [vmem:[#allocation2 + $0xd3] sm:$0xff] %vm9011_vm12, %v4380_v31  ;;  %6305 = vrcp.f32 %v4136_v42  ;;  %vm9023_vm12 = vnez %v9022_v21  ;;  %v6333_v31 = vld [vmem:[#allocation2 + $0xfb] sm:$0xff]  ;;  %v5091_v21 = vpack.c.bf16 (%p951_p4), %v4432_v36, %v4432_v36 }
 0x2de   : >> { %v6292_v55 = vpop.eup %6291  ;;  %v4239_v59 = vmul.f32 %v6290_v19, %v8216_v28  ;;  %6307 = vrcp.f32 %v4139_v61 }
 0x2df   : >> { %v6294_v60 = vpop.eup %6293  ;;  %v4237_v34 = vmul.f32 %v6292_v55, %v8237_v57  ;;  %v9016_v57 = vld [vmem:[#allocation10_spill] sm:$0xff]  ;;  %v9028_v55 = vld [vmem:[#allocation43_spill] sm:$0xff] }
 0x2e0   : >> { %v6296_v18 = vpop.eup %6295  ;;  %v4275_v35 = vadd.f32 %v4239_v59, %v9012_v49  ;;  %v4242_v50 = vmul.f32 %v6294_v60, %v8243_v52  ;;  %vm9017_vm7 = vnez %v9016_v57  ;;  %v4429_v57 = vld [vmem:[#allocation2 + $0x8] sm:$0xff] (%p951_p4) }
 0x2e1   : >> { %v6298_v48 = vpop.eup %6297  ;;  %v4273_v47 = vadd.f32 %v6331_v15, %v4237_v34  ;;  %v4240_v2 = vmul.f32 %v6296_v18, %v8253_v3  ;;  %v9029_v34 = vld [vmem:[#allocation19_spill] sm:$0xff]  ;;  %v9035_v15 = vld [vmem:[#allocation17_spill] sm:$0xff] }
 0x2e2   : >> { %v6300_v62 = vpop.eup %6299  ;;  %v4383_v51 = vsel %vm7561_vm3, %v4275_v35, 0.0  ;;  %v4278_v28 = vadd.f32 %v4242_v50, %v9014_v32  ;;  %v4137_v23 = vadd.f32 1.0, %v6298_v48  ;;  %v6334_v18 = vld [vmem:[#allocation2 + $0x113] sm:$0xff]  ;;  %v9041_v32 = vld [vmem:[#allocation18_spill] sm:$0xff] }
 0x2e3   : >> { %4419 = vst.msk [vmem:[#allocation2 + $0xeb] sm:$0xff] %vm9015_vm6, %v4383_v51  ;;  %v4381_v39 = vsel %vm9017_vm7, %v4273_v47, 0.0  ;;  %v4276_v20 = vadd.f32 %v6332_v26, %v4240_v2  ;;  %v4243_v52 = vmul.f32 %v6300_v62, %v8257_v43  ;;  %vm9026_vm7 = vnez %v9025_v8  ;;  %v9032_v35 = vld [vmem:[#allocation20_spill] sm:$0xff]  ;;  %v4446_v8 = vld [vmem:[#allocation2 + $0x90] sm:$0xff] (%p951_p4) }
 0x2e4   : >> { %4417 = vst.msk [vmem:[#allocation2 + $0xdb] sm:$0xff] %vm9018_vm11, %v4381_v39  ;;  %v4386_v3 = vsel %vm9020_vm4, %v4278_v28, 0.0  ;;  %6309 = vrcp.f32 %v4137_v23  ;;  %vm9027_vm11 = vmmov %vm9015_vm6  ;;  %vm9030_vm4 = vnez %v9029_v34  ;;  %v9034_v50 = vld [vmem:[#allocation44_spill] sm:$0xff]  ;;  %v4428_v23 = vld [vmem:[#allocation2] sm:$0xff] (%p951_p4)  ;;  %v5088_v26 = vpack.c.bf16 (%p951_p4), %v4429_v57, %v4429_v57 }
 0x2e5   : >> { %v6302_v37 = vpop.eup %6301  ;;  %4422 = vst.msk [vmem:[#allocation2 + $0x103] sm:$0xff] %vm9021_vm8, %v4386_v3  ;;  %v4384_v29 = vsel %vm9023_vm12, %v4276_v20, 0.0  ;;  %v4279_v58 = vadd.f32 %v4243_v52, %v9024_v14  ;;  %vm9031_vm8 = vmmov %vm9015_vm6  ;;  %vm9033_vm12 = vnez %v9032_v35  ;;  %v4430_v39 = vld [vmem:[#allocation2 + $0x10] sm:$0xff] (%p951_p4)  ;;  %v4431_v52 = vld [vmem:[#allocation2 + $0x18] sm:$0xff] (%p951_p4) }
 0x2e6   : >> { %v6304_v12 = vpop.eup %6303  ;;  %4420 = vst.msk [vmem:[#allocation2 + $0xf3] sm:$0xff] %vm9015_vm6, %v4384_v29  ;;  %v4241_v46 = vmul.f32 %v6302_v37, %v8262_v0  ;;  %v5089_v20 = vpack.c.bf16 (%p951_p4), %v4430_v39, %v4430_v39  ;;  %v4433_v3 = vld [vmem:[#allocation2 + $0x28] sm:$0xff] (%p951_p4)  ;;  %v5090_v37 = vpack.c.bf16 (%p951_p4), %v4431_v52, %v4431_v52  ;;  %v4434_v14 = vld [vmem:[#allocation2 + $0x30] sm:$0xff] (%p951_p4) }
 0x2e7   : >> { %v6306_v43 = vpop.eup %6305  ;;  %v4387_v5 = vsel %vm9026_vm7, %v4279_v58, 0.0  ;;  %v4246_v42 = vmul.f32 %v6304_v12, %v8272_v53  ;;  %vm9036_vm7 = vnez %v9035_v15  ;;  %v5092_v29 = vpack.c.bf16 (%p951_p4), %v4433_v3, %v4433_v3  ;;  %v4435_v58 = vld [vmem:[#allocation2 + $0x38] sm:$0xff] (%p951_p4)  ;;  %4639 = vst.msk [vmem:[%s6388_s20 + $0x4] sm:$0xf] (%p951_p4), %vm9045_vm2, %v5088_v26  ;;  %v4454_v35 = vld [vmem:[#allocation2 + $0xd0] sm:$0xff] (%p951_p4) }
 0x2e8   : >> { %v6308_v17 = vpop.eup %6307  ;;  %4423 = vst.msk [vmem:[#allocation2 + $0x10b] sm:$0xff] %vm9027_vm11, %v4387_v5  ;;  %v4277_v61 = vadd.f32 %v6333_v31, %v4241_v46  ;;  %v4244_v19 = vmul.f32 %v6306_v43, %v8281_v11  ;;  %vm9037_vm11 = vmmov %vm9015_vm6  ;;  %v5093_v30 = vpack.c.bf16 (%p951_p4), %v4434_v14, %v4434_v14  ;;  %v5094_v63 = vpack.c.bf16 (%p951_p4), %v4435_v58, %v4435_v58  ;;  %v4447_v5 = vld [vmem:[#allocation2 + $0x98] sm:$0xff] (%p951_p4) }
 0x2e9   : >> { %v4282_v59 = vadd.f32 %v4246_v42, %v9028_v55  ;;  %v4247_v60 = vmul.f32 %v6308_v17, %v8284_v33  ;;  %v9038_v33 = vld [vmem:[#allocation21_spill] sm:$0xff]  ;;  %4640 = vst.msk [vmem:[%s6388_s20 + $0x8] sm:$0xf] (%p951_p4), %vm9046_vm10, %v5089_v20  ;;  %v5102_v12 = vpack.c.bf16 (%p951_p4), %v4443_v45, %v4443_v45  ;;  %v5103_v46 = vpack.c.bf16 (%p951_p4), %v4444_v25, %v4444_v25  ;;  %v4450_v55 = vld [vmem:[#allocation2 + $0xb0] sm:$0xff] (%p951_p4) }
 0x2ea   : >> { %v4385_v0 = vsel %vm9030_vm4, %v4277_v61, 0.0  ;;  %v4280_v49 = vadd.f32 %v6334_v18, %v4244_v19  ;;  %vm9039_vm0 = vnez %v9038_v33  ;;  %vm9040_vm4 = vmmov %vm9015_vm6  ;;  %4641 = vst.msk [vmem:[%s6388_s20 + $0xc] sm:$0xf] (%p951_p4), %vm9047_vm13, %v5090_v37  ;;  %v5104_v43 = vpack.c.bf16 (%p951_p4), %v4445_v44, %v4445_v44  ;;  %v4448_v42 = vld [vmem:[#allocation2 + $0xa0] sm:$0xff] (%p951_p4)  ;;  %v4449_v19 = vld [vmem:[#allocation2 + $0xa8] sm:$0xff] (%p951_p4) }
 0x2eb   : >> { %4421 = vst.msk [vmem:[#allocation2 + $0xfb] sm:$0xff] %vm9031_vm8, %v4385_v0  ;;  %v4390_v53 = vsel %vm9033_vm12, %v4282_v59, 0.0  ;;  %v4283_v48 = vadd.f32 %v4247_v60, %v9034_v50  ;;  %vm9042_vm8 = vnez %v9041_v32  ;;  %vm9043_vm12 = vmmov %vm9040_vm4  ;;  %v5105_v17 = vpack.c.bf16 (%p951_p4), %v4446_v8, %v4446_v8  ;;  %v4451_v59 = vld [vmem:[#allocation2 + $0xb8] sm:$0xff] (%p951_p4)  ;;  %v4452_v18 = vld [vmem:[#allocation2 + $0xc0] sm:$0xff] (%p951_p4) }
 0x2ec   : >> { %4426 = vst.msk [vmem:[#allocation2 + $0x123] sm:$0xff] %vm9015_vm6, %v4390_v53  ;;  %v4388_v11 = vsel %vm9036_vm7, %v4280_v49, 0.0  ;;  %v5106_v31 = vpack.c.bf16 (%p951_p4), %v4447_v5, %v4447_v5  ;;  %v5107_v61 = vpack.c.bf16 (%p951_p4), %v4448_v42, %v4448_v42  ;;  %v5108_v60 = vpack.c.bf16 (%p951_p4), %v4449_v19, %v4449_v19  ;;  %v4453_v49 = vld [vmem:[#allocation2 + $0xc8] sm:$0xff] (%p951_p4)  ;;  %v4455_v15 = vld [vmem:[#allocation2 + $0xd8] sm:$0xff] (%p951_p4) }
 0x2ed   : >> { %4424 = vst.msk [vmem:[#allocation2 + $0x113] sm:$0xff] %vm9037_vm11, %v4388_v11  ;;  %v4391_v47 = vsel %vm9039_vm0, %v4283_v48, 0.0  ;;  %vm9048_vm0 = vmmov (%p951_p4), %vm9045_vm2  ;;  %v5109_v34 = vpack.c.bf16 (%p951_p4), %v4450_v55, %v4450_v55  ;;  %v5110_v0 = vpack.c.bf16 (%p951_p4), %v4451_v59, %v4451_v59  ;;  %v5111_v53 = vpack.c.bf16 (%p951_p4), %v4452_v18, %v4452_v18  ;;  %v4456_v11 = vld [vmem:[#allocation2 + $0xe0] sm:$0xff] (%p951_p4)  ;;  %v4457_v33 = vld [vmem:[#allocation2 + $0xe8] sm:$0xff] (%p951_p4) }
 0x2ee   : >> { %v6310_v2 = vpop.eup %6309  ;;  %4427 = vst.msk [vmem:[#allocation2 + $0x12b] sm:$0xff] %vm9040_vm4, %v4391_v47  ;;  %953 = sbr.rel (!%p951_p4) target bundleno = 160 (0xa0), region = 79  ;;  %vm9049_vm5 = vmmov (%p951_p4), %vm9048_vm0  ;;  %v5112_v50 = vpack.c.bf16 (%p951_p4), %v4453_v49, %v4453_v49  ;;  %v5113_v48 = vpack.c.bf16 (%p951_p4), %v4454_v35, %v4454_v35  ;;  %v5114_v47 = vpack.c.bf16 (%p951_p4), %v4455_v15, %v4455_v15 }
 0x2ef   : >> { %v4245_v62 = vmul.f32 %v6310_v2, %v8288_v27  ;;  %v5087_v27 = vpack.c.bf16 (%p951_p4), %v4428_v23, %v4428_v23  ;;  %4642 = vst.msk [vmem:[%s6388_s20 + $0x10] sm:$0xf] (%p951_p4), %vm9048_vm0, %v5091_v21  ;;  %vm9050_vm1 = vmmov (%p951_p4), %vm9048_vm0  ;;  %v5115_v2 = vpack.c.bf16 (%p951_p4), %v4456_v11, %v4456_v11  ;;  %v4461_v39 = vld [vmem:[#allocation2 + $0x108] sm:$0xff] (%p951_p4) }
 0x2f0   : > { %4643 = vst.msk [vmem:[%s6388_s20 + $0x14] sm:$0xf] (%p951_p4), %vm9049_vm5, %v5092_v29  ;;  %vm9051_vm14 = vmmov (%p951_p4), %vm9048_vm0  ;;  %v5120_v20 = vpack.c.bf16 (%p951_p4), %v4461_v39, %v4461_v39 }
 0x2f1   : >> { %v4281_v51 = vadd.f32 %v6335_v24, %v4245_v62  ;;  %4638 = vst.msk [vmem:[%s6388_s20] sm:$0xf] (%p951_p4), %vm9044_vm9, %v5087_v27  ;;  %vm9052_vm3 = vmmov (%p951_p4), %vm9048_vm0  ;;  %v5116_v62 = vpack.c.bf16 (%p951_p4), %v4457_v33, %v4457_v33  ;;  %v4458_v24 = vld [vmem:[#allocation2 + $0xf0] sm:$0xff] (%p951_p4) }
 0x2f2   : > { %4644 = vst.msk [vmem:[%s6388_s20 + $0x18] sm:$0xf] (%p951_p4), %vm9050_vm1, %v5093_v30  ;;  %vm9053_vm15 = vmmov (%p951_p4), %vm9048_vm0  ;;  %v4460_v32 = vld [vmem:[#allocation2 + $0x100] sm:$0xff] (%p951_p4) }
 0x2f3   : >> { %v4389_v28 = vsel %vm9042_vm8, %v4281_v51, 0.0  ;;  %4645 = vst.msk [vmem:[%s6388_s20 + $0x1c] sm:$0xf] (%p951_p4), %vm9051_vm14, %v5094_v63  ;;  %vm9054_vm6 = vmmov (%p951_p4), %vm9048_vm0  ;;  %v4459_v51 = vld [vmem:[#allocation2 + $0xf8] sm:$0xff] (%p951_p4)  ;;  %v5119_v57 = vpack.c.bf16 (%p951_p4), %v4460_v32, %v4460_v32  ;;  %v4468_v30 = vld [vmem:[#allocation2 + $0x140] sm:$0xff] (%p951_p4) }
 0x2f4   : >> { %4425 = vst.msk [vmem:[#allocation2 + $0x11b] sm:$0xff] %vm9043_vm12, %v4389_v28  ;;  %vm9055_vm7 = vmmov (%p951_p4), %vm9048_vm0  ;;  %v5117_v28 = vpack.c.bf16 (%p951_p4), %v4458_v24, %v4458_v24  ;;  %v5118_v23 = vpack.c.bf16 (%p951_p4), %v4459_v51, %v4459_v51  ;;  %v4462_v27 = vld [vmem:[#allocation2 + $0x110] sm:$0xff] (%p951_p4)  ;;  %v4469_v63 = vld [vmem:[#allocation2 + $0x148] sm:$0xf] (%p951_p4)  ;;  %v5127_v13 = vpack.c.bf16 (%p951_p4), %v4468_v30, %v4468_v30 }
 0x2f5   : > { %4646 = vst.msk [vmem:[%s6388_s20 + $0x20] sm:$0xf] %vm9052_vm3, %v5095_v54  ;;  %vm9056_vm11 = vmmov %vm9048_vm0  ;;  %v5121_v52 = vpack.c.bf16 %v4462_v27, %v4462_v27  ;;  %v4465_v37 = vld [vmem:[#allocation2 + $0x128] sm:$0xff]  ;;  %v4466_v21 = vld [vmem:[#allocation2 + $0x130] sm:$0xff]  ;;  %v5126_v54 = vpack.c.bf16 %v4467_v41, %v4467_v41  ;;  %v5128_v40 = vpack.c.bf16 %v4469_v63, %v4469_v63 }
 0x2f6   : > { %4647 = vst.msk [vmem:[%s6388_s20 + $0x24] sm:$0xf] %vm9053_vm15, %v5096_v56  ;;  %vm9057_vm4 = vmmov %vm9048_vm0  ;;  %v5124_v14 = vpack.c.bf16 %v4465_v37, %v4465_v37  ;;  %v5125_v58 = vpack.c.bf16 %v4466_v21, %v4466_v21 }
 0x2f7   : > { %4648 = vst.msk [vmem:[%s6388_s20 + $0x28] sm:$0xf] %vm9054_vm6, %v5097_v6  ;;  %vm9058_vm8 = vmmov %vm9048_vm0 }
 0x2f8   : > { %4649 = vst.msk [vmem:[%s6388_s20 + $0x2c] sm:$0xf] %vm9055_vm7, %v5098_v9  ;;  %vm9059_vm12 = vmmov %vm9048_vm0 }
 0x2f9   : > { %4650 = vst.msk [vmem:[%s6388_s20 + $0x30] sm:$0xf] %vm9056_vm11, %v5099_v4  ;;  %vm9060_vm9 = vmmov %vm9048_vm0 }
 0x2fa   : > { %4651 = vst.msk [vmem:[%s6388_s20 + $0x34] sm:$0xf] %vm9057_vm4, %v5100_v7  ;;  %vm9061_vm2 = vmmov %vm9048_vm0 }
 0x2fb   : > { %4652 = vst.msk [vmem:[%s6388_s20 + $0x38] sm:$0xf] %vm9058_vm8, %v5101_v10  ;;  %vm9062_vm10 = vmmov %vm9048_vm0  ;;  %v4463_v26 = vld [vmem:[#allocation2 + $0x118] sm:$0xff]  ;;  %v4464_v3 = vld [vmem:[#allocation2 + $0x120] sm:$0xff] }
 0x2fc   : > { %4653 = vst.msk [vmem:[%s6388_s20 + $0x3c] sm:$0xf] %vm9059_vm12, %v5102_v12  ;;  %vm9063_vm13 = vmmov %vm9048_vm0  ;;  %v5122_v36 = vpack.c.bf16 %v4463_v26, %v4463_v26  ;;  %v5123_v29 = vpack.c.bf16 %v4464_v3, %v4464_v3 }
 0x2fd   : > { %4654 = vst.msk [vmem:[%s6388_s20 + $0x40] sm:$0xf] %vm9060_vm9, %v5103_v46  ;;  %vm9064_vm5 = vmmov %vm9048_vm0 }
 0x2fe   : > { %4655 = vst.msk [vmem:[%s6388_s20 + $0x44] sm:$0xf] %vm9061_vm2, %v5104_v43  ;;  %vm9065_vm1 = vmmov %vm9048_vm0  ;;  %vm4679_vm2 = vcmask 254976  }
 0x2ff   : > { %4656 = vst.msk [vmem:[%s6388_s20 + $0x48] sm:$0xf] %vm9062_vm10, %v5105_v17  ;;  %vm9066_vm14 = vmmov %vm9048_vm0 }
 0x300   : > { %4657 = vst.msk [vmem:[%s6388_s20 + $0x4c] sm:$0xf] %vm9063_vm13, %v5106_v31  ;;  %vm9067_vm3 = vmmov %vm9048_vm0 }
 0x301   : > { %4658 = vst.msk [vmem:[%s6388_s20 + $0x50] sm:$0xf] %vm9048_vm0, %v5107_v61  ;;  %vm9068_vm15 = vmmov %vm9048_vm0 }
 0x302   : > { %4659 = vst.msk [vmem:[%s6388_s20 + $0x54] sm:$0xf] %vm9064_vm5, %v5108_v60  ;;  %vm9069_vm6 = vmmov %vm9048_vm0 }
 0x303   : > { %4660 = vst.msk [vmem:[%s6388_s20 + $0x58] sm:$0xf] %vm9065_vm1, %v5109_v34  ;;  %vm9070_vm7 = vmmov %vm9048_vm0 }
 0x304   : > { %4661 = vst.msk [vmem:[%s6388_s20 + $0x5c] sm:$0xf] %vm9066_vm14, %v5110_v0  ;;  %vm9071_vm11 = vmmov %vm9048_vm0 }
 0x305   : > { %4662 = vst.msk [vmem:[%s6388_s20 + $0x60] sm:$0xf] %vm9067_vm3, %v5111_v53  ;;  %vm9072_vm4 = vmmov %vm9048_vm0 }
 0x306   : > { %4663 = vst.msk [vmem:[%s6388_s20 + $0x64] sm:$0xf] %vm9068_vm15, %v5112_v50  ;;  %vm9073_vm8 = vmmov %vm9048_vm0 }
 0x307   : > { %4664 = vst.msk [vmem:[%s6388_s20 + $0x68] sm:$0xf] %vm9069_vm6, %v5113_v48  ;;  %vm9074_vm12 = vmmov %vm9048_vm0 }
 0x308   : > { %4665 = vst.msk [vmem:[%s6388_s20 + $0x6c] sm:$0xf] %vm9070_vm7, %v5114_v47  ;;  %vm9075_vm9 = vmmov %vm9048_vm0 }
 0x309   : > { %4666 = vst.msk [vmem:[%s6388_s20 + $0x70] sm:$0xf] %vm9071_vm11, %v5115_v2  ;;  %vm9076_vm10 = vmmov %vm9048_vm0 }
 0x30a   : > { %4667 = vst.msk [vmem:[%s6388_s20 + $0x74] sm:$0xf] %vm9072_vm4, %v5116_v62  ;;  %vm9077_vm13 = vmmov %vm9048_vm0 }
 0x30b   : > { %4668 = vst.msk [vmem:[%s6388_s20 + $0x78] sm:$0xf] %vm9073_vm8, %v5117_v28  ;;  %vm9078_vm5 = vmmov %vm9048_vm0 }
 0x30c   : > { %4669 = vst.msk [vmem:[%s6388_s20 + $0x7c] sm:$0xf] %vm9074_vm12, %v5118_v23  ;;  %vm9079_vm1 = vmmov %vm9048_vm0 }
 0x30d   : > { %4670 = vst.msk [vmem:[%s6388_s20 + $0x80] sm:$0xf] %vm9075_vm9, %v5119_v57  ;;  %vm9080_vm14 = vmmov %vm9048_vm0 }
 0x30e   : > { %4671 = vst.msk [vmem:[%s6388_s20 + $0x84] sm:$0xf] %vm9076_vm10, %v5120_v20  ;;  %vm9081_vm3 = vmmov %vm9048_vm0 }
 0x30f   : > { %4672 = vst.msk [vmem:[%s6388_s20 + $0x88] sm:$0xf] %vm9077_vm13, %v5121_v52  ;;  %vm9082_vm15 = vmmov %vm9048_vm0 }
 0x310   : > { %4673 = vst.msk [vmem:[%s6388_s20 + $0x8c] sm:$0xf] %vm9048_vm0, %v5122_v36 }
 0x311   : > { %4674 = vst.msk [vmem:[%s6388_s20 + $0x90] sm:$0xf] %vm9078_vm5, %v5123_v29 }
 0x312   : > { %4675 = vst.msk [vmem:[%s6388_s20 + $0x94] sm:$0xf] %vm9079_vm1, %v5124_v14 }
 0x313   : > { %4676 = vst.msk [vmem:[%s6388_s20 + $0x98] sm:$0xf] %vm9080_vm14, %v5125_v58 }
 0x314   : > { %4677 = vst.msk [vmem:[%s6388_s20 + $0x9c] sm:$0xf] %vm9081_vm3, %v5126_v54 }
 0x315   : > { %4678 = vst.msk [vmem:[%s6388_s20 + $0xa0] sm:$0xf] %vm9082_vm15, %v5127_v13 }
 0x316   : > { %4680 = vst.msk [vmem:[%s6388_s20 + $0xa4] sm:$0x3] %vm4679_vm2, %v5128_v40 }
 0x317 PF: > { %s13_s12 = sadd.s32 1, %s6346_s12  }
 0x318   : > { %p10_p5 = scmp.ge.s32.totalorder %s13_s12, 4  }
 0x31a   :  { %12 = sbr.rel (!%p10_p5) target bundleno = 1 (0x1), region = 90 }

// kernel: padim_forward.7
= control target key start
LH: loop header
LB: loop body
LE: loop exit
PB: predicated region body
PF: predicated region fallthrough
CT: control target
= control target key end

     0   :  { %vm325_vm0 = vcmask 261120   ;;  %vm880_vm1 = vcmask 519168   ;;  %s1583_s1 = inlined_call_operand.vmem [shape: bf16[288,128], index: 1, kind: input, shape index: {}]   ;;  %s1584_s0 = inlined_call_operand.vmem [shape: bf16[128,288], index: 0, kind: input, shape index: {}]   ;;  %s1585_s3 = inlined_call_operand.vmem [shape: bf16[128,64], index: 3, kind: input, shape index: {}]   ;;  %s1586_s2 = inlined_call_operand.vmem [shape: f32[1,128], index: 2, kind: input, shape index: {}]   ;;  %s1587_s4 = inlined_call_operand.vmem [shape: f32[1,64], index: 4, kind: input, shape index: {}]   ;;  %s1588_s5 = inlined_call_operand.vmem [shape: bf16[128,64], index: 5, kind: output, shape index: {}]  }
   0x1   :  { %v1143_v0 = vld [vmem:[%s1583_s1 + $0x40] sm:$0xff]   ;;  %v1145_v2 = vld [vmem:[%s1583_s1 + $0x48] sm:$0xff]   ;;  %v1147_v4 = vld [vmem:[%s1583_s1 + $0x50] sm:$0xff]  }
   0x2   :  { %v1144_v1 = vld [vmem:[%s1583_s1] sm:$0xff]   ;;  %1001 = vmatprep.subr.bf16.mxu0 %v1143_v0  ;;  %v1146_v3 = vld [vmem:[%s1583_s1 + $0x8] sm:$0xff]   ;;  %v1148_v5 = vld [vmem:[%s1583_s1 + $0x10] sm:$0xff]  }
   0x3   :  { %1002 = vmatpush3.bf16.msra.mxu0 %v1144_v1  ;;  %v1149_v6 = vld [vmem:[%s1583_s1 + $0x58] sm:$0xff]   ;;  %v1151_v8 = vld [vmem:[%s1583_s1 + $0x60] sm:$0xff]   ;;  %v1153_v11 = vld [vmem:[%s1583_s1 + $0x68] sm:$0xff]  }
   0x4   :  { %1003 = vmatprep.subr.bf16.mxu0 %v1145_v2  ;;  %v1150_v7 = vld [vmem:[%s1583_s1 + $0x18] sm:$0xff]   ;;  %v1152_v9 = vld [vmem:[%s1583_s1 + $0x20] sm:$0xff]   ;;  %v1154_v12 = vld [vmem:[%s1583_s1 + $0x28] sm:$0xff]  }
   0x5   :  { %v1158_v10 = vld [vmem:[%s1583_s1 + $0x80] sm:$0xff]   ;;  %v1155_v13 = vld [vmem:[%s1583_s1 + $0x70] sm:$0xff]   ;;  %v1163_v15 = vld [vmem:[%s1583_s1 + $0x88] sm:$0xff]  }
   0x6   :  { %1091 = vmatprep.subr.bf16.mxu1 %v1158_v10  ;;  %v1162_v14 = vld [vmem:[%s1584_s0 + $0x4] ss:$12 sps:$4 sm:$0xff]   ;;  %v1164_v16 = vld [vmem:[%s1584_s0 + $0x8] ss:$12 sps:$4 sm:$0xff]   ;;  %v1165_v17 = vld [vmem:[%s1584_s0 + $0x20] ss:$12 sps:$4 sm:$0xff]  }
   0x7   :  { %1004 = vmatpush3.bf16.msra.mxu0 %v1146_v3  ;;  %1092 = vmatpush3.bf16.msra.mxu1 %v1158_v10  ;;  %v1156_v18 = vld [vmem:[%s1583_s1 + $0x30] sm:$0xff]   ;;  %v1157_v19 = vld [vmem:[%s1583_s1 + $0x78] sm:$0xff]   ;;  %v1160_v22 = vld [vmem:[%s1584_s0] ss:$12 sps:$4 sm:$0xff]  }
   0x8   :  { %1005 = vmatprep.subr.bf16.mxu0 %v1147_v4  ;;  %382 = vmatprep.mubr.bf16.mxu0 %v1162_v14  ;;  %v1172_v20 = vld [vmem:[%s1584_s0 + $0x38] ss:$12 sps:$4 sm:$0xff]   ;;  %v1173_v23 = vld [vmem:[%s1584_s0 + $0x50] ss:$12 sps:$4 sm:$0xff]   ;;  %v1180_v24 = vld [vmem:[%s1584_s0 + $0x68] ss:$12 sps:$4 sm:$0xff]  }
   0x9   :  { %1093 = vmatprep.subr.bf16.mxu1 %v1163_v15  ;;  %1095 = vmatprep.mubr.msk.bf16.mxu1 %vm325_vm0, %v1164_v16  ;;  %v1159_v21 = vld [vmem:[%s1583_s1 + $0x38] sm:$0xff]   ;;  %v1181_v26 = vld [vmem:[%s1584_s0 + $0x80] ss:$12 sps:$4 sm:$0xff]   ;;  %v1176_v33 = vld [vmem:[%s1584_s0 + $0x48] ss:$12 sps:$4 sm:$0xff]  }
   0xa   :  { %v1166_v25 = vld [vmem:[%s1584_s0 + $0x1c] ss:$12 sps:$4 sm:$0xff]   ;;  %v1168_v27 = vld [vmem:[%s1584_s0 + $0x18] ss:$12 sps:$4 sm:$0xff]   ;;  %v1169_v29 = vld [vmem:[%s1584_s0 + $0x34] ss:$12 sps:$4 sm:$0xff]  }
   0xb   :  { %1006 = vmatpush3.bf16.msra.mxu0 %v1148_v5  ;;  %1094 = vmatpush3.bf16.msra.mxu1 %v1163_v15  ;;  %v1188_v28 = vld [vmem:[%s1584_s0 + $0x98] ss:$12 sps:$4 sm:$0xff]   ;;  %v1189_v30 = vld [vmem:[%s1584_s0 + $0xb0] ss:$12 sps:$4 sm:$0xff]   ;;  %v1179_v35 = vld [vmem:[%s1584_s0 + $0x60] ss:$12 sps:$4 sm:$0xff]  }
   0xc   :  { %1007 = vmatprep.subr.bf16.mxu0 %v1149_v6  ;;  %v1171_v31 = vld [vmem:[%s1584_s0 + $0x30] ss:$12 sps:$4 sm:$0xff]   ;;  %v1174_v32 = vld [vmem:[%s1584_s0 + $0x4c] ss:$12 sps:$4 sm:$0xff]   ;;  %v1185_v38 = vld [vmem:[%s1584_s0 + $0x94] ss:$12 sps:$4 sm:$0xff]  }
   0xd   :  { %v1177_v34 = vld [vmem:[%s1584_s0 + $0x64] ss:$12 sps:$4 sm:$0xff]   ;;  %v1182_v36 = vld [vmem:[%s1584_s0 + $0x7c] ss:$12 sps:$4 sm:$0xff]   ;;  %v1190_v40 = vld [vmem:[%s1584_s0 + $0xac] ss:$12 sps:$4 sm:$0xff]  }
   0xe   :  { %1096 = vmatmul.mubr.msk.bf16.vlgmr.msra.gmra.mrb[0].mxu1 %vm325_vm0, %v1165_v17  ;;  %v1184_v37 = vld [vmem:[%s1584_s0 + $0x78] ss:$12 sps:$4 sm:$0xff]   ;;  %v1187_v39 = vld [vmem:[%s1584_s0 + $0x90] ss:$12 sps:$4 sm:$0xff]   ;;  %v1192_v41 = vld [vmem:[%s1584_s0 + $0xa8] ss:$12 sps:$4 sm:$0xff]  }
   0xf   :  { %1008 = vmatpush3.bf16.msra.mxu0 %v1150_v7  ;;  %1099 = vmatprep.mubr.msk.bf16.mxu1 %vm325_vm0, %v1172_v20  ;;  %v1193_v42 = vld [vmem:[%s1585_s3] sm:$0xff]   ;;  %v1194_v43 = vld [vmem:[%s1585_s3 + $0x8] sm:$0xff]   ;;  %v1195_v44 = vld [vmem:[%s1585_s3 + $0x10] sm:$0xff]  }
  0x10   :  { %1009 = vmatprep.subr.bf16.mxu0 %v1151_v8  ;;  %1111 = vmatprep.subr.bf16.mxu1 %v1193_v42  ;;  %v1196_v45 = vld [vmem:[%s1585_s3 + $0x18] sm:$0xff]   ;;  %v1197_v46 = vld [vmem:[%s1585_s3 + $0x20] sm:$0xff]   ;;  %v1198_v47 = vld [vmem:[%s1585_s3 + $0x28] sm:$0xff]  }
  0x11   :  { %1112 = vmatpush3.bf16.msra.mxu1 %v1193_v42  ;;  %v1199_v48 = vld [vmem:[%s1585_s3 + $0x30] sm:$0xff]   ;;  %v1200_v49 = vld [vmem:[%s1585_s3 + $0x38] sm:$0xff]   ;;  %v1424_v58 = vld [vmem:[%s1586_s2] ss:$0 sm:$0xff] }
  0x12   :  { %1113 = vmatprep.subr.bf16.mxu1 %v1194_v43 }
  0x13   :  { %1010 = vmatpush3.bf16.msra.mxu0 %v1152_v9 }
  0x14   :  { %1011 = vmatprep.subr.bf16.mxu0 %v1153_v11 }
  0x15   :  { %1114 = vmatpush3.bf16.msra.mxu1 %v1194_v43 }
  0x16   :  { %1100 = vmatmul.mubr.msk.bf16.gmra.mrb[4].mxu1 %vm325_vm0, %v1173_v23  ;;  %1115 = vmatprep.subr.bf16.mxu1 %v1195_v44 }
  0x17   :  { %1012 = vmatpush3.bf16.msra.mxu0 %v1154_v12  ;;  %1103 = vmatprep.mubr.msk.bf16.mxu1 %vm325_vm0, %v1180_v24 }
  0x18   :  { %1013 = vmatprep.subr.bf16.mxu0 %v1155_v13 }
  0x19   :  { %1116 = vmatpush3.bf16.msra.mxu1 %v1195_v44 }
  0x1a   :  { %1117 = vmatprep.subr.bf16.mxu1 %v1196_v45 }
  0x1b   :  { %1014 = vmatpush3.bf16.msra.mxu0 %v1156_v18 }
  0x1c   :  { %1015 = vmatprep.subr.bf16.mxu0 %v1157_v19 }
  0x1d   :  { %1118 = vmatpush3.bf16.msra.mxu1 %v1196_v45 }
  0x1e   :  { %1104 = vmatmul.mubr.msk.bf16.gmra.mrb[8].mxu1 %vm325_vm0, %v1181_v26  ;;  %1119 = vmatprep.subr.bf16.mxu1 %v1197_v46 }
  0x1f   :  { %1016 = vmatpush3.bf16.msra.mxu0 %v1159_v21  ;;  %1107 = vmatprep.mubr.msk.bf16.mxu1 %vm325_vm0, %v1188_v28 }
  0x21   :  { %1120 = vmatpush3.bf16.msra.mxu1 %v1197_v46 }
  0x22   :  { %383 = vmatmul.mubr.bf16.vlgmr.msra.gmra.mrb[0].mxu0 %v1160_v22  ;;  %1121 = vmatprep.subr.bf16.mxu1 %v1198_v47 }
  0x23   :  { %390 = vmatprep.mubr.bf16.mxu0 %v1166_v25 }
  0x25   :  { %1122 = vmatpush3.bf16.msra.mxu1 %v1198_v47 }
  0x26   :  { %1108 = vmatmul.mubr.msk.bf16.gmra.mrb[12].mxu1 %vm325_vm0, %v1189_v30  ;;  %1123 = vmatprep.subr.bf16.mxu1 %v1199_v48 }
  0x29   :  { %1124 = vmatpush3.bf16.msra.mxu1 %v1199_v48 }
  0x2a   :  { %391 = vmatmul.mubr.bf16.gmra.mrb[4].mxu0 %v1168_v27  ;;  %1125 = vmatprep.subr.bf16.mxu1 %v1200_v49 }
  0x2b   :  { %398 = vmatprep.mubr.bf16.mxu0 %v1169_v29 }
  0x2d   :  { %1126 = vmatpush3.bf16.msra.mxu1 %v1200_v49 }
  0x32   :  { %399 = vmatmul.mubr.bf16.gmra.mrb[8].mxu0 %v1171_v31 }
  0x33   :  { %406 = vmatprep.mubr.bf16.mxu0 %v1174_v32 }
  0x3a   :  { %407 = vmatmul.mubr.bf16.gmra.mrb[12].mxu0 %v1176_v33 }
  0x3b   :  { %414 = vmatprep.mubr.bf16.mxu0 %v1177_v34 }
  0x42   :  { %415 = vmatmul.mubr.bf16.gmra.mrb[16].mxu0 %v1179_v35 }
  0x43   :  { %422 = vmatprep.mubr.bf16.mxu0 %v1182_v36 }
  0x4a   :  { %423 = vmatmul.mubr.bf16.gmra.mrb[20].mxu0 %v1184_v37 }
  0x4b   :  { %430 = vmatprep.mubr.bf16.mxu0 %v1185_v38 }
  0x52   :  { %431 = vmatmul.mubr.bf16.gmra.mrb[24].mxu0 %v1187_v39 }
  0x53   :  { %438 = vmatprep.mubr.bf16.mxu0 %v1190_v40 }
  0x5a   :  { %439 = vmatmul.mubr.bf16.gmra.mrb[28].mxu0 %v1192_v41 }
  0xe1   :  { %v1097_v50 = vpop.f32.mrb[0].mxu1 }
  0xe2   :  { %v481_v51 = vpop.f32.mrb[1].mxu1 }
  0xe3   :  { %v1098_v52 = vpop.f32.mrb[2].mxu1 }
  0xe4   :  { %v484_v53 = vpop.f32.mrb[3].mxu1 }
  0xe9   :  { %v1101_v54 = vpop.f32.mrb[4].mxu1 }
  0xea   :  { %v497_v56 = vpop.f32.mrb[5].mxu1 }
  0xeb   :  { %v1102_v59 = vpop.f32.mrb[6].mxu1 }
  0xec   :  { %v500_v62 = vpop.f32.mrb[7].mxu1 }
  0xf1   :  { %v1430_v4 = vpop.f32.mrb[8].mxu1 }
  0xf2   :  { %v513_v7 = vpop.f32.mrb[9].mxu1 }
  0xf3   :  { %v1434_v9 = vpop.f32.mrb[10].mxu1 }
  0xf4   :  { %v516_v13 = vpop.f32.mrb[11].mxu1 }
  0xf5   :  { %v1017_v55 = vpop.f32.mrb[0].mxu0 }
  0xf6   :  { %v1018_v57 = vpop.f32.mrb[1].mxu0 }
  0xf7   :  { %v1019_v60 = vadd.f32 %v1018_v57, %v1017_v55  ;;  %v1020_v61 = vpop.f32.mrb[2].mxu0 }
  0xf8   :  { %v1021_v63 = vpop.f32.mrb[3].mxu0 }
  0xf9   :  { %v1022_v0 = vadd.f32 %v1021_v63, %v1020_v61  ;;  %v385_v1 = vadd.f32 %v1019_v60, %v1424_v58  ;;  %v1442_v20 = vpop.f32.mrb[12].mxu1 }
  0xfa   :  { %v1446_v23 = vpop.f32.mrb[13].mxu1 }
  0xfb   :  { %v1427_v2 = vadd.f32 %v481_v51, %v385_v1  ;;  %v388_v3 = vadd.f32 %v1022_v0, %v1424_v58  ;;  %v1448_v25 = vpop.f32.mrb[14].mxu1 }
  0xfc   :  { %v1452_v29 = vpop.f32.mrb[15].mxu1 }
  0xfd   :  { %v1432_v5 = vadd.f32 %v484_v53, %v388_v3  ;;  %v1023_v6 = vpop.f32.mrb[4].mxu0 }
  0xfe   :  { %v1024_v8 = vpop.f32.mrb[5].mxu0 }
  0xff   :  { %v544_v10 = vpack.c.bf16 %v1432_v5, %v1427_v2  ;;  %v1025_v11 = vadd.f32 %v1024_v8, %v1023_v6  ;;  %v1026_v12 = vpop.f32.mrb[6].mxu0 }
 0x100   :  { %v1027_v14 = vpop.f32.mrb[7].mxu0 }
 0x101   :  { %v952_v15 = vmul.bf16 3216621497, %v544_v10  ;;  %v393_v16 = vadd.f32 %v1025_v11, %v1424_v58  ;;  %v1028_v17 = vadd.f32 %v1027_v14, %v1026_v12 }
 0x103   :  { %1201 = vpow.bf16 %v952_v15  ;;  %v1439_v18 = vadd.f32 %v1097_v50, %v393_v16  ;;  %v396_v19 = vadd.f32 %v1028_v17, %v1424_v58 }
 0x105   :  { %v1444_v21 = vadd.f32 %v1098_v52, %v396_v19  ;;  %v1029_v22 = vpop.f32.mrb[8].mxu0 }
 0x106   :  { %v1030_v24 = vpop.f32.mrb[9].mxu0 }
 0x107   :  { %v545_v26 = vpack.c.bf16 %v1444_v21, %v1439_v18  ;;  %v1031_v27 = vadd.f32 %v1030_v24, %v1029_v22  ;;  %v1032_v28 = vpop.f32.mrb[10].mxu0 }
 0x108   :  { %v1033_v30 = vpop.f32.mrb[11].mxu0 }
 0x109   :  { %v953_v31 = vmul.bf16 3216621497, %v545_v26  ;;  %v1034_v32 = vadd.f32 %v1033_v30, %v1032_v28  ;;  %v401_v33 = vadd.f32 %v1031_v27, %v1424_v58 }
 0x10b   :  { %1203 = vpow.bf16 %v953_v31  ;;  %v1455_v34 = vadd.f32 %v497_v56, %v401_v33  ;;  %v404_v35 = vadd.f32 %v1034_v32, %v1424_v58 }
 0x10d   :  { %v1458_v36 = vadd.f32 %v500_v62, %v404_v35  ;;  %v1035_v37 = vpop.f32.mrb[12].mxu0 }
 0x10e   :  { %v1202_v38 = vpop.eup %1201  ;;  %v1036_v39 = vpop.f32.mrb[13].mxu0 }
 0x10f   :  { %v584_v40 = vadd.bf16 1065369472, %v1202_v38  ;;  %v546_v41 = vpack.c.bf16 %v1458_v36, %v1455_v34  ;;  %v1037_v42 = vadd.f32 %v1036_v39, %v1035_v37  ;;  %v1038_v43 = vpop.f32.mrb[14].mxu0 }
 0x110   :  { %v1039_v44 = vpop.f32.mrb[15].mxu0 }
 0x111   :  { %1205 = vrcp.bf16 %v584_v40  ;;  %v954_v45 = vmul.bf16 3216621497, %v546_v41  ;;  %v409_v46 = vadd.f32 %v1037_v42, %v1424_v58  ;;  %v1040_v47 = vadd.f32 %v1039_v44, %v1038_v43 }
 0x113   :  { %1207 = vpow.bf16 %v954_v45  ;;  %v1463_v48 = vadd.f32 %v1101_v54, %v409_v46  ;;  %v412_v49 = vadd.f32 %v1040_v47, %v1424_v58 }
 0x115   :  { %v1466_v50 = vadd.f32 %v1102_v59, %v412_v49  ;;  %v1041_v51 = vpop.f32.mrb[16].mxu0 }
 0x116   :  { %v1204_v52 = vpop.eup %1203  ;;  %v1042_v53 = vpop.f32.mrb[17].mxu0 }
 0x117   :  { %v585_v55 = vadd.bf16 1065369472, %v1204_v52  ;;  %v547_v56 = vpack.c.bf16 %v1466_v50, %v1463_v48  ;;  %v1043_v57 = vadd.f32 %v1042_v53, %v1041_v51  ;;  %v1044_v60 = vpop.f32.mrb[18].mxu0 }
 0x118   :  { %v1045_v61 = vpop.f32.mrb[19].mxu0 }
 0x119   :  { %1209 = vrcp.bf16 %v585_v55  ;;  %v955_v62 = vmul.bf16 3216621497, %v547_v56  ;;  %v1046_v63 = vadd.f32 %v1045_v61, %v1044_v60  ;;  %v417_v54 = vadd.f32 %v1043_v57, %v1424_v58 }
 0x11b   :  { %1211 = vpow.bf16 %v955_v62  ;;  %v1471_v0 = vadd.f32 %v513_v7, %v417_v54  ;;  %v420_v59 = vadd.f32 %v1046_v63, %v1424_v58 }
 0x11c   :  { %v1206_v1 = vpop.eup %1205 }
 0x11d   :  { %v593_v3 = vmul.bf16 1065369472, %v1206_v1  ;;  %v1474_v6 = vadd.f32 %v516_v13, %v420_v59  ;;  %v1047_v8 = vpop.f32.mrb[20].mxu0 }
 0x11e   :  { %v1208_v10 = vpop.eup %1207  ;;  %v1048_v11 = vpop.f32.mrb[21].mxu0 }
 0x11f   :  { %v609_v12 = vunpack.c.h.bf16 %v593_v3  ;;  %v586_v14 = vadd.bf16 1065369472, %v1208_v10  ;;  %v548_v15 = vpack.c.bf16 %v1474_v6, %v1471_v0  ;;  %v1049_v16 = vadd.f32 %v1048_v11, %v1047_v8  ;;  %v1050_v17 = vpop.f32.mrb[22].mxu0 }
 0x120   :  { %v1051_v19 = vpop.f32.mrb[23].mxu0  ;;  %v608_v22 = vunpack.c.l.bf16 %v593_v3 }
 0x121   :  { %v625_v7 = vmul.f32 %v609_v12, %v1432_v5  ;;  %1213 = vrcp.bf16 %v586_v14  ;;  %v956_v24 = vmul.bf16 3216621497, %v548_v15  ;;  %v425_v26 = vadd.f32 %v1049_v16, %v1424_v58 }
 0x122   :  { %v1052_v13 = vadd.f32 %v1051_v19, %v1050_v17  ;;  %v624_v27 = vmul.f32 %v608_v22, %v1427_v2 }
 0x123   :  { %1215 = vpow.bf16 %v956_v24  ;;  %v1482_v28 = vadd.f32 %v1430_v4, %v425_v26 }
 0x124   :  { %v1210_v30 = vpop.eup %1209  ;;  %v428_v31 = vadd.f32 %v1052_v13, %v1424_v58  ;;  %v640_v32 = vpack.c.bf16 %v625_v7, %v624_v27 }
 0x125   :  { %v595_v33 = vmul.bf16 1065369472, %v1210_v30  ;;  %v1053_v35 = vpop.f32.mrb[24].mxu0 }
 0x126   :  { %v1212_v37 = vpop.eup %1211  ;;  %v1486_v5 = vadd.f32 %v1434_v9, %v428_v31  ;;  %1127 = vmatprep.mubr.bf16.mxu1 %v640_v32  ;;  %v1054_v38 = vpop.f32.mrb[25].mxu0 }
 0x127   :  { %v610_v39 = vunpack.c.l.bf16 %v595_v33  ;;  %v611_v40 = vunpack.c.h.bf16 %v595_v33  ;;  %v587_v41 = vadd.bf16 1065369472, %v1212_v37  ;;  %v1055_v2 = vadd.f32 %v1054_v38, %v1053_v35  ;;  %v1056_v42 = vpop.f32.mrb[26].mxu0 }
 0x128   :  { %v549_v4 = vpack.c.bf16 %v1486_v5, %v1482_v28  ;;  %v1057_v43 = vpop.f32.mrb[27].mxu0 }
 0x129   :  { %v626_v44 = vmul.f32 %v610_v39, %v1439_v18  ;;  %v627_v45 = vmul.f32 %v611_v40, %v1444_v21  ;;  %1217 = vrcp.bf16 %v587_v41  ;;  %v1058_v46 = vadd.f32 %v1057_v43, %v1056_v42 }
 0x12a   :  { %v957_v47 = vmul.bf16 3216621497, %v549_v4  ;;  %v433_v9 = vadd.f32 %v1055_v2, %v1424_v58 }
 0x12b   :  { %v641_v49 = vpack.c.bf16 %v627_v45, %v626_v44  ;;  %v436_v51 = vadd.f32 %v1058_v46, %v1424_v58 }
 0x12c   :  { %v1214_v52 = vpop.eup %1213  ;;  %1219 = vpow.bf16 %v957_v47  ;;  %v1495_v53 = vadd.f32 %v1446_v23, %v433_v9 }
 0x12d   :  { %v597_v55 = vmul.bf16 1065369472, %v1214_v52  ;;  %v1498_v56 = vadd.f32 %v1452_v29, %v436_v51  ;;  %v1059_v18 = vpop.f32.mrb[28].mxu0  ;;  %1128 = vmatmul.mubr.bf16.vlgmr.msra.gmra.mrb[16].mxu1 %v641_v49 }
 0x12e   :  { %v1216_v21 = vpop.eup %1215  ;;  %v1060_v57 = vpop.f32.mrb[29].mxu0 }
 0x12f   :  { %v613_v60 = vunpack.c.h.bf16 %v597_v55  ;;  %v588_v61 = vadd.bf16 1065369472, %v1216_v21  ;;  %v550_v62 = vpack.c.bf16 %v1498_v56, %v1495_v53  ;;  %v1061_v63 = vadd.f32 %v1060_v57, %v1059_v18  ;;  %v1062_v54 = vpop.f32.mrb[30].mxu0 }
 0x130   :  { %v1063_v59 = vpop.f32.mrb[31].mxu0  ;;  %v612_v1 = vunpack.c.l.bf16 %v597_v55 }
 0x131   :  { %v629_v23 = vmul.f32 %v613_v60, %v1458_v36  ;;  %1221 = vrcp.bf16 %v588_v61  ;;  %v958_v3 = vmul.bf16 3216621497, %v550_v62  ;;  %v441_v29 = vadd.f32 %v1061_v63, %v1424_v58 }
 0x132   :  { %v1064_v8 = vadd.f32 %v1063_v59, %v1062_v54  ;;  %v628_v10 = vmul.f32 %v612_v1, %v1455_v34 }
 0x133   :  { %1223 = vpow.bf16 %v958_v3  ;;  %v538_v11 = vadd.f32 %v1442_v20, %v441_v29 }
 0x134   :  { %v1218_v12 = vpop.eup %1217  ;;  %v444_v14 = vadd.f32 %v1064_v8, %v1424_v58  ;;  %v642_v15 = vpack.c.bf16 %v629_v23, %v628_v10 }
 0x135   :  { %v599_v16 = vmul.bf16 1065369472, %v1218_v12 }
 0x136   :  { %v541_v17 = vadd.f32 %v1448_v25, %v444_v14  ;;  %1131 = vmatprep.mubr.bf16.mxu1 %v642_v15 }
 0x137   :  { %v1220_v19 = vpop.eup %1219  ;;  %v614_v36 = vunpack.c.l.bf16 %v599_v16  ;;  %v615_v22 = vunpack.c.h.bf16 %v599_v16 }
 0x138   :  { %v589_v7 = vadd.bf16 1065369472, %v1220_v19  ;;  %v551_v24 = vpack.c.bf16 %v541_v17, %v538_v11 }
 0x139   :  { %v630_v26 = vmul.f32 %v614_v36, %v1463_v48  ;;  %v631_v34 = vmul.f32 %v615_v22, %v1466_v50 }
 0x13a   :  { %1225 = vrcp.bf16 %v589_v7  ;;  %v959_v13 = vmul.bf16 3216621497, %v551_v24 }
 0x13b   :  { %v643_v20 = vpack.c.bf16 %v631_v34, %v630_v26 }
 0x13c   :  { %v1222_v27 = vpop.eup %1221  ;;  %1227 = vpow.bf16 %v959_v13 }
 0x13d   :  { %v601_v58 = vmul.bf16 1065369472, %v1222_v27  ;;  %1132 = vmatmul.mubr.bf16.gmra.mrb[20].mxu1 %v643_v20 }
 0x13e   :  { %v1224_v30 = vpop.eup %1223 }
 0x13f   :  { %v617_v31 = vunpack.c.h.bf16 %v601_v58  ;;  %v590_v25 = vadd.bf16 1065369472, %v1224_v30  ;;  %v616_v32 = vunpack.c.l.bf16 %v601_v58 }
 0x141   :  { %v633_v33 = vmul.f32 %v617_v31, %v1474_v6  ;;  %1229 = vrcp.bf16 %v590_v25  ;;  %v632_v35 = vmul.f32 %v616_v32, %v1471_v0 }
 0x143   :  { %v644_v37 = vpack.c.bf16 %v633_v33, %v632_v35 }
 0x145   :  { %v1226_v48 = vpop.eup %1225  ;;  %1135 = vmatprep.mubr.bf16.mxu1 %v644_v37 }
 0x146   :  { %v603_v50 = vmul.bf16 1065369472, %v1226_v48 }
 0x147   :  { %v1228_v38 = vpop.eup %1227 }
 0x148   :  { %v591_v39 = vadd.bf16 1065369472, %v1228_v38  ;;  %v618_v40 = vunpack.c.l.bf16 %v603_v50  ;;  %v619_v41 = vunpack.c.h.bf16 %v603_v50 }
 0x14a   :  { %1231 = vrcp.bf16 %v591_v39  ;;  %v634_v2 = vmul.f32 %v618_v40, %v1482_v28  ;;  %v635_v42 = vmul.f32 %v619_v41, %v1486_v5  ;;  %v960_v5 = vld [vmem:[%s1587_s4] ss:$0 sm:$0xff] }
 0x14c   :  { %v1230_v4 = vpop.eup %1229  ;;  %v645_v43 = vpack.c.bf16 %v635_v42, %v634_v2 }
 0x14d   :  { %v605_v44 = vmul.bf16 1065369472, %v1230_v4 }
 0x14e   :  { %1136 = vmatmul.mubr.bf16.gmra.mrb[24].mxu1 %v645_v43 }
 0x14f   :  { %v621_v6 = vunpack.c.h.bf16 %v605_v44  ;;  %v620_v45 = vunpack.c.l.bf16 %v605_v44 }
 0x151   :  { %v637_v0 = vmul.f32 %v621_v6, %v1498_v56  ;;  %v636_v46 = vmul.f32 %v620_v45, %v1495_v53 }
 0x153   :  { %v646_v47 = vpack.c.bf16 %v637_v0, %v636_v46 }
 0x155   :  { %v1232_v9 = vpop.eup %1231  ;;  %1139 = vmatprep.mubr.bf16.mxu1 %v646_v47 }
 0x156   :  { %v607_v49 = vmul.bf16 1065369472, %v1232_v9 }
 0x158   :  { %v622_v51 = vunpack.c.l.bf16 %v607_v49  ;;  %v623_v52 = vunpack.c.h.bf16 %v607_v49 }
 0x15a   :  { %v638_v55 = vmul.f32 %v622_v51, %v538_v11  ;;  %v639_v28 = vmul.f32 %v623_v52, %v541_v17 }
 0x15c   :  { %v647_v18 = vpack.c.bf16 %v639_v28, %v638_v55 }
 0x15e   :  { %1140 = vmatmul.mubr.bf16.gmra.mrb[28].mxu1 %v647_v18 }
 0x200   :  { %v1129_v21 = vpop.f32.mrb[16].mxu1 }
 0x201   :  { %v762_v57 = vadd.f32 %v1129_v21, %v960_v5  ;;  %v753_v60 = vpop.f32.mrb[17].mxu1 }
 0x202   :  { %v754_v56 = vadd.f32 %v960_v5, %v753_v60  ;;  %v1130_v53 = vpop.f32.mrb[18].mxu1 }
 0x203   :  { %v987_v61 = vpack.c.bf16 %v762_v57, %v762_v57  ;;  %v765_v62 = vadd.f32 %v1130_v53, %v960_v5  ;;  %v756_v63 = vpop.f32.mrb[19].mxu1 }
 0x204   :  { %v985_v54 = vpack.c.bf16 %v754_v56, %v754_v56  ;;  %v757_v59 = vadd.f32 %v960_v5, %v756_v63 }
 0x205   :  { %883 = vst.msk [vmem:[%s1588_s5 + $0x8] sm:$0xf] %vm880_vm1, %v987_v61  ;;  %v988_v1 = vpack.c.bf16 %v765_v62, %v765_v62 }
 0x206   :  { %881 = vst.msk [vmem:[%s1588_s5] sm:$0xf] %vm880_vm1, %v985_v54  ;;  %v986_v23 = vpack.c.bf16 %v757_v59, %v757_v59 }
 0x207   :  { %884 = vst.msk [vmem:[%s1588_s5 + $0xc] sm:$0xf] %vm880_vm1, %v988_v1 }
 0x208   :  { %882 = vst.msk [vmem:[%s1588_s5 + $0x4] sm:$0xf] %vm880_vm1, %v986_v23 }
 0x210   :  { %v1133_v3 = vpop.f32.mrb[20].mxu1 }
 0x211   :  { %v778_v29 = vadd.f32 %v1133_v3, %v960_v5  ;;  %v769_v8 = vpop.f32.mrb[21].mxu1 }
 0x212   :  { %v770_v10 = vadd.f32 %v960_v5, %v769_v8  ;;  %v1134_v11 = vpop.f32.mrb[22].mxu1 }
 0x213   :  { %v991_v12 = vpack.c.bf16 %v778_v29, %v778_v29  ;;  %v781_v14 = vadd.f32 %v1134_v11, %v960_v5  ;;  %v772_v15 = vpop.f32.mrb[23].mxu1 }
 0x214   :  { %v989_v16 = vpack.c.bf16 %v770_v10, %v770_v10  ;;  %v773_v17 = vadd.f32 %v960_v5, %v772_v15 }
 0x215   :  { %887 = vst.msk [vmem:[%s1588_s5 + $0x18] sm:$0xf] %vm880_vm1, %v991_v12  ;;  %v992_v19 = vpack.c.bf16 %v781_v14, %v781_v14 }
 0x216   :  { %885 = vst.msk [vmem:[%s1588_s5 + $0x10] sm:$0xf] %vm880_vm1, %v989_v16  ;;  %v990_v36 = vpack.c.bf16 %v773_v17, %v773_v17 }
 0x217   :  { %888 = vst.msk [vmem:[%s1588_s5 + $0x1c] sm:$0xf] %vm880_vm1, %v992_v19 }
 0x218   :  { %886 = vst.msk [vmem:[%s1588_s5 + $0x14] sm:$0xf] %vm880_vm1, %v990_v36 }
 0x221   :  { %v1137_v22 = vpop.f32.mrb[24].mxu1 }
 0x222   :  { %v794_v7 = vadd.f32 %v1137_v22, %v960_v5  ;;  %v785_v24 = vpop.f32.mrb[25].mxu1 }
 0x223   :  { %v786_v26 = vadd.f32 %v960_v5, %v785_v24  ;;  %v1138_v34 = vpop.f32.mrb[26].mxu1 }
 0x224   :  { %v995_v13 = vpack.c.bf16 %v794_v7, %v794_v7  ;;  %v797_v20 = vadd.f32 %v1138_v34, %v960_v5  ;;  %v788_v27 = vpop.f32.mrb[27].mxu1 }
 0x225   :  { %v993_v58 = vpack.c.bf16 %v786_v26, %v786_v26  ;;  %v789_v30 = vadd.f32 %v960_v5, %v788_v27 }
 0x226   :  { %891 = vst.msk [vmem:[%s1588_s5 + $0x28] sm:$0xf] %vm880_vm1, %v995_v13  ;;  %v996_v31 = vpack.c.bf16 %v797_v20, %v797_v20 }
 0x227   :  { %889 = vst.msk [vmem:[%s1588_s5 + $0x20] sm:$0xf] %vm880_vm1, %v993_v58  ;;  %v994_v25 = vpack.c.bf16 %v789_v30, %v789_v30 }
 0x228   :  { %892 = vst.msk [vmem:[%s1588_s5 + $0x2c] sm:$0xf] %vm880_vm1, %v996_v31 }
 0x229   :  { %890 = vst.msk [vmem:[%s1588_s5 + $0x24] sm:$0xf] %vm880_vm1, %v994_v25 }
 0x231   :  { %v1141_v32 = vpop.f32.mrb[28].mxu1 }
 0x232   :  { %v810_v33 = vadd.f32 %v1141_v32, %v960_v5  ;;  %v801_v35 = vpop.f32.mrb[29].mxu1 }
 0x233   :  { %v802_v37 = vadd.f32 %v960_v5, %v801_v35  ;;  %v1142_v48 = vpop.f32.mrb[30].mxu1 }
 0x234   :  { %v999_v50 = vpack.c.bf16 %v810_v33, %v810_v33  ;;  %v813_v38 = vadd.f32 %v1142_v48, %v960_v5  ;;  %v804_v39 = vpop.f32.mrb[31].mxu1 }
 0x235   :  { %v997_v40 = vpack.c.bf16 %v802_v37, %v802_v37  ;;  %v805_v41 = vadd.f32 %v960_v5, %v804_v39 }
 0x236   :  { %895 = vst.msk [vmem:[%s1588_s5 + $0x38] sm:$0xf] %vm880_vm1, %v999_v50  ;;  %v1000_v2 = vpack.c.bf16 %v813_v38, %v813_v38 }
 0x237   :  { %893 = vst.msk [vmem:[%s1588_s5 + $0x30] sm:$0xf] %vm880_vm1, %v997_v40  ;;  %v998_v42 = vpack.c.bf16 %v805_v41, %v805_v41 }
 0x238   :  { %896 = vst.msk [vmem:[%s1588_s5 + $0x3c] sm:$0xf] %vm880_vm1, %v1000_v2 }
 0x239   :  { %894 = vst.msk [vmem:[%s1588_s5 + $0x34] sm:$0xf] %vm880_vm1, %v998_v42 }

// kernel: padim_forward.9
= control target key start
LH: loop header
LB: loop body
LE: loop exit
PB: predicated region body
PF: predicated region fallthrough
CT: control target
= control target key end

     0   :  { %s1214_s15 = smov 0   ;;  %s1216_s16 = smov 0   ;;  %s1697_s0 = inlined_call_operand.vmem [shape: bf16[2,16,16,32], index: 0, kind: input, shape index: {}]   ;;  %s1698_s1 = inlined_call_operand.vmem [shape: bf16[2,8,16,64], index: 1, kind: input, shape index: {}]   ;;  %s1699_s2 = inlined_call_operand.vmem [shape: bf16[2,96,256], index: 2, kind: output, shape index: {0}]   ;;  %s1700_s3 = inlined_call_operand.vmem [shape: f32[2,1,1,1], index: 3, kind: output, shape index: {1}]   ;;  %s1701_s4 = inlined_call_operand.vmem [shape: f32[2,1,1,1], index: 4, kind: output, shape index: {2}]  }
   0x1   :  { %s1218_s17 = smov 0  }
   0x2 LB: > { %s27_s18 = sadd.s32 1, %s1182_s16  ;;  %p958_p0 = scmp.ge.s32.totalorder %s1186_s17, 1  ;;  %s1186_s17 = sphi %s1218_s17, %s15_s17   ;;  %s1182_s16 = sphi %s1216_s16, %s1720_s16   ;;  %s1178_s15 = sphi %s1214_s15, %s1719_s15  }
   0x3   : > { %p29_p1 = scmp.ge.s32.totalorder %s27_s18, 2  ;;  %p211_p2 = scmp.lt.s32.totalorder %s1186_s17, 3 }
   0x5   : > { %s1722_s18 = smov (%p29_p1, %s27_s18), 0  ;;  %p212_p3 = pnand %p958_p0, %p211_p2 }
   0x6   : > { %p269_p4 = scmp.lt.s32.totalorder (!%p212_p3), %s1178_s15, 1  ;;  %s1188_s23 = smov (!%p212_p3), 32   ;;  %vm472_vm0 = vcmask (!%p212_p3), 261120   ;;  %vm505_vm1 = vcmask (!%p212_p3), 785408   ;;  %vm578_vm2 = vcmask (!%p212_p3), 0  }
   0x7   : > { %215 = sbr.rel (%p212_p3) target bundleno = 376 (0x178), region = 28 }
   0xe   : > { %s1724_s15 = smov (!%p269_p4, %s1178_s15), 1 }
   0xf   : > { %s979_s19 = sshll.u32 %s1724_s15, 6  ;;  %s978_s24 = sshll.u32 %s1724_s15, 7 }
  0x10   : > { %s288_s22 = scalar_lea.vmem %s1698_s1, %s979_s19  ;;  %s1242_s27 = scalar_lea.vmem %s1697_s0, %s978_s24 }
  0x11   : > { %v1045_v0 = vld [vmem:[%s288_s22] sm:$0xff]   ;;  %v1092_v1 = vld [vmem:[%s288_s22 + $0x10] sm:$0xff]   ;;  %v1091_v2 = vld [vmem:[%s288_s22 + $0x8] sm:$0xff]   ;;  %s305_s30 = scalar_lea.vmem %s1700_s3, %s1724_s15  ;;  %s311_s7 = scalar_lea.vmem %s1701_s4, %s1724_s15 }
  0x12   : > { %v1046_v3 = vunpack.c.l.bf16 %v1045_v0  ;;  %v1047_v4 = vunpack.c.h.bf16 %v1045_v0  ;;  %v1054_v5 = vunpack.c.l.bf16 %v1092_v1  ;;  %v1055_v6 = vunpack.c.h.bf16 %v1092_v1  ;;  %v1093_v7 = vld [vmem:[%s288_s22 + $0x18] sm:$0xff]   ;;  %v1094_v8 = vld [vmem:[%s288_s22 + $0x20] sm:$0xff]   ;;  %v1095_v13 = vld [vmem:[%s288_s22 + $0x28] sm:$0xff]   ;;  %s1098_s8 = smul.u32 96, %s1724_s15 }
  0x13   : > { %v1050_v9 = vunpack.c.l.bf16 %v1091_v2  ;;  %v1051_v10 = vunpack.c.h.bf16 %v1091_v2  ;;  %v1058_v11 = vunpack.c.l.bf16 %v1093_v7  ;;  %v1059_v12 = vunpack.c.h.bf16 %v1093_v7  ;;  %v1096_v22 = vld [vmem:[%s288_s22 + $0x30] sm:$0xff]   ;;  %v1097_v23 = vld [vmem:[%s288_s22 + $0x38] sm:$0xff]   ;;  %v981_v32 = vld [vmem:[%s1242_s27] sm:$0xff]  }
  0x14   : > { %v1124_v14 = vpack.i.bf16 %v1047_v4, %v1046_v3  ;;  %v1134_v15 = vpack.i.bf16 %v1055_v6, %v1054_v5  ;;  %v1062_v16 = vunpack.c.l.bf16 %v1094_v8  ;;  %v1063_v17 = vunpack.c.h.bf16 %v1094_v8  ;;  %v1076_v33 = vld [vmem:[%s1242_s27 + $0x8] sm:$0xff]   ;;  %v1247_v34 = vld [vmem:[%s1242_s27 + $0x20] sm:$0xff]   ;;  %v1253_v36 = vld [vmem:[%s1242_s27 + $0x10] sm:$0xff]   ;;  %s1674_s11 = scalar_lea.vmem %s1699_s2, %s1098_s8 }
  0x15   : > { %v1129_v18 = vpack.i.bf16 %v1051_v10, %v1050_v9  ;;  %v1139_v19 = vpack.i.bf16 %v1059_v12, %v1058_v11  ;;  %v1066_v20 = vunpack.c.l.bf16 %v1095_v13  ;;  %v1067_v21 = vunpack.c.h.bf16 %v1095_v13  ;;  %v1250_v35 = vld [vmem:[%s1242_s27 + $0x28] sm:$0xff]   ;;  %v1256_v37 = vld [vmem:[%s1242_s27 + $0x18] sm:$0xff]   ;;  %v1259_v42 = vld [vmem:[%s1242_s27 + $0x30] sm:$0xff]  }
  0x16   : > { %1125 = vrot.lane.b32.xlu0 %v1124_v14, %s1188_s23  ;;  %1135 = vrot.lane.b32.xlu1 %v1134_v15, %s1188_s23  ;;  %v1144_v24 = vpack.i.bf16 %v1063_v17, %v1062_v16  ;;  %v1070_v25 = vunpack.c.l.bf16 %v1096_v22  ;;  %v1071_v27 = vunpack.c.h.bf16 %v1096_v22  ;;  %v1074_v28 = vunpack.c.l.bf16 %v1097_v23  ;;  %v1262_v43 = vld [vmem:[%s1242_s27 + $0x38] sm:$0xff]   ;;  %v1269_v48 = vld [vmem:[%s1242_s27 + $0x40] sm:$0xff]  }
  0x17   : > { %v1149_v26 = vpack.i.bf16 %v1067_v21, %v1066_v20  ;;  %v1075_v29 = vunpack.c.h.bf16 %v1097_v23  ;;  %v982_v38 = vunpack.c.l.bf16 %v981_v32  ;;  %v983_v39 = vunpack.c.h.bf16 %v981_v32  ;;  %v1272_v49 = vld [vmem:[%s1242_s27 + $0x48] sm:$0xff]   ;;  %v1279_v54 = vld [vmem:[%s1242_s27 + $0x50] sm:$0xff]   ;;  %v1282_v55 = vld [vmem:[%s1242_s27 + $0x58] sm:$0xff]  }
  0x18   : > { %v1154_v30 = vpack.i.bf16 %v1071_v27, %v1070_v25  ;;  %v986_v40 = vunpack.c.l.bf16 %v1076_v33  ;;  %v987_v41 = vunpack.c.h.bf16 %v1076_v33  ;;  %v998_v44 = vunpack.c.l.bf16 %v1247_v34  ;;  %v1289_v60 = vld [vmem:[%s1242_s27 + $0x60] sm:$0xff]   ;;  %v1292_v61 = vld [vmem:[%s1242_s27 + $0x68] sm:$0xff]   ;;  %v1299_v2 = vld [vmem:[%s1242_s27 + $0x70] sm:$0xff]  }
  0x19   : > { %v1159_v31 = vpack.i.bf16 %v1075_v29, %v1074_v28  ;;  %v999_v45 = vunpack.c.h.bf16 %v1247_v34  ;;  %v1002_v46 = vunpack.c.l.bf16 %v1250_v35  ;;  %v1003_v47 = vunpack.c.h.bf16 %v1250_v35  ;;  %v1306_v7 = vld [vmem:[%s1242_s27 + $0x78] sm:$0xff]  }
  0x1a   : > { %1130 = vrot.lane.b32.xlu0 %v1129_v18, %s1188_s23  ;;  %1140 = vrot.lane.b32.xlu1 %v1139_v19, %s1188_s23  ;;  %v990_v50 = vunpack.c.l.bf16 %v1253_v36  ;;  %v991_v51 = vunpack.c.h.bf16 %v1253_v36  ;;  %v994_v52 = vunpack.c.l.bf16 %v1256_v37  ;;  %v995_v53 = vunpack.c.h.bf16 %v1256_v37 }
  0x1b   : > { %v1006_v56 = vunpack.c.l.bf16 %v1259_v42  ;;  %v1007_v57 = vunpack.c.h.bf16 %v1259_v42  ;;  %v1010_v58 = vunpack.c.l.bf16 %v1262_v43  ;;  %v1011_v59 = vunpack.c.h.bf16 %v1262_v43 }
  0x1c   : > { %v1014_v62 = vunpack.c.l.bf16 %v1269_v48  ;;  %v1015_v63 = vunpack.c.h.bf16 %v1269_v48  ;;  %v1018_v0 = vunpack.c.l.bf16 %v1272_v49 }
  0x1e   : > { %1145 = vrot.lane.b32.xlu0 %v1144_v24, %s1188_s23  ;;  %1150 = vrot.lane.b32.xlu1 %v1149_v26, %s1188_s23 }
  0x22   : > { %1155 = vrot.lane.b32.xlu0 %v1154_v30, %s1188_s23  ;;  %1160 = vrot.lane.b32.xlu1 %v1159_v31, %s1188_s23 }
  0x88   : > { %v1126_v8 = vpop.permute.xlu0 %1125  ;;  %v1136_v9 = vpop.permute.xlu1 %1135 }
  0x89   : > { %v1128_v14 = vunpack.i.h.bf16 %v1126_v8  ;;  %v1127_v15 = vunpack.i.l.bf16 %v1126_v8  ;;  %v1138_v18 = vunpack.i.h.bf16 %v1136_v9  ;;  %v1137_v19 = vunpack.i.l.bf16 %v1136_v9 }
  0x8b   : > { %v1317_v22 = vsel %vm472_vm0, %v982_v38, %v1127_v15  ;;  %v1320_v23 = vsel %vm472_vm0, %v983_v39, %v1128_v14  ;;  %v1323_v24 = vsel %vm472_vm0, %v986_v40, %v1127_v15  ;;  %v1326_v25 = vsel %vm472_vm0, %v987_v41, %v1128_v14 }
  0x8c   : > { %v506_v26 = vsel %vm505_vm1, %v1317_v22, inf  ;;  %v507_v27 = vsel %vm505_vm1, %v1320_v23, inf  ;;  %v508_v28 = vsel %vm505_vm1, %v1323_v24, inf  ;;  %v509_v29 = vsel %vm505_vm1, %v1326_v25, inf  ;;  %v1131_v30 = vpop.permute.xlu0 %1130  ;;  %v1141_v31 = vpop.permute.xlu1 %1140 }
  0x8d   : > { %v1338_v32 = vsel %vm505_vm1, %v1317_v22, -inf  ;;  %v1342_v33 = vsel %vm505_vm1, %v1320_v23, -inf  ;;  %v1346_v34 = vsel %vm505_vm1, %v1323_v24, -inf  ;;  %v1350_v35 = vsel %vm505_vm1, %v1326_v25, -inf }
  0x8e   : > { %v1353_v38 = vsel %vm472_vm0, %v998_v44, %v1137_v19  ;;  %v1356_v39 = vsel %vm472_vm0, %v999_v45, %v1138_v18  ;;  %v1359_v40 = vsel %vm472_vm0, %v1002_v46, %v1137_v19  ;;  %v1362_v41 = vsel %vm472_vm0, %v1003_v47, %v1138_v18 }
  0x8f   : > { %v518_v8 = vsel %vm505_vm1, %v1353_v38, inf  ;;  %v520_v9 = vsel %vm505_vm1, %v1356_v39, inf  ;;  %v522_v14 = vsel %vm505_vm1, %v1359_v40, inf  ;;  %v524_v44 = vsel %vm505_vm1, %v1362_v41, inf }
  0x90   : > { %v592_v45 = vsel %vm505_vm1, %v1353_v38, -inf  ;;  %v594_v46 = vsel %vm505_vm1, %v1356_v39, -inf  ;;  %v596_v47 = vsel %vm505_vm1, %v1359_v40, -inf  ;;  %v598_v15 = vsel %vm505_vm1, %v1362_v41, -inf  ;;  %v1380_v18 = vpop.permute.xlu0 %1145  ;;  %v1382_v19 = vpop.permute.xlu1 %1150 }
  0x91   : > { %v1133_v21 = vunpack.i.h.bf16 %v1131_v30  ;;  %v1132_v20 = vunpack.i.l.bf16 %v1131_v30  ;;  %v1143_v17 = vunpack.i.h.bf16 %v1141_v31  ;;  %v1142_v16 = vunpack.i.l.bf16 %v1141_v31 }
  0x92   : > { %v1148_v13 = vunpack.i.h.bf16 %v1380_v18  ;;  %v1147_v12 = vunpack.i.l.bf16 %v1380_v18 }
  0x93   : > { %v1391_v6 = vsel %vm472_vm0, %v990_v50, %v1132_v20  ;;  %v1396_v5 = vsel %vm472_vm0, %v991_v51, %v1133_v21  ;;  %v1401_v30 = vsel %vm472_vm0, %v994_v52, %v1132_v20  ;;  %v1406_v31 = vsel %vm472_vm0, %v995_v53, %v1133_v21 }
  0x94   : > { %v510_v18 = vsel %vm505_vm1, %v1391_v6, inf  ;;  %v512_v50 = vsel %vm505_vm1, %v1396_v5, inf  ;;  %v514_v36 = vsel %vm505_vm1, %v1401_v30, inf  ;;  %v516_v51 = vsel %vm505_vm1, %v1406_v31, inf }
  0x95   : > { %v511_v4 = vmin.f32 %v506_v26, %v510_v18  ;;  %v513_v52 = vmin.f32 %v507_v27, %v512_v50  ;;  %v515_v20 = vmin.f32 %v508_v28, %v514_v36  ;;  %v517_v11 = vmin.f32 %v509_v29, %v516_v51 }
  0x96   : > { %v584_v37 = vsel %vm505_vm1, %v1391_v6, -inf  ;;  %v586_v53 = vsel %vm505_vm1, %v1396_v5, -inf  ;;  %v588_v21 = vsel %vm505_vm1, %v1401_v30, -inf  ;;  %v590_v3 = vsel %vm505_vm1, %v1406_v31, -inf }
  0x97   : > { %v585_v10 = vmax.f32 %v1338_v32, %v584_v37  ;;  %v587_v1 = vmax.f32 %v1342_v33, %v586_v53  ;;  %v589_v26 = vmax.f32 %v1346_v34, %v588_v21  ;;  %v591_v27 = vmax.f32 %v1350_v35, %v590_v3 }
  0x98   : > { %v1431_v28 = vsel %vm472_vm0, %v1006_v56, %v1142_v16  ;;  %v1436_v29 = vsel %vm472_vm0, %v1007_v57, %v1143_v17  ;;  %v1441_v32 = vsel %vm472_vm0, %v1010_v58, %v1142_v16  ;;  %v1446_v33 = vsel %vm472_vm0, %v1011_v59, %v1143_v17 }
  0x99   : > { %v519_v3 = vmin.f32 %v511_v4, %v518_v8  ;;  %v521_v34 = vmin.f32 %v513_v52, %v520_v9  ;;  %v523_v35 = vmin.f32 %v515_v20, %v522_v14  ;;  %v525_v56 = vmin.f32 %v517_v11, %v524_v44 }
  0x9a   : > { %v526_v42 = vsel %vm505_vm1, %v1431_v28, inf  ;;  %v528_v57 = vsel %vm505_vm1, %v1436_v29, inf  ;;  %v530_v18 = vsel %vm505_vm1, %v1441_v32, inf  ;;  %v532_v58 = vsel %vm505_vm1, %v1446_v33, inf }
  0x9b   : > { %v527_v43 = vmin.f32 %v519_v3, %v526_v42  ;;  %v529_v16 = vmin.f32 %v521_v34, %v528_v57  ;;  %v531_v59 = vmin.f32 %v523_v35, %v530_v18  ;;  %v533_v17 = vmin.f32 %v525_v56, %v532_v58 }
  0x9c   : > { %v593_v4 = vmax.f32 %v585_v10, %v592_v45  ;;  %v595_v8 = vmax.f32 %v587_v1, %v594_v46  ;;  %v597_v9 = vmax.f32 %v589_v26, %v596_v47  ;;  %v599_v11 = vmax.f32 %v591_v27, %v598_v15 }
  0x9d   : > { %v600_v14 = vsel %vm505_vm1, %v1431_v28, -inf  ;;  %v602_v44 = vsel %vm505_vm1, %v1436_v29, -inf  ;;  %v604_v50 = vsel %vm505_vm1, %v1441_v32, -inf  ;;  %v606_v36 = vsel %vm505_vm1, %v1446_v33, -inf }
  0x9e   : > { %v601_v51 = vmax.f32 %v593_v4, %v600_v14  ;;  %v603_v52 = vmax.f32 %v595_v8, %v602_v44  ;;  %v605_v20 = vmax.f32 %v597_v9, %v604_v50  ;;  %v607_v37 = vmax.f32 %v599_v11, %v606_v36 }
  0x9f   : > { %v1467_v1 = vsel %vm472_vm0, %v1014_v62, %v1147_v12  ;;  %v1472_v10 = vsel %vm472_vm0, %v1015_v63, %v1148_v13  ;;  %v1477_v45 = vsel %vm472_vm0, %v1018_v0, %v1147_v12  ;;  %v1702_v46 = vunpack.c.h.bf16 %v1272_v49 }
  0xa0   : > { %v534_v15 = vsel %vm505_vm1, %v1467_v1, inf  ;;  %v536_v62 = vsel %vm505_vm1, %v1472_v10, inf  ;;  %v538_v48 = vsel %vm505_vm1, %v1477_v45, inf  ;;  %v608_v49 = vsel %vm505_vm1, %v1467_v1, -inf }
  0xa1   : > { %v1482_v47 = vsel %vm472_vm0, %v1702_v46, %v1148_v13  ;;  %v535_v53 = vmin.f32 %v527_v43, %v534_v15  ;;  %v537_v0 = vmin.f32 %v529_v16, %v536_v62  ;;  %v539_v12 = vmin.f32 %v531_v59, %v538_v48 }
  0xa2   : > { %v540_v63 = vsel %vm505_vm1, %v1482_v47, inf  ;;  %v610_v13 = vsel %vm505_vm1, %v1472_v10, -inf  ;;  %v612_v26 = vsel %vm505_vm1, %v1477_v45, -inf  ;;  %v614_v27 = vsel %vm505_vm1, %v1482_v47, -inf }
  0xa3   : > { %v541_v21 = vmin.f32 %v533_v17, %v540_v63  ;;  %v609_v3 = vmax.f32 %v601_v51, %v608_v49  ;;  %v611_v34 = vmax.f32 %v603_v52, %v610_v13  ;;  %v613_v35 = vmax.f32 %v605_v20, %v612_v26  ;;  %v1161_v20 = vpop.permute.xlu1 %1160 }
  0xa4   : > { %v615_v56 = vmax.f32 %v607_v37, %v614_v27  ;;  %v1703_v42 = vunpack.i.l.bf16 %v1382_v19  ;;  %v1704_v57 = vunpack.c.l.bf16 %v1279_v54  ;;  %v1705_v58 = vunpack.i.h.bf16 %v1382_v19 }
  0xa5   : > { %v1706_v43 = vunpack.c.h.bf16 %v1279_v54  ;;  %v1708_v17 = vunpack.c.l.bf16 %v1282_v55  ;;  %v1710_v9 = vunpack.c.h.bf16 %v1282_v55  ;;  %v1156_v55 = vpop.permute.xlu0 %1155  ;;  %v1163_v49 = vunpack.i.h.bf16 %v1161_v20 }
  0xa6   : > { %v1505_v18 = vsel %vm472_vm0, %v1704_v57, %v1703_v42  ;;  %v1707_v59 = vmov %v1703_v42  ;;  %v1709_v8 = vmov %v1705_v58  ;;  %v1162_v13 = vunpack.i.l.bf16 %v1161_v20 }
  0xa7   : > { %v1512_v16 = vsel %vm472_vm0, %v1706_v43, %v1705_v58  ;;  %v1519_v4 = vsel %vm472_vm0, %v1708_v17, %v1707_v59  ;;  %v1526_v11 = vsel %vm472_vm0, %v1710_v9, %v1709_v8  ;;  %v542_v54 = vsel %vm505_vm1, %v1505_v18, inf }
  0xa8   : > { %v544_v14 = vsel %vm505_vm1, %v1512_v16, inf  ;;  %v546_v44 = vsel %vm505_vm1, %v1519_v4, inf  ;;  %v548_v50 = vsel %vm505_vm1, %v1526_v11, inf  ;;  %v543_v36 = vmin.f32 %v535_v53, %v542_v54 }
  0xa9   : > { %v545_v51 = vmin.f32 %v537_v0, %v544_v14  ;;  %v547_v19 = vmin.f32 %v539_v12, %v546_v44  ;;  %v549_v52 = vmin.f32 %v541_v21, %v548_v50  ;;  %v616_v37 = vsel %vm505_vm1, %v1505_v18, -inf }
  0xaa   : > { %v618_v46 = vsel %vm505_vm1, %v1512_v16, -inf  ;;  %v620_v15 = vsel %vm505_vm1, %v1519_v4, -inf  ;;  %v622_v62 = vsel %vm505_vm1, %v1526_v11, -inf  ;;  %v617_v48 = vmax.f32 %v609_v3, %v616_v37 }
  0xab   : > { %v619_v63 = vmax.f32 %v611_v34, %v618_v46  ;;  %v621_v53 = vmax.f32 %v613_v35, %v620_v15  ;;  %v623_v0 = vmax.f32 %v615_v56, %v622_v62  ;;  %v1158_v12 = vunpack.i.h.bf16 %v1156_v55 }
  0xac   : > { %v1157_v21 = vunpack.i.l.bf16 %v1156_v55  ;;  %v661_v26 = vpack.c.bf16 %v1472_v10, %v1467_v1  ;;  %v653_v27 = vpack.c.bf16 %v1320_v23, %v1317_v22  ;;  %v662_v42 = vpack.c.bf16 %v1482_v47, %v1477_v45 }
  0xad   : > { %v654_v57 = vpack.c.bf16 %v1326_v25, %v1323_v24  ;;  %v1711_v3 = vunpack.c.l.bf16 %v1289_v60  ;;  %v1712_v35 = vunpack.c.h.bf16 %v1289_v60  ;;  %v1713_v58 = vunpack.c.l.bf16 %v1292_v61 }
  0xae   : > { %v1714_v59 = vunpack.c.h.bf16 %v1292_v61 }
  0xaf   : > { %v1555_v34 = vsel %vm472_vm0, %v1711_v3, %v1157_v21  ;;  %v1560_v56 = vsel %vm472_vm0, %v1712_v35, %v1158_v12  ;;  %v1565_v43 = vsel %vm472_vm0, %v1713_v58, %v1157_v21  ;;  %v1717_v3 = vunpack.c.l.bf16 %v1306_v7 }
  0xb0   : > { %v1570_v17 = vsel %vm472_vm0, %v1714_v59, %v1158_v12  ;;  %v550_v8 = vsel %vm505_vm1, %v1555_v34, inf  ;;  %v552_v9 = vsel %vm505_vm1, %v1560_v56, inf  ;;  %v554_v60 = vsel %vm505_vm1, %v1565_v43, inf }
  0xb1   : > { %v556_v54 = vsel %vm505_vm1, %v1570_v17, inf  ;;  %v551_v14 = vmin.f32 %v543_v36, %v550_v8  ;;  %v553_v44 = vmin.f32 %v545_v51, %v552_v9  ;;  %v555_v50 = vmin.f32 %v547_v19, %v554_v60 }
  0xb2   : > { %v557_v55 = vmin.f32 %v549_v52, %v556_v54  ;;  %v624_v61 = vsel %vm505_vm1, %v1555_v34, -inf  ;;  %v626_v20 = vsel %vm505_vm1, %v1560_v56, -inf  ;;  %v628_v37 = vsel %vm505_vm1, %v1565_v43, -inf }
  0xb3   : > { %v630_v46 = vsel %vm505_vm1, %v1570_v17, -inf  ;;  %v625_v15 = vmax.f32 %v617_v48, %v624_v61  ;;  %v627_v62 = vmax.f32 %v619_v63, %v626_v20  ;;  %v629_v12 = vmax.f32 %v621_v53, %v628_v37 }
  0xb4   : > { %v631_v21 = vmax.f32 %v623_v0, %v630_v46  ;;  %v1715_v36 = vunpack.c.l.bf16 %v1299_v2  ;;  %v1716_v19 = vunpack.c.h.bf16 %v1299_v2  ;;  %v1601_v35 = vsel %vm472_vm0, %v1717_v3, %v1162_v13 }
  0xb5   : > { %v1718_v48 = vunpack.c.h.bf16 %v1306_v7  ;;  %v562_v2 = vsel %vm505_vm1, %v1601_v35, inf  ;;  %v636_v60 = vsel %vm505_vm1, %v1601_v35, -inf  ;;  %v664_v3 = vpack.c.bf16 %v1526_v11, %v1519_v4 }
  0xb6   : > { %v1591_v51 = vsel %vm472_vm0, %v1715_v36, %v1162_v13  ;;  %v1596_v52 = vsel %vm472_vm0, %v1716_v19, %v1163_v49  ;;  %v563_v8 = vmin.f32 %v555_v50, %v562_v2  ;;  %v637_v37 = vmax.f32 %v629_v12, %v636_v60 }
  0xb7   : > { %v1606_v63 = vsel %vm472_vm0, %v1718_v48, %v1163_v49  ;;  %v558_v53 = vsel %vm505_vm1, %v1591_v51, inf  ;;  %v560_v0 = vsel %vm505_vm1, %v1596_v52, inf  ;;  %v632_v7 = vsel %vm505_vm1, %v1591_v51, -inf }
  0xb8   : > { %v564_v58 = vsel %vm505_vm1, %v1606_v63, inf  ;;  %v559_v59 = vmin.f32 %v551_v14, %v558_v53  ;;  %v561_v13 = vmin.f32 %v553_v44, %v560_v0  ;;  %v634_v49 = vsel %vm505_vm1, %v1596_v52, -inf }
  0xb9   : > { %v565_v9 = vmin.f32 %v557_v55, %v564_v58  ;;  %v638_v54 = vsel %vm505_vm1, %v1606_v63, -inf  ;;  %v633_v61 = vmax.f32 %v625_v15, %v632_v7  ;;  %v635_v20 = vmax.f32 %v627_v62, %v634_v49 }
  0xba   : > { %v639_v46 = vmax.f32 %v631_v21, %v638_v54  ;;  %v566_v14 = vmin.f32 %v559_v59, %v561_v13  ;;  %v663_v50 = vpack.c.bf16 %v1512_v16, %v1505_v18  ;;  %v655_v55 = vpack.c.bf16 %v1396_v5, %v1391_v6 }
  0xbb   : > { %v567_v44 = vmin.f32 %v563_v8, %v565_v9  ;;  %v640_v36 = vmax.f32 %v633_v61, %v635_v20  ;;  %v656_v48 = vpack.c.bf16 %v1406_v31, %v1401_v30  ;;  %v665_v62 = vpack.c.bf16 %v1560_v56, %v1555_v34 }
  0xbc   : > { %v641_v19 = vmax.f32 %v637_v37, %v639_v46  ;;  %v657_v12 = vpack.c.bf16 %v1356_v39, %v1353_v38  ;;  %v666_v18 = vpack.c.bf16 %v1570_v17, %v1565_v43  ;;  %v658_v5 = vpack.c.bf16 %v1362_v41, %v1359_v40 }
  0xbd   : > { %v568_v15 = vmin.f32 %v566_v14, %v567_v44  ;;  %v667_v6 = vpack.c.bf16 %v1596_v52, %v1591_v51  ;;  %v659_v30 = vpack.c.bf16 %v1436_v29, %v1431_v28  ;;  %v668_v4 = vpack.c.bf16 %v1606_v63, %v1601_v35 }
  0xbe   : > { %v642_v16 = vmax.f32 %v640_v36, %v641_v19  ;;  %v660_v38 = vpack.c.bf16 %v1446_v33, %v1441_v32 }
  0xbf   : > { %v569_v31 = vrot.slane %v568_v15, 4 }
  0xc0   : > { %v643_v39 = vrot.slane %v642_v16, 4 }
  0xc1   : > { %v570_v11 = vmin.f32 %v568_v15, %v569_v31 }
  0xc2   : > { %v644_v34 = vmax.f32 %v642_v16, %v643_v39 }
  0xc3   : > { %v571_v56 = vrot.slane %v570_v11, 2 }
  0xc4   : > { %v645_v43 = vrot.slane %v644_v34, 2 }
  0xc5   : > { %v572_v17 = vmin.f32 %v570_v11, %v571_v56 }
  0xc6   : > { %v646_v40 = vmax.f32 %v644_v34, %v645_v43 }
  0xc7   : > { %v573_v41 = vrot.slane %v572_v17, 1 }
  0xc8   : > { %v647_v21 = vrot.slane %v646_v40, 1 }
  0xc9   : > { %v574_v51 = vmin.f32 %v572_v17, %v573_v41 }
  0xca   : > { %v648_v52 = vmax.f32 %v646_v40, %v647_v21 }
  0xcb   : > { %v575_v28 = vsel %vm505_vm1, %v574_v51, inf }
  0xcc   : > { %v649_v29 = vsel %vm505_vm1, %v648_v52, -inf  ;;  %576 = vmin.xlane.f32.xlu0 %v575_v28 }
  0xcd   : > { %650 = vmax.xlane.f32.xlu1 %v649_v29 }
  0xf9   : > { %669 = vxpose.xlu0.c.b16.start [1/8] (narrow) %v653_v27, 96 }
  0xfa   : > { %685 = vxpose.xlu1.c.b16.start [1/8] (narrow) %v661_v26, 96 }
  0xfd   : > { %670 = vxpose.xlu0.c.b16.cont [2/8] (narrow) %v654_v57, 96 }
  0xfe   : > { %686 = vxpose.xlu1.c.b16.cont [2/8] (narrow) %v662_v42, 96 }
 0x101   : > { %671 = vxpose.xlu0.c.b16.cont [3/8] (narrow) %v655_v55, 96 }
 0x102   : > { %687 = vxpose.xlu1.c.b16.cont [3/8] (narrow) %v663_v50, 96 }
 0x105   : > { %672 = vxpose.xlu0.c.b16.cont [4/8] (narrow) %v656_v48, 96 }
 0x106   : > { %688 = vxpose.xlu1.c.b16.cont [4/8] (narrow) %v664_v3, 96 }
 0x109   : > { %673 = vxpose.xlu0.c.b16.cont [5/8] (narrow) %v657_v12, 96 }
 0x10a   : > { %689 = vxpose.xlu1.c.b16.cont [5/8] (narrow) %v665_v62, 96 }
 0x10d   : > { %674 = vxpose.xlu0.c.b16.cont [6/8] (narrow) %v658_v5, 96 }
 0x10e   : > { %690 = vxpose.xlu1.c.b16.cont [6/8] (narrow) %v666_v18, 96 }
 0x111   : > { %675 = vxpose.xlu0.c.b16.cont [7/8] (narrow) %v659_v30, 96 }
 0x112   : > { %691 = vxpose.xlu1.c.b16.cont [7/8] (narrow) %v667_v6, 96 }
 0x115   : > { %676 = vxpose.xlu0.c.b16.end [8/8] (narrow) %v660_v38, 96 }
 0x116   : > { %692 = vxpose.xlu1.c.b16.end [8/8] (narrow) %v668_v4, 96 }
 0x159   : > { %v577_v22 = vpop.xlane.xlu0 %576 }
 0x15a   : > { %v651_v23 = vpop.xlane.xlu1 %650  ;;  %579 = vst.msk [vmem:[%s305_s30] sm:$0x1] %vm578_vm2, %v577_v22 }
 0x15b   : > { %652 = vst.msk [vmem:[%s311_s7] sm:$0x1] %vm578_vm2, %v651_v23 }
 0x15f   : > { %v677_v24 = vpop.trf.xlu0 }
 0x160   : > { %v693_v25 = vpop.trf.xlu1 }
 0x161   : > { %v964_v32 = vcombine.low %v677_v24, %v693_v25  ;;  %v965_v33 = vcombine.high %v677_v24, %v693_v25 }
 0x163   : > { %761 = vst [vmem:[%s1674_s11] sm:$0xff] %v964_v32  ;;  %762 = vst [vmem:[%s1674_s11 + $0x8] sm:$0xff] %v965_v33  ;;  %v678_v1 = vpop.trf.xlu0 }
 0x164   : > { %v694_v10 = vpop.trf.xlu1 }
 0x165   : > { %v966_v45 = vcombine.low %v678_v1, %v694_v10  ;;  %v967_v47 = vcombine.high %v678_v1, %v694_v10 }
 0x167   : > { %763 = vst [vmem:[%s1674_s11 + $0x10] sm:$0xff] %v966_v45  ;;  %764 = vst [vmem:[%s1674_s11 + $0x18] sm:$0xff] %v967_v47  ;;  %v679_v26 = vpop.trf.xlu0 }
 0x168   : > { %v695_v27 = vpop.trf.xlu1 }
 0x169   : > { %v968_v42 = vcombine.low %v679_v26, %v695_v27  ;;  %v969_v57 = vcombine.high %v679_v26, %v695_v27 }
 0x16b   : > { %765 = vst [vmem:[%s1674_s11 + $0x20] sm:$0xff] %v968_v42  ;;  %766 = vst [vmem:[%s1674_s11 + $0x28] sm:$0xff] %v969_v57  ;;  %v680_v35 = vpop.trf.xlu0 }
 0x16c   : > { %v696_v63 = vpop.trf.xlu1 }
 0x16d   : > { %v970_v53 = vcombine.low %v680_v35, %v696_v63  ;;  %v971_v0 = vcombine.high %v680_v35, %v696_v63 }
 0x16f   : > { %767 = vst [vmem:[%s1674_s11 + $0x30] sm:$0xff] %v970_v53  ;;  %768 = vst [vmem:[%s1674_s11 + $0x38] sm:$0xff] %v971_v0  ;;  %v681_v2 = vpop.trf.xlu0 }
 0x170   : > { %v697_v58 = vpop.trf.xlu1 }
 0x171   : > { %v972_v59 = vcombine.low %v681_v2, %v697_v58  ;;  %v973_v13 = vcombine.high %v681_v2, %v697_v58 }
 0x173   : > { %769 = vst [vmem:[%s1674_s11 + $0x40] sm:$0xff] %v972_v59  ;;  %770 = vst [vmem:[%s1674_s11 + $0x48] sm:$0xff] %v973_v13  ;;  %v682_v8 = vpop.trf.xlu0 }
 0x174   : > { %v698_v9 = vpop.trf.xlu1 }
 0x175   : > { %v974_v7 = vcombine.low %v682_v8, %v698_v9  ;;  %v975_v49 = vcombine.high %v682_v8, %v698_v9 }
 0x177   : > { %771 = vst [vmem:[%s1674_s11 + $0x50] sm:$0xff] %v974_v7  ;;  %772 = vst [vmem:[%s1674_s11 + $0x58] sm:$0xff] %v975_v49 }
 0x178 PF: > { %s15_s17 = sadd.s32 1, %s1186_s17   ;;  %s1719_s15 = smov %s1182_s16 }
 0x179   : > { %p12_p5 = scmp.ge.s32.totalorder %s15_s17, 4   ;;  %s1720_s16 = smov %s1722_s18 }
 0x17b   :  { %14 = sbr.rel (!%p12_p5) target bundleno = 2 (0x2), region = 85 }

// kernel: padim_forward.8
= control target key start
LH: loop header
LB: loop body
LE: loop exit
PB: predicated region body
PF: predicated region fallthrough
CT: control target
= control target key end

     0   :  { %s3447_s18 = smov 0   ;;  %s4142_s0 = inlined_call_operand.vmem [shape: bf16[2,108,64], index: 0, kind: input, shape index: {}]   ;;  %s4143_s1 = inlined_call_operand.vmem [shape: bf16[54,64,256], index: 1, kind: input, shape index: {}]   ;;  %s4144_s2 = inlined_call_operand.vmem [shape: f32[6,1,256], index: 2, kind: input, shape index: {}]   ;;  %s4145_s3 = inlined_call_operand.vmem [shape: bf16[6,256,64], index: 3, kind: input, shape index: {}]   ;;  %s4146_s4 = inlined_call_operand.vmem [shape: f32[6,1,64], index: 4, kind: input, shape index: {}]   ;;  %s4147_s5 = inlined_call_operand.vmem [shape: bf16[2,108,64], index: 5, kind: output, shape index: {}]  }
   0x1 LB: > { %s2693_s19 = sadd.s32 4294967295, %s3410_s18   ;;  %p2697_p0 = scmp.ge.s32.totalorder %s3410_s18, 1  ;;  %s3410_s18 = sphi %s3447_s18, %s15_s18  }
   0x2   : > { %p187_p1 = scmp.lt.s32.totalorder %s3410_s18, 3 }
   0x4   : > { %p188_p2 = pnand %p2697_p0, %p187_p1 }
   0x5   : > { %p215_p3 = scmp.lt.s32.totalorder (!%p188_p2), %s2693_s19, 1  ;;  %v271_v0 = vlaneseq (!%p188_p2)  ;;  %vm4149_vm0 = vcmask (!%p188_p2), 523264   ;;  %vm4148_vm1 = vcmask (!%p188_p2), 519168   ;;  %s3700_s27 = smov (!%p188_p2), 0  }
   0x6   : > { %191 = sbr.rel (%p188_p2) target bundleno = 748 (0x2ec), region = 40 }
   0x7   : > { %v3455_v1 = vshrl.u32 (!%p188_p2), %v271_v0, 7 }
   0x9   : > { %v3458_v2 = vadd.s32 (!%p188_p2), 8, %v3455_v1  ;;  %v3461_v3 = vadd.s32 (!%p188_p2), 16, %v3455_v1  ;;  %v3464_v4 = vadd.s32 (!%p188_p2), 24, %v3455_v1  ;;  %v3467_v5 = vadd.s32 (!%p188_p2), 32, %v3455_v1 }
   0xa   : > { %v3478_v6 = vadd.s32 (!%p188_p2), 40, %v3455_v1  ;;  %v3481_v7 = vadd.s32 (!%p188_p2), 48, %v3455_v1  ;;  %v3484_v8 = vmul.u32.u64.low (!%p188_p2), 3435973837, %v3455_v1  ;;  %v3485_v9 = vmul.u32.u64.high 3435973837, %v3455_v1, %v3484_v8 }
   0xb   : > { %v3488_v13 = vadd.s32 (!%p188_p2), 56, %v3455_v1  ;;  %v3491_v14 = vmul.u32.u64.low (!%p188_p2), 3435973837, %v3458_v2  ;;  %v3492_v15 = vmul.u32.u64.high 3435973837, %v3458_v2, %v3491_v14  ;;  %v280_v41 = vadd.s32 (!%p188_p2), 64, %v3455_v1 }
   0xc   : > { %v288_v35 = vshrl.u32 (!%p188_p2), %v3485_v9, 3  ;;  %v3509_v37 = vmul.u32.u64.low (!%p188_p2), 3435973837, %v3461_v3  ;;  %v3510_v38 = vmul.u32.u64.high 3435973837, %v3461_v3, %v3509_v37  ;;  %v281_v42 = vadd.s32 (!%p188_p2), 72, %v3455_v1 }
   0xd   : > { %s4256_s19 = smov (!%p215_p3, %s2693_s19), 1  ;;  %v299_v36 = vshrl.u32 %v3492_v15, 3  ;;  %v3513_v39 = vmul.u32.u64.low 3435973837, %v3464_v4  ;;  %v3514_v40 = vmul.u32.u64.high 3435973837, %v3464_v4, %v3513_v39 }
   0xe   : > { %s3188_s20 = smul.u32 56, %s4256_s19  ;;  %v289_v43 = vmul.u32 10, %v288_v35  ;;  %v3521_v45 = vmul.u32.u64.low 3435973837, %v3467_v5  ;;  %v3522_v46 = vmul.u32.u64.high 3435973837, %v3467_v5, %v3521_v45  ;;  %v310_v53 = vshrl.u32 %v3510_v38, 3 }
   0xf   : > { %v300_v44 = vmul.u32 10, %v299_v36  ;;  %v3525_v47 = vmul.u32.u64.low 3435973837, %v3478_v6  ;;  %v3526_v48 = vmul.u32.u64.high 3435973837, %v3478_v6, %v3525_v47  ;;  %v321_v54 = vshrl.u32 %v3514_v40, 3 }
  0x10   : > { %s219_s23 = scalar_lea.vmem %s4142_s0, %s3188_s20  ;;  %s3475_s26 = scalar_lea.vmem %s4147_s5, %s3188_s20  ;;  %v3529_v49 = vsub.s32 %v3455_v1, %v289_v43  ;;  %v3535_v51 = vmul.u32.u64.low 3435973837, %v3481_v7  ;;  %v3536_v52 = vmul.u32.u64.high 3435973837, %v3481_v7, %v3535_v51  ;;  %v311_v61 = vmul.u32 10, %v310_v53 }
  0x11   : > { %v2954_v10 = vld [vmem:[%s219_s23] sm:$0xff]   ;;  %v2977_v11 = vld [vmem:[%s219_s23 + $0x8] sm:$0xff]   ;;  %v2978_v12 = vld [vmem:[%s219_s23 + $0x10] sm:$0xff]   ;;  %v3532_v50 = vsub.s32 %v3458_v2, %v300_v44  ;;  %v3541_v55 = vmul.u32.u64.low 3435973837, %v3488_v13  ;;  %v3542_v56 = vmul.u32.u64.high 3435973837, %v3488_v13, %v3541_v55  ;;  %v322_v62 = vmul.u32 10, %v321_v54 }
  0x12   : > { %v2955_v16 = vunpack.c.l.bf16 %v2954_v10  ;;  %v2956_v17 = vunpack.c.h.bf16 %v2954_v10  ;;  %v2959_v18 = vunpack.c.l.bf16 %v2977_v11  ;;  %v2960_v19 = vunpack.c.h.bf16 %v2977_v11  ;;  %v2979_v20 = vld [vmem:[%s219_s23 + $0x18] sm:$0xff]   ;;  %v2980_v21 = vld [vmem:[%s219_s23 + $0x20] sm:$0xff]   ;;  %v2981_v22 = vld [vmem:[%s219_s23 + $0x28] sm:$0xff]  }
  0x13   : > { %v2963_v23 = vunpack.c.l.bf16 %v2978_v12  ;;  %v2964_v24 = vunpack.c.h.bf16 %v2978_v12  ;;  %v2967_v25 = vunpack.c.l.bf16 %v2979_v20  ;;  %v2968_v26 = vunpack.c.h.bf16 %v2979_v20  ;;  %v239_v27 = vld [vmem:[%s219_s23 + $0x30] sm:$0xf]  ;;  %v240_v28 = vld [vmem:[%s219_s23 + $0x34] sm:$0x3] }
  0x14   : > { %256 = vst.msk [vmem:[#allocation2] sm:$0xff] %vm4149_vm0, %v2955_v16  ;;  %257 = vst.msk [vmem:[#allocation2 + $0x8] sm:$0xff] %vm4149_vm0, %v2956_v17  ;;  %v2971_v29 = vunpack.c.l.bf16 %v2980_v21  ;;  %v2972_v30 = vunpack.c.h.bf16 %v2980_v21  ;;  %v2975_v31 = vunpack.c.l.bf16 %v2981_v22  ;;  %v2976_v32 = vunpack.c.h.bf16 %v2981_v22 }
  0x15   : > { %258 = vst.msk [vmem:[#allocation2 + $0x10] sm:$0xff] %vm4149_vm0, %v2959_v18  ;;  %259 = vst.msk [vmem:[#allocation2 + $0x18] sm:$0xff] %vm4149_vm0, %v2960_v19  ;;  %v253_v33 = vunpack.c.l.bf16 %v239_v27  ;;  %v254_v34 = vunpack.c.l.bf16 %v240_v28  ;;  %v3544_v57 = vmul.u32.u64.low 3435973837, %v280_v41  ;;  %v3545_v58 = vmul.u32.u64.high 3435973837, %v280_v41, %v3544_v57 }
  0x16   : > { %260 = vst.msk [vmem:[#allocation2 + $0x20] sm:$0xff] %vm4149_vm0, %v2963_v23  ;;  %261 = vst.msk [vmem:[#allocation2 + $0x28] sm:$0xff] %vm4149_vm0, %v2964_v24  ;;  %v3547_v59 = vmul.u32.u64.low 3435973837, %v281_v42  ;;  %v3548_v60 = vmul.u32.u64.high 3435973837, %v281_v42, %v3547_v59  ;;  %v332_v63 = vshrl.u32 %v3522_v46, 3  ;;  %v343_v0 = vshrl.u32 %v3526_v48, 3 }
  0x17   : > { %262 = vst.msk [vmem:[#allocation2 + $0x30] sm:$0xff] %vm4149_vm0, %v2967_v25  ;;  %263 = vst.msk [vmem:[#allocation2 + $0x38] sm:$0xff] %vm4149_vm0, %v2968_v26  ;;  %v354_v2 = vshrl.u32 %v3536_v52, 3  ;;  %vm392_vm2 = vcmp.ne.s32.totalorder %v3529_v49, 0  ;;  %vm393_vm3 = vcmp.ne.s32.totalorder %v3532_v50, 0  ;;  %vm402_vm4 = vcmp.lt.s32.totalorder %v3529_v49, 0 }
  0x18   : > { %264 = vst.msk [vmem:[#allocation2 + $0x40] sm:$0xff] %vm4149_vm0, %v2971_v29  ;;  %265 = vst.msk [vmem:[#allocation2 + $0x48] sm:$0xff] %vm4149_vm0, %v2972_v30  ;;  %v3557_v8 = vsub.s32 %v3461_v3, %v311_v61  ;;  %v3560_v9 = vsub.s32 %v3464_v4, %v322_v62  ;;  %v333_v10 = vmul.u32 10, %v332_v63  ;;  %v344_v11 = vmul.u32 10, %v343_v0 }
  0x19   : > { %266 = vst.msk [vmem:[#allocation2 + $0x50] sm:$0xff] %vm4149_vm0, %v2975_v31  ;;  %267 = vst.msk [vmem:[#allocation2 + $0x58] sm:$0xff] %vm4149_vm0, %v2976_v32  ;;  %v355_v12 = vmul.u32 10, %v354_v2  ;;  %v365_v14 = vshrl.u32 %v3542_v56, 3  ;;  %v376_v15 = vshrl.u32 %v3545_v58, 3  ;;  %v387_v16 = vshrl.u32 %v3548_v60, 3 }
  0x1a   : > { %268 = vst.msk [vmem:[#allocation2 + $0x60] sm:$0xff] %vm4149_vm0, %v253_v33  ;;  %v334_v17 = vsub.s32 %v3467_v5, %v333_v10  ;;  %v345_v18 = vsub.s32 %v3478_v6, %v344_v11  ;;  %vm394_vm5 = vcmp.ne.s32.totalorder %v3557_v8, 0  ;;  %vm395_vm6 = vcmp.ne.s32.totalorder %v3560_v9, 0  ;;  %vm3575_vm8 = vmand %vm402_vm4, %vm392_vm2 }
  0x1b   : > { %270 = vst.msk [vmem:[#allocation2 + $0x68] sm:$0xf] %vm4148_vm1, %v254_v34  ;;  %v356_v3 = vsub.s32 %v3481_v7, %v355_v12  ;;  %v366_v4 = vmul.u32 10, %v365_v14  ;;  %v377_v19 = vmul.u32 10, %v376_v15  ;;  %vm403_vm7 = vcmp.lt.s32.totalorder %v3532_v50, 0 }
  0x1c   : > { %v4150_v20 = vmov 0  ;;  %v388_v5 = vmul.u32 10, %v387_v16  ;;  %vm396_vm9 = vcmp.ne.s32.totalorder %v334_v17, 0  ;;  %vm404_vm11 = vcmp.lt.s32.totalorder %v3557_v8, 0  ;;  %vm3582_vm12 = vmand %vm403_vm7, %vm393_vm3 }
  0x1d   : > { %v4151_v20 = vsel %vm3575_vm8, 4294967295, %v4150_v20  ;;  %v4152_v6 = vmov 0  ;;  %v367_v7 = vsub.s32 %v3488_v13, %v366_v4  ;;  %v378_v21 = vsub.s32 %v280_v41, %v377_v19  ;;  %vm3590_vm15 = vmand %vm404_vm11, %vm394_vm5 }
  0x1e   : > { %v4153_v6 = vsel %vm3582_vm12, 4294967295, %v4152_v6  ;;  %vm405_vm14 = vcmp.lt.s32.totalorder %v3560_v9, 0  ;;  %v4154_v22 = vmov 0  ;;  %v389_v23 = vsub.s32 %v281_v42, %v388_v5 }
  0x1f   : > { %v4155_v22 = vsel %vm3590_vm15, 4294967295, %v4154_v22  ;;  %vm406_vm2 = vcmp.lt.s32.totalorder %v334_v17, 0  ;;  %vm407_vm4 = vcmp.lt.s32.totalorder %v345_v18, 0  ;;  %vm408_vm1 = vcmp.lt.s32.totalorder %v356_v3, 0  ;;  %vm3596_vm3 = vmand %vm405_vm14, %vm395_vm6 }
  0x20   : > { %vm399_vm7 = vcmp.ne.s32.totalorder %v367_v7, 0  ;;  %vm400_vm0 = vcmp.ne.s32.totalorder %v378_v21, 0  ;;  %vm409_vm13 = vcmp.lt.s32.totalorder %v367_v7, 0  ;;  %vm410_vm10 = vcmp.lt.s32.totalorder %v378_v21, 0  ;;  %vm3601_vm12 = vmand %vm406_vm2, %vm396_vm9 }
  0x21   : > { %vm401_vm5 = vcmp.ne.s32.totalorder %v389_v23, 0  ;;  %vm411_vm11 = vcmp.lt.s32.totalorder %v389_v23, 0  ;;  %vm4160_vm15 = vcmp.ne.s32.totalorder %v345_v18, 0  ;;  %v422_v26 = vadd.s32 10, %v3529_v49  ;;  %vm3620_vm9 = vmand %vm409_vm13, %vm399_vm7 }
  0x22   : > { %vm3606_vm8 = vmand %vm407_vm4, %vm4160_vm15  ;;  %v423_v27 = vadd.s32 10, %v3532_v50  ;;  %vm4163_vm6 = vcmp.ne.s32.totalorder %v356_v3, 0  ;;  %v424_v29 = vadd.s32 10, %v3557_v8  ;;  %v425_v30 = vadd.s32 10, %v3560_v9 }
  0x23   : > { %vm3613_vm14 = vmand %vm408_vm1, %vm4163_vm6  ;;  %v426_v31 = vadd.s32 10, %v334_v17  ;;  %v427_v32 = vadd.s32 10, %v345_v18  ;;  %v428_v34 = vadd.s32 10, %v356_v3  ;;  %v429_v35 = vadd.s32 10, %v367_v7 }
  0x24   : > { %v430_v36 = vadd.s32 10, %v378_v21  ;;  %v431_v37 = vadd.s32 10, %v389_v23  ;;  %vm3626_vm1 = vmand %vm410_vm10, %vm400_vm0  ;;  %vm4170_vm15 = vnez %v4151_v20  ;;  %vm4171_vm13 = vnez %v4153_v6 }
  0x25   : > { %v432_v39 = vsel %vm4170_vm15, %v422_v26, %v3529_v49  ;;  %v433_v40 = vsel %vm4171_vm13, %v423_v27, %v3532_v50  ;;  %vm4172_vm2 = vnez %v4155_v22  ;;  %v435_v42 = vsel %vm3596_vm3, %v425_v30, %v3560_v9  ;;  %vm3644_vm0 = vmand %vm411_vm11, %vm401_vm5 }
  0x26   : > { %v434_v41 = vsel %vm4172_vm2, %v424_v29, %v3557_v8  ;;  %v436_v44 = vsel %vm3601_vm12, %v426_v31, %v334_v17  ;;  %v437_v45 = vsel %vm3606_vm8, %v427_v32, %v345_v18  ;;  %v438_v46 = vsel %vm3613_vm14, %v428_v34, %v356_v3 }
  0x27   : > { %v439_v47 = vsel %vm3620_vm9, %v429_v35, %v367_v7  ;;  %v440_v48 = vsel %vm3626_vm1, %v430_v36, %v378_v21  ;;  %v441_v49 = vsel %vm3644_vm0, %v431_v37, %v389_v23  ;;  %vm3660_vm10 = vcmp.lt.s32.totalorder %v432_v39, 8 }
  0x28   : > { %vm3664_vm12 = vcmp.lt.s32.totalorder %v433_v40, 8  ;;  %vm3668_vm8 = vcmp.lt.s32.totalorder %v434_v41, 8  ;;  %vm3672_vm4 = vcmp.lt.s32.totalorder %v435_v42, 8  ;;  %vm3676_vm3 = vcmp.lt.s32.totalorder %v436_v44, 8 }
  0x29   : > { %vm3680_vm7 = vcmp.lt.s32.totalorder %v437_v45, 8  ;;  %vm3684_vm5 = vcmp.lt.s32.totalorder %v438_v46, 8  ;;  %vm3688_vm11 = vcmp.lt.s32.totalorder %v439_v47, 8  ;;  %vm3692_vm6 = vcmp.lt.s32.totalorder %v440_v48, 8 }
  0x2a   : > { %vm3696_vm14 = vcmp.lt.s32.totalorder %v441_v49, 8 }
  0x2b LB: >> { %v3416_v60 = vmov 0   ;;  %s2937_s28 = smul.u32 576, %s3414_s27  ;;  %v485_v18 = vld [vmem:[#allocation2 + $0x1] sm:$0xff]  ;;  %v486_v3 = vld [vmem:[#allocation2 + $0x9] sm:$0xff]  ;;  %v1159_v20 = vld [vmem:[#allocation2 + $0x13] sm:$0xff]  ;;  %vm4195_vm9 = vcmask 523264   ;;  %s2282_s17 = scalar_lea.vmem %s4146_s4, %s3414_s27  ;;  %s3414_s27 = sphi %s3700_s27, %s457_s27  }
  0x2c   : >> { %599 = vmatprep.mubr.bf16.mxu1 %v3416_v60  ;;  %1272 = vmatprep.mubr.bf16.mxu0 %v3416_v60  ;;  %v1158_v4 = vld [vmem:[#allocation2 + $0xb] sm:$0xff]  ;;  %v495_v7 = vpack.c.bf16 %v486_v3, %v485_v18  ;;  %v488_v25 = vld [vmem:[#allocation2 + $0x19] sm:$0xff]  ;;  %vm4196_vm1 = vmmov %vm4195_vm9  ;;  %s2938_s7 = sshll.u32 %s3414_s27, 7  ;;  %s2891_s11 = sshll.u32 %s3414_s27, 1 }
  0x2d   : >> { %s3711_s6 = scalar_lea.vmem %s4143_s1, %s2937_s28  ;;  %v1168_v21 = vpack.c.bf16 %v1159_v20, %v1158_v4  ;;  %v487_v13 = vld [vmem:[#allocation2 + $0x11] sm:$0xff]  ;;  %v1160_v27 = vld [vmem:[#allocation2 + $0x1b] sm:$0xff]  ;;  %v1161_v29 = vld [vmem:[#allocation2 + $0x23] sm:$0xff]  ;;  %s2249_s10 = scalar_lea.vmem %s4145_s3, %s2938_s7 }
  0x2e   : >> { %v3226_v61 = vld [vmem:[%s3711_s6 + $0x44] ss:$8 sps:$4 sm:$0xff]   ;;  %v3230_v63 = vld [vmem:[%s3711_s6 + $0x40] ss:$8 sps:$4 sm:$0xff]   ;;  %v3232_v2 = vld [vmem:[%s3711_s6 + $0x54] ss:$8 sps:$4 sm:$0xff]   ;;  %v496_v33 = vpack.c.bf16 %v488_v25, %v487_v13  ;;  %v1169_v34 = vpack.c.bf16 %v1161_v29, %v1160_v27  ;;  %s2084_s14 = scalar_lea.vmem %s4144_s2, %s2891_s11 }
  0x2f   : >> { %v3228_v62 = vld [vmem:[%s3711_s6 + $0x104] ss:$8 sps:$4 sm:$0xff]   ;;  %567 = vmatprep.subr.bf16.mxu1 %v3226_v61  ;;  %v3231_v0 = vld [vmem:[%s3711_s6 + $0x100] ss:$8 sps:$4 sm:$0xff]   ;;  %v3234_v8 = vld [vmem:[%s3711_s6 + $0x114] ss:$8 sps:$4 sm:$0xff]  }
  0x30   : >> { %1240 = vmatprep.subr.bf16.mxu0 %v3228_v62  ;;  %568 = vmatpush1.bf16.msra.mxu1 %v3230_v63  ;;  %v3236_v9 = vld [vmem:[%s3711_s6 + $0x50] ss:$8 sps:$4 sm:$0xff]   ;;  %v3238_v11 = vld [vmem:[%s3711_s6 + $0x64] ss:$8 sps:$4 sm:$0xff]   ;;  %v3242_v14 = vld [vmem:[%s3711_s6 + $0x60] ss:$8 sps:$4 sm:$0xff]  }
  0x31   : >> { %1241 = vmatpush1.bf16.msra.mxu0 %v3231_v0  ;;  %569 = vmatprep.subr.bf16.mxu1 %v3232_v2  ;;  %v3237_v10 = vld [vmem:[%s3711_s6 + $0x110] ss:$8 sps:$4 sm:$0xff]   ;;  %v3240_v12 = vld [vmem:[%s3711_s6 + $0x124] ss:$8 sps:$4 sm:$0xff]   ;;  %v3243_v15 = vld [vmem:[%s3711_s6 + $0x120] ss:$8 sps:$4 sm:$0xff]  }
  0x32   : >> { %1242 = vmatprep.subr.bf16.mxu0 %v3234_v8  ;;  %v3244_v16 = vld [vmem:[%s3711_s6 + $0x74] ss:$8 sps:$4 sm:$0xff]   ;;  %v3248_v19 = vld [vmem:[%s3711_s6 + $0x70] ss:$8 sps:$4 sm:$0xff]   ;;  %v3252_v6 = vld [vmem:[%s3711_s6 + $0x144] ss:$8 sps:$4 sm:$0xff]  }
  0x33   : >> { %v3246_v17 = vld [vmem:[%s3711_s6 + $0x134] ss:$8 sps:$4 sm:$0xff]   ;;  %v3249_v5 = vld [vmem:[%s3711_s6 + $0x130] ss:$8 sps:$4 sm:$0xff]   ;;  %v3261_v22 = vld [vmem:[%s3711_s6 + $0x4] ss:$8 sps:$4 sm:$0xff]  }
  0x34   : >> { %570 = vmatpush1.bf16.msra.mxu1 %v3236_v9  ;;  %v3250_v23 = vld [vmem:[%s3711_s6 + $0x140] ss:$8 sps:$4 sm:$0xff]   ;;  %v3255_v24 = vld [vmem:[%s3711_s6 + $0x154] ss:$8 sps:$4 sm:$0xff]   ;;  %v3253_v30 = vld [vmem:[%s3711_s6 + $0x150] ss:$8 sps:$4 sm:$0xff]  }
  0x35   : >> { %1243 = vmatpush1.bf16.msra.mxu0 %v3237_v10  ;;  %571 = vmatprep.subr.bf16.mxu1 %v3238_v11  ;;  %v3259_v26 = vld [vmem:[%s3711_s6] ss:$8 sps:$4 sm:$0xff]   ;;  %v3264_v28 = vld [vmem:[%s3711_s6 + $0x14] ss:$8 sps:$4 sm:$0xff]   ;;  %v3258_v31 = vld [vmem:[%s3711_s6 + $0x164] ss:$8 sps:$4 sm:$0xff]  }
  0x36   : >> { %1244 = vmatprep.subr.bf16.mxu0 %v3240_v12  ;;  %v3262_v32 = vld [vmem:[%s3711_s6 + $0x10] ss:$8 sps:$4 sm:$0xff]   ;;  %v3256_v35 = vld [vmem:[%s3711_s6 + $0x160] ss:$8 sps:$4 sm:$0xff]   ;;  %v3270_v36 = vld [vmem:[%s3711_s6 + $0x24] ss:$8 sps:$4 sm:$0xff]  }
  0x37   : >> { %v489_v37 = vld [vmem:[#allocation2 + $0x21] sm:$0xff]  ;;  %v3267_v38 = vld [vmem:[%s3711_s6 + $0x174] ss:$8 sps:$4 sm:$0xff]   ;;  %vm4197_vm15 = vmmov %vm4196_vm1  ;;  %s457_s27 = sadd.s32 1, %s3414_s27  }
  0x38   : >> { %572 = vmatpush1.bf16.msra.mxu1 %v3242_v14  ;;  %v3268_v39 = vld [vmem:[%s3711_s6 + $0x20] ss:$8 sps:$4 sm:$0xff]   ;;  %vm4198_vm13 = vmmov %vm4196_vm1  ;;  %v3273_v40 = vld [vmem:[%s3711_s6 + $0x34] ss:$8 sps:$4 sm:$0xff]   ;;  %p454_p4 = scmp.ge.s32.totalorder %s457_s27, 6  }
  0x39   : >> { %1245 = vmatpush1.bf16.msra.mxu0 %v3243_v15  ;;  %573 = vmatprep.subr.bf16.mxu1 %v3244_v16  ;;  %v490_v41 = vld [vmem:[#allocation2 + $0x29] sm:$0xff]  ;;  %v1163_v43 = vld [vmem:[#allocation2 + $0x33] sm:$0xff]  ;;  %vm4199_vm2 = vmmov %vm4196_vm1 }
  0x3a   : >> { %1246 = vmatprep.subr.bf16.mxu0 %v3246_v17  ;;  %v1162_v42 = vld [vmem:[#allocation2 + $0x2b] sm:$0xff]  ;;  %v497_v47 = vpack.c.bf16 %v490_v41, %v489_v37  ;;  %vm4200_vm0 = vmmov %vm4196_vm1  ;;  %v492_v62 = vld [vmem:[#allocation2 + $0x39] sm:$0xff] }
  0x3b   : >> { %v3265_v44 = vld [vmem:[%s3711_s6 + $0x170] ss:$8 sps:$4 sm:$0xff]   ;;  %v3276_v46 = vld [vmem:[%s3711_s6 + $0x184] ss:$8 sps:$4 sm:$0xff]   ;;  %v1170_v48 = vpack.c.bf16 %v1163_v43, %v1162_v42  ;;  %v3274_v20 = vld [vmem:[%s3711_s6 + $0x180] ss:$8 sps:$4 sm:$0xff]  }
  0x3c   : >> { %574 = vmatpush1.bf16.msra.mxu1 %v3248_v19  ;;  %v3271_v45 = vld [vmem:[%s3711_s6 + $0x30] ss:$8 sps:$4 sm:$0xff]   ;;  %v3285_v49 = vld [vmem:[%s3711_s6 + $0x84] ss:$8 sps:$4 sm:$0xff]   ;;  %v3280_v29 = vld [vmem:[%s3711_s6 + $0x1a0] ss:$8 sps:$4 sm:$0xff]  }
  0x3d   : >> { %1247 = vmatpush1.bf16.msra.mxu0 %v3249_v5  ;;  %705 = vmatprep.subr.bf16.mxu1 %v3261_v22  ;;  %v491_v61 = vld [vmem:[#allocation2 + $0x31] sm:$0xff]  ;;  %v1164_v63 = vld [vmem:[#allocation2 + $0x3b] sm:$0xff]  ;;  %v1165_v0 = vld [vmem:[#allocation2 + $0x43] sm:$0xff] }
  0x3e   : >> { %1425 = vmatprep.subr.bf16.mxu0 %v3252_v6  ;;  %v498_v2 = vpack.c.bf16 %v492_v62, %v491_v61  ;;  %v1171_v8 = vpack.c.bf16 %v1165_v0, %v1164_v63  ;;  %v493_v9 = vld [vmem:[#allocation2 + $0x41] sm:$0xff]  ;;  %v494_v10 = vld [vmem:[#allocation2 + $0x49] sm:$0xff]  ;;  %v1167_v12 = vld [vmem:[#allocation2 + $0x53] sm:$0xff] }
  0x3f   : >> { %2719 = vmatmul.mubr.msk.bf16.vlgmr.msra.gmra.mrb[0].mxu1 %vm4195_vm9, %v495_v7  ;;  %vm4201_vm9 = vmmov %vm4200_vm0  ;;  %v1166_v11 = vld [vmem:[#allocation2 + $0x4b] sm:$0xff]  ;;  %v499_v14 = vpack.c.bf16 %v494_v10, %v493_v9  ;;  %v458_v16 = vld [vmem:[#allocation2] sm:$0xff] }
  0x40   : >> { %2798 = vmatmul.mubr.msk.bf16.vlgmr.msra.gmra.mrb[0].mxu0 %vm4196_vm1, %v1168_v21  ;;  %609 = vmatprep.mubr.bf16.mxu1 %v3416_v60  ;;  %vm4202_vm1 = vmmov %vm4200_vm0  ;;  %v1172_v15 = vpack.c.bf16 %v1167_v12, %v1166_v11  ;;  %v459_v17 = vld [vmem:[#allocation2 + $0x8] sm:$0xff]  ;;  %v3767_v3 = vld [vmem:[#allocation2 + $0x14] sm:$0xff] }
  0x41   : >> { %1426 = vmatpush1.bf16.msra.mxu0 %v3250_v23  ;;  %1282 = vmatprep.mubr.bf16.mxu0 %v3416_v60  ;;  %v1343_v18 = vld [vmem:[#allocation2 + $0xc] sm:$0xff]  ;;  %v468_v4 = vpack.c.bf16 %v459_v17, %v458_v16  ;;  %v3279_v5 = vld [vmem:[%s3711_s6 + $0x194] ss:$8 sps:$4 sm:$0xff]   ;;  %v3283_v21 = vld [vmem:[%s3711_s6 + $0x80] ss:$8 sps:$4 sm:$0xff]  }
  0x42   : >> { %1427 = vmatprep.subr.bf16.mxu0 %v3255_v24  ;;  %706 = vmatpush1.bf16.msra.mxu1 %v3259_v26  ;;  %v1353_v19 = vpack.c.bf16 %v3767_v3, %v1343_v18  ;;  %v460_v6 = vld [vmem:[#allocation2 + $0x10] sm:$0xff]  ;;  %v461_v7 = vld [vmem:[#allocation2 + $0x18] sm:$0xff]  ;;  %v3779_v24 = vld [vmem:[#allocation2 + $0x24] sm:$0xff] }
  0x43   : >> { %707 = vmatprep.subr.bf16.mxu1 %v3264_v28  ;;  %v3288_v22 = vld [vmem:[%s3711_s6 + $0x94] ss:$8 sps:$4 sm:$0xff]   ;;  %v3277_v13 = vld [vmem:[%s3711_s6 + $0x190] ss:$8 sps:$4 sm:$0xff]   ;;  %v3282_v25 = vld [vmem:[%s3711_s6 + $0x1a4] ss:$8 sps:$4 sm:$0xff]   ;;  %v469_v27 = vpack.c.bf16 %v461_v7, %v460_v6 }
  0x44   : >> { %v3777_v23 = vld [vmem:[#allocation2 + $0x1c] sm:$0xff]  ;;  %v3286_v26 = vld [vmem:[%s3711_s6 + $0x90] ss:$8 sps:$4 sm:$0xff]   ;;  %v3309_v43 = vld [vmem:[%s3711_s6 + $0xc4] ss:$8 sps:$4 sm:$0xff]  }
  0x45   : >> { %1428 = vmatpush1.bf16.msra.mxu0 %v3253_v30  ;;  %v1354_v28 = vpack.c.bf16 %v3779_v24, %v3777_v23  ;;  %v3294_v30 = vld [vmem:[%s3711_s6 + $0xa4] ss:$8 sps:$4 sm:$0xff]   ;;  %v3798_v37 = vld [vmem:[#allocation2 + $0x34] sm:$0xff]  ;;  %v1538_v12 = vpack.c.bf16 %v3777_v23, %v3767_v3  ;;  %v3307_v16 = vld [vmem:[%s3711_s6 + $0xc0] ss:$8 sps:$4 sm:$0xff]  }
  0x46   : >> { %1429 = vmatprep.subr.bf16.mxu0 %v3258_v31  ;;  %708 = vmatpush1.bf16.msra.mxu1 %v3262_v32  ;;  %v3291_v31 = vld [vmem:[%s3711_s6 + $0x1b4] ss:$8 sps:$4 sm:$0xff]   ;;  %v3292_v32 = vld [vmem:[%s3711_s6 + $0xa0] ss:$8 sps:$4 sm:$0xff]   ;;  %v3820_v63 = vld [vmem:[#allocation2 + $0x4c] sm:$0xff] }
  0x47   : >> { %2720 = vmatmul.mubr.msk.bf16.gmra.mrb[4].mxu1 %vm4197_vm15, %v496_v33  ;;  %709 = vmatprep.subr.bf16.mxu1 %v3270_v36  ;;  %vm4203_vm15 = vmmov %vm4200_vm0  ;;  %v462_v33 = vld [vmem:[#allocation2 + $0x20] sm:$0xff]  ;;  %v3796_v36 = vld [vmem:[#allocation2 + $0x2c] sm:$0xff] }
  0x48   : >> { %2799 = vmatmul.mubr.msk.bf16.gmra.mrb[4].mxu0 %vm4198_vm13, %v1169_v34  ;;  %619 = vmatprep.mubr.bf16.mxu1 %v3416_v60  ;;  %vm4204_vm13 = vmmov %vm4200_vm0  ;;  %v3297_v34 = vld [vmem:[%s3711_s6 + $0xb4] ss:$8 sps:$4 sm:$0xff]   ;;  %v1355_v42 = vpack.c.bf16 %v3798_v37, %v3796_v36  ;;  %v466_v61 = vld [vmem:[#allocation2 + $0x40] sm:$0xff]  ;;  %v1539_v6 = vpack.c.bf16 %v3796_v36, %v3779_v24 }
  0x49   : >> { %1292 = vmatprep.mubr.bf16.mxu0 %v3416_v60  ;;  %1430 = vmatpush1.bf16.msra.mxu0 %v3256_v35  ;;  %v463_v35 = vld [vmem:[#allocation2 + $0x28] sm:$0xff]  ;;  %v3822_v0 = vld [vmem:[#allocation2 + $0x54] sm:$0xff]  ;;  %v2521_v59 = vld [vmem:[#allocation2 + $0x60] sm:$0xff] (%p454_p4) }
  0x4a   : >> { %1431 = vmatprep.subr.bf16.mxu0 %v3267_v38  ;;  %710 = vmatpush1.bf16.msra.mxu1 %v3268_v39  ;;  %v3289_v38 = vld [vmem:[%s3711_s6 + $0x1b0] ss:$8 sps:$4 sm:$0xff]   ;;  %v470_v41 = vpack.c.bf16 %v463_v35, %v462_v33  ;;  %v467_v62 = vld [vmem:[#allocation2 + $0x48] sm:$0xff]  ;;  %v3312_v17 = vld [vmem:[%s3711_s6 + $0xd4] ss:$8 sps:$4 sm:$0xff]  }
  0x4b   : >> { %711 = vmatprep.subr.bf16.mxu1 %v3273_v40  ;;  %v3295_v39 = vld [vmem:[%s3711_s6 + $0xb0] ss:$8 sps:$4 sm:$0xff]   ;;  %v3300_v40 = vld [vmem:[%s3711_s6 + $0x1c4] ss:$8 sps:$4 sm:$0xff]   ;;  %v3304_v7 = vld [vmem:[%s3711_s6 + $0x1e0] ss:$8 sps:$4 sm:$0xff]  }
  0x4c   : >> { %v788_v9 = vld [vmem:[#allocation2 + $0x2] sm:$0xff]  ;;  %v3830_v10 = vld [vmem:[#allocation2 + $0xa] sm:$0xff]  ;;  %v3842_v18 = vld [vmem:[#allocation2 + $0x12] sm:$0xff] }
  0x4d   : >> { %1432 = vmatpush1.bf16.msra.mxu0 %v3265_v44  ;;  %v464_v44 = vld [vmem:[#allocation2 + $0x30] sm:$0xff]  ;;  %v798_v11 = vpack.c.bf16 %v3830_v10, %v788_v9  ;;  %v3316_v23 = vld [vmem:[%s3711_s6 + $0xe0] ss:$8 sps:$4 sm:$0xff]  }
  0x4e   : >> { %712 = vmatpush1.bf16.msra.mxu1 %v3271_v45  ;;  %1610 = vmatprep.subr.bf16.mxu0 %v3276_v46  ;;  %v465_v45 = vld [vmem:[#allocation2 + $0x38] sm:$0xff]  ;;  %v792_v24 = vld [vmem:[#allocation2 + $0x22] sm:$0xff]  ;;  %v797_v36 = vld [vmem:[#allocation2 + $0x4a] sm:$0xff] }
  0x4f   : >> { %2721 = vmatmul.mubr.msk.bf16.gmra.mrb[8].mxu1 %vm4199_vm2, %v497_v47  ;;  %870 = vmatprep.subr.bf16.mxu1 %v3285_v49  ;;  %vm4205_vm2 = vmmov %vm4200_vm0  ;;  %v3810_v46 = vld [vmem:[#allocation2 + $0x3c] sm:$0xff]  ;;  %v3812_v47 = vld [vmem:[#allocation2 + $0x44] sm:$0xff] }
  0x50   : >> { %2800 = vmatmul.mubr.msk.bf16.gmra.mrb[8].mxu0 %vm4200_vm0, %v1170_v48  ;;  %629 = vmatprep.mubr.bf16.mxu1 %v3416_v60  ;;  %v471_v48 = vpack.c.bf16 %v465_v45, %v464_v44  ;;  %v1356_v49 = vpack.c.bf16 %v3812_v47, %v3810_v46  ;;  %v3301_v3 = vld [vmem:[%s3711_s6 + $0x1d0] ss:$8 sps:$4 sm:$0xff]   ;;  %v796_v35 = vld [vmem:[#allocation2 + $0x42] sm:$0xff]  ;;  %v3327_v45 = vld [vmem:[%s3711_s6 + $0x214] ss:$8 sps:$4 sm:$0xff]  }
  0x51   : >> { %1302 = vmatprep.mubr.bf16.mxu0 %v3416_v60  ;;  %v3322_v44 = vld [vmem:[%s3711_s6 + $0x200] ss:$8 sps:$4 sm:$0xff]   ;;  %v3331_v9 = vld [vmem:[%s3711_s6 + $0x230] ss:$8 sps:$4 sm:$0xff]  }
  0x57   : >> { %2722 = vmatmul.mubr.msk.bf16.gmra.mrb[12].mxu1 %vm4201_vm9, %v498_v2  ;;  %vm4206_vm9 = vmmov %vm4200_vm0  ;;  %v472_v2 = vpack.c.bf16 %v467_v62, %v466_v61 }
  0x58   : >> { %2801 = vmatmul.mubr.msk.bf16.gmra.mrb[12].mxu0 %vm4202_vm1, %v1171_v8  ;;  %639 = vmatprep.mubr.bf16.mxu1 %v3416_v60  ;;  %vm4207_vm1 = vmmov %vm4200_vm0  ;;  %v1357_v8 = vpack.c.bf16 %v3822_v0, %v3820_v63 }
  0x59   : >> { %1312 = vmatprep.mubr.bf16.mxu0 %v3416_v60 }
  0x5f   : >> { %2723 = vmatmul.mubr.msk.bf16.gmra.mrb[16].mxu1 %vm4203_vm15, %v499_v14  ;;  %vm4208_vm15 = vmmov %vm4200_vm0  ;;  %v3298_v14 = vld [vmem:[%s3711_s6 + $0x1c0] ss:$8 sps:$4 sm:$0xff]  }
  0x60   : >> { %2802 = vmatmul.mubr.msk.bf16.gmra.mrb[16].mxu0 %vm4204_vm13, %v1172_v15  ;;  %737 = vmatprep.mubr.bf16.mxu1 %v3416_v60  ;;  %vm4209_vm13 = vmmov %vm4200_vm0  ;;  %v3303_v15 = vld [vmem:[%s3711_s6 + $0x1d4] ss:$8 sps:$4 sm:$0xff]  }
  0x61   : >> { %1457 = vmatprep.mubr.bf16.mxu0 %v3416_v60 }
  0x67   : >> { %2732 = vmatmul.mubr.msk.bf16.vlgmr.msra.gmra.mrb[0].mxu1 %vm4205_vm2, %v468_v4  ;;  %vm4210_vm2 = vmmov %vm4200_vm0  ;;  %v3844_v4 = vld [vmem:[#allocation2 + $0x1a] sm:$0xff] }
  0x68   : >> { %2820 = vmatmul.mubr.msk.bf16.vlgmr.msra.gmra.mrb[0].mxu0 %vm4200_vm0, %v1353_v19  ;;  %747 = vmatprep.mubr.bf16.mxu1 %v3416_v60  ;;  %v3306_v19 = vld [vmem:[%s3711_s6 + $0x1e4] ss:$8 sps:$4 sm:$0xff]   ;;  %v984_v61 = vpack.c.bf16 %v792_v24, %v3844_v4 }
  0x69   : >> { %1611 = vmatpush1.bf16.msra.mxu0 %v3274_v20  ;;  %1467 = vmatprep.mubr.bf16.mxu0 %v3416_v60  ;;  %v3310_v20 = vld [vmem:[%s3711_s6 + $0xd0] ss:$8 sps:$4 sm:$0xff]  }
  0x6a   : >> { %1612 = vmatprep.subr.bf16.mxu0 %v3279_v5  ;;  %871 = vmatpush1.bf16.msra.mxu1 %v3283_v21  ;;  %v799_v5 = vpack.c.bf16 %v3844_v4, %v3842_v18  ;;  %v3318_v21 = vld [vmem:[%s3711_s6 + $0xe4] ss:$8 sps:$4 sm:$0xff]  }
  0x6b   : >> { %872 = vmatprep.subr.bf16.mxu1 %v3288_v22  ;;  %v3315_v22 = vld [vmem:[%s3711_s6 + $0x1f4] ss:$8 sps:$4 sm:$0xff]  }
  0x6c   : >> { %v1722_v4 = vld [vmem:[#allocation2 + $0x5d] sm:$0xff] }
  0x6d   : >> { %1613 = vmatpush1.bf16.msra.mxu0 %v3277_v13  ;;  %v3321_v13 = vld [vmem:[%s3711_s6 + $0xf4] ss:$8 sps:$4 sm:$0xff]  }
  0x6e   : >> { %1614 = vmatprep.subr.bf16.mxu0 %v3282_v25  ;;  %873 = vmatpush1.bf16.msra.mxu1 %v3286_v26  ;;  %v3863_v25 = vld [vmem:[#allocation2 + $0x2a] sm:$0xff] }
  0x6f   : >> { %2733 = vmatmul.mubr.msk.bf16.gmra.mrb[4].mxu1 %vm4206_vm9, %v469_v27  ;;  %874 = vmatprep.subr.bf16.mxu1 %v3294_v30  ;;  %vm4211_vm9 = vmmov %vm4200_vm0  ;;  %v3313_v26 = vld [vmem:[%s3711_s6 + $0x1f0] ss:$8 sps:$4 sm:$0xff]   ;;  %v1540_v30 = vpack.c.bf16 %v3810_v46, %v3798_v37  ;;  %v1537_v37 = vld [vmem:[#allocation2 + $0x5c] sm:$0xff] }
  0x70   : >> { %2821 = vmatmul.mubr.msk.bf16.gmra.mrb[4].mxu0 %vm4207_vm1, %v1354_v28  ;;  %757 = vmatprep.mubr.bf16.mxu1 %v3416_v60  ;;  %vm4212_vm1 = vmmov %vm4200_vm0  ;;  %v3319_v27 = vld [vmem:[%s3711_s6 + $0xf0] ss:$8 sps:$4 sm:$0xff]   ;;  %v3324_v28 = vld [vmem:[%s3711_s6 + $0x204] ss:$8 sps:$4 sm:$0xff]  }
  0x71   : >> { %1477 = vmatprep.mubr.bf16.mxu0 %v3416_v60  ;;  %1615 = vmatpush1.bf16.msra.mxu0 %v3280_v29  ;;  %v800_v29 = vpack.c.bf16 %v3863_v25, %v792_v24  ;;  %v1715_v46 = vld [vmem:[#allocation2 + $0x25] sm:$0xff] }
  0x72   : >> { %1616 = vmatprep.subr.bf16.mxu0 %v3291_v31  ;;  %875 = vmatpush1.bf16.msra.mxu1 %v3292_v32  ;;  %v794_v31 = vld [vmem:[#allocation2 + $0x32] sm:$0xff]  ;;  %v795_v32 = vld [vmem:[#allocation2 + $0x3a] sm:$0xff] }
  0x73   : >> { %876 = vmatprep.subr.bf16.mxu1 %v3297_v34  ;;  %v801_v33 = vpack.c.bf16 %v795_v32, %v794_v31  ;;  %v1541_v34 = vpack.c.bf16 %v3820_v63, %v3812_v47  ;;  %v1716_v47 = vld [vmem:[#allocation2 + $0x2d] sm:$0xff]  ;;  %v3328_v63 = vld [vmem:[%s3711_s6 + $0x220] ss:$8 sps:$4 sm:$0xff]  }
  0x74   : >> { %v1724_v62 = vpack.c.bf16 %v1716_v47, %v1715_v46 }
  0x75   : >> { %1617 = vmatpush1.bf16.msra.mxu0 %v3289_v38  ;;  %v802_v38 = vpack.c.bf16 %v797_v36, %v796_v35 }
  0x76   : >> { %877 = vmatpush1.bf16.msra.mxu1 %v3295_v39  ;;  %1795 = vmatprep.subr.bf16.mxu0 %v3300_v40  ;;  %v1542_v39 = vpack.c.bf16 %v1537_v37, %v3822_v0  ;;  %v1713_v40 = vld [vmem:[#allocation2 + $0x15] sm:$0xff] }
  0x77   : >> { %2734 = vmatmul.mubr.msk.bf16.gmra.mrb[8].mxu1 %vm4208_vm15, %v470_v41  ;;  %1055 = vmatprep.subr.bf16.mxu1 %v3309_v43  ;;  %vm4213_vm15 = vmmov %vm4200_vm0  ;;  %v1714_v41 = vld [vmem:[#allocation2 + $0x1d] sm:$0xff] }
  0x78   : >> { %2822 = vmatmul.mubr.msk.bf16.gmra.mrb[8].mxu0 %vm4209_vm13, %v1355_v42  ;;  %767 = vmatprep.mubr.bf16.mxu1 %v3416_v60  ;;  %vm4214_vm13 = vmmov %vm4200_vm0  ;;  %v983_v42 = vpack.c.bf16 %v3842_v18, %v3830_v10  ;;  %v1723_v43 = vpack.c.bf16 %v1714_v41, %v1713_v40  ;;  %v3333_v0 = vld [vmem:[%s3711_s6 + $0x234] ss:$8 sps:$4 sm:$0xff]   ;;  %v985_v10 = vpack.c.bf16 %v794_v31, %v3863_v25  ;;  %v1904_v25 = vld [vmem:[#allocation2 + $0x46] sm:$0xff] }
  0x79   : >> { %1487 = vmatprep.mubr.bf16.mxu0 %v3416_v60  ;;  %v1721_v18 = vld [vmem:[#allocation2 + $0x55] sm:$0xff]  ;;  %v3334_v31 = vld [vmem:[%s2249_s10 + $0x40] sm:$0xff]   ;;  %v3344_v40 = vld [vmem:[%s2249_s10 + $0x68] sm:$0xff]  }
  0x7a   : >> { %v3341_v37 = vld [vmem:[%s2249_s10 + $0x18] sm:$0xff]   ;;  %v3345_v41 = vld [vmem:[%s2249_s10 + $0x28] sm:$0xff]  }
  0x7f   : >> { %2735 = vmatmul.mubr.msk.bf16.gmra.mrb[12].mxu1 %vm4210_vm2, %v471_v48  ;;  %vm4215_vm2 = vmmov %vm4200_vm0  ;;  %v3325_v48 = vld [vmem:[%s3711_s6 + $0x210] ss:$8 sps:$4 sm:$0xff]  }
  0x80   : >> { %2823 = vmatmul.mubr.msk.bf16.gmra.mrb[12].mxu0 %vm4200_vm0, %v1356_v49  ;;  %777 = vmatprep.mubr.bf16.mxu1 %v3416_v60  ;;  %v3330_v49 = vld [vmem:[%s3711_s6 + $0x224] ss:$8 sps:$4 sm:$0xff]  }
  0x81   : >> { %1497 = vmatprep.mubr.bf16.mxu0 %v3416_v60 }
  0x87   : >> { %2736 = vmatmul.mubr.msk.bf16.gmra.mrb[16].mxu1 %vm4211_vm9, %v472_v2  ;;  %vm4216_vm9 = vmmov %vm4200_vm0  ;;  %v1717_v2 = vld [vmem:[#allocation2 + $0x35] sm:$0xff] }
  0x88   : >> { %2824 = vmatmul.mubr.msk.bf16.gmra.mrb[16].mxu0 %vm4212_vm1, %v1357_v8  ;;  %902 = vmatprep.mubr.bf16.mxu1 %v3416_v60  ;;  %vm4217_vm1 = vmmov %vm4200_vm0  ;;  %v1718_v8 = vld [vmem:[#allocation2 + $0x3d] sm:$0xff] }
  0x89   : >> { %1642 = vmatprep.mubr.bf16.mxu0 %v3416_v60 }
  0x8f   : >> { %2754 = vmatmul.mubr.msk.bf16.vlgmr.msra.gmra.mrb[0].mxu1 %vm4213_vm15, %v798_v11  ;;  %vm4218_vm15 = vmmov %vm4200_vm0  ;;  %v1725_v11 = vpack.c.bf16 %v1718_v8, %v1717_v2 }
  0x90   : >> { %2842 = vmatmul.mubr.msk.bf16.vlgmr.msra.gmra.mrb[0].mxu0 %vm4214_vm13, %v1538_v12  ;;  %912 = vmatprep.mubr.bf16.mxu1 %v3416_v60  ;;  %vm4219_vm13 = vmmov %vm4200_vm0  ;;  %v1719_v12 = vld [vmem:[#allocation2 + $0x45] sm:$0xff] }
  0x91   : >> { %1796 = vmatpush1.bf16.msra.mxu0 %v3298_v14  ;;  %1652 = vmatprep.mubr.bf16.mxu0 %v3416_v60  ;;  %v1720_v14 = vld [vmem:[#allocation2 + $0x4d] sm:$0xff] }
  0x92   : >> { %1797 = vmatprep.subr.bf16.mxu0 %v3303_v15  ;;  %1056 = vmatpush1.bf16.msra.mxu1 %v3307_v16  ;;  %v986_v15 = vpack.c.bf16 %v796_v35, %v795_v32  ;;  %v1726_v16 = vpack.c.bf16 %v1720_v14, %v1719_v12  ;;  %v3335_v32 = vld [vmem:[%s2249_s10] sm:$0xff]   ;;  %v3338_v35 = vld [vmem:[%s2249_s10 + $0x50] sm:$0xff]  }
  0x93   : >> { %1057 = vmatprep.subr.bf16.mxu1 %v3312_v17  ;;  %v982_v17 = vld [vmem:[#allocation2 + $0x52] sm:$0xff] }
  0x95   : >> { %1798 = vmatpush1.bf16.msra.mxu0 %v3301_v3  ;;  %v987_v3 = vpack.c.bf16 %v982_v17, %v797_v36  ;;  %v3340_v36 = vld [vmem:[%s2249_s10 + $0x58] sm:$0xff]  }
  0x96   : >> { %1799 = vmatprep.subr.bf16.mxu0 %v3306_v19  ;;  %1058 = vmatpush1.bf16.msra.mxu1 %v3310_v20  ;;  %v1727_v19 = vpack.c.bf16 %v1722_v4, %v1721_v18  ;;  %v1898_v20 = vld [vmem:[#allocation2 + $0x16] sm:$0xff] }
  0x97   : >> { %2755 = vmatmul.mubr.msk.bf16.gmra.mrb[4].mxu1 %vm4215_vm2, %v799_v5  ;;  %1059 = vmatprep.subr.bf16.mxu1 %v3318_v21  ;;  %vm4220_vm2 = vmmov %vm4200_vm0  ;;  %v1899_v5 = vld [vmem:[#allocation2 + $0x1e] sm:$0xff]  ;;  %v1901_v21 = vld [vmem:[#allocation2 + $0x2e] sm:$0xff] }
  0x98   : >> { %2843 = vmatmul.mubr.msk.bf16.gmra.mrb[4].mxu0 %vm4200_vm0, %v1539_v6  ;;  %922 = vmatprep.mubr.bf16.mxu1 %v3416_v60  ;;  %v1908_v6 = vpack.c.bf16 %v1899_v5, %v1898_v20  ;;  %v2093_v20 = vsub.s32 1, %v3455_v1 }
  0x99   : >> { %1662 = vmatprep.mubr.bf16.mxu0 %v3416_v60  ;;  %1800 = vmatpush1.bf16.msra.mxu0 %v3304_v7  ;;  %v1900_v7 = vld [vmem:[#allocation2 + $0x26] sm:$0xff] }
  0x9a   : >> { %1801 = vmatprep.subr.bf16.mxu0 %v3315_v22  ;;  %1060 = vmatpush1.bf16.msra.mxu1 %v3316_v23  ;;  %v1909_v22 = vpack.c.bf16 %v1901_v21, %v1900_v7  ;;  %v1902_v23 = vld [vmem:[#allocation2 + $0x36] sm:$0xff] }
  0x9b   : >> { %1061 = vmatprep.subr.bf16.mxu1 %v3321_v13  ;;  %v1903_v13 = vld [vmem:[#allocation2 + $0x3e] sm:$0xff] }
  0x9c   : >> { %v1910_v24 = vpack.c.bf16 %v1903_v13, %v1902_v23 }
  0x9d   : >> { %1802 = vmatpush1.bf16.msra.mxu0 %v3313_v26  ;;  %v1905_v26 = vld [vmem:[#allocation2 + $0x4e] sm:$0xff] }
  0x9e   : >> { %1062 = vmatpush1.bf16.msra.mxu1 %v3319_v27  ;;  %1980 = vmatprep.subr.bf16.mxu0 %v3324_v28  ;;  %v1911_v27 = vpack.c.bf16 %v1905_v26, %v1904_v25  ;;  %v1906_v28 = vld [vmem:[#allocation2 + $0x56] sm:$0xff] }
  0x9f   : >> { %2756 = vmatmul.mubr.msk.bf16.gmra.mrb[8].mxu1 %vm4216_vm9, %v800_v29  ;;  %vm4221_vm9 = vmmov %vm4200_vm0  ;;  %v1907_v29 = vld [vmem:[#allocation2 + $0x5e] sm:$0xff]  ;;  %2982 = vmatprep.subr.bf16.mxu1 %v3334_v31 }
  0xa0   : >> { %2844 = vmatmul.mubr.msk.bf16.gmra.mrb[8].mxu0 %vm4217_vm1, %v1540_v30  ;;  %932 = vmatprep.mubr.bf16.mxu1 %v3416_v60  ;;  %vm4222_vm1 = vmmov %vm4200_vm0  ;;  %v1912_v30 = vpack.c.bf16 %v1907_v29, %v1906_v28 }
  0xa1   : >> { %1672 = vmatprep.mubr.bf16.mxu0 %v3416_v60 }
  0xa7   : >> { %2757 = vmatmul.mubr.msk.bf16.gmra.mrb[12].mxu1 %vm4218_vm15, %v801_v33  ;;  %vm4223_vm15 = vmmov %vm4200_vm0  ;;  %v3336_v33 = vld [vmem:[%s2249_s10 + $0x48] sm:$0xff]  }
  0xa8   : >> { %2845 = vmatmul.mubr.msk.bf16.gmra.mrb[12].mxu0 %vm4219_vm13, %v1541_v34  ;;  %942 = vmatprep.mubr.bf16.mxu1 %v3416_v60  ;;  %vm4224_vm13 = vmmov %vm4200_vm0  ;;  %v3337_v34 = vld [vmem:[%s2249_s10 + $0x8] sm:$0xff]  }
  0xa9   : >> { %1682 = vmatprep.mubr.bf16.mxu0 %v3416_v60 }
  0xaf   : >> { %2758 = vmatmul.mubr.msk.bf16.gmra.mrb[16].mxu1 %vm4220_vm2, %v802_v38  ;;  %vm4225_vm2 = vmmov %vm4200_vm0  ;;  %v3342_v38 = vld [vmem:[%s2249_s10 + $0x60] sm:$0xff]  }
  0xb0   : >> { %2846 = vmatmul.mubr.msk.bf16.gmra.mrb[16].mxu0 %vm4200_vm0, %v1542_v39  ;;  %1087 = vmatprep.mubr.bf16.mxu1 %v3416_v60  ;;  %v3343_v39 = vld [vmem:[%s2249_s10 + $0x20] sm:$0xff]  }
  0xb1   : >> { %1827 = vmatprep.mubr.bf16.mxu0 %v3416_v60 }
  0xb7   : >> { %2776 = vmatmul.mubr.msk.bf16.vlgmr.msra.gmra.mrb[0].mxu1 %vm4221_vm9, %v983_v42  ;;  %vm4226_vm9 = vmmov %vm4200_vm0  ;;  %v3346_v42 = vld [vmem:[%s2249_s10 + $0x70] sm:$0xff]  }
  0xb8   : >> { %2864 = vmatmul.mubr.msk.bf16.vlgmr.msra.gmra.mrb[0].mxu0 %vm4222_vm1, %v1723_v43  ;;  %1097 = vmatprep.mubr.bf16.mxu1 %v3416_v60  ;;  %vm4227_vm1 = vmmov %vm4200_vm0  ;;  %v3347_v43 = vld [vmem:[%s2249_s10 + $0x30] sm:$0xff]  }
  0xb9   : >> { %1981 = vmatpush1.bf16.msra.mxu0 %v3322_v44  ;;  %1837 = vmatprep.mubr.bf16.mxu0 %v3416_v60  ;;  %v3348_v44 = vld [vmem:[%s2249_s10 + $0x78] sm:$0xff]  }
  0xba   : >> { %1982 = vmatprep.subr.bf16.mxu0 %v3327_v45  ;;  %2983 = vmatpush3.bf16.msra.mxu1 %v3335_v32  ;;  %v3349_v45 = vld [vmem:[%s2249_s10 + $0x38] sm:$0xff]  }
  0xbb   : >> { %2984 = vmatprep.subr.bf16.mxu1 %v3336_v33 }
  0xbd   : >> { %1983 = vmatpush1.bf16.msra.mxu0 %v3325_v48 }
  0xbe   : >> { %1984 = vmatprep.subr.bf16.mxu0 %v3330_v49  ;;  %2985 = vmatpush3.bf16.msra.mxu1 %v3337_v34 }
  0xbf   : >> { %2777 = vmatmul.mubr.msk.bf16.gmra.mrb[4].mxu1 %vm4223_vm15, %v984_v61  ;;  %vm4228_vm15 = vmmov %vm4200_vm0  ;;  %2986 = vmatprep.subr.bf16.mxu1 %v3338_v35 }
  0xc0   : >> { %2865 = vmatmul.mubr.msk.bf16.gmra.mrb[4].mxu0 %vm4224_vm13, %v1724_v62  ;;  %1107 = vmatprep.mubr.bf16.mxu1 %v3416_v60  ;;  %vm4229_vm13 = vmmov %vm4200_vm0 }
  0xc1   : >> { %1847 = vmatprep.mubr.bf16.mxu0 %v3416_v60  ;;  %1985 = vmatpush1.bf16.msra.mxu0 %v3328_v63 }
  0xc2   : >> { %1986 = vmatprep.subr.bf16.mxu0 %v3333_v0 }
  0xc5   : >> { %1987 = vmatpush1.bf16.msra.mxu0 %v3331_v9 }
  0xc7   : >> { %2778 = vmatmul.mubr.msk.bf16.gmra.mrb[8].mxu1 %vm4225_vm2, %v985_v10  ;;  %vm4230_vm2 = vmmov %vm4200_vm0 }
  0xc8   : >> { %2866 = vmatmul.mubr.msk.bf16.gmra.mrb[8].mxu0 %vm4200_vm0, %v1725_v11  ;;  %1117 = vmatprep.mubr.bf16.mxu1 %v3416_v60 }
  0xc9   : >> { %1857 = vmatprep.mubr.bf16.mxu0 %v3416_v60 }
  0xcf   : >> { %2779 = vmatmul.mubr.msk.bf16.gmra.mrb[12].mxu1 %vm4226_vm9, %v986_v15  ;;  %vm4231_vm9 = vmmov %vm4200_vm0 }
  0xd0   : >> { %2867 = vmatmul.mubr.msk.bf16.gmra.mrb[12].mxu0 %vm4227_vm1, %v1726_v16  ;;  %1127 = vmatprep.mubr.bf16.mxu1 %v3416_v60  ;;  %vm4232_vm1 = vmmov %vm4200_vm0 }
  0xd1   : >> { %1867 = vmatprep.mubr.bf16.mxu0 %v3416_v60 }
  0xd7   : >> { %2780 = vmatmul.mubr.msk.bf16.gmra.mrb[16].mxu1 %vm4228_vm15, %v987_v3  ;;  %vm4233_vm15 = vmmov %vm4200_vm0  ;;  %v2089_v3 = vsub.s32 0, %v3455_v1 }
  0xd8   : >> { %2868 = vmatmul.mubr.msk.bf16.gmra.mrb[16].mxu0 %vm4229_vm13, %v1727_v19  ;;  %v2085_v19 = vld [vmem:[%s2084_s14] sm:$0x3]  ;;  %vm4234_vm13 = vmmov %vm4200_vm0 }
  0xd9   : >> { %2012 = vmatprep.mubr.bf16.mxu0 %v3416_v60  ;;  %v3951_v7 = vrot.slane %v2085_v19, %v2089_v3  ;;  %v3953_v23 = vrot.slane %v2085_v19, %v2093_v20 }
  0xe0   : >> { %2886 = vmatmul.mubr.msk.bf16.vlgmr.msra.gmra.mrb[0].mxu0 %vm4230_vm2, %v1908_v6  ;;  %vm4235_vm2 = vmmov %vm4200_vm0 }
  0xe1   : >> { %2022 = vmatprep.mubr.bf16.mxu0 %v3416_v60 }
  0xe8   : >> { %2887 = vmatmul.mubr.msk.bf16.gmra.mrb[4].mxu0 %vm4200_vm0, %v1909_v22 }
  0xe9   : >> { %2032 = vmatprep.mubr.bf16.mxu0 %v3416_v60 }
  0xf0   : >> { %2888 = vmatmul.mubr.msk.bf16.gmra.mrb[8].mxu0 %vm4231_vm9, %v1910_v24  ;;  %vm4236_vm9 = vmmov %vm4200_vm0 }
  0xf1   : >> { %2042 = vmatprep.mubr.bf16.mxu0 %v3416_v60 }
  0xf8   : >> { %2889 = vmatmul.mubr.msk.bf16.gmra.mrb[12].mxu0 %vm4232_vm1, %v1911_v27  ;;  %vm4237_vm1 = vmmov %vm4200_vm0 }
  0xf9   : >> { %2052 = vmatprep.mubr.bf16.mxu0 %v3416_v60  ;;  %v3339_v60 = vld [vmem:[%s2249_s10 + $0x10] sm:$0xff]  }
  0xfa   : >> { %2987 = vmatpush3.bf16.msra.mxu1 %v3339_v60 }
  0xfb   : >> { %2988 = vmatprep.subr.bf16.mxu1 %v3340_v36 }
  0xfe   : >> { %2989 = vmatpush3.bf16.msra.mxu1 %v3341_v37 }
  0xff   : >> { %2990 = vmatprep.subr.bf16.mxu1 %v3342_v38 }
 0x100   : >> { %2890 = vmatmul.mubr.msk.bf16.gmra.mrb[16].mxu0 %vm4233_vm15, %v1912_v30  ;;  %vm4238_vm15 = vmmov %vm4200_vm0 }
 0x102   : >> { %2991 = vmatpush3.bf16.msra.mxu1 %v3343_v39 }
 0x103   : >> { %2992 = vmatprep.subr.bf16.mxu1 %v3344_v40 }
 0x106   : >> { %2993 = vmatpush3.bf16.msra.mxu1 %v3345_v41 }
 0x107   : >> { %2994 = vmatprep.subr.bf16.mxu1 %v3346_v42 }
 0x10a   : >> { %2995 = vmatpush3.bf16.msra.mxu1 %v3347_v43 }
 0x10b   : >> { %2996 = vmatprep.subr.bf16.mxu1 %v3348_v44 }
 0x10e   : >> { %2997 = vmatpush3.bf16.msra.mxu1 %v3349_v45 }
 0x18a   : >> { %v1089_v46 = vpop.f32.mrb[0].mxu1 }
 0x18b   : >> { %v1091_v47 = vpop.f32.mrb[1].mxu1 }
 0x18c   : >> { %v1093_v48 = vpop.f32.mrb[2].mxu1 }
 0x18d   : >> { %v1095_v49 = vpop.f32.mrb[3].mxu1 }
 0x192   : >> { %v1099_v61 = vpop.f32.mrb[4].mxu1 }
 0x193   : >> { %v1101_v62 = vpop.f32.mrb[5].mxu1 }
 0x194   : >> { %v1103_v63 = vpop.f32.mrb[6].mxu1 }
 0x195   : >> { %v1105_v0 = vpop.f32.mrb[7].mxu1 }
 0x19a   : >> { %v1109_v2 = vpop.f32.mrb[8].mxu1 }
 0x19b   : >> { %v1111_v8 = vpop.f32.mrb[9].mxu1 }
 0x19c   : >> { %v1113_v9 = vpop.f32.mrb[10].mxu1 }
 0x19d   : >> { %v1115_v10 = vpop.f32.mrb[11].mxu1 }
 0x1a2   : >> { %v3929_v11 = vpop.f32.mrb[12].mxu1 }
 0x1a3   : >> { %v3931_v12 = vpop.f32.mrb[13].mxu1 }
 0x1a4   : >> { %v3933_v14 = vpop.f32.mrb[14].mxu1 }
 0x1a5   : >> { %v3935_v15 = vpop.f32.mrb[15].mxu1 }
 0x1aa   : >> { %v3937_v16 = vpop.f32.mrb[16].mxu1 }
 0x1ab   : >> { %v3940_v17 = vpop.f32.mrb[17].mxu1 }
 0x1ac   : >> { %v3942_v18 = vpop.f32.mrb[18].mxu1 }
 0x1ad   : >> { %v3944_v4 = vpop.f32.mrb[19].mxu1 }
 0x1b3   : >> { %v2014_v5 = vpop.f32.mrb[0].mxu0 }
 0x1b4   : >> { %v3028_v6 = vadd.f32 %v2014_v5, %v1089_v46  ;;  %v2016_v21 = vpop.f32.mrb[1].mxu0 }
 0x1b5   : >> { %v3029_v22 = vadd.f32 %v2016_v21, %v1091_v47  ;;  %v2018_v13 = vpop.f32.mrb[2].mxu0 }
 0x1b6   : >> { %v3030_v24 = vadd.f32 %v2018_v13, %v1093_v48  ;;  %v2020_v25 = vpop.f32.mrb[3].mxu0  ;;  %v3956_v27 = vadd.f32 %v3028_v6, %v3951_v7 }
 0x1b7   : >> { %v3031_v26 = vadd.f32 %v2020_v25, %v1095_v49  ;;  %v3962_v29 = vadd.f32 %v3029_v22, %v3953_v23 }
 0x1b8   : >> { %v3959_v28 = vadd.f32 %v3030_v24, %v3951_v7 }
 0x1b9   : >> { %v3965_v30 = vadd.f32 %v3031_v26, %v3953_v23 }
 0x1ba   : >> { %v2117_v31 = vpack.c.bf16 %v3959_v28, %v3956_v27 }
 0x1bb   : >> { %v2118_v32 = vpack.c.bf16 %v3965_v30, %v3962_v29  ;;  %v2024_v33 = vpop.f32.mrb[4].mxu0 }
 0x1bc   : >> { %v2892_v34 = vmul.bf16 3216621497, %v2117_v31  ;;  %v3032_v35 = vadd.f32 %v2024_v33, %v1099_v61  ;;  %v2026_v60 = vpop.f32.mrb[5].mxu0 }
 0x1bd   : >> { %v2893_v36 = vmul.bf16 3216621497, %v2118_v32  ;;  %v3033_v37 = vadd.f32 %v2026_v60, %v1101_v62  ;;  %v2028_v38 = vpop.f32.mrb[6].mxu0 }
 0x1be   : >> { %3350 = vpow.bf16 %v2892_v34  ;;  %v3034_v39 = vadd.f32 %v2028_v38, %v1103_v63  ;;  %v2030_v40 = vpop.f32.mrb[7].mxu0  ;;  %v3972_v42 = vadd.f32 %v3032_v35, %v3951_v7 }
 0x1bf   : >> { %3352 = vpow.bf16 %v2893_v36  ;;  %v3035_v41 = vadd.f32 %v2030_v40, %v1105_v0  ;;  %v3978_v44 = vadd.f32 %v3033_v37, %v3953_v23 }
 0x1c0   : >> { %v3975_v43 = vadd.f32 %v3034_v39, %v3951_v7 }
 0x1c1   : >> { %v3981_v45 = vadd.f32 %v3035_v41, %v3953_v23 }
 0x1c2   : >> { %v2119_v46 = vpack.c.bf16 %v3975_v43, %v3972_v42 }
 0x1c3   : >> { %v2120_v47 = vpack.c.bf16 %v3981_v45, %v3978_v44  ;;  %v2034_v48 = vpop.f32.mrb[8].mxu0 }
 0x1c4   : >> { %v2894_v49 = vmul.bf16 3216621497, %v2119_v46  ;;  %v3036_v61 = vadd.f32 %v2034_v48, %v1109_v2  ;;  %v2036_v62 = vpop.f32.mrb[9].mxu0 }
 0x1c5   : >> { %v2895_v63 = vmul.bf16 3216621497, %v2120_v47  ;;  %v3037_v0 = vadd.f32 %v2036_v62, %v1111_v8  ;;  %v2038_v3 = vpop.f32.mrb[10].mxu0 }
 0x1c6   : >> { %3354 = vpow.bf16 %v2894_v49  ;;  %v3038_v19 = vadd.f32 %v2038_v3, %v1113_v9  ;;  %v2040_v20 = vpop.f32.mrb[11].mxu0  ;;  %v3988_v6 = vadd.f32 %v3036_v61, %v3951_v7 }
 0x1c7   : >> { %3356 = vpow.bf16 %v2895_v63  ;;  %v3039_v5 = vadd.f32 %v2040_v20, %v1115_v10  ;;  %v3994_v13 = vadd.f32 %v3037_v0, %v3953_v23 }
 0x1c8   : >> { %v3991_v21 = vadd.f32 %v3038_v19, %v3951_v7 }
 0x1c9   : >> { %v3351_v22 = vpop.eup %3350  ;;  %v3997_v2 = vadd.f32 %v3039_v5, %v3953_v23 }
 0x1ca   : >> { %v3353_v8 = vpop.eup %3352  ;;  %v2167_v24 = vadd.bf16 1065369472, %v3351_v22  ;;  %v2121_v9 = vpack.c.bf16 %v3991_v21, %v3988_v6 }
 0x1cb   : >> { %v2168_v25 = vadd.bf16 1065369472, %v3353_v8  ;;  %v2122_v10 = vpack.c.bf16 %v3997_v2, %v3994_v13  ;;  %v2044_v26 = vpop.f32.mrb[12].mxu0 }
 0x1cc   : >> { %3358 = vrcp.bf16 %v2167_v24  ;;  %v2896_v31 = vmul.bf16 3216621497, %v2121_v9  ;;  %v3040_v32 = vadd.f32 %v2044_v26, %v3929_v11  ;;  %v2046_v33 = vpop.f32.mrb[13].mxu0 }
 0x1cd   : >> { %3360 = vrcp.bf16 %v2168_v25  ;;  %v2897_v34 = vmul.bf16 3216621497, %v2122_v10  ;;  %v3041_v35 = vadd.f32 %v2046_v33, %v3931_v12  ;;  %v2048_v60 = vpop.f32.mrb[14].mxu0 }
 0x1ce   : >> { %3362 = vpow.bf16 %v2896_v31  ;;  %v3042_v36 = vadd.f32 %v2048_v60, %v3933_v14  ;;  %v2050_v37 = vpop.f32.mrb[15].mxu0  ;;  %v4008_v39 = vadd.f32 %v3040_v32, %v3951_v7 }
 0x1cf   : >> { %3364 = vpow.bf16 %v2897_v34  ;;  %v3043_v38 = vadd.f32 %v2050_v37, %v3935_v15  ;;  %v4014_v41 = vadd.f32 %v3041_v35, %v3953_v23 }
 0x1d0   : >> { %v4011_v40 = vadd.f32 %v3042_v36, %v3951_v7 }
 0x1d1   : >> { %v3355_v11 = vpop.eup %3354  ;;  %v4017_v12 = vadd.f32 %v3043_v38, %v3953_v23 }
 0x1d2   : >> { %v3357_v46 = vpop.eup %3356  ;;  %v2169_v47 = vadd.bf16 1065369472, %v3355_v11  ;;  %v2123_v14 = vpack.c.bf16 %v4011_v40, %v4008_v39 }
 0x1d3   : >> { %v2170_v48 = vadd.bf16 1065369472, %v3357_v46  ;;  %v2124_v15 = vpack.c.bf16 %v4017_v12, %v4014_v41  ;;  %v2054_v49 = vpop.f32.mrb[16].mxu0 }
 0x1d4   : >> { %3366 = vrcp.bf16 %v2169_v47  ;;  %v2898_v61 = vmul.bf16 3216621497, %v2123_v14  ;;  %v3044_v62 = vadd.f32 %v2054_v49, %v3937_v16  ;;  %v2056_v63 = vpop.f32.mrb[17].mxu0 }
 0x1d5   : >> { %3368 = vrcp.bf16 %v2170_v48  ;;  %v2899_v0 = vmul.bf16 3216621497, %v2124_v15  ;;  %v3045_v3 = vadd.f32 %v2056_v63, %v3940_v17  ;;  %v2058_v19 = vpop.f32.mrb[18].mxu0 }
 0x1d6   : >> { %3370 = vpow.bf16 %v2898_v61  ;;  %v3046_v20 = vadd.f32 %v2058_v19, %v3942_v18  ;;  %v2060_v5 = vpop.f32.mrb[19].mxu0  ;;  %v4028_v25 = vadd.f32 %v3044_v62, %v3951_v7 }
 0x1d7   : >> { %v3359_v22 = vpop.eup %3358  ;;  %3372 = vpow.bf16 %v2899_v0  ;;  %v3047_v8 = vadd.f32 %v2060_v5, %v3944_v4  ;;  %v4034_v17 = vadd.f32 %v3045_v3, %v3953_v23 }
 0x1d8   : >> { %v3361_v24 = vpop.eup %3360  ;;  %v2178_v9 = vmul.bf16 1065369472, %v3359_v22  ;;  %v4031_v16 = vadd.f32 %v3046_v20, %v3951_v7 }
 0x1d9   : >> { %v3363_v10 = vpop.eup %3362  ;;  %v2180_v26 = vmul.bf16 1065369472, %v3361_v24  ;;  %v4037_v18 = vadd.f32 %v3047_v8, %v3953_v23 }
 0x1da   : >> { %v3365_v31 = vpop.eup %3364  ;;  %v2197_v32 = vunpack.c.l.bf16 %v2178_v9  ;;  %v2199_v33 = vunpack.c.h.bf16 %v2178_v9  ;;  %v2171_v4 = vadd.bf16 1065369472, %v3363_v10  ;;  %v2125_v34 = vpack.c.bf16 %v4031_v16, %v4028_v25 }
 0x1db   : >> { %v2200_v35 = vunpack.c.h.bf16 %v2180_v26  ;;  %v2172_v60 = vadd.bf16 1065369472, %v3365_v31  ;;  %v2126_v7 = vpack.c.bf16 %v4037_v18, %v4034_v17  ;;  %v2198_v36 = vunpack.c.l.bf16 %v2180_v26 }
 0x1dc   : >> { %v2217_v37 = vmul.f32 %v2197_v32, %v3956_v27  ;;  %v2219_v38 = vmul.f32 %v2199_v33, %v3959_v28  ;;  %3374 = vrcp.bf16 %v2171_v4  ;;  %v2900_v23 = vmul.bf16 3216621497, %v2125_v34 }
 0x1dd   : >> { %v2220_v11 = vmul.f32 %v2200_v35, %v3965_v30  ;;  %3376 = vrcp.bf16 %v2172_v60  ;;  %v2901_v46 = vmul.bf16 3216621497, %v2126_v7  ;;  %v2218_v47 = vmul.f32 %v2198_v36, %v3962_v29 }
 0x1de   : >> { %v2237_v14 = vpack.c.bf16 %v2219_v38, %v2217_v37  ;;  %3378 = vpow.bf16 %v2900_v23 }
 0x1df   : >> { %v3367_v48 = vpop.eup %3366  ;;  %3380 = vpow.bf16 %v2901_v46  ;;  %v2238_v15 = vpack.c.bf16 %v2220_v11, %v2218_v47 }
 0x1e0   : >> { %v3369_v49 = vpop.eup %3368  ;;  %v2182_v61 = vmul.bf16 1065369472, %v3367_v48 }
 0x1e1   : >> { %v3371_v62 = vpop.eup %3370  ;;  %v2184_v63 = vmul.bf16 1065369472, %v3369_v49  ;;  %2418 = vmatprep.mubr.bf16.mxu1 %v2238_v15 }
 0x1e2   : >> { %v3373_v27 = vpop.eup %3372  ;;  %v2203_v28 = vunpack.c.h.bf16 %v2182_v61  ;;  %v2173_v0 = vadd.bf16 1065369472, %v3371_v62  ;;  %2419 = vmatmul.mubr.bf16.vlgmr.msra.gmra.mrb[20].mxu1 %v2237_v14  ;;  %v2201_v3 = vunpack.c.l.bf16 %v2182_v61 }
 0x1e3   : >> { %v2204_v30 = vunpack.c.h.bf16 %v2184_v63  ;;  %v2174_v19 = vadd.bf16 1065369472, %v3373_v27  ;;  %v2202_v20 = vunpack.c.l.bf16 %v2184_v63 }
 0x1e4   : >> { %v2223_v29 = vmul.f32 %v2203_v28, %v3975_v43  ;;  %3382 = vrcp.bf16 %v2173_v0  ;;  %v2221_v5 = vmul.f32 %v2201_v3, %v3972_v42 }
 0x1e5   : >> { %v2224_v22 = vmul.f32 %v2204_v30, %v3981_v45  ;;  %3384 = vrcp.bf16 %v2174_v19  ;;  %v2222_v8 = vmul.f32 %v2202_v20, %v3978_v44 }
 0x1e6   : >> { %v2239_v24 = vpack.c.bf16 %v2223_v29, %v2221_v5 }
 0x1e7   : >> { %v3375_v9 = vpop.eup %3374  ;;  %v2240_v10 = vpack.c.bf16 %v2224_v22, %v2222_v8 }
 0x1e8   : >> { %v3377_v26 = vpop.eup %3376  ;;  %v2186_v31 = vmul.bf16 1065369472, %v3375_v9 }
 0x1e9   : >> { %v3379_v32 = vpop.eup %3378  ;;  %v2188_v33 = vmul.bf16 1065369472, %v3377_v26  ;;  %2426 = vmatprep.mubr.bf16.mxu1 %v2240_v10 }
 0x1ea   : >> { %v3381_v4 = vpop.eup %3380  ;;  %v2207_v34 = vunpack.c.h.bf16 %v2186_v31  ;;  %v2175_v35 = vadd.bf16 1065369472, %v3379_v32  ;;  %2427 = vmatmul.mubr.bf16.gmra.mrb[24].mxu1 %v2239_v24  ;;  %v2205_v43 = vunpack.c.l.bf16 %v2186_v31  ;;  %v4067_v24 = vld [vmem:[%s2282_s17] ss:$0 sm:$0xff]  ;;  %v3390_v31 = vld [vmem:[#allocation2 + $0xb] sm:$0xff] }
 0x1eb   : >> { %v2208_v60 = vunpack.c.h.bf16 %v2188_v33  ;;  %v2176_v42 = vadd.bf16 1065369472, %v3381_v4  ;;  %v2206_v7 = vunpack.c.l.bf16 %v2188_v33  ;;  %v3391_v4 = vld [vmem:[#allocation2 + $0x13] sm:$0xff] }
 0x1ec   : >> { %v2227_v45 = vmul.f32 %v2207_v34, %v3991_v21  ;;  %3386 = vrcp.bf16 %v2175_v35  ;;  %v2225_v44 = vmul.f32 %v2205_v43, %v3988_v6 }
 0x1ed   : >> { %v2228_v36 = vmul.f32 %v2208_v60, %v3997_v2  ;;  %3388 = vrcp.bf16 %v2176_v42  ;;  %v2226_v37 = vmul.f32 %v2206_v7, %v3994_v13 }
 0x1ee   : >> { %v2241_v38 = vpack.c.bf16 %v2227_v45, %v2225_v44 }
 0x1ef   : >> { %v3383_v23 = vpop.eup %3382  ;;  %v2242_v11 = vpack.c.bf16 %v2228_v36, %v2226_v37  ;;  %v3392_v37 = vld [vmem:[#allocation2 + $0x1b] sm:$0xff] }
 0x1f0   : >> { %v3385_v46 = vpop.eup %3384  ;;  %v2190_v47 = vmul.bf16 1065369472, %v3383_v23 }
 0x1f1   : >> { %v2192_v14 = vmul.bf16 1065369472, %v3385_v46  ;;  %2434 = vmatprep.mubr.bf16.mxu1 %v2242_v11  ;;  %v3393_v46 = vld [vmem:[#allocation2 + $0x23] sm:$0xff] }
 0x1f2   : >> { %v2211_v48 = vunpack.c.h.bf16 %v2190_v47  ;;  %2435 = vmatmul.mubr.bf16.gmra.mrb[28].mxu1 %v2241_v38  ;;  %v2209_v15 = vunpack.c.l.bf16 %v2190_v47 }
 0x1f3   : >> { %v2212_v49 = vunpack.c.h.bf16 %v2192_v14  ;;  %v2210_v21 = vunpack.c.l.bf16 %v2192_v14 }
 0x1f4   : >> { %v2231_v61 = vmul.f32 %v2211_v48, %v4011_v40  ;;  %v2229_v6 = vmul.f32 %v2209_v15, %v4008_v39 }
 0x1f5   : >> { %v2232_v2 = vmul.f32 %v2212_v49, %v4017_v12  ;;  %v2230_v13 = vmul.f32 %v2210_v21, %v4014_v41 }
 0x1f6   : >> { %v2243_v62 = vpack.c.bf16 %v2231_v61, %v2229_v6 }
 0x1f7   : >> { %v3387_v63 = vpop.eup %3386  ;;  %v2244_v27 = vpack.c.bf16 %v2232_v2, %v2230_v13  ;;  %v3394_v13 = vld [vmem:[#allocation2 + $0x2b] sm:$0xff] }
 0x1f8   : >> { %v3389_v28 = vpop.eup %3388  ;;  %v2194_v0 = vmul.bf16 1065369472, %v3387_v63 }
 0x1f9   : >> { %v2196_v3 = vmul.bf16 1065369472, %v3389_v28  ;;  %2442 = vmatprep.mubr.bf16.mxu1 %v2244_v27  ;;  %v3395_v28 = vld [vmem:[#allocation2 + $0x33] sm:$0xff] }
 0x1fa   : >> { %v2215_v30 = vunpack.c.h.bf16 %v2194_v0  ;;  %2443 = vmatmul.mubr.bf16.gmra.mrb[32].mxu1 %v2243_v62  ;;  %v2213_v19 = vunpack.c.l.bf16 %v2194_v0 }
 0x1fb   : >> { %v2216_v20 = vunpack.c.h.bf16 %v2196_v3  ;;  %v2214_v29 = vunpack.c.l.bf16 %v2196_v3 }
 0x1fc   : >> { %v2235_v40 = vmul.f32 %v2215_v30, %v4031_v16  ;;  %v2233_v39 = vmul.f32 %v2213_v19, %v4028_v25 }
 0x1fd   : >> { %v2236_v12 = vmul.f32 %v2216_v20, %v4037_v18  ;;  %v2234_v41 = vmul.f32 %v2214_v29, %v4034_v17 }
 0x1fe   : >> { %v2245_v5 = vpack.c.bf16 %v2235_v40, %v2233_v39 }
 0x1ff   : >> { %v2246_v22 = vpack.c.bf16 %v2236_v12, %v2234_v41  ;;  %v3396_v41 = vld [vmem:[#allocation2 + $0x3b] sm:$0xff] }
 0x201   : >> { %2450 = vmatprep.mubr.bf16.mxu1 %v2246_v22 }
 0x202   : >> { %2451 = vmatmul.mubr.bf16.gmra.mrb[36].mxu1 %v2245_v5 }
 0x2b5   : >> { %v2998_v8 = vpop.f32.mrb[20].mxu1 }
 0x2b6   : >> { %v2999_v9 = vpop.f32.mrb[21].mxu1 }
 0x2b7   : >> { %v3000_v10 = vadd.f32 %v2999_v9, %v2998_v8  ;;  %v3001_v16 = vpop.f32.mrb[22].mxu1  ;;  %v3397_v9 = vld [vmem:[#allocation2 + $0x43] sm:$0xff] }
 0x2b8   : >> { %v3002_v26 = vpop.f32.mrb[23].mxu1 }
 0x2b9   : >> { %v2421_v25 = vadd.f32 %v3000_v10, %v4067_v24  ;;  %v3003_v18 = vadd.f32 %v3002_v26, %v3001_v16 }
 0x2bb   : >> { %v2459_v17 = vadd.f32 %v3390_v31, %v2421_v25  ;;  %v2424_v32 = vadd.f32 %v3003_v18, %v4067_v24 }
 0x2bd   : >> { %v2489_v33 = vsel %vm3660_vm10, %v2459_v17, 0.0  ;;  %v2460_v34 = vadd.f32 %v3391_v4, %v2424_v32  ;;  %v3004_v35 = vpop.f32.mrb[24].mxu1  ;;  %v3398_v4 = vld [vmem:[#allocation2 + $0x4b] sm:$0xff]  ;;  %vm4242_vm10 = vcmask (%p454_p4), 519168  }
 0x2be   : >> { %2499 = vst.msk [vmem:[#allocation2 + $0xb] sm:$0xff] %vm4234_vm13, %v2489_v33  ;;  %v3005_v43 = vpop.f32.mrb[25].mxu1  ;;  %vm4239_vm13 = vmmov %vm4200_vm0 }
 0x2bf   : >> { %v2490_v60 = vsel %vm3664_vm12, %v2460_v34, 0.0  ;;  %v3006_v42 = vadd.f32 %v3005_v43, %v3004_v35  ;;  %v3007_v7 = vpop.f32.mrb[26].mxu1  ;;  %vm4243_vm12 = vmmov (%p454_p4), %vm4242_vm10 }
 0x2c0   : >> { %2500 = vst.msk [vmem:[#allocation2 + $0x13] sm:$0xff] %vm4235_vm2, %v2490_v60  ;;  %v3008_v45 = vpop.f32.mrb[27].mxu1  ;;  %vm4240_vm2 = vmmov %vm4200_vm0  ;;  %v3399_v60 = vld [vmem:[#allocation2 + $0x53] sm:$0xff] }
 0x2c1   : >> { %v2429_v44 = vadd.f32 %v3006_v42, %v4067_v24  ;;  %v3009_v36 = vadd.f32 %v3008_v45, %v3007_v7  ;;  %v2509_v45 = vld [vmem:[#allocation2] sm:$0xff] (%p454_p4) }
 0x2c3   : >> { %v2461_v38 = vadd.f32 %v3392_v37, %v2429_v44  ;;  %v2432_v23 = vadd.f32 %v3009_v36, %v4067_v24  ;;  %v2939_v36 = vpack.c.bf16 (%p454_p4), %v2509_v45, %v2509_v45 }
 0x2c5   : >> { %v2491_v11 = vsel %vm3668_vm8, %v2461_v38, 0.0  ;;  %v2462_v47 = vadd.f32 %v3393_v46, %v2432_v23  ;;  %v3010_v14 = vpop.f32.mrb[28].mxu1  ;;  %2579 = vst.msk [vmem:[%s3475_s26] sm:$0xf] (%p454_p4), %vm4242_vm10, %v2939_v36  ;;  %vm4244_vm8 = vmmov (%p454_p4), %vm4242_vm10 }
 0x2c6   : >> { %2501 = vst.msk [vmem:[#allocation2 + $0x1b] sm:$0xff] %vm4200_vm0, %v2491_v11  ;;  %v3011_v48 = vpop.f32.mrb[29].mxu1 }
 0x2c7   : >> { %v2492_v15 = vsel %vm3672_vm4, %v2462_v47, 0.0  ;;  %v3012_v49 = vadd.f32 %v3011_v48, %v3010_v14  ;;  %v3013_v21 = vpop.f32.mrb[30].mxu1  ;;  %v2511_v44 = vld [vmem:[#allocation2 + $0x10] sm:$0xff] (%p454_p4)  ;;  %vm4245_vm4 = vmmov (%p454_p4), %vm4244_vm8 }
 0x2c8   : >> { %2502 = vst.msk [vmem:[#allocation2 + $0x23] sm:$0xff] %vm4236_vm9, %v2492_v15  ;;  %v3014_v61 = vpop.f32.mrb[31].mxu1  ;;  %vm4241_vm9 = vmmov %vm4200_vm0  ;;  %v2941_v38 = vpack.c.bf16 (%p454_p4), %v2511_v44, %v2511_v44 }
 0x2c9   : >> { %v2437_v6 = vadd.f32 %v3012_v49, %v4067_v24  ;;  %v3015_v2 = vadd.f32 %v3014_v61, %v3013_v21  ;;  %v2522_v21 = vld [vmem:[#allocation2 + $0x68] sm:$0xf] (%p454_p4)  ;;  %v2951_v61 = vpack.c.bf16 (%p454_p4), %v2521_v59, %v2521_v59 }
 0x2ca   : > { %2581 = vst.msk [vmem:[%s3475_s26 + $0x8] sm:$0xf] (%p454_p4), %vm4244_vm8, %v2941_v38 }
 0x2cb   : >> { %v2463_v62 = vadd.f32 %v3394_v13, %v2437_v6  ;;  %v2440_v63 = vadd.f32 %v3015_v2, %v4067_v24  ;;  %v2952_v6 = vpack.c.bf16 (%p454_p4), %v2522_v21, %v2522_v21 }
 0x2cd   : >> { %v2493_v27 = vsel %vm3676_vm3, %v2463_v62, 0.0  ;;  %v2464_v0 = vadd.f32 %v3395_v28, %v2440_v63  ;;  %v3016_v3 = vpop.f32.mrb[32].mxu1  ;;  %v2512_v23 = vld [vmem:[#allocation2 + $0x18] sm:$0xff] (%p454_p4)  ;;  %vm4246_vm3 = vmmov (%p454_p4), %vm4245_vm4 }
 0x2ce   : >> { %2503 = vst.msk [vmem:[#allocation2 + $0x2b] sm:$0xff] %vm4237_vm1, %v2493_v27  ;;  %v3017_v30 = vpop.f32.mrb[33].mxu1  ;;  %v2942_v47 = vpack.c.bf16 (%p454_p4), %v2512_v23, %v2512_v23  ;;  %vm4251_vm1 = vmmov (%p454_p4), %vm4246_vm3 }
 0x2cf   : >> { %v2494_v19 = vsel %vm3680_vm7, %v2464_v0, 0.0  ;;  %v3018_v20 = vadd.f32 %v3017_v30, %v3016_v3  ;;  %v3019_v29 = vpop.f32.mrb[34].mxu1  ;;  %v2513_v11 = vld [vmem:[#allocation2 + $0x20] sm:$0xff] (%p454_p4)  ;;  %vm4247_vm7 = vmmov (%p454_p4), %vm4246_vm3 }
 0x2d0   : >> { %2504 = vst.msk [vmem:[#allocation2 + $0x33] sm:$0xff] %vm4238_vm15, %v2494_v19  ;;  %v3020_v40 = vpop.f32.mrb[35].mxu1  ;;  %v2943_v14 = vpack.c.bf16 (%p454_p4), %v2513_v11, %v2513_v11  ;;  %vm4252_vm15 = vmmov (%p454_p4), %vm4251_vm1 }
 0x2d1   : >> { %v2445_v39 = vadd.f32 %v3018_v20, %v4067_v24  ;;  %v3021_v12 = vadd.f32 %v3020_v40, %v3019_v29  ;;  %2582 = vst.msk [vmem:[%s3475_s26 + $0xc] sm:$0xf] (%p454_p4), %vm4245_vm4, %v2942_v47 }
 0x2d2   : > { %2583 = vst.msk [vmem:[%s3475_s26 + $0x10] sm:$0xf] (%p454_p4), %vm4246_vm3, %v2943_v14 }
 0x2d3   : >> { %v2465_v5 = vadd.f32 %v3396_v41, %v2445_v39  ;;  %v2448_v22 = vadd.f32 %v3021_v12, %v4067_v24 }
 0x2d5   : >> { %v2495_v8 = vsel %vm3684_vm5, %v2465_v5, 0.0  ;;  %v2466_v10 = vadd.f32 %v3397_v9, %v2448_v22  ;;  %v3022_v16 = vpop.f32.mrb[36].mxu1  ;;  %v2514_v46 = vld [vmem:[#allocation2 + $0x28] sm:$0xff] (%p454_p4)  ;;  %vm2592_vm5 = vcmask (%p454_p4), 517120  }
 0x2d6   : >> { %2505 = vst.msk [vmem:[#allocation2 + $0x3b] sm:$0xff] %vm4239_vm13, %v2495_v8  ;;  %v3023_v26 = vpop.f32.mrb[37].mxu1  ;;  %v2944_v48 = vpack.c.bf16 (%p454_p4), %v2514_v46, %v2514_v46  ;;  %vm4253_vm13 = vmmov (%p454_p4), %vm4251_vm1 }
 0x2d7   : >> { %v2496_v25 = vsel %vm3688_vm11, %v2466_v10, 0.0  ;;  %v3024_v18 = vadd.f32 %v3023_v26, %v3022_v16  ;;  %v3025_v31 = vpop.f32.mrb[38].mxu1  ;;  %v2515_v15 = vld [vmem:[#allocation2 + $0x30] sm:$0xff] (%p454_p4)  ;;  %vm4248_vm11 = vmmov (%p454_p4), %vm4246_vm3  ;;  %2593 = vst.msk [vmem:[%s3475_s26 + $0x34] sm:$0x3] (%p454_p4), %vm2592_vm5, %v2952_v6 }
 0x2d8   : >> { %2506 = vst.msk [vmem:[#allocation2 + $0x43] sm:$0xff] %vm4240_vm2, %v2496_v25  ;;  %v3026_v17 = vpop.f32.mrb[39].mxu1  ;;  %v2945_v50 = vpack.c.bf16 (%p454_p4), %v2515_v15, %v2515_v15  ;;  %vm4254_vm2 = vmmov (%p454_p4), %vm4251_vm1 }
 0x2d9   : >> { %v2453_v32 = vadd.f32 %v3024_v18, %v4067_v24  ;;  %v3027_v33 = vadd.f32 %v3026_v17, %v3025_v31  ;;  %2584 = vst.msk [vmem:[%s3475_s26 + $0x14] sm:$0xf] (%p454_p4), %vm4247_vm7, %v2944_v48 }
 0x2da   : > { %456 = sbr.rel (!%p454_p4) target bundleno = 43 (0x2b), region = 89  ;;  %2585 = vst.msk [vmem:[%s3475_s26 + $0x18] sm:$0xf] (%p454_p4), %vm4248_vm11, %v2945_v50 }
 0x2db   : >> { %v2467_v34 = vadd.f32 %v3398_v4, %v2453_v32  ;;  %v2456_v35 = vadd.f32 %v3027_v33, %v4067_v24  ;;  %v2510_v24 = vld [vmem:[#allocation2 + $0x8] sm:$0xff] (%p454_p4)  ;;  %2591 = vst.msk [vmem:[%s3475_s26 + $0x30] sm:$0xf] (%p454_p4), %vm4254_vm2, %v2951_v61 }
 0x2dc   : > { %v2940_v37 = vpack.c.bf16 (%p454_p4), %v2510_v24, %v2510_v24 }
 0x2dd   : >> { %v2497_v43 = vsel %vm3692_vm6, %v2467_v34, 0.0  ;;  %v2468_v42 = vadd.f32 %v3399_v60, %v2456_v35  ;;  %v2516_v49 = vld [vmem:[#allocation2 + $0x38] sm:$0xff] (%p454_p4)  ;;  %vm4249_vm6 = vmmov (%p454_p4), %vm4246_vm3 }
 0x2de   : >> { %2507 = vst.msk [vmem:[#allocation2 + $0x4b] sm:$0xff] %vm4200_vm0, %v2497_v43  ;;  %v2946_v51 = vpack.c.bf16 (%p454_p4), %v2516_v49, %v2516_v49 }
 0x2df   : >> { %v2498_v7 = vsel %vm3696_vm14, %v2468_v42, 0.0  ;;  %v2517_v1 = vld [vmem:[#allocation2 + $0x40] sm:$0xff] (%p454_p4)  ;;  %2580 = vst.msk [vmem:[%s3475_s26 + $0x4] sm:$0xf] (%p454_p4), %vm4243_vm12, %v2940_v37  ;;  %vm4250_vm14 = vmmov (%p454_p4), %vm4246_vm3 }
 0x2e0   : >> { %2508 = vst.msk [vmem:[#allocation2 + $0x53] sm:$0xff] %vm4241_vm9, %v2498_v7  ;;  %v2947_v52 = vpack.c.bf16 (%p454_p4), %v2517_v1, %v2517_v1 }
 0x2e1   : > { %2586 = vst.msk [vmem:[%s3475_s26 + $0x1c] sm:$0xf] %vm4249_vm6, %v2946_v51 }
 0x2e2   : > { %2587 = vst.msk [vmem:[%s3475_s26 + $0x20] sm:$0xf] %vm4250_vm14, %v2947_v52 }
 0x2e5   : > { %v2518_v53 = vld [vmem:[#allocation2 + $0x48] sm:$0xff] }
 0x2e6   : > { %v2948_v56 = vpack.c.bf16 %v2518_v53, %v2518_v53 }
 0x2e7   : > { %v2519_v54 = vld [vmem:[#allocation2 + $0x50] sm:$0xff]  ;;  %v2520_v55 = vld [vmem:[#allocation2 + $0x58] sm:$0xff] }
 0x2e8   : > { %v2949_v57 = vpack.c.bf16 %v2519_v54, %v2519_v54  ;;  %v2950_v58 = vpack.c.bf16 %v2520_v55, %v2520_v55  ;;  %2588 = vst.msk [vmem:[%s3475_s26 + $0x24] sm:$0xf] %vm4251_vm1, %v2948_v56 }
 0x2ea   : > { %2589 = vst.msk [vmem:[%s3475_s26 + $0x28] sm:$0xf] %vm4252_vm15, %v2949_v57 }
 0x2eb   : > { %2590 = vst.msk [vmem:[%s3475_s26 + $0x2c] sm:$0xf] %vm4253_vm13, %v2950_v58 }
 0x2ec PF: > { %s15_s18 = sadd.s32 1, %s3410_s18  }
 0x2ed   : > { %p12_p5 = scmp.ge.s32.totalorder %s15_s18, 4  }
 0x2ef   :  { %14 = sbr.rel (!%p12_p5) target bundleno = 1 (0x1), region = 100 }

</bundles_post_ra>
